<compile_context>
chip_gen: v7x
topology: tpu7x:2x2x1
jax: 0.10.0
libtpu: 0.0.40
codegen_flags: <defaults>
</compile_context>

<pallas_src>
import jax
import jax.numpy as jnp
from jax import lax
from jax.experimental import pallas as pl
from jax.experimental.pallas import tpu as pltpu

FOURIER_FREQS = 8
TEMPERATURE = 100.0
POS_DIM = FOURIER_FREQS * 2 * 2          # 32
H1, H2, H3 = 128, 256, 512
GRID_HW = 8
N_CELLS = GRID_HW * GRID_HW              # 64
DOWNSAMPLE = 64


# ---------------------------------------------------------------------------
# Fused kernel: Fourier (sin-only, VPU/EUP) + 3-layer MLP (MXU) +
#               in-VMEM one-hot + batched scatter matmul (MXU) -> (BT, 512, 64)
# ---------------------------------------------------------------------------
def fused_kernel(coords_ref, cell_ref, table_ref,
                 w1_ref, b1_ref, w2_ref, b2_ref, w3_ref, b3_ref, out_ref):
    # ---- Fourier features: feat[m, k] = sin(x0*mul0[k] + x1*mul1[k] + off[k]) ----
    # cos slots carry a +pi/2 phase offset (halves EUP transcendentals).
    coords = coords_ref[...]                                   # (PT, 2) f32
    x0 = coords[:, 0:1]                                        # (PT, 1)
    x1 = coords[:, 1:2]
    mul0 = table_ref[0:1, :]                                   # (1, 32)
    mul1 = table_ref[1:2, :]
    off = table_ref[2:3, :]
    feat = jnp.sin(x0 * mul0 + x1 * mul1 + off)                # (PT, 32) f32

    # ---- 3-layer MLP with SiLU (f32 accumulation on MXU) ----
    def dense(x, w_ref, b_ref):
        w = w_ref[...]
        return jnp.dot(x.astype(w.dtype), w,
                       preferred_element_type=jnp.float32) + b_ref[...]

    h = dense(feat, w1_ref, b1_ref)
    h = h * jax.nn.sigmoid(h)                                  # SiLU, f32 (v5e-friendly)
    h = dense(h, w2_ref, b2_ref)
    h = h * jax.nn.sigmoid(h)
    emb = dense(h, w3_ref, b3_ref)                             # (PT, 512) f32

    # ---- Scatter-add into the 8x8 grid as a batched (over BT) matmul over NP points ----
    bt, np_ = cell_ref.shape                                   # (BT, NP), NP % 8 == 0
    cell = cell_ref[...]                                       # int32, -1 => padded/invalid
    cell_iota = lax.broadcasted_iota(jnp.int32, (bt, np_, N_CELLS), 2)
    scatter_dtype = w1_ref.dtype                               # bf16 when use_bf16, else f32
    onehot = (cell_iota == cell[:, :, None]).astype(scatter_dtype)      # (BT, NP, 64)
    emb3 = emb.reshape(bt, np_, H3).astype(scatter_dtype)      # free reshape (NP % 8 == 0)

    # out[b, d, c] = sum_n emb3[b, n, d] * onehot[b, n, c]  -> (BT, 512, 64)
    out = lax.dot_general(emb3, onehot,
                          dimension_numbers=(((1,), (1,)), ((0,), (0,))),
                          preferred_element_type=jnp.float32)
    out_ref[...] = out.astype(out_ref.dtype)


def _choose_batch_tile(np_points, n_batches, out_itemsize, target_rows=256):
    """Batches per grid step.

    Aims for >= target_rows MXU rows per step, but caps at ~half the real batch count
    (no padding tiny inputs, keeps >= 2 grid tiles for v7x dual-TC), caps so the
    double-buffered (BT, 512, 64) output blocks stay <= ~8 MiB, and rounds up to a
    multiple of 8 (sublane alignment for the cell-index block and free reshapes).
    """
    bt = max(1, -(-target_rows // np_points))
    bt = min(bt, max(1, -(-n_batches // 2)))
    vmem_cap = max(8, (8 * 1024 * 1024) // (2 * H3 * N_CELLS * out_itemsize))
    bt = min(bt, vmem_cap)
    return max(8, -(-bt // 8) * 8)


# ---------------------------------------------------------------------------
# Wrapper: one pallas_call for the whole forward pass
# ---------------------------------------------------------------------------
def drag_position_net(drags_start, drags_end, params, *, use_bf16=False,
                      out_dtype=jnp.float32, target_rows=256):
    """Pallas-backed forward pass of DragPositionNet. Returns (B*V, 1024, 8, 8)."""
    w1, b1, w2, b2, w3, b3 = params
    if use_bf16:                                   # bf16 MXU inputs, f32 accumulation
        w1, w2, w3 = (w.astype(jnp.bfloat16) for w in (w1, w2, w3))

    B, V, N, _ = drags_start.shape
    BV = B * V
    BV2 = 2 * BV
    # Interleave start/end along the batch axis ([s0, e0, s1, e1, ...]) so the final
    # channel concat becomes a free reshape of the kernel output.
    coords = jnp.stack([drags_start.reshape(BV, N, 2).astype(jnp.float32),
                        drags_end.reshape(BV, N, 2).astype(jnp.float32)],
                       axis=1).reshape(BV2, N, 2)

    NP = -(-N // 8) * 8                            # points padded to a sublane multiple
    BT = _choose_batch_tile(NP, BV2, jnp.dtype(out_dtype).itemsize, target_rows)
    n_tiles = -(-BV2 // BT)
    BVp = n_tiles * BT
    PT = BT * NP                                   # MXU rows per grid step

    # Cell index per point. Truncating int cast + //64 matches the PyTorch int(x)//64 for
    # the assumed non-negative pixel coordinates; out-of-range cells are dropped (-1).
    cell_xy = coords.astype(jnp.int32) // DOWNSAMPLE
    flat_cell = cell_xy[..., 0] * GRID_HW + cell_xy[..., 1]                 # (BV2, N)
    flat_cell = jnp.where((flat_cell >= 0) & (flat_cell < N_CELLS), flat_cell, -1)

    # Pad batches -> BVp and points -> NP; padded entries get cell=-1 (all-zero one-hot row).
    coords_p = jnp.zeros((BVp, NP, 2), jnp.float32).at[:BV2, :N].set(coords)
    cell_p = jnp.full((BVp, NP), -1, jnp.int32).at[:BV2, :N].set(flat_cell)
    coords_flat = coords_p.reshape(BVp * NP, 2)

    # Fourier phase table: column k = 4*f + j -> [sin(f x0), sin(f x1), cos(f x0), cos(f x1)]
    freqs = TEMPERATURE ** (jnp.arange(FOURIER_FREQS, dtype=jnp.float32) / FOURIER_FREQS)
    f_rep = jnp.repeat(freqs, 4)                                            # (32,)
    j = jnp.tile(jnp.arange(4), FOURIER_FREQS)                              # (32,)
    table = jnp.stack([jnp.where(j % 2 == 0, f_rep, 0.0),
                       jnp.where(j % 2 == 1, f_rep, 0.0),
                       jnp.where(j >= 2, jnp.pi / 2, 0.0)],
                      axis=0).astype(jnp.float32)                           # (3, 32)

    out = pl.pallas_call(
        fused_kernel,
        out_shape=jax.ShapeDtypeStruct((BVp, H3, N_CELLS), out_dtype),
        grid=(n_tiles,),
        in_specs=[
            pl.BlockSpec((PT, 2), lambda i: (i, 0)),            # coords
            pl.BlockSpec((BT, NP), lambda i: (i, 0)),           # cell indices
            pl.BlockSpec((3, POS_DIM), lambda i: (0, 0)),       # Fourier table (constant)
            pl.BlockSpec((POS_DIM, H1), lambda i: (0, 0)),      # weights (constant index
            pl.BlockSpec((1, H1), lambda i: (0, 0)),            #  maps -> DMA'd once)
            pl.BlockSpec((H1, H2), lambda i: (0, 0)),
            pl.BlockSpec((1, H2), lambda i: (0, 0)),
            pl.BlockSpec((H2, H3), lambda i: (0, 0)),
            pl.BlockSpec((1, H3), lambda i: (0, 0)),
        ],
        out_specs=pl.BlockSpec((BT, H3, N_CELLS), lambda i: (i, 0, 0)),
        compiler_params=pltpu.CompilerParams(
            # NOTE: on v7x, if xprof shows single-core execution, switch this axis to
            # pltpu.CORE_PARALLEL; "parallel" + n_tiles >= 2 is the portable default.
            dimension_semantics=("parallel",),
            vmem_limit_bytes=32 * 1024 * 1024),
    )(coords_flat, cell_p, table, w1, b1, w2, b2, w3, b3)

    # (BVp, 512, 64) interleaved -> (BV, 1024, 8, 8): pure (free) reshape, no transpose/concat.
    return out[:BV2].reshape(BV, 2 * H3, GRID_HW, GRID_HW)


# ---------------------------------------------------------------------------
# Deterministic parameter init (PyTorch nn.Linear-style uniform bounds)
# ---------------------------------------------------------------------------
def init_params(key):
    keys = jax.random.split(key, 6)

    def linear(kw, kb, fan_in, fan_out):
        bound = 1.0 / jnp.sqrt(jnp.float32(fan_in))
        w = jax.random.uniform(kw, (fan_in, fan_out), jnp.float32, -bound, bound)
        b = jax.random.uniform(kb, (1, fan_out), jnp.float32, -bound, bound)
        return w, b

    w1, b1 = linear(keys[0], keys[1], POS_DIM, H1)
    w2, b2 = linear(keys[2], keys[3], H1, H2)
    w3, b3 = linear(keys[4], keys[5], H2, H3)
    return (w1, b1, w2, b2, w3, b3)


# ---------------------------------------------------------------------------
# Pure-JAX reference (mirrors the PyTorch forward) for a correctness check
# ---------------------------------------------------------------------------
def reference(drags_start, drags_end, params):
    w1, b1, w2, b2, w3, b3 = params
    B, V, N, _ = drags_start.shape
    BV = B * V
    freqs = TEMPERATURE ** (jnp.arange(FOURIER_FREQS, dtype=jnp.float32) / FOURIER_FREQS)

    def fourier(x):
        outs = []
        for f in range(FOURIER_FREQS):
            outs.append(jnp.sin(freqs[f] * x))
            outs.append(jnp.cos(freqs[f] * x))
        return jnp.concatenate(outs, axis=-1)

    def mlp(x):
        h = jax.nn.silu(x @ w1 + b1)
        h = jax.nn.silu(h @ w2 + b2)
        return h @ w3 + b3

    def process(drags):
        d = drags.reshape(BV, N, 2)
        emb = mlp(fourier(d.reshape(BV * N, 2))).reshape(BV, N, H3)
        merged = jnp.zeros((BV, H3, GRID_HW, GRID_HW), jnp.float32)
        idx = d.astype(jnp.int32) // DOWNSAMPLE
        for i in range(BV):
            for j in range(N):
                merged = merged.at[i, :, idx[i, j, 0], idx[i, j, 1]].add(emb[i, j])
        return merged

    return jnp.concatenate([process(drags_start), process(drags_end)], axis=1)


if __name__ == "__main__":
    key = jax.random.PRNGKey(0)
    kp, ks, ke = jax.random.split(key, 3)

    B, V, N = 2, 2, 4                                   # num_drags = 4
    params = init_params(kp)
    # pixel coordinates in [0, 512) so that // 64 lands in the 8x8 grid
    drags_start = jax.random.uniform(ks, (B, V, N, 2), jnp.float32, 0.0, 512.0)
    drags_end = jax.random.uniform(ke, (B, V, N, 2), jnp.float32, 0.0, 512.0)

    # f32 everywhere for the exactness check; on v6e/v7x set use_bf16=True and/or
    # out_dtype=jnp.bfloat16 for faster MXU passes and half the output writeback.
    out = jax.block_until_ready(drag_position_net(drags_start, drags_end, params))
    assert out.shape == (B * V, 2 * H3, GRID_HW, GRID_HW), out.shape

    ref = jax.block_until_ready(reference(drags_start, drags_end, params))
    if not jnp.allclose(out, ref, atol=1e-2, rtol=1e-2):
        raise AssertionError("Pallas output does not match reference")

    print("KERNEL_OK")
</pallas_src>

<mosaic_0001>
module attributes {stable_mosaic.version = 11 : i64} {
  func.func @fused_kernel(%arg0: i32, %arg1: memref<64x2xf32, #tpu.memory_space<vmem>>, %arg2: memref<8x8xi32, #tpu.memory_space<vmem>>, %arg3: memref<3x32xf32, #tpu.memory_space<vmem>>, %arg4: memref<32x128xf32, #tpu.memory_space<vmem>>, %arg5: memref<1x128xf32, #tpu.memory_space<vmem>>, %arg6: memref<128x256xf32, #tpu.memory_space<vmem>>, %arg7: memref<1x256xf32, #tpu.memory_space<vmem>>, %arg8: memref<256x512xf32, #tpu.memory_space<vmem>>, %arg9: memref<1x512xf32, #tpu.memory_space<vmem>>, %arg10: memref<8x512x64xf32, #tpu.memory_space<vmem>>) attributes {dimension_semantics = [#tpu.dimension_semantics<parallel>], iteration_bounds = array<i64: 1>, scalar_prefetch = 0 : i64, scratch_operands = 0 : i64, tpu.core_type = #tpu.core_type<tc>, window_params = [{transform_indices = @transform_0, window_bounds = array<i64: 64, 2>}, {transform_indices = @transform_1, window_bounds = array<i64: 8, 8>}, {pipeline_mode = #tpu.pipeline_mode<synchronous>, transform_indices = @transform_2, window_bounds = array<i64: 3, 32>}, {pipeline_mode = #tpu.pipeline_mode<synchronous>, transform_indices = @transform_3, window_bounds = array<i64: 32, 128>}, {pipeline_mode = #tpu.pipeline_mode<synchronous>, transform_indices = @transform_4, window_bounds = array<i64: 1, 128>}, {pipeline_mode = #tpu.pipeline_mode<synchronous>, transform_indices = @transform_5, window_bounds = array<i64: 128, 256>}, {pipeline_mode = #tpu.pipeline_mode<synchronous>, transform_indices = @transform_6, window_bounds = array<i64: 1, 256>}, {pipeline_mode = #tpu.pipeline_mode<synchronous>, transform_indices = @transform_7, window_bounds = array<i64: 256, 512>}, {pipeline_mode = #tpu.pipeline_mode<synchronous>, transform_indices = @transform_8, window_bounds = array<i64: 1, 512>}, {transform_indices = @transform_9, window_bounds = array<i64: 8, 512, 64>}]} {
    %c0 = arith.constant 0 : index
    %c0_0 = arith.constant 0 : index
    %0 = vector.load %arg1[%c0, %c0_0] : memref<64x2xf32, #tpu.memory_space<vmem>>, vector<64x2xf32>
    %1 = vector.extract_strided_slice %0 {offsets = [0, 0], sizes = [64, 1], strides = [1, 1]} : vector<64x2xf32> to vector<64x1xf32>
    %2 = vector.extract_strided_slice %0 {offsets = [0, 1], sizes = [64, 1], strides = [1, 1]} : vector<64x2xf32> to vector<64x1xf32>
    %c0_1 = arith.constant 0 : index
    %c0_2 = arith.constant 0 : index
    %3 = vector.load %arg3[%c0_1, %c0_2] : memref<3x32xf32, #tpu.memory_space<vmem>>, vector<1x32xf32>
    %c1 = arith.constant 1 : index
    %c0_3 = arith.constant 0 : index
    %4 = vector.load %arg3[%c1, %c0_3] : memref<3x32xf32, #tpu.memory_space<vmem>>, vector<1x32xf32>
    %c2 = arith.constant 2 : index
    %c0_4 = arith.constant 0 : index
    %5 = vector.load %arg3[%c2, %c0_4] : memref<3x32xf32, #tpu.memory_space<vmem>>, vector<1x32xf32>
    %6 = vector.broadcast %1 : vector<64x1xf32> to vector<64x32xf32>
    %7 = vector.broadcast %3 : vector<1x32xf32> to vector<64x32xf32>
    %8 = arith.mulf %6, %7 : vector<64x32xf32>
    %9 = vector.broadcast %2 : vector<64x1xf32> to vector<64x32xf32>
    %10 = vector.broadcast %4 : vector<1x32xf32> to vector<64x32xf32>
    %11 = arith.mulf %9, %10 : vector<64x32xf32>
    %12 = arith.addf %8, %11 : vector<64x32xf32>
    %13 = vector.broadcast %5 : vector<1x32xf32> to vector<64x32xf32>
    %14 = arith.addf %12, %13 : vector<64x32xf32>
    %15 = math.sin %14 : vector<64x32xf32>
    %c0_5 = arith.constant 0 : index
    %c0_6 = arith.constant 0 : index
    %16 = vector.load %arg4[%c0_5, %c0_6] : memref<32x128xf32, #tpu.memory_space<vmem>>, vector<32x128xf32>
    %cst = arith.constant dense<0.000000e+00> : vector<64x128xf32>
    %17 = tpu.matmul %15, %16, %cst {dimension_numbers = #tpu.dot_dimension_numbers<[1], [0], [0], [1], [0, 0, 1, 1], [], []>} : vector<64x32xf32>, vector<32x128xf32>, vector<64x128xf32> -> vector<64x128xf32>
    %c0_7 = arith.constant 0 : index
    %c0_8 = arith.constant 0 : index
    %18 = vector.load %arg5[%c0_7, %c0_8] : memref<1x128xf32, #tpu.memory_space<vmem>>, vector<1x128xf32>
    %19 = vector.broadcast %18 : vector<1x128xf32> to vector<64x128xf32>
    %20 = arith.addf %17, %19 : vector<64x128xf32>
    %21 = arith.negf %20 : vector<64x128xf32>
    %22 = math.exp %21 : vector<64x128xf32>
    %cst_9 = arith.constant 1.000000e+00 : f32
    %23 = vector.broadcast %cst_9 : f32 to vector<64x128xf32>
    %24 = arith.addf %23, %22 : vector<64x128xf32>
    %25 = arith.divf %23, %24 : vector<64x128xf32>
    %26 = arith.mulf %20, %25 : vector<64x128xf32>
    %c0_10 = arith.constant 0 : index
    %c0_11 = arith.constant 0 : index
    %27 = vector.load %arg6[%c0_10, %c0_11] : memref<128x256xf32, #tpu.memory_space<vmem>>, vector<128x256xf32>
    %cst_12 = arith.constant dense<0.000000e+00> : vector<64x256xf32>
    %28 = tpu.matmul %26, %27, %cst_12 {dimension_numbers = #tpu.dot_dimension_numbers<[1], [0], [0], [1], [0, 0, 1, 1], [], []>} : vector<64x128xf32>, vector<128x256xf32>, vector<64x256xf32> -> vector<64x256xf32>
    %c0_13 = arith.constant 0 : index
    %c0_14 = arith.constant 0 : index
    %29 = vector.load %arg7[%c0_13, %c0_14] : memref<1x256xf32, #tpu.memory_space<vmem>>, vector<1x256xf32>
    %30 = vector.broadcast %29 : vector<1x256xf32> to vector<64x256xf32>
    %31 = arith.addf %28, %30 : vector<64x256xf32>
    %32 = arith.negf %31 : vector<64x256xf32>
    %33 = math.exp %32 : vector<64x256xf32>
    %cst_15 = arith.constant 1.000000e+00 : f32
    %34 = vector.broadcast %cst_15 : f32 to vector<64x256xf32>
    %35 = arith.addf %34, %33 : vector<64x256xf32>
    %36 = arith.divf %34, %35 : vector<64x256xf32>
    %37 = arith.mulf %31, %36 : vector<64x256xf32>
    %c0_16 = arith.constant 0 : index
    %c0_17 = arith.constant 0 : index
    %38 = vector.load %arg8[%c0_16, %c0_17] : memref<256x512xf32, #tpu.memory_space<vmem>>, vector<256x512xf32>
    %cst_18 = arith.constant dense<0.000000e+00> : vector<64x512xf32>
    %39 = tpu.matmul %37, %38, %cst_18 {dimension_numbers = #tpu.dot_dimension_numbers<[1], [0], [0], [1], [0, 0, 1, 1], [], []>} : vector<64x256xf32>, vector<256x512xf32>, vector<64x512xf32> -> vector<64x512xf32>
    %c0_19 = arith.constant 0 : index
    %c0_20 = arith.constant 0 : index
    %40 = vector.load %arg9[%c0_19, %c0_20] : memref<1x512xf32, #tpu.memory_space<vmem>>, vector<1x512xf32>
    %41 = vector.broadcast %40 : vector<1x512xf32> to vector<64x512xf32>
    %42 = arith.addf %39, %41 : vector<64x512xf32>
    %c0_21 = arith.constant 0 : index
    %c0_22 = arith.constant 0 : index
    %43 = vector.load %arg2[%c0_21, %c0_22] : memref<8x8xi32, #tpu.memory_space<vmem>>, vector<8x8xi32>
    %44 = tpu.iota {dimensions = array<i32: 2>} : vector<8x8x64xi32>
    %45 = vector.shape_cast %43 : vector<8x8xi32> to vector<8x8x1xi32>
    %46 = vector.broadcast %45 : vector<8x8x1xi32> to vector<8x8x64xi32>
    %47 = arith.cmpi eq, %44, %46 : vector<8x8x64xi32>
    %48 = arith.extui %47 : vector<8x8x64xi1> to vector<8x8x64xi32>
    %49 = arith.sitofp %48 : vector<8x8x64xi32> to vector<8x8x64xf32>
    %50 = vector.shape_cast %42 : vector<64x512xf32> to vector<8x8x512xf32>
    %cst_23 = arith.constant dense<0.000000e+00> : vector<8x512x64xf32>
    %51 = tpu.matmul %50, %49, %cst_23 {dimension_numbers = #tpu.dot_dimension_numbers<[1], [1], [2], [2], [0, 0, 0, 2, 1, 2], [0], [0]>} : vector<8x8x512xf32>, vector<8x8x64xf32>, vector<8x512x64xf32> -> vector<8x512x64xf32>
    %c0_24 = arith.constant 0 : index
    %c0_25 = arith.constant 0 : index
    %c0_26 = arith.constant 0 : index
    %52 = vector.load %arg10[%c0_24, %c0_25, %c0_26] : memref<8x512x64xf32, #tpu.memory_space<vmem>>, vector<8x512x64xf32>
    tpu.vector_store %arg10[%c0_24, %c0_25, %c0_26], %51 {strides = array<i32>} : memref<8x512x64xf32, #tpu.memory_space<vmem>>, vector<8x512x64xf32>,
    return
  }
  func.func @transform_0(%arg0: i32) -> (i32, i32) {
    %c0_i32 = arith.constant 0 : i32
    %c0_i32_0 = arith.constant 0 : i32
    return %arg0, %c0_i32 : i32, i32
  }
  func.func @transform_1(%arg0: i32) -> (i32, i32) {
    %c0_i32 = arith.constant 0 : i32
    %c0_i32_0 = arith.constant 0 : i32
    return %arg0, %c0_i32 : i32, i32
  }
  func.func @transform_2(%arg0: i32) -> (i32, i32) {
    %c0_i32 = arith.constant 0 : i32
    %c0_i32_0 = arith.constant 0 : i32
    %c0_i32_1 = arith.constant 0 : i32
    return %c0_i32, %c0_i32_0 : i32, i32
  }
  func.func @transform_3(%arg0: i32) -> (i32, i32) {
    %c0_i32 = arith.constant 0 : i32
    %c0_i32_0 = arith.constant 0 : i32
    %c0_i32_1 = arith.constant 0 : i32
    return %c0_i32, %c0_i32_0 : i32, i32
  }
  func.func @transform_4(%arg0: i32) -> (i32, i32) {
    %c0_i32 = arith.constant 0 : i32
    %c0_i32_0 = arith.constant 0 : i32
    %c0_i32_1 = arith.constant 0 : i32
    return %c0_i32, %c0_i32_0 : i32, i32
  }
  func.func @transform_5(%arg0: i32) -> (i32, i32) {
    %c0_i32 = arith.constant 0 : i32
    %c0_i32_0 = arith.constant 0 : i32
    %c0_i32_1 = arith.constant 0 : i32
    return %c0_i32, %c0_i32_0 : i32, i32
  }
  func.func @transform_6(%arg0: i32) -> (i32, i32) {
    %c0_i32 = arith.constant 0 : i32
    %c0_i32_0 = arith.constant 0 : i32
    %c0_i32_1 = arith.constant 0 : i32
    return %c0_i32, %c0_i32_0 : i32, i32
  }
  func.func @transform_7(%arg0: i32) -> (i32, i32) {
    %c0_i32 = arith.constant 0 : i32
    %c0_i32_0 = arith.constant 0 : i32
    %c0_i32_1 = arith.constant 0 : i32
    return %c0_i32, %c0_i32_0 : i32, i32
  }
  func.func @transform_8(%arg0: i32) -> (i32, i32) {
    %c0_i32 = arith.constant 0 : i32
    %c0_i32_0 = arith.constant 0 : i32
    %c0_i32_1 = arith.constant 0 : i32
    return %c0_i32, %c0_i32_0 : i32, i32
  }
  func.func @transform_9(%arg0: i32) -> (i32, i32, i32) {
    %c0_i32 = arith.constant 0 : i32
    %c0_i32_0 = arith.constant 0 : i32
    %c0_i32_1 = arith.constant 0 : i32
    return %arg0, %c0_i32, %c0_i32_0 : i32, i32, i32
  }
}

</mosaic_0001>

<bundles_post_ra>
// kernel: tpu_custom_call.1
= control target key start
LH: loop header
LB: loop body
LE: loop exit
PB: predicated region body
PF: predicated region fallthrough
CT: control target
= control target key end

     0   :  { %14 = vsyncpa [#allocation3], 0  ;;  %s15196_s0 = inlined_call_operand.vmem [shape: f32[64,2], index: 0, kind: input, shape index: {}]   ;;  %s15197_s1 = inlined_call_operand.hbm [shape: s32[8,8], index: 1, kind: input, shape index: {}]   ;;  %s15198_s2 = inlined_call_operand.hbm [shape: f32[3,32], index: 2, kind: input, shape index: {}]   ;;  %s15199_s3 = inlined_call_operand.hbm [shape: f32[32,128], index: 3, kind: input, shape index: {}]   ;;  %s15200_s4 = inlined_call_operand.hbm [shape: f32[1,128], index: 4, kind: input, shape index: {}]   ;;  %s15201_s5 = inlined_call_operand.hbm [shape: f32[128,256], index: 5, kind: input, shape index: {}]   ;;  %s15202_s6 = inlined_call_operand.hbm [shape: f32[1,256], index: 6, kind: input, shape index: {}]   ;;  %s15203_s7 = inlined_call_operand.hbm [shape: f32[256,512], index: 7, kind: input, shape index: {}]   ;;  %s15204_s8 = inlined_call_operand.hbm [shape: f32[1,512], index: 8, kind: input, shape index: {}]   ;;  %s15205_s9 = inlined_call_operand.vmem [shape: f32[8,512,64], index: 9, kind: output, shape index: {}]  }
   0x1   :  { %15 = vsyncpa [#allocation5], 0 }
   0x2   :  { %16 = vsyncpa [#allocation8], 0 }
   0x3   :  { %17 = vsyncpa [#allocation11], 0 }
   0x4   :  { %18 = vsyncpa [#allocation14], 0  ;;  %s10655_s30 = smov [#allocation4]   ;;  %s10656_s11 = smov [#allocation7]  }
   0x5   :  { %s37_s10 = sshll.u32 %s10655_s30, 4  ;;  %s59_s12 = sshll.u32 %s10656_s11, 4  ;;  %s38_s10 = int_to_ptr.vmem [resolvable:$true] %s37_s10  ;;  %s60_s12 = int_to_ptr.vmem [resolvable:$true] %s59_s12 }
   0x6   :  { %s10469_s15 = scalar_lea.hbm %s15198_s2, 64 }
   0x7   :  { %p10470_p0 = scmp.ne.s32.totalorder %s15198_s2, %s10469_s15  ;;  %p10473_p1 = scmp.lt.u32.totalorder %s10469_s15, %s15198_s2 }
   0x9   :  { %p10475_p2 = pnand %p10473_p1, %p10470_p0 }
   0xb   :  { %10478 = shalt.err (!%p10475_p2)
}
   0xc   :  { %s10479_s20 = scalar_lea.vmem %s38_s10, 64  ;;  %p10484_p4 = scmp.lt.s32.totalorder %s38_s10, %s38_s10 }
   0xd   :  { %p10480_p3 = scmp.ne.s32.totalorder %s38_s10, %s10479_s20  ;;  %p10485_p5 = scmp.lt.s32.totalorder %s10479_s20, %s10479_s20 }
   0xf   :  { %p10486_p6 = por %p10485_p5, %p10484_p4 }
  0x11   :  { %p10487_p7 = pnand %p10486_p6, %p10480_p3 }
  0x13   :  { %10490 = shalt.err (!%p10487_p7)
}
  0x14   :  { %40 = dma.hbm_to_vmem [thread:$0]  %s15198_s2, 64, %s38_s10, [#allocation5]  }
  0x15   :  { %s10491_s25 = scalar_lea.hbm %s15200_s4, 16 }
  0x16   :  { %p10492_p8 = scmp.ne.s32.totalorder %s15200_s4, %s10491_s25  ;;  %p10495_p9 = scmp.lt.u32.totalorder %s10491_s25, %s15200_s4 }
  0x18   :  { %p10497_p10 = pnand %p10495_p9, %p10492_p8 }
  0x1a   :  { %10500 = shalt.err (!%p10497_p10)
}
  0x1b   :  { %s10501_s30 = scalar_lea.vmem %s60_s12, 16  ;;  %s10505_s11 = scalar_lea.vmem %s60_s12, 32 }
  0x1c   :  { %p10502_p11 = scmp.ne.s32.totalorder %s60_s12, %s10501_s30  ;;  %p10506_p12 = scmp.lt.s32.totalorder %s60_s12, %s60_s12 }
  0x1d   :  { %p10507_p13 = scmp.lt.s32.totalorder %s10505_s11, %s10501_s30 }
  0x1f   :  { %p10508_p0 = por %p10507_p13, %p10506_p12 }
  0x21   :  { %p10509_p1 = pnand %p10508_p0, %p10502_p11 }
  0x23   :  { %10512 = shalt.err (!%p10509_p1)
}
  0x24   :  { %62 = dma.hbm_to_vmem [thread:$0]  %s15200_s4, 16, %s60_s12, [#allocation8]  }
  0x25   :  { %s10657_s13 = smov [#allocation10]   ;;  %s10658_s15 = smov [#allocation2]  }
  0x26   :  { %s81_s14 = sshll.u32 %s10657_s13, 4  ;;  %s27_s16 = sshll.u32 %s10658_s15, 4  ;;  %s82_s14 = int_to_ptr.vmem [resolvable:$true] %s81_s14  ;;  %s28_s16 = int_to_ptr.vmem [resolvable:$true] %s27_s16 }
  0x27   :  { %s10513_s19 = scalar_lea.hbm %s15202_s6, 32 }
  0x28   :  { %p10514_p2 = scmp.ne.s32.totalorder %s15202_s6, %s10513_s19  ;;  %p10517_p3 = scmp.lt.u32.totalorder %s10513_s19, %s15202_s6 }
  0x2a   :  { %p10519_p4 = pnand %p10517_p3, %p10514_p2 }
  0x2c   :  { %10522 = shalt.err (!%p10519_p4)
}
  0x2d   :  { %s10523_s4 = scalar_lea.vmem %s82_s14, 32  ;;  %p10528_p6 = scmp.lt.s32.totalorder %s82_s14, %s82_s14 }
  0x2e   :  { %p10524_p5 = scmp.ne.s32.totalorder %s82_s14, %s10523_s4  ;;  %p10529_p7 = scmp.lt.s32.totalorder %s10523_s4, %s10523_s4 }
  0x30   :  { %p10530_p8 = por %p10529_p7, %p10528_p6 }
  0x32   :  { %p10531_p9 = pnand %p10530_p8, %p10524_p5 }
  0x34   :  { %10534 = shalt.err (!%p10531_p9)
}
  0x35   :  { %84 = dma.hbm_to_vmem [thread:$0]  %s15202_s6, 32, %s82_s14, [#allocation11]  }
  0x36   :  { %s10535_s27 = scalar_lea.hbm %s15197_s1, 128 }
  0x37   :  { %p10536_p10 = scmp.ne.s32.totalorder %s15197_s1, %s10535_s27  ;;  %p10539_p11 = scmp.lt.u32.totalorder %s10535_s27, %s15197_s1 }
  0x39   :  { %p10541_p12 = pnand %p10539_p11, %p10536_p10 }
  0x3b   :  { %10544 = shalt.err (!%p10541_p12)
}
  0x3c   :  { %s10545_s2 = scalar_lea.vmem %s28_s16, 128  ;;  %p10550_p0 = scmp.lt.s32.totalorder %s28_s16, %s28_s16 }
  0x3d   :  { %p10546_p13 = scmp.ne.s32.totalorder %s28_s16, %s10545_s2  ;;  %p10551_p1 = scmp.lt.s32.totalorder %s10545_s2, %s10545_s2 }
  0x3f   :  { %p10552_p2 = por %p10551_p1, %p10550_p0 }
  0x41   :  { %p10553_p3 = pnand %p10552_p2, %p10546_p13 }
  0x43   :  { %10556 = shalt.err (!%p10553_p3)
}
  0x44   :  { %30 = dma.hbm_to_vmem [thread:$0]  %s15197_s1, 128, %s28_s16, [#allocation3]  }
  0x45   :  { %s10659_s13 = smov [#allocation6]   ;;  %s10557_s18 = scalar_lea.hbm %s15199_s3, 512 }
  0x46   :  { %s46_s14 = sshll.u32 %s10659_s13, 4  ;;  %p10558_p4 = scmp.ne.s32.totalorder %s15199_s3, %s10557_s18  ;;  %s47_s14 = int_to_ptr.vmem [resolvable:$true] %s46_s14 }
  0x47   :  { %p10561_p5 = scmp.lt.u32.totalorder %s10557_s18, %s15199_s3 }
  0x49   :  { %p10563_p6 = pnand %p10561_p5, %p10558_p4 }
  0x4b   :  { %10566 = shalt.err (!%p10563_p6)
}
  0x4c   :  { %s10567_s23 = scalar_lea.vmem %s47_s14, 512  ;;  %p10572_p8 = scmp.lt.s32.totalorder %s47_s14, %s47_s14 }
  0x4d   :  { %p10568_p7 = scmp.ne.s32.totalorder %s47_s14, %s10567_s23  ;;  %p10573_p9 = scmp.lt.s32.totalorder %s10567_s23, %s10567_s23 }
  0x4f   :  { %p10574_p10 = por %p10573_p9, %p10572_p8 }
  0x51   :  { %p10575_p11 = pnand %p10574_p10, %p10568_p7 }
  0x53   :  { %10578 = shalt.err (!%p10575_p11)
}
  0x54   :  { %s10660_s1 = smov 128   ;;  %s10661_s16 = smov 8  }
  0x55   :  { %52 = dma.hbm_to_vmem [thread:$0]  %s15199_s3, 512, %s47_s14, [#allocation5], %s10660_s1, %s10660_s1, %s10661_s16  }
  0x56   :  { %s10662_s24 = smov [#allocation9]   ;;  %s10579_s28 = scalar_lea.hbm %s15201_s5, 4096 }
  0x57   :  { %s68_s25 = sshll.u32 %s10662_s24, 4  ;;  %p10580_p12 = scmp.ne.s32.totalorder %s15201_s5, %s10579_s28  ;;  %s69_s25 = int_to_ptr.vmem [resolvable:$true] %s68_s25 }
  0x58   :  { %p10583_p13 = scmp.lt.u32.totalorder %s10579_s28, %s15201_s5 }
  0x5a   :  { %p10585_p0 = pnand %p10583_p13, %p10580_p12 }
  0x5c   :  { %10588 = shalt.err (!%p10585_p0)
}
  0x5d   :  { %s10589_s6 = scalar_lea.vmem %s69_s25, 4096  ;;  %p10594_p2 = scmp.lt.s32.totalorder %s69_s25, %s69_s25 }
  0x5e   :  { %p10590_p1 = scmp.ne.s32.totalorder %s69_s25, %s10589_s6  ;;  %p10595_p3 = scmp.lt.s32.totalorder %s10589_s6, %s10589_s6 }
  0x60   :  { %p10596_p4 = por %p10595_p3, %p10594_p2 }
  0x62   :  { %p10597_p5 = pnand %p10596_p4, %p10590_p1 }
  0x64   :  { %10600 = shalt.err (!%p10597_p5)
}
  0x65   :  { %s10663_s3 = smov 256   ;;  %s10664_s10 = smov 16  }
  0x66   :  { %74 = dma.hbm_to_vmem [thread:$0]  %s15201_s5, 4096, %s69_s25, [#allocation8], %s10663_s3, %s10663_s3, %s10664_s10  }
  0x67   :  { %s10665_s15 = smov [#allocation12]   ;;  %s10601_s20 = scalar_lea.hbm %s15203_s7, 16384 }
  0x68   :  { %s90_s17 = sshll.u32 %s10665_s15, 4  ;;  %p10602_p6 = scmp.ne.s32.totalorder %s15203_s7, %s10601_s20  ;;  %s91_s17 = int_to_ptr.vmem [resolvable:$true] %s90_s17 }
  0x69   :  { %p10605_p7 = scmp.lt.u32.totalorder %s10601_s20, %s15203_s7 }
  0x6b   :  { %p10607_p8 = pnand %p10605_p7, %p10602_p6 }
  0x6d   :  { %10610 = shalt.err (!%p10607_p8)
}
  0x6e   :  { %s10611_s16 = scalar_lea.vmem %s91_s17, 16384  ;;  %p10616_p10 = scmp.lt.s32.totalorder %s91_s17, %s91_s17 }
  0x6f   :  { %p10612_p9 = scmp.ne.s32.totalorder %s91_s17, %s10611_s16  ;;  %p10617_p11 = scmp.lt.s32.totalorder %s10611_s16, %s10611_s16 }
  0x71   :  { %p10618_p12 = por %p10617_p11, %p10616_p10 }
  0x73   :  { %p10619_p13 = pnand %p10618_p12, %p10612_p9 }
  0x75   :  { %10622 = shalt.err (!%p10619_p13)
}
  0x76   :  { %s10666_s5 = smov 512   ;;  %s10667_s4 = smov 32  }
  0x77   :  { %96 = dma.hbm_to_vmem [thread:$0]  %s15203_s7, 16384, %s91_s17, [#allocation11], %s10666_s5, %s10666_s5, %s10667_s4  }
  0x78   :  { %s10668_s25 = smov [#allocation13]   ;;  %s10623_s29 = scalar_lea.hbm %s15204_s8, 64 }
  0x79   :  { %s103_s26 = sshll.u32 %s10668_s25, 4  ;;  %p10624_p0 = scmp.ne.s32.totalorder %s15204_s8, %s10623_s29  ;;  %s104_s26 = int_to_ptr.vmem [resolvable:$true] %s103_s26 }
  0x7a   :  { %p10627_p1 = scmp.lt.u32.totalorder %s10623_s29, %s15204_s8 }
  0x7c   :  { %p10629_p2 = pnand %p10627_p1, %p10624_p0 }
  0x7e   :  { %10632 = shalt.err (!%p10629_p2)
}
  0x7f   :  { %s10633_s3 = scalar_lea.vmem %s104_s26, 64  ;;  %p10638_p4 = scmp.lt.s32.totalorder %s104_s26, %s104_s26 }
  0x80   :  { %p10634_p3 = scmp.ne.s32.totalorder %s104_s26, %s10633_s3  ;;  %p10639_p5 = scmp.lt.s32.totalorder %s10633_s3, %s10633_s3 }
  0x82   :  { %p10640_p6 = por %p10639_p5, %p10638_p4 }
  0x84   :  { %p10641_p7 = pnand %p10640_p6, %p10634_p3 }
  0x86   :  { %10644 = shalt.err (!%p10641_p7)
}
  0x87   :  { %106 = dma.hbm_to_vmem [thread:$0]  %s15204_s8, 64, %s104_s26, [#allocation14]  }
  0x88   :  { %10645 = dma.done.wait [#allocation3], 128  }
  0x89   :  { %10646 = vsyncadd [#allocation3], 4294967168 }
  0x8a   :  { %10647 = dma.done.wait [#allocation5], 576  }
  0x8b   :  { %10648 = vsyncadd [#allocation5], 4294966720 }
  0x8c   :  { %10649 = dma.done.wait [#allocation8], 4112  }
  0x8d   :  { %10650 = vsyncadd [#allocation8], 4294963184 }
  0x8e   :  { %10651 = dma.done.wait [#allocation11], 16416  }
  0x8f   :  { %10652 = vsyncadd [#allocation11], 4294950880 }
  0x90   :  { %10653 = dma.done.wait [#allocation14], 64  }
  0x91   :  { %10654 = vsyncadd [#allocation14], 4294967232  ;;  %v10669_v0 = vmov 0   ;;  %v132_v1 = vld [vmem:[%s15196_s0 + $0x8] sm:$0xff]  ;;  %v131_v2 = vld [vmem:[%s15196_s0] sm:$0xff]  ;;  %v10670_v3 = vmov 1  }
  0x92   :  { %10338 = vset.pattern.permute.xlu1 %v10669_v0  ;;  %10336 = vset.pattern.permute.xlu0 %v10669_v0  ;;  %v133_v4 = vld [vmem:[%s15196_s0 + $0x10] sm:$0xff]  ;;  %v134_v5 = vld [vmem:[%s15196_s0 + $0x18] sm:$0xff]  ;;  %v135_v6 = vld [vmem:[%s15196_s0 + $0x20] sm:$0xff] }
  0x93   :  { %149 = vperm.xlu1 %10338, %v132_v1   ;;  %144 = vperm.xlu0 %10336, %v131_v2   ;;  %v136_v7 = vld [vmem:[%s15196_s0 + $0x28] sm:$0xff]  ;;  %v137_v8 = vld [vmem:[%s15196_s0 + $0x30] sm:$0xff]  ;;  %v138_v9 = vld [vmem:[%s15196_s0 + $0x38] sm:$0xff] }
  0x94   :  { %v1090_v10 = vld [vmem:[#allocation6] sm:$0xff]  ;;  %v1091_v11 = vld [vmem:[#allocation6 + $0x8] sm:$0xff]  ;;  %v1092_v12 = vld [vmem:[#allocation6 + $0x10] sm:$0xff] }
  0x95   :  { %v10110_v13 = vpack.c.bf16 %v1091_v11, %v1090_v10  ;;  %v1093_v14 = vld [vmem:[#allocation6 + $0x18] sm:$0xff] }
  0x96   :  { %v10114_v15 = vpack.c.bf16 %v1093_v14, %v1092_v12  ;;  %v10849_v18 = vld [vmem:[#allocation4] ss:$0 sm:$0xff]  ;;  %v10851_v19 = vld [vmem:[#allocation4 + $0x1] ss:$0 sm:$0xff]  ;;  %v10857_v26 = vld [vmem:[#allocation4 + $0x2] ss:$0 sm:$0xff] }
  0x97   :  { %10339 = vset.pattern.permute.xlu1 %v10670_v3  ;;  %10337 = vset.pattern.permute.xlu0 %v10670_v3 }
  0x98   :  { %199 = vperm.xlu1 %10339, %v132_v1   ;;  %195 = vperm.xlu0 %10337, %v131_v2  }
  0x99   :  { %10111 = vmatprep.subr.bf16.mxu0 %v10110_v13 }
  0x9a   :  { %10113 = vmatpush3.bf16.msra.mxu0 %v10110_v13 }
  0x9b   :  { %10115 = vmatprep.subr.bf16.mxu0 %v10114_v15 }
  0x9c   :  { %10340 = vset.pattern.permute.xlu1 %v10669_v0  ;;  %203 = vperm.xlu0 %10337, %v133_v4  }
  0x9d   :  { %154 = vperm.xlu1 %10340, %v133_v4  }
  0x9e   :  { %10117 = vmatpush3.bf16.msra.mxu0 %v10114_v15 }
  0xa0   :  { %207 = vperm.xlu0 %10337, %v134_v5  }
  0xa1   :  { %159 = vperm.xlu1 %10340, %v134_v5  }
  0xa4   :  { %211 = vperm.xlu0 %10337, %v135_v6  }
  0xa5   :  { %164 = vperm.xlu1 %10340, %v135_v6  }
  0xa8   :  { %215 = vperm.xlu0 %10337, %v136_v7  }
  0xa9   :  { %169 = vperm.xlu1 %10340, %v136_v7  }
  0xac   :  { %219 = vperm.xlu0 %10337, %v137_v8  }
  0xad   :  { %174 = vperm.xlu1 %10340, %v137_v8  }
  0xb0   :  { %223 = vperm.xlu0 %10337, %v138_v9  }
  0xb1   :  { %179 = vperm.xlu1 %10340, %v138_v9  }
 0x112   :  { %v145_v16 = vpop.permute.xlu0 %144  ;;  %v150_v17 = vpop.permute.xlu1 %149 }
 0x113   :  { %v186_v22 = vmul.f32 %v10849_v18, %v145_v16  ;;  %v187_v23 = vmul.f32 %v10849_v18, %v150_v17 }
 0x117   :  { %v200_v20 = vpop.permute.xlu1 %199  ;;  %v196_v21 = vpop.permute.xlu0 %195 }
 0x118   :  { %v231_v24 = vmul.f32 %v10851_v19, %v200_v20  ;;  %v230_v25 = vmul.f32 %v10851_v19, %v196_v21 }
 0x11a   :  { %v239_v27 = vadd.f32 %v231_v24, %v187_v23  ;;  %v238_v28 = vadd.f32 %v230_v25, %v186_v22 }
 0x11b   :  { %v204_v29 = vpop.permute.xlu0 %203 }
 0x11c   :  { %v10860_v30 = vadd.f32 %v10857_v26, %v239_v27  ;;  %v232_v31 = vmul.f32 %v10851_v19, %v204_v29  ;;  %v155_v32 = vpop.permute.xlu1 %154  ;;  %v10866_v35 = vadd.f32 %v10857_v26, %v238_v28 }
 0x11d   :  { %v188_v33 = vmul.f32 %v10849_v18, %v155_v32 }
 0x11e   :  { %v365_v34 = vand.u32 2139095040, %v10860_v30  ;;  %v261_v44 = vand.u32 2139095040, %v10866_v35  ;;  %v15207_v57 = vand.u32 2147483647, %v10866_v35  ;;  %v15206_v63 = vand.u32 2147483647, %v10860_v30 }
 0x11f   :  { %v240_v36 = vadd.f32 %v232_v31, %v188_v33  ;;  %v208_v37 = vpop.permute.xlu0 %207 }
 0x120   :  { %v366_v38 = vshrl.u32 %v365_v34, 23  ;;  %v233_v39 = vmul.f32 %v10851_v19, %v208_v37  ;;  %v160_v40 = vpop.permute.xlu1 %159  ;;  %v262_v52 = vshrl.u32 %v261_v44, 23  ;;  %v265_v4 = vand.u32 8388607, %v15207_v57 }
 0x121   :  { %v10870_v41 = vadd.f32 %v10857_v26, %v240_v36  ;;  %v189_v42 = vmul.f32 %v10849_v18, %v160_v40  ;;  %v369_v14 = vand.u32 8388607, %v15206_v63  ;;  %v15210_v36 = vmov 2102212464  }
 0x122   :  { %v8185_v43 = vadd.s32 4294967169, %v366_v38  ;;  %v8181_v59 = vadd.s32 4294967169, %v262_v52  ;;  %v266_v13 = vor.u32 8388608, %v265_v4  ;;  %v10673_v44 = vmov 1326507024  }
 0x123   :  { %v469_v45 = vand.u32 2139095040, %v10870_v41  ;;  %v212_v46 = vpop.permute.xlu0 %211  ;;  %v241_v47 = vadd.f32 %v233_v39, %v189_v42  ;;  %v370_v28 = vor.u32 8388608, %v369_v14  ;;  %v15216_v42 = vmov 920167782  }
 0x124   :  { %v165_v48 = vpop.permute.xlu1 %164  ;;  %v372_v49 = vadd.s32 1, %v8185_v43  ;;  %v234_v50 = vmul.f32 %v10851_v19, %v212_v46  ;;  %v268_v7 = vadd.s32 1, %v8181_v59  ;;  %v10904_v27 = vshll.u32 %v266_v13, 8 }
 0x125   :  { %v190_v51 = vmul.f32 %v10849_v18, %v165_v48  ;;  %v470_v53 = vshrl.u32 %v469_v45, 23  ;;  %v10878_v55 = vadd.f32 %v10857_v26, %v241_v47 }
 0x126   :  { %vm373_vm0 = vcmp.gt.s32.totalorder %v372_v49, 0  ;;  %vm269_vm1 = vcmp.gt.s32.totalorder %v268_v7, 0 }
 0x127   :  { %v216_v54 = vpop.permute.xlu0 %215  ;;  %v242_v58 = vadd.f32 %v234_v50, %v190_v51  ;;  %v8189_v61 = vadd.s32 4294967169, %v470_v53  ;;  %v374_v0 = vsel %vm373_vm0, %v372_v49, 0  ;;  %v573_v1 = vand.u32 2139095040, %v10878_v55 }
 0x128   :  { %v170_v56 = vpop.permute.xlu1 %169  ;;  %v235_v60 = vmul.f32 %v10851_v19, %v216_v54  ;;  %v10891_v9 = vand.u32 31, %v374_v0  ;;  %v270_v31 = vsel %vm269_vm1, %v268_v7, 0  ;;  %v10927_v53 = vshrl.u32 %v374_v0, 5 }
 0x129   :  { %v10883_v62 = vadd.f32 %v10857_v26, %v242_v58  ;;  %v191_v2 = vmul.f32 %v10849_v18, %v170_v56  ;;  %v476_v10 = vadd.s32 1, %v8189_v61  ;;  %v574_v11 = vshrl.u32 %v573_v1, 23 }
 0x12a   :  { %v10901_v22 = vsub.s32 32, %v10891_v9  ;;  %v388_v37 = vshll.u32 %v15210_v36, %v10891_v9  ;;  %v10929_v54 = vshrl.u32 %v270_v31, 5  ;;  %v10932_v58 = vshll.u32 %v370_v28, 8 }
 0x12b   :  { %v220_v3 = vpop.permute.xlu0 %219  ;;  %v677_v5 = vand.u32 2139095040, %v10883_v62  ;;  %v243_v8 = vadd.f32 %v235_v60, %v191_v2  ;;  %vm477_vm2 = vcmp.gt.s32.totalorder %v476_v10, 0  ;;  %v8193_v25 = vadd.s32 4294967169, %v574_v11 }
 0x12c   :  { %v175_v6 = vpop.permute.xlu1 %174  ;;  %v236_v17 = vmul.f32 %v10851_v19, %v220_v3  ;;  %v478_v38 = vsel %vm477_vm2, %v476_v10, 0  ;;  %v389_v43 = vshrl.u32 %v15216_v42, %v10901_v22  ;;  %v392_v45 = vshrl.u32 %v10673_v44, %v10901_v22 }
 0x12d   :  { %v678_v12 = vshrl.u32 %v677_v5, 23  ;;  %v10896_v15 = vadd.f32 %v10857_v26, %v243_v8  ;;  %v192_v20 = vmul.f32 %v10849_v18, %v175_v6  ;;  %v580_v47 = vadd.s32 1, %v8193_v25 }
 0x12e   :  { %v10934_v59 = vor.u32 %v389_v43, %v388_v37  ;;  %v272_v61 = vand.u32 31, %v270_v31  ;;  %vm397_vm6 = vcmp.lt.s32.totalorder %v10927_v53, 4  ;;  %v10960_v11 = vshrl.u32 %v478_v38, 5 }
 0x12f   :  { %v8197_v16 = vadd.s32 4294967169, %v678_v12  ;;  %v224_v21 = vpop.permute.xlu0 %223  ;;  %v781_v23 = vand.u32 2139095040, %v10896_v15  ;;  %v244_v39 = vadd.f32 %v236_v17, %v192_v20  ;;  %vm581_vm4 = vcmp.gt.s32.totalorder %v580_v47, 0 }
 0x130   :  { %v180_v24 = vpop.permute.xlu1 %179  ;;  %v237_v34 = vmul.f32 %v10851_v19, %v224_v21  ;;  %v391_v19 = vshll.u32 %v15216_v42, %v10891_v9  ;;  %v273_v10 = vsub.s32 32, %v272_v61  ;;  %v582_v12 = vsel %vm581_vm4, %v580_v47, 0 }
 0x131   :  { %v684_v32 = vadd.s32 1, %v8197_v16  ;;  %v782_v33 = vshrl.u32 %v781_v23, 23  ;;  %v193_v40 = vmul.f32 %v10849_v18, %v180_v24  ;;  %v10920_v49 = vadd.f32 %v10857_v26, %v244_v39 }
 0x132   :  { %v10922_v18 = vand.u32 31, %v478_v38  ;;  %v393_v60 = vor.u32 %v392_v45, %v391_v19  ;;  %v10967_v14 = vsel %vm397_vm6, %v10934_v59, 920167782  ;;  %v10988_v31 = vand.u32 31, %v582_v12 }
 0x133   :  { %vm685_vm3 = vcmp.gt.s32.totalorder %v684_v32, 0  ;;  %v8201_v46 = vadd.s32 4294967169, %v782_v33  ;;  %15235 = vst [vmem:[#allocation20_spill] sm:$0xff] %v10920_v49  ;;  %v245_v52 = vadd.f32 %v237_v34, %v193_v40  ;;  %v885_v56 = vand.u32 2139095040, %v10920_v49 }
 0x134   :  { %v10917_v48 = vsel %vm685_vm3, %v684_v32, 0  ;;  %v10943_v0 = vsub.s32 32, %v10922_v18  ;;  %v492_v16 = vshll.u32 %v15210_v36, %v10922_v18  ;;  %v10973_v17 = vshll.u32 %v15216_v42, %v10922_v18 }
 0x135   :  { %v10925_v50 = vand.u32 31, %v10917_v48  ;;  %v788_v51 = vadd.s32 1, %v8201_v46  ;;  %v886_v2 = vshrl.u32 %v885_v56, 23  ;;  %v10940_v3 = vadd.f32 %v10857_v26, %v245_v52 }
 0x136   :  { %v10980_v21 = vsel %vm397_vm6, %v393_v60, 1326507024  ;;  %v493_v23 = vshrl.u32 %v15216_v42, %v10943_v0  ;;  %v10986_v28 = vshrl.u32 %v10673_v44, %v10943_v0  ;;  %v15212_v37 = vmov 2475754826  }
 0x137   :  { %v10937_v1 = vsub.s32 32, %v10925_v50  ;;  %vm789_vm5 = vcmp.gt.s32.totalorder %v788_v51, 0  ;;  %15236 = vst [vmem:[#allocation21_spill] sm:$0xff] %v10940_v3  ;;  %v10947_v4 = vshll.u32 %v15216_v42, %v10925_v50  ;;  %v8205_v26 = vadd.s32 4294967169, %v886_v2 }
 0x138   :  { %v10953_v6 = vsel %vm789_vm5, %v788_v51, 0  ;;  %v989_v8 = vand.u32 2139095040, %v10940_v3  ;;  %v276_v38 = vshrl.u32 %v15212_v37, %v273_v10  ;;  %v282_v39 = vshrl.u32 %v15210_v36, %v273_v10 }
 0x139   :  { %v10951_v5 = vshrl.u32 %v10673_v44, %v10937_v1  ;;  %v10957_v7 = vand.u32 31, %v10953_v6  ;;  %v892_v24 = vadd.s32 1, %v8205_v26  ;;  %v15208_v45 = vmov 2131351028  }
 0x13a   :  { %v990_v25 = vshrl.u32 %v989_v8, 23  ;;  %v279_v46 = vshrl.u32 %v15208_v45, %v273_v10  ;;  %v285_v19 = vshrl.u32 %v15216_v42, %v273_v10  ;;  %v11006_v47 = vshrl.u32 %v582_v12, 5 }
 0x13b   :  { %v10976_v20 = vsub.s32 32, %v10957_v7  ;;  %v10992_v32 = vshll.u32 %v15216_v42, %v10957_v7  ;;  %vm893_vm7 = vcmp.gt.s32.totalorder %v892_v24, 0  ;;  %v281_v56 = vshll.u32 %v15208_v45, %v272_v61 }
 0x13c   :  { %v8209_v34 = vadd.s32 4294967169, %v990_v25  ;;  %v11002_v43 = vsel %vm893_vm7, %v892_v24, 0  ;;  %v11012_v60 = vor.u32 %v493_v23, %v492_v16  ;;  %v15214_v2 = vmov 683565275  }
 0x13d   :  { %v10996_v33 = vshrl.u32 %v10673_v44, %v10976_v20  ;;  %v11009_v51 = vand.u32 31, %v11002_v43  ;;  %v275_v26 = vshll.u32 %v15214_v2, %v272_v61  ;;  %v278_v8 = vshll.u32 %v15212_v37, %v272_v61 }
 0x13e   :  { %v996_v52 = vadd.s32 1, %v8209_v34  ;;  %v284_v24 = vshll.u32 %v15210_v36, %v272_v61  ;;  %vm501_vm8 = vcmp.lt.s32.totalorder %v10960_v11, 4  ;;  %v11019_v12 = vsub.s32 32, %v10988_v31 }
 0x13f   :  { %v11022_v25 = vsub.s32 32, %v11009_v51  ;;  %v283_v34 = vor.u32 %v282_v39, %v281_v56  ;;  %v288_v63 = vshrl.u32 %v10673_v44, %v273_v10  ;;  %v277_v16 = vor.u32 %v276_v38, %v275_v26 }
 0x140   :  { %vm997_vm9 = vcmp.gt.s32.totalorder %v996_v52, 0  ;;  %v280_v23 = vor.u32 %v279_v46, %v278_v8  ;;  %v286_v40 = vor.u32 %v285_v19, %v284_v24  ;;  %v11027_v13 = vshll.u32 %v15216_v42, %v11009_v51 }
 0x141   :  { %v11031_v57 = vshrl.u32 %v10673_v44, %v11022_v25  ;;  %v11033_v29 = vsel %vm997_vm9, %v996_v52, 0  ;;  %v287_v45 = vshll.u32 %v15216_v42, %v272_v61  ;;  %v497_v39 = vor.u32 %v10986_v28, %v10973_v17 }
 0x142   :  { %15237 = vst [vmem:[#allocation22_spill] sm:$0xff] %v11027_v13  ;;  %15239 = vst [vmem:[#allocation24_spill] sm:$0xff] %v11033_v29  ;;  %v11039_v56 = vand.u32 31, %v11033_v29  ;;  %v274_v38 = vshrl.u32 %v15214_v2, %v273_v10  ;;  %vm293_vm10 = vcmp.lt.s32.totalorder %v10929_v54, 4  ;;  %vm290_vm11 = vcmp.lt.s32.totalorder %v10929_v54, 1 }
 0x143   :  { %15238 = vst [vmem:[#allocation23_spill] sm:$0xff] %v11031_v57  ;;  %v289_v19 = vor.u32 %v288_v63, %v287_v45  ;;  %v295_v52 = vsel %vm293_vm10, %v283_v34, 2102212464  ;;  %v596_v61 = vshll.u32 %v15210_v36, %v10988_v31  ;;  %v597_v17 = vshrl.u32 %v15216_v42, %v11019_v12 }
 0x144   :  { %15240 = vst [vmem:[#allocation25_spill] sm:$0xff] %v11039_v56  ;;  %v11053_v28 = vsub.s32 32, %v11039_v56  ;;  %v298_v10 = vsel %vm290_vm11, %v277_v16, %v280_v23  ;;  %vm291_vm12 = vcmp.lt.s32.totalorder %v10929_v54, 2  ;;  %vm292_vm13 = vcmp.lt.s32.totalorder %v10929_v54, 3 }
 0x145   :  { %v294_v63 = vsel %vm290_vm11, %v274_v38, %v277_v16  ;;  %v299_v45 = vsel %vm293_vm10, %v286_v40, 920167782  ;;  %v11065_v26 = vshll.u32 %v15216_v42, %v11039_v56  ;;  %v296_v24 = vsel %vm292_vm13, %v280_v23, %v295_v52 }
 0x146   :  { %15241 = vst [vmem:[#allocation26_spill] sm:$0xff] %v11053_v28  ;;  %v11069_v8 = vshrl.u32 %v10673_v44, %v11053_v28  ;;  %v300_v46 = vsel %vm292_vm13, %v283_v34, %v299_v45  ;;  %v11073_v36 = vshll.u32 %v15216_v42, %v10988_v31  ;;  %v302_v38 = vsel %vm290_vm11, %v280_v23, %v283_v34 }
 0x147   :  { %15242 = vst [vmem:[#allocation27_spill] sm:$0xff] %v11065_v26  ;;  %v301_v16 = vsel %vm291_vm12, %v298_v10, %v300_v46  ;;  %v303_v37 = vsel %vm293_vm10, %v289_v19, 1326507024  ;;  %v11084_v2 = vsel %vm501_vm8, %v11012_v60, 920167782  ;;  %v600_v52 = vshrl.u32 %v10673_v44, %v11019_v12 }
 0x148   :  { %15243 = vst [vmem:[#allocation28_spill] sm:$0xff] %v11069_v8  ;;  %v304_v42 = vsel %vm292_vm13, %v286_v40, %v303_v37  ;;  %v297_v46 = vsel %vm291_vm12, %v294_v63, %v296_v24  ;;  %v11095_v23 = vmul.u32.u64.low %v10904_v27, %v301_v16  ;;  %v11096_v19 = vmul.u32.u64.high %v10904_v27, %v301_v16, %v11095_v23 }
 0x149   :  { %v305_v34 = vsel %vm291_vm12, %v302_v38, %v304_v42  ;;  %v11101_v10 = vsel %vm501_vm8, %v497_v39, 1326507024  ;;  %v11103_v44 = vor.u32 %v597_v17, %v596_v61  ;;  %vm605_vm14 = vcmp.lt.s32.totalorder %v11006_v47, 4 }
 0x14a   :  { %v11107_v37 = vmul.u32.u64.low %v10904_v27, %v305_v34  ;;  %v11108_v40 = vmul.u32.u64.high %v10904_v27, %v305_v34, %v11107_v37  ;;  %v15244_v54 = vmov 683565275   ;;  %v15245_v63 = vmov 2475754826  }
 0x14b   :  { %v379_v42 = vshll.u32 %v15244_v54, %v10891_v9  ;;  %v380_v24 = vshrl.u32 %v15245_v63, %v10901_v22  ;;  %v382_v16 = vshll.u32 %v15245_v63, %v10891_v9  ;;  %v15246_v39 = vmov 2131351028  }
 0x14c   :  { %v383_v38 = vshrl.u32 %v15246_v39, %v10901_v22  ;;  %v601_v61 = vor.u32 %v600_v52, %v11073_v36  ;;  %v313_v17 = vmul.u32 %v10904_v27, %v297_v46  ;;  %v385_v34 = vshll.u32 %v15246_v39, %v10891_v9 }
 0x14d   :  { %v15247_v37 = vmov 2102212464   ;;  %v316_v3 = vadd.s32 1, %v11096_v19  ;;  %v381_v26 = vor.u32 %v380_v24, %v379_v42  ;;  %vm396_vm15 = vcmp.lt.s32.totalorder %v10927_v53, 3 }
 0x14e   :  { %v386_v45 = vshrl.u32 %v15247_v37, %v10901_v22  ;;  %v384_v8 = vor.u32 %v383_v38, %v382_v16  ;;  %vm315_vm0 = vc.u32 %v11108_v40, %v11095_v23  ;;  %vm394_vm1 = vcmp.lt.s32.totalorder %v10927_v53, 1 }
 0x14f   :  { %v408_v27 = vsel %vm396_vm15, %v10934_v59, %v10980_v21  ;;  %v317_v9 = vsel %vm315_vm0, %v316_v3, %v11096_v19  ;;  %v378_v36 = vshrl.u32 %v15244_v54, %v10901_v22  ;;  %vm395_vm2 = vcmp.lt.s32.totalorder %v10927_v53, 2 }
 0x150   :  { %v387_v28 = vor.u32 %v386_v45, %v385_v34  ;;  %v402_v52 = vsel %vm394_vm1, %v381_v26, %v384_v8  ;;  %v318_v46 = vadd.s32 %v317_v9, %v313_v17  ;;  %v11143_v22 = vshrl.u32 %v10917_v48, 5 }
 0x151   :  { %v398_v16 = vsel %vm394_vm1, %v378_v36, %v381_v26  ;;  %v483_v9 = vshll.u32 %v15244_v54, %v10922_v18  ;;  %v484_v36 = vshrl.u32 %v15245_v63, %v10943_v0  ;;  %vm260_vm3 = vcmp.lt.s32.totalorder %v10866_v35, 0 }
 0x152   :  { %v399_v42 = vsel %vm397_vm6, %v387_v28, 2102212464  ;;  %v404_v24 = vsel %vm396_vm15, %v387_v28, %v10967_v14  ;;  %v406_v45 = vsel %vm394_vm1, %v384_v8, %v387_v28  ;;  %v319_v21 = vadd.s32 536870912, %v318_v46 }
 0x153   :  { %v400_v38 = vsel %vm396_vm15, %v384_v8, %v399_v42  ;;  %v405_v59 = vsel %vm395_vm2, %v402_v52, %v404_v24  ;;  %v409_v3 = vsel %vm395_vm2, %v406_v45, %v408_v27  ;;  %v11152_v14 = vsel %vm605_vm14, %v11103_v44, 920167782 }
 0x154   :  { %v11146_v19 = vmul.u32.u64.low %v10932_v58, %v409_v3  ;;  %v11147_v17 = vmul.u32.u64.high %v10932_v58, %v409_v3, %v11146_v19  ;;  %v11155_v28 = vmul.u32.u64.low %v10932_v58, %v405_v59  ;;  %v11156_v26 = vmul.u32.u64.high %v10932_v58, %v405_v59, %v11155_v28 }
 0x155   :  { %v15248_v8 = vand.u32 2147483647, %v10870_v41  ;;  %v320_v48 = vshrl.u32 %v319_v21, 30  ;;  %v401_v27 = vsel %vm395_vm2, %v398_v16, %v400_v38  ;;  %v486_v52 = vshll.u32 %v15245_v63, %v10922_v18 }
 0x156   :  { %v487_v42 = vshrl.u32 %v15246_v39, %v10943_v0  ;;  %v489_v24 = vshll.u32 %v15246_v39, %v10922_v18  ;;  %v490_v53 = vshrl.u32 %v15247_v37, %v10943_v0  ;;  %v11178_v45 = vsel %vm605_vm14, %v601_v61, 1326507024 }
 0x157   :  { %v473_v34 = vand.u32 8388607, %v15248_v8  ;;  %v700_v16 = vshll.u32 %v15247_v37, %v10925_v50  ;;  %v321_v38 = vshll.u32 %v320_v48, 30  ;;  %vm419_vm4 = vc.u32 %v11147_v17, %v11155_v28 }
 0x158   :  { %v420_v59 = vadd.s32 1, %v11156_v26  ;;  %v485_v3 = vor.u32 %v484_v36, %v483_v9  ;;  %v488_v21 = vor.u32 %v487_v42, %v486_v52  ;;  %v491_v19 = vor.u32 %v490_v53, %v489_v24 }
 0x159   :  { %v15249_v18 = vmov 920167782   ;;  %v11188_v13 = vshrl.u32 %v10953_v6, 5  ;;  %v15250_v61 = vand.u32 2147483647, %v10866_v35  ;;  %v11196_v56 = vsub.s32 %v318_v46, %v321_v38 }
 0x15a   :  { %v701_v8 = vshrl.u32 %v15249_v18, %v10937_v1  ;;  %v417_v49 = vmul.u32 %v10932_v58, %v401_v27  ;;  %v421_v9 = vsel %vm419_vm4, %v420_v59, %v11156_v26  ;;  %v474_v36 = vor.u32 8388608, %v473_v34 }
 0x15b   :  { %vm11192_vm5 = vcmp.le.f32.partialorder %v15250_v61, 0.7853982  ;;  %v482_v52 = vshrl.u32 %v15244_v54, %v10943_v0  ;;  %vm498_vm6 = vcmp.lt.s32.totalorder %v10960_v11, 1  ;;  %v324_v6 = vsub.s32 0, %v11196_v56 }
 0x15c   :  { %v344_v42 = vsub.s32 4, %v320_v48  ;;  %v422_v24 = vadd.s32 %v421_v9, %v417_v49  ;;  %vm500_vm7 = vcmp.lt.s32.totalorder %v10960_v11, 3  ;;  %vm499_vm9 = vcmp.lt.s32.totalorder %v10960_v11, 2 }
 0x15d   :  { %v503_v46 = vsel %vm501_vm8, %v491_v19, 2102212464  ;;  %v506_v58 = vsel %vm498_vm6, %v485_v3, %v488_v21  ;;  %v508_v0 = vsel %vm500_vm7, %v491_v19, %v11084_v2  ;;  %v8182_v26 = vmin.u32 %v324_v6, %v11196_v56 }
 0x15e   :  { %v423_v34 = vadd.s32 536870912, %v422_v24  ;;  %v509_v49 = vsel %vm499_vm9, %v506_v58, %v508_v0  ;;  %v510_v27 = vsel %vm498_vm6, %v488_v21, %v491_v19  ;;  %v11218_v53 = vor.u32 %v701_v8, %v700_v16 }
 0x15f   :  { %v805_v38 = vshrl.u32 %v15249_v18, %v10976_v20  ;;  %v512_v59 = vsel %vm500_vm7, %v11012_v60, %v11101_v10  ;;  %v514_v2 = vshll.u32 %v474_v36, 8  ;;  %v326_v61 = vclz %v8182_v26 }
 0x160   :  { %v345_v9 = vsel %vm260_vm3, %v344_v42, %v320_v48  ;;  %v502_v6 = vsel %vm498_vm6, %v482_v52, %v485_v3  ;;  %v504_v16 = vsel %vm500_vm7, %v488_v21, %v503_v46  ;;  %v11232_v19 = vshrl.u32 %v423_v34, 30 }
 0x161   :  { %v513_v8 = vsel %vm499_vm9, %v510_v27, %v512_v59  ;;  %v11236_v58 = vmul.u32.u64.low %v514_v2, %v509_v49  ;;  %v11237_v0 = vmul.u32.u64.high %v514_v2, %v509_v49, %v11236_v58  ;;  %vm709_vm8 = vcmp.lt.s32.totalorder %v11143_v22, 4 }
 0x162   :  { %v8183_v60 = vadd.s32 4294967294, %v326_v61  ;;  %v11241_v10 = vmul.u32.u64.low %v514_v2, %v513_v8  ;;  %v11242_v48 = vmul.u32.u64.high %v514_v2, %v513_v8, %v11241_v10  ;;  %v804_v3 = vshll.u32 %v15247_v37, %v10957_v7 }
 0x163   :  { %vm813_vm10 = vcmp.lt.s32.totalorder %v11188_v13, 4  ;;  %v347_v21 = vsel %vm11192_vm5, 0, %v345_v9  ;;  %v425_v36 = vshll.u32 %v11232_v19, 30  ;;  %v11253_v52 = vsel %vm709_vm8, %v11218_v53, 920167782 }
 0x164   :  { %v15253_v42 = vor.u32 %v10951_v5, %v10947_v4  ;;  %vm8184_vm11 = vcmp.lt.s32.totalorder %v8183_v60, 0  ;;  %v505_v26 = vsel %vm499_vm9, %v502_v6, %v504_v16  ;;  %v11264_v34 = vor.u32 %v805_v38, %v804_v3 }
 0x165   :  { %v329_v49 = vsel %vm8184_vm11, 0, %v8183_v60  ;;  %v11266_v27 = vsub.s32 %v422_v24, %v425_v36  ;;  %v524_v59 = vadd.s32 1, %v11237_v0  ;;  %v314_v61 = vadd.s32 %v11095_v23, %v11108_v40 }
 0x166   :  { %v11260_v46 = vsel %vm709_vm8, %v15253_v42, 1326507024  ;;  %15254 = vst [vmem:[#allocation29_spill] sm:$0xff] %v11264_v34  ;;  %v330_v9 = vsub.s32 32, %v329_v49  ;;  %v334_v4 = vsub.s32 4294967266, %v329_v49  ;;  %v351_v5 = vadd.s32 3, %v347_v21 }
 0x167   :  { %v428_v8 = vsub.s32 0, %v11266_v27  ;;  %v521_v10 = vmul.u32 %v514_v2, %v505_v26  ;;  %vm523_vm12 = vc.u32 %v11242_v48, %v11236_v58  ;;  %v15230_v11 = vand.u32 2147483647, %v10878_v55 }
 0x168   :  { %v331_v38 = vshll.u32 %v11196_v56, %v329_v49  ;;  %v332_v24 = vshrl.u32 %v314_v61, %v330_v9  ;;  %v335_v6 = vadd.s32 127, %v334_v4  ;;  %vm364_vm13 = vcmp.lt.s32.totalorder %v10860_v30, 0 }
 0x169   :  { %v525_v16 = vsel %vm523_vm12, %v524_v59, %v11237_v0  ;;  %v11281_v23 = vsel %vm813_vm10, %v11264_v34, 920167782  ;;  %v11284_v40 = vshrl.u32 %v11002_v43, 5  ;;  %v8186_v2 = vmin.u32 %v428_v8, %v11266_v27 }
 0x16a   :  { %v526_v60 = vadd.s32 %v525_v16, %v521_v10  ;;  %v15255_v56 = vor.u32 %v10996_v33, %v10992_v32  ;;  %v333_v21 = vor.u32 %v332_v24, %v331_v38  ;;  %v336_v0 = vshll.u32 %v335_v6, 23 }
 0x16b   :  { %v418_v36 = vadd.s32 %v11155_v28, %v11147_v17  ;;  %v11296_v42 = vand.u32 3, %v351_v5  ;;  %v430_v26 = vclz %v8186_v2  ;;  %v588_v43 = vshrl.u32 %v15245_v63, %v11019_v12 }
 0x16c   :  { %v11292_v3 = vsel %vm813_vm10, %v15255_v56, 1326507024  ;;  %v591_v49 = vshrl.u32 %v15246_v39, %v11019_v12  ;;  %v337_v59 = vor.u32 4788187, %v336_v0  ;;  %v448_v32 = vsub.s32 4, %v11232_v19 }
 0x16d   :  { %15256 = vst [vmem:[#allocation30_spill] sm:$0xff] %v11292_v3  ;;  %v527_v33 = vadd.s32 536870912, %v526_v60  ;;  %v577_v61 = vand.u32 8388607, %v15230_v11  ;;  %v15257_v9 = vand.u32 2147483647, %v10860_v30  ;;  %v587_v4 = vshll.u32 %v15244_v54, %v10988_v31 }
 0x16e   :  { %v8187_v28 = vadd.s32 4294967294, %v430_v26  ;;  %v590_v5 = vshll.u32 %v15245_v63, %v10988_v31  ;;  %v594_v8 = vshrl.u32 %v15247_v37, %v11019_v12  ;;  %v338_v10 = vand.u32 2147483647, %v337_v59 }
 0x16f   :  { %vm11307_vm15 = vcmp.le.f32.partialorder %v15257_v9, 0.7853982  ;;  %v340_v38 = vcvt.s32.f32 %v333_v21  ;;  %v528_v24 = vshrl.u32 %v527_v33, 30  ;;  %v593_v6 = vshll.u32 %v15246_v39, %v10988_v31 }
 0x170   :  { %vm8188_vm0 = vcmp.lt.s32.totalorder %v8187_v28, 0  ;;  %vm468_vm1 = vcmp.lt.s32.totalorder %v10870_v41, 0  ;;  %v586_v16 = vshrl.u32 %v15244_v54, %v11019_v12  ;;  %v589_v2 = vor.u32 %v588_v43, %v587_v4 }
 0x171   :  { %v592_v56 = vor.u32 %v591_v49, %v590_v5  ;;  %v341_v0 = vmul.f32 %v340_v38, %v338_v10  ;;  %v433_v26 = vsel %vm8188_vm0, 0, %v8187_v28  ;;  %v529_v9 = vshll.u32 %v528_v24, 30 }
 0x172   :  { %v595_v11 = vor.u32 %v594_v8, %v593_v6  ;;  %v434_v29 = vsub.s32 32, %v433_v26  ;;  %v438_v34 = vsub.s32 4294967266, %v433_v26  ;;  %v449_v21 = vsel %vm364_vm13, %v448_v32, %v11232_v19 }
 0x173   :  { %v578_v59 = vor.u32 8388608, %v577_v61  ;;  %v342_v31 = vxor.u32 2147483648, %v341_v0  ;;  %v15260_v33 = vand.u32 2147483647, %v10870_v41  ;;  %v11331_v12 = vsub.s32 %v526_v60, %v529_v9 }
 0x174   :  { %vm602_vm4 = vcmp.lt.s32.totalorder %v11006_v47, 1  ;;  %vm604_vm6 = vcmp.lt.s32.totalorder %v11006_v47, 3  ;;  %v435_v43 = vshll.u32 %v11266_v27, %v433_v26  ;;  %v436_v49 = vshrl.u32 %v418_v36, %v434_v29 }
 0x175   :  { %vm11327_vm2 = vcmp.le.f32.partialorder %v15260_v33, 0.7853982  ;;  %v439_v28 = vadd.s32 127, %v438_v34  ;;  %v552_v4 = vsub.s32 4, %v528_v24  ;;  %v343_v19 = vsel %vm260_vm3, %v342_v31, %v341_v0 }
 0x176   :  { %v532_v32 = vsub.s32 0, %v11331_v12  ;;  %v607_v61 = vsel %vm605_vm14, %v595_v11, 2102212464  ;;  %v610_v60 = vsel %vm602_vm4, %v589_v2, %v592_v56  ;;  %v346_v5 = vsel %vm11192_vm5, %v10866_v35, %v343_v19 }
 0x177   :  { %v437_v8 = vor.u32 %v436_v49, %v435_v43  ;;  %v440_v27 = vshll.u32 %v439_v28, 23  ;;  %v612_v29 = vsel %vm604_vm6, %v595_v11, %v11152_v14  ;;  %10341 = vcosq.f32 %v346_v5 }
 0x178   :  { %v451_v34 = vsel %vm11307_vm15, 0, %v449_v21  ;;  %v8190_v36 = vmin.u32 %v532_v32, %v11331_v12  ;;  %vm603_vm14 = vcmp.lt.s32.totalorder %v11006_v47, 2  ;;  %10343 = vsinq.f32 %v346_v5 }
 0x179   :  { %v441_v10 = vor.u32 4788187, %v440_v27  ;;  %v606_v57 = vsel %vm602_vm4, %v586_v16, %v589_v2  ;;  %v614_v38 = vsel %vm602_vm4, %v592_v56, %v595_v11  ;;  %v553_v14 = vsel %vm468_vm1, %v552_v4, %v528_v24 }
 0x17a   :  { %v534_v6 = vclz %v8190_v36  ;;  %v608_v0 = vsel %vm604_vm6, %v592_v56, %v607_v61  ;;  %v613_v26 = vsel %vm603_vm14, %v610_v60, %v612_v29  ;;  %v444_v21 = vcvt.s32.f32 %v437_v8 }
 0x17b   :  { %v442_v9 = vand.u32 2147483647, %v441_v10  ;;  %v616_v16 = vsel %vm604_vm6, %v11103_v44, %v11178_v45  ;;  %v618_v2 = vshll.u32 %v578_v59, 8  ;;  %vm357_vm3 = vcmp.eq.s32.totalorder %v11296_v42, 2 }
 0x17c   :  { %v455_v11 = vadd.s32 3, %v451_v34  ;;  %v8191_v31 = vadd.s32 4294967294, %v534_v6  ;;  %v617_v24 = vsel %vm603_vm14, %v614_v38, %v616_v16  ;;  %vm354_vm5 = vcmp.eq.s32.totalorder %v11296_v42, 0 }
 0x17d   :  { %v445_v56 = vmul.f32 %v444_v21, %v442_v9  ;;  %v555_v33 = vsel %vm11327_vm2, 0, %v553_v14  ;;  %v11373_v43 = vmul.u32.u64.low %v618_v2, %v617_v24  ;;  %v11374_v49 = vmul.u32.u64.high %v618_v2, %v617_v24, %v11373_v43 }
 0x17e   :  { %vm353_vm7 = vcmp.lt.s32.totalorder %v11296_v42, 2  ;;  %vm1101_vm9 = vcmask 261120   ;;  %vm8192_vm11 = vcmp.lt.s32.totalorder %v8191_v31, 0  ;;  %v609_v44 = vsel %vm603_vm14, %v606_v57, %v608_v0 }
 0x17f   :  { %v11379_v45 = vmul.u32.u64.low %v618_v2, %v613_v26  ;;  %v11380_v59 = vmul.u32.u64.high %v618_v2, %v613_v26, %v11379_v45  ;;  %vm350_vm12 = vweird.f32 %v10866_v35  ;;  %v446_v28 = vxor.u32 2147483648, %v445_v56 }
 0x180   :  { %v522_v4 = vadd.s32 %v11236_v58, %v11242_v48  ;;  %v537_v19 = vsel %vm8192_vm11, 0, %v8191_v31  ;;  %v674_v32 = vand.u32 2147483647, %v10883_v62  ;;  %v11387_v61 = vand.u32 3, %v455_v11 }
 0x181   :  { %v538_v60 = vsub.s32 32, %v537_v19  ;;  %v542_v5 = vsub.s32 4294967266, %v537_v19  ;;  %v559_v8 = vadd.s32 3, %v555_v33  ;;  %v447_v47 = vsel %vm364_vm13, %v446_v28, %v445_v56  ;;  %v10342_v34 = vpop.eup %10341 }
 0x182   :  { %v539_v27 = vshll.u32 %v11331_v12, %v537_v19  ;;  %v625_v29 = vmul.u32 %v618_v2, %v609_v44  ;;  %vm627_vm0 = vc.u32 %v11374_v49, %v11379_v45  ;;  %v450_v58 = vsel %vm11307_vm15, %v10860_v30, %v447_v47  ;;  %v10344_v57 = vpop.eup %10343 }
 0x183   :  { %v540_v48 = vshrl.u32 %v522_v4, %v538_v60  ;;  %v543_v36 = vadd.s32 127, %v542_v5  ;;  %v628_v10 = vadd.s32 1, %v11380_v59  ;;  %v358_v38 = vxor.u32 2147483648, %v10342_v34 }
 0x184   :  { %10345 = vcosq.f32 %v450_v58  ;;  %v681_v6 = vand.u32 8388607, %v674_v32  ;;  %v692_v12 = vshrl.u32 %v15245_v63, %v10937_v1  ;;  %v355_v14 = vxor.u32 2147483648, %v10344_v57 }
 0x185   :  { %10347 = vsinq.f32 %v450_v58  ;;  %v541_v0 = vor.u32 %v540_v48, %v539_v27  ;;  %v544_v26 = vshll.u32 %v543_v36, 23  ;;  %v359_v17 = vsel %vm357_vm3, %v358_v38, %v10344_v57 }
 0x186   :  { %v629_v9 = vsel %vm627_vm0, %v628_v10, %v11380_v59  ;;  %v694_v21 = vshll.u32 %v15245_v63, %v10925_v50  ;;  %v695_v16 = vshrl.u32 %v15246_v39, %v10937_v1  ;;  %v356_v2 = vsel %vm354_vm5, %v10342_v34, %v355_v14 }
 0x187   :  { %v545_v11 = vor.u32 4788187, %v544_v26  ;;  %v630_v31 = vadd.s32 %v629_v9, %v625_v29  ;;  %v691_v24 = vshll.u32 %v15244_v54, %v10925_v50  ;;  %v360_v56 = vsel %vm353_vm7, %v356_v2, %v359_v17 }
 0x188   :  { %v696_v33 = vor.u32 %v695_v16, %v694_v21  ;;  %v697_v43 = vshll.u32 %v15246_v39, %v10925_v50  ;;  %v698_v44 = vshrl.u32 %v15247_v37, %v10937_v1  ;;  %v361_v59 = vsel %vm350_vm12, nan, %v360_v56 }
 0x189   :  { %vm458_vm13 = vcmp.eq.s32.totalorder %v11387_v61, 0  ;;  %v546_v28 = vand.u32 2147483647, %v545_v11  ;;  %v548_v4 = vcvt.s32.f32 %v541_v0  ;;  %v631_v19 = vadd.s32 536870912, %v630_v31  ;;  %9314 = vmatprep.mubr.msk.f32.mxu0 %vm1101_vm9, %v361_v59 }
 0x18a   :  { %vm457_vm15 = vcmp.lt.s32.totalorder %v11387_v61, 2  ;;  %vm461_vm4 = vcmp.eq.s32.totalorder %v11387_v61, 2  ;;  %vm572_vm6 = vcmp.lt.s32.totalorder %v10878_v55, 0  ;;  %v693_v50 = vor.u32 %v692_v12, %v691_v24 }
 0x18b   :  { %v699_v42 = vor.u32 %v698_v44, %v697_v43  ;;  %vm708_vm14 = vcmp.lt.s32.totalorder %v11143_v22, 3  ;;  %vm454_vm3 = vweird.f32 %v10860_v30  ;;  %v549_v35 = vmul.f32 %v548_v4, %v546_v28 }
 0x18c   :  { %v632_v60 = vshrl.u32 %v631_v19, 30  ;;  %vm706_vm5 = vcmp.lt.s32.totalorder %v11143_v22, 1  ;;  %v720_v5 = vsel %vm708_vm14, %v11218_v53, %v11260_v46  ;;  %v11436_v47 = vand.u32 3, %v559_v8 }
 0x18d   :  { %v682_v27 = vor.u32 8388608, %v681_v6  ;;  %v690_v29 = vshrl.u32 %v15244_v54, %v10937_v1  ;;  %v718_v34 = vsel %vm706_vm5, %v696_v33, %v699_v42  ;;  %v550_v58 = vxor.u32 2147483648, %v549_v35 }
 0x18e   :  { %v633_v48 = vshll.u32 %v632_v60, 30  ;;  %vm707_vm7 = vcmp.lt.s32.totalorder %v11143_v22, 2  ;;  %v711_v36 = vsel %vm709_vm8, %v699_v42, 2102212464  ;;  %v10346_v10 = vpop.eup %10345  ;;  %v656_v57 = vsub.s32 4, %v632_v60 }
 0x18f   :  { %v710_v38 = vsel %vm706_vm5, %v690_v29, %v693_v50  ;;  %v714_v12 = vsel %vm706_vm5, %v693_v50, %v696_v33  ;;  %v716_v53 = vsel %vm708_vm14, %v699_v42, %v11253_v52  ;;  %v10348_v46 = vpop.eup %10347  ;;  %v462_v8 = vxor.u32 2147483648, %v10346_v10 }
 0x190   :  { %v551_v1 = vsel %vm468_vm1, %v550_v58, %v549_v35  ;;  %v11448_v6 = vsub.s32 %v630_v31, %v633_v48  ;;  %v721_v14 = vsel %vm707_vm7, %v718_v34, %v720_v5  ;;  %v459_v0 = vxor.u32 2147483648, %v10348_v46 }
 0x191   :  { %v554_v26 = vsel %vm11327_vm2, %v10870_v41, %v551_v1  ;;  %v712_v17 = vsel %vm708_vm14, %v696_v33, %v711_v36  ;;  %v722_v9 = vshll.u32 %v682_v27, 8  ;;  %v463_v52 = vsel %vm461_vm4, %v462_v8, %v10348_v46 }
 0x192   :  { %10349 = vcosq.f32 %v554_v26  ;;  %v636_v21 = vsub.s32 0, %v11448_v6  ;;  %v717_v16 = vsel %vm707_vm7, %v714_v12, %v716_v53  ;;  %v460_v2 = vsel %vm458_vm13, %v10346_v10, %v459_v0 }
 0x193   :  { %10351 = vsinq.f32 %v554_v26  ;;  %v11464_v11 = vmul.u32.u64.low %v722_v9, %v721_v14  ;;  %v11465_v3 = vmul.u32.u64.high %v722_v9, %v721_v14, %v11464_v11  ;;  %v11469_v31 = vshll.u32 %v15247_v37, %v11009_v51 }
 0x194   :  { %v464_v24 = vsel %vm457_vm15, %v460_v2, %v463_v52  ;;  %v8194_v56 = vmin.u32 %v636_v21, %v11448_v6  ;;  %v11476_v33 = vsel %vm572_vm6, %v656_v57, %v632_v60  ;;  %v778_v28 = vand.u32 2147483647, %v10896_v15 }
 0x195   :  { %v465_v43 = vsel %vm454_vm3, nan, %v464_v24  ;;  %v11480_v44 = vmul.u32.u64.low %v722_v9, %v717_v16  ;;  %v11481_v59 = vmul.u32.u64.high %v722_v9, %v717_v16, %v11480_v44  ;;  %v11486_v4 = vshrl.u32 %v15249_v18, %v11022_v25 }
 0x196   :  { %9315 = vmatmul.mubr.msk.f32.vlgmr.msra.gmra.mrb[0].mxu0 %vm1101_vm9, %v465_v43  ;;  %v15263_v61 = vand.u32 2147483647, %v10878_v55  ;;  %v638_v50 = vclz %v8194_v56  ;;  %v713_v30 = vsel %vm707_vm7, %v710_v38, %v712_v17  ;;  %vm562_vm1 = vcmp.eq.s32.totalorder %v11436_v47, 0 }
 0x197   :  { %vm565_vm2 = vcmp.eq.s32.totalorder %v11436_v47, 2  ;;  %v11500_v42 = vadd.s32 %v11480_v44, %v11465_v3  ;;  %vm731_vm11 = vc.u32 %v11465_v3, %v11480_v44  ;;  %vm561_vm12 = vcmp.lt.s32.totalorder %v11436_v47, 2 }
 0x198   :  { %vm11491_vm8 = vcmp.le.f32.partialorder %v15263_v61, 0.7853982  ;;  %v626_v35 = vadd.s32 %v11379_v45, %v11374_v49  ;;  %v8195_v60 = vadd.s32 4294967294, %v638_v50  ;;  %v796_v5 = vshrl.u32 %v15245_v63, %v10976_v20 }
 0x199   :  { %v659_v22 = vsel %vm11491_vm8, 0, %v11476_v33  ;;  %vm558_vm0 = vweird.f32 %v10870_v41  ;;  %v729_v27 = vmul.u32 %v722_v9, %v713_v30  ;;  %v732_v29 = vadd.s32 1, %v11481_v59 }
 0x19a   :  { %v785_v34 = vand.u32 8388607, %v778_v28  ;;  %v799_v58 = vshrl.u32 %v15246_v39, %v10976_v20  ;;  %vm8196_vm13 = vcmp.lt.s32.totalorder %v8195_v60, 0  ;;  %v794_v49 = vshrl.u32 %v15244_v54, %v10976_v20 }
 0x19b   :  { %v795_v45 = vshll.u32 %v15244_v54, %v10957_v7  ;;  %v802_v48 = vshrl.u32 %v15247_v37, %v10976_v20  ;;  %v641_v36 = vsel %vm8196_vm13, 0, %v8195_v60  ;;  %v733_v10 = vsel %vm731_vm11, %v732_v29, %v11481_v59  ;;  %v15266_v60 = vld [vmem:[#allocation30_spill] sm:$0xff] }
 0x19c   :  { %v798_v57 = vshll.u32 %v15245_v63, %v10957_v7  ;;  %v801_v38 = vshll.u32 %v15246_v39, %v10957_v7  ;;  %v10350_v12 = vpop.eup %10349  ;;  %v642_v53 = vsub.s32 32, %v641_v36  ;;  %v646_v46 = vsub.s32 4294967266, %v641_v36 }
 0x19d   :  { %v734_v8 = vadd.s32 %v733_v10, %v729_v27  ;;  %v797_v1 = vor.u32 %v796_v5, %v795_v45  ;;  %v10352_v14 = vpop.eup %10351  ;;  %v566_v0 = vxor.u32 2147483648, %v10350_v12  ;;  %v643_v20 = vshll.u32 %v11448_v6, %v641_v36  ;;  %v15267_v5 = vld [vmem:[#allocation29_spill] sm:$0xff] }
 0x19e   :  { %v800_v26 = vor.u32 %v799_v58, %v798_v57  ;;  %v803_v17 = vor.u32 %v802_v48, %v801_v38  ;;  %v563_v9 = vxor.u32 2147483648, %v10352_v14  ;;  %v644_v52 = vshrl.u32 %v626_v35, %v642_v53 }
 0x19f   :  { %v647_v21 = vadd.s32 127, %v646_v46  ;;  %v735_v16 = vadd.s32 536870912, %v734_v8  ;;  %v567_v2 = vsel %vm565_vm2, %v566_v0, %v10352_v14  ;;  %v786_v11 = vor.u32 8388608, %v785_v34  ;;  %v15270_v46 = vld [vmem:[#allocation25_spill] sm:$0xff] }
 0x1a0   :  { %vm810_vm15 = vcmp.lt.s32.totalorder %v11188_v13, 1  ;;  %v815_v7 = vsel %vm813_vm10, %v803_v17, 2102212464  ;;  %vm917_vm4 = vcmp.lt.s32.totalorder %v11284_v40, 4  ;;  %v564_v6 = vsel %vm562_vm1, %v10350_v12, %v563_v9  ;;  %v15269_v12 = vld [vmem:[#allocation20_spill] sm:$0xff]  ;;  %v15272_v9 = vld [vmem:[#allocation22_spill] sm:$0xff] }
 0x1a1   :  { %v645_v3 = vor.u32 %v644_v52, %v643_v20  ;;  %v648_v24 = vshll.u32 %v647_v21, 23  ;;  %v11539_v56 = vshrl.u32 %v735_v16, 30  ;;  %v568_v33 = vsel %vm561_vm12, %v564_v6, %v567_v2 }
 0x1a2   :  { %vm812_vm14 = vcmp.lt.s32.totalorder %v11188_v13, 3  ;;  %v818_v43 = vsel %vm810_vm15, %v797_v1, %v800_v26  ;;  %v822_v44 = vsel %vm810_vm15, %v800_v26, %v803_v17  ;;  %v569_v59 = vsel %vm558_vm0, nan, %v568_v33 }
 0x1a3   :  { %v649_v61 = vor.u32 4788187, %v648_v24  ;;  %v737_v50 = vshll.u32 %v11539_v56, 30  ;;  %v820_v30 = vsel %vm812_vm14, %v803_v17, %v11281_v23  ;;  %9317 = vmatprep.mubr.msk.f32.mxu0 %vm1101_vm9, %v569_v59  ;;  %vm811_vm10 = vcmp.lt.s32.totalorder %v11188_v13, 2  ;;  %v15271_v17 = vld [vmem:[#allocation23_spill] sm:$0xff]  ;;  %v15274_v13 = vld [vmem:[#allocation26_spill] sm:$0xff] }
 0x1a4   :  { %v814_v47 = vsel %vm810_vm15, %v794_v49, %v797_v1  ;;  %v816_v35 = vsel %vm812_vm14, %v800_v26, %v815_v7  ;;  %v824_v27 = vsel %vm812_vm14, %v15267_v5, %v15266_v60  ;;  %v652_v34 = vcvt.s32.f32 %v645_v3  ;;  %v15268_v49 = vld [vmem:[#allocation24_spill] sm:$0xff] }
 0x1a5   :  { %v650_v29 = vand.u32 2147483647, %v649_v61  ;;  %v11558_v41 = vsub.s32 %v734_v8, %v737_v50  ;;  %v825_v58 = vsel %vm811_vm10, %v822_v44, %v824_v27  ;;  %v910_v23 = vor.u32 %v11486_v4, %v11469_v31 }
 0x1a6   :  { %v663_v45 = vadd.s32 3, %v659_v22  ;;  %v821_v48 = vsel %vm811_vm10, %v818_v43, %v820_v30  ;;  %v826_v36 = vshll.u32 %v786_v11, 8  ;;  %v11567_v10 = vshrl.u32 %v15268_v49, 5 }
 0x1a7   :  { %v653_v57 = vmul.f32 %v652_v34, %v650_v29  ;;  %v740_v38 = vsub.s32 0, %v11558_v41  ;;  %v882_v53 = vand.u32 2147483647, %v15269_v12  ;;  %v11573_v8 = vshll.u32 %v15247_v37, %v15270_v46 }
 0x1a8   :  { %v817_v31 = vsel %vm811_vm10, %v814_v47, %v816_v35  ;;  %v11577_v4 = vmul.u32.u64.low %v826_v36, %v825_v58  ;;  %v11578_v22 = vmul.u32.u64.high %v826_v36, %v825_v58, %v11577_v4  ;;  %v923_v26 = vsel %vm917_vm4, %v910_v23, 920167782 }
 0x1a9   :  { %v654_v1 = vxor.u32 2147483648, %v653_v57  ;;  %v8198_v14 = vmin.u32 %v740_v38, %v11558_v41  ;;  %v11581_v0 = vmul.u32.u64.low %v826_v36, %v821_v48  ;;  %v11582_v20 = vmul.u32.u64.high %v826_v36, %v821_v48, %v11581_v0 }
 0x1aa   :  { %v15273_v52 = vor.u32 %v15271_v17, %v15272_v9  ;;  %v11593_v16 = vshrl.u32 %v15249_v18, %v15274_v13  ;;  %v11595_v2 = vand.u32 3, %v663_v45  ;;  %v760_v6 = vsub.s32 4, %v11539_v56 }
 0x1ab   :  { %v655_v11 = vsel %vm572_vm6, %v654_v1, %v653_v57  ;;  %v742_v7 = vclz %v8198_v14  ;;  %v889_v3 = vand.u32 8388607, %v882_v53  ;;  %v833_v33 = vmul.u32 %v826_v36, %v817_v31 }
 0x1ac   :  { %v927_v21 = vsel %vm917_vm4, %v15273_v52, 1326507024  ;;  %v658_v24 = vsel %vm11491_vm8, %v10878_v55, %v655_v11  ;;  %v898_v18 = vshrl.u32 %v15244_v54, %v11022_v25  ;;  %v900_v43 = vshrl.u32 %v15245_v63, %v11022_v25 }
 0x1ad   :  { %10353 = vcosq.f32 %v658_v24  ;;  %vm676_vm6 = vcmp.lt.s32.totalorder %v10883_v62, 0  ;;  %v8199_v44 = vadd.s32 4294967294, %v742_v7  ;;  %v11611_v59 = vadd.s32 %v11581_v0, %v11578_v22 }
 0x1ae   :  { %vm835_vm3 = vc.u32 %v11578_v22, %v11581_v0  ;;  %10355 = vsinq.f32 %v658_v24  ;;  %v836_v19 = vadd.s32 1, %v11582_v20  ;;  %v899_v61 = vshll.u32 %v15244_v54, %v11009_v51 }
 0x1af   :  { %v902_v50 = vshll.u32 %v15245_v63, %v11009_v51  ;;  %vm8200_vm5 = vcmp.lt.s32.totalorder %v8199_v44, 0  ;;  %v890_v30 = vor.u32 8388608, %v889_v3  ;;  %v903_v47 = vshrl.u32 %v15246_v39, %v11022_v25 }
 0x1b0   :  { %v906_v35 = vshrl.u32 %v15247_v37, %v11022_v25  ;;  %v745_v60 = vsel %vm8200_vm5, 0, %v8199_v44  ;;  %v837_v5 = vsel %vm835_vm3, %v836_v19, %v11582_v20  ;;  %v901_v27 = vor.u32 %v900_v43, %v899_v61 }
 0x1b1   :  { %v905_v29 = vshll.u32 %v15246_v39, %v11009_v51  ;;  %v746_v34 = vsub.s32 32, %v745_v60  ;;  %v750_v58 = vsub.s32 4294967266, %v745_v60  ;;  %v838_v45 = vadd.s32 %v837_v5, %v833_v33 }
 0x1b2   :  { %vm914_vm7 = vcmp.lt.s32.totalorder %v11284_v40, 1  ;;  %vm11629_vm8 = vcmp.le.f32.partialorder %v674_v32, 0.7853982  ;;  %v747_v25 = vshll.u32 %v11558_v41, %v745_v60  ;;  %v904_v36 = vor.u32 %v903_v47, %v902_v50 }
 0x1b3   :  { %v907_v49 = vor.u32 %v906_v35, %v905_v29  ;;  %vm916_vm1 = vcmp.lt.s32.totalorder %v11284_v40, 3  ;;  %vm665_vm2 = vcmp.lt.s32.totalorder %v11595_v2, 2  ;;  %v748_v51 = vshrl.u32 %v11500_v42, %v746_v34 }
 0x1b4   :  { %v751_v57 = vadd.s32 127, %v750_v58  ;;  %v839_v38 = vadd.s32 536870912, %v838_v45  ;;  %v928_v31 = vsel %vm916_vm1, %v910_v23, %v927_v21  ;;  %vm662_vm11 = vweird.f32 %v10878_v55 }
 0x1b5   :  { %vm915_vm12 = vcmp.lt.s32.totalorder %v11284_v40, 2  ;;  %v922_v32 = vsel %vm914_vm7, %v901_v27, %v904_v36  ;;  %v924_v41 = vsel %vm916_vm1, %v907_v49, %v923_v26  ;;  %v926_v4 = vsel %vm914_vm7, %v904_v36, %v907_v49 }
 0x1b6   :  { %v749_v22 = vor.u32 %v748_v51, %v747_v25  ;;  %v752_v42 = vshll.u32 %v751_v57, 23  ;;  %v11647_v1 = vshrl.u32 %v839_v38, 30  ;;  %v919_v23 = vsel %vm917_vm4, %v907_v49, 2102212464  ;;  %v15277_v38 = vld [vmem:[#allocation28_spill] sm:$0xff] }
 0x1b7   :  { %vm669_vm0 = vcmp.eq.s32.totalorder %v11595_v2, 2  ;;  %v761_v14 = vsel %vm676_vm6, %v760_v6, %v11539_v56  ;;  %v929_v0 = vsel %vm915_vm12, %v926_v4, %v928_v31  ;;  %v930_v20 = vshll.u32 %v890_v30, 8  ;;  %v10354_v26 = vpop.eup %10353  ;;  %v15278_v31 = vld [vmem:[#allocation27_spill] sm:$0xff]  ;;  %v15280_v4 = vld [vmem:[#allocation21_spill] sm:$0xff] }
 0x1b8   :  { %v753_v17 = vor.u32 4788187, %v752_v42  ;;  %v841_v9 = vshll.u32 %v11647_v1, 30  ;;  %v918_v52 = vsel %vm914_vm7, %v898_v18, %v901_v27  ;;  %v925_v21 = vsel %vm915_vm12, %v922_v32, %v924_v41  ;;  %v10356_v11 = vpop.eup %10355 }
 0x1b9   :  { %v670_v7 = vxor.u32 2147483648, %v10354_v26  ;;  %v920_v3 = vsel %vm916_vm1, %v904_v36, %v919_v23  ;;  %v11664_v56 = vmul.u32.u64.low %v930_v20, %v929_v0  ;;  %v11665_v6 = vmul.u32.u64.high %v930_v20, %v929_v0, %v11664_v56 }
 0x1ba   :  { %v667_v24 = vxor.u32 2147483648, %v10356_v11  ;;  %v754_v33 = vand.u32 2147483647, %v753_v17  ;;  %v756_v43 = vcvt.s32.f32 %v749_v22  ;;  %v842_v44 = vsub.s32 %v838_v45, %v841_v9 }
 0x1bb   :  { %vm666_vm13 = vcmp.eq.s32.totalorder %v11595_v2, 0  ;;  %v671_v18 = vsel %vm669_vm0, %v670_v7, %v10356_v11  ;;  %v11670_v19 = vmul.u32.u64.low %v930_v20, %v925_v21  ;;  %v11671_v61 = vmul.u32.u64.high %v930_v20, %v925_v21, %v11670_v19 }
 0x1bc   :  { %v668_v50 = vsel %vm666_vm13, %v10354_v26, %v667_v24  ;;  %v757_v30 = vmul.f32 %v756_v43, %v754_v33  ;;  %v763_v47 = vsel %vm11629_vm8, 0, %v761_v14  ;;  %v844_v35 = vsub.s32 0, %v842_v44 }
 0x1bd   :  { %v672_v60 = vsel %vm665_vm2, %v668_v50, %v671_v18  ;;  %v921_v5 = vsel %vm915_vm12, %v918_v52, %v920_v3  ;;  %v11680_v27 = vadd.s32 %v11670_v19, %v11665_v6  ;;  %vm939_vm15 = vc.u32 %v11665_v6, %v11670_v19 }
 0x1be   :  { %v11685_v29 = vor.u32 %v11593_v16, %v11573_v8  ;;  %v673_v34 = vsel %vm662_vm11, nan, %v672_v60  ;;  %v758_v58 = vxor.u32 2147483648, %v757_v30  ;;  %v8202_v45 = vmin.u32 %v844_v35, %v842_v44 }
 0x1bf   :  { %9318 = vmatmul.mubr.msk.f32.gmra.mrb[2].mxu0 %vm1101_vm9, %v673_v34  ;;  %v940_v2 = vadd.s32 1, %v11671_v61  ;;  %v767_v25 = vadd.s32 3, %v763_v47  ;;  %v937_v49 = vmul.u32 %v930_v20, %v921_v5  ;;  %vm1021_vm4 = vcmp.lt.s32.totalorder %v11567_v10, 4 }
 0x1c0   :  { %v759_v40 = vsel %vm676_vm6, %v758_v58, %v757_v30  ;;  %v846_v36 = vclz %v8202_v45  ;;  %v1027_v16 = vsel %vm1021_vm4, %v11685_v29, 920167782  ;;  %v15279_v32 = vor.u32 %v15277_v38, %v15278_v31 }
 0x1c1   :  { %v762_v8 = vsel %vm11629_vm8, %v10883_v62, %v759_v40  ;;  %v941_v55 = vsel %vm939_vm15, %v940_v2, %v11671_v61  ;;  %v986_v22 = vand.u32 2147483647, %v15280_v4  ;;  %v1004_v48 = vshrl.u32 %v15245_v63, %v15274_v13 }
 0x1c2   :  { %10357 = vcosq.f32 %v762_v8  ;;  %v8203_v51 = vadd.s32 4294967294, %v846_v36  ;;  %v942_v57 = vadd.s32 %v941_v55, %v937_v49  ;;  %v1031_v41 = vsel %vm1021_vm4, %v15279_v32, 1326507024 }
 0x1c3   :  { %10359 = vsinq.f32 %v762_v8  ;;  %v768_v42 = vand.u32 3, %v767_v25  ;;  %v1007_v14 = vshrl.u32 %v15246_v39, %v15274_v13  ;;  %v1003_v20 = vshll.u32 %v15244_v54, %v15270_v46 }
 0x1c4   :  { %vm8204_vm14 = vcmp.lt.s32.totalorder %v8203_v51, 0  ;;  %v943_v23 = vadd.s32 536870912, %v942_v57  ;;  %v1006_v26 = vshll.u32 %v15245_v63, %v15270_v46  ;;  %v1010_v17 = vshrl.u32 %v15247_v37, %v15274_v13 }
 0x1c5   :  { %v849_v0 = vsel %vm8204_vm14, 0, %v8203_v51  ;;  %v1009_v11 = vshll.u32 %v15246_v39, %v15270_v46  ;;  %v993_v3 = vand.u32 8388607, %v986_v22  ;;  %v1005_v56 = vor.u32 %v1004_v48, %v1003_v20 }
 0x1c6   :  { %v850_v9 = vsub.s32 32, %v849_v0  ;;  %v854_v52 = vsub.s32 4294967266, %v849_v0  ;;  %v11717_v21 = vshrl.u32 %v943_v23, 30  ;;  %v851_v7 = vshll.u32 %v842_v44, %v849_v0 }
 0x1c7   :  { %v1008_v6 = vor.u32 %v1007_v14, %v1006_v26  ;;  %v1011_v43 = vor.u32 %v1010_v17, %v1009_v11  ;;  %vm766_vm10 = vweird.f32 %v10883_v62  ;;  %vm769_vm6 = vcmp.lt.s32.totalorder %v768_v42, 2 }
 0x1c8   :  { %v852_v24 = vshrl.u32 %v11611_v59, %v850_v9  ;;  %v855_v33 = vadd.s32 127, %v854_v52  ;;  %v945_v63 = vshll.u32 %v11717_v21, 30  ;;  %vm770_vm3 = vcmp.eq.s32.totalorder %v768_v42, 0 }
 0x1c9   :  { %vm780_vm5 = vcmp.lt.s32.totalorder %v10896_v15, 0  ;;  %vm773_vm7 = vcmp.eq.s32.totalorder %v768_v42, 2  ;;  %v864_v44 = vsub.s32 4, %v11647_v1  ;;  %v994_v18 = vor.u32 8388608, %v993_v3 }
 0x1ca   :  { %v853_v39 = vor.u32 %v852_v24, %v851_v7  ;;  %v856_v37 = vshll.u32 %v855_v33, 23  ;;  %v946_v46 = vsub.s32 %v942_v57, %v945_v63  ;;  %vm1018_vm8 = vcmp.lt.s32.totalorder %v11567_v10, 1 }
 0x1cb   :  { %vm1020_vm1 = vcmp.lt.s32.totalorder %v11567_v10, 3  ;;  %v1026_v50 = vsel %vm1018_vm8, %v1005_v56, %v1008_v6  ;;  %vm1019_vm2 = vcmp.lt.s32.totalorder %v11567_v10, 2  ;;  %v1030_v60 = vsel %vm1018_vm8, %v1008_v6, %v1011_v43 }
 0x1cc   :  { %v10358_v59 = vpop.eup %10357  ;;  %v857_v19 = vor.u32 4788187, %v856_v37  ;;  %v948_v61 = vsub.s32 0, %v946_v46  ;;  %v1028_v30 = vsel %vm1020_vm1, %v1011_v43, %v1027_v16  ;;  %v1032_v5 = vsel %vm1020_vm1, %v11685_v29, %v1031_v41 }
 0x1cd   :  { %v10360_v47 = vpop.eup %10359  ;;  %v774_v35 = vxor.u32 2147483648, %v10358_v59  ;;  %v860_v45 = vcvt.s32.f32 %v853_v39  ;;  %v1002_v25 = vshrl.u32 %v15244_v54, %v15274_v13  ;;  %v1023_v36 = vsel %vm1021_vm4, %v1011_v43, 2102212464 }
 0x1ce   :  { %v771_v34 = vxor.u32 2147483648, %v10360_v47  ;;  %v858_v58 = vand.u32 2147483647, %v857_v19  ;;  %v8206_v2 = vmin.u32 %v948_v61, %v946_v46  ;;  %v1029_v49 = vsel %vm1019_vm2, %v1026_v50, %v1028_v30 }
 0x1cf   :  { %v775_v40 = vsel %vm773_vm7, %v774_v35, %v10360_v47  ;;  %v1033_v29 = vsel %vm1019_vm2, %v1030_v60, %v1032_v5  ;;  %v865_v57 = vsel %vm780_vm5, %v864_v44, %v11647_v1  ;;  %v1022_v54 = vsel %vm1018_vm8, %v1002_v25, %v1005_v56 }
 0x1d0   :  { %v772_v8 = vsel %vm770_vm3, %v10358_v59, %v771_v34  ;;  %v861_v55 = vmul.f32 %v860_v45, %v858_v58  ;;  %v950_v16 = vclz %v8206_v2  ;;  %v1034_v13 = vshll.u32 %v994_v18, 8 }
 0x1d1   :  { %v776_v51 = vsel %vm769_vm6, %v772_v8, %v775_v40  ;;  %v1024_v41 = vsel %vm1020_vm1, %v1008_v6, %v1023_v36  ;;  %vm11769_vm11 = vcmp.le.f32.partialorder %v778_v28, 0.7853982  ;;  %vm884_vm13 = vcmp.lt.s32.totalorder %v15269_v12, 0 }
 0x1d2   :  { %v777_v38 = vsel %vm766_vm10, nan, %v776_v51  ;;  %v862_v31 = vxor.u32 2147483648, %v861_v55  ;;  %v8207_v32 = vadd.s32 4294967294, %v950_v16  ;;  %v1025_v26 = vsel %vm1019_vm2, %v1022_v54, %v1024_v41 }
 0x1d3   :  { %9320 = vmatprep.mubr.msk.f32.mxu0 %vm1101_vm9, %v777_v38  ;;  %v11761_v48 = vmul.u32.u64.low %v1034_v13, %v1033_v29  ;;  %v11762_v42 = vmul.u32.u64.high %v1034_v13, %v1033_v29, %v11761_v48  ;;  %v11764_v23 = vmul.u32.u64.low %v1034_v13, %v1029_v49  ;;  %v11765_v14 = vmul.u32.u64.high %v1034_v13, %v1029_v49, %v11764_v23 }
 0x1d4   :  { %v863_v62 = vsel %vm780_vm5, %v862_v31, %v861_v55  ;;  %vm8208_vm12 = vcmp.lt.s32.totalorder %v8207_v32, 0  ;;  %v867_v17 = vsel %vm11769_vm11, 0, %v865_v57  ;;  %v1041_v6 = vmul.u32 %v1034_v13, %v1025_v26 }
 0x1d5   :  { %v866_v0 = vsel %vm11769_vm11, %v10896_v15, %v863_v62  ;;  %v953_v20 = vsel %vm8208_vm12, 0, %v8207_v32  ;;  %v1042_v52 = vadd.s32 %v11764_v23, %v11762_v42  ;;  %vm1043_vm0 = vc.u32 %v11762_v42, %v11764_v23 }
 0x1d6   :  { %10361 = vcosq.f32 %v866_v0  ;;  %v954_v28 = vsub.s32 32, %v953_v20  ;;  %v958_v9 = vsub.s32 4294967266, %v953_v20  ;;  %v1044_v11 = vadd.s32 1, %v11765_v14 }
 0x1d7   :  { %10363 = vsinq.f32 %v866_v0  ;;  %v955_v7 = vshll.u32 %v946_v46, %v953_v20  ;;  %v871_v24 = vadd.s32 3, %v867_v17  ;;  %v968_v46 = vsub.s32 4, %v11717_v21 }
 0x1d8   :  { %v956_v3 = vshrl.u32 %v11680_v27, %v954_v28  ;;  %v959_v56 = vadd.s32 127, %v958_v9  ;;  %v1045_v10 = vsel %vm1043_vm0, %v1044_v11, %v11765_v14  ;;  %vm883_vm10 = vcmp.le.f32.partialorder %v882_v53, 0.7853982  ;;  %v1316_v11 = vld [vmem:[#allocation9 + $0xe8] sm:$0xff] }
 0x1d9   :  { %v1046_v43 = vadd.s32 %v1045_v10, %v1041_v6  ;;  %v872_v44 = vand.u32 3, %v871_v24  ;;  %v969_v2 = vsel %vm884_vm13, %v968_v46, %v11717_v21  ;;  %vm870_vm6 = vweird.f32 %v10896_v15  ;;  %v1290_v6 = vld [vmem:[#allocation9 + $0x18] sm:$0xff]  ;;  %v1287_v24 = vld [vmem:[#allocation9] sm:$0xff] }
 0x1da   :  { %v957_v33 = vor.u32 %v956_v3, %v955_v7  ;;  %v960_v63 = vshll.u32 %v959_v56, 23  ;;  %v971_v55 = vsel %vm883_vm10, 0, %v969_v2  ;;  %vm974_vm1 = vweird.f32 %v15269_v12  ;;  %v1288_v56 = vld [vmem:[#allocation9 + $0x8] sm:$0xff]  ;;  %v1295_v2 = vld [vmem:[#allocation9 + $0x40] sm:$0xff] }
 0x1db   :  { %v1047_v37 = vadd.s32 536870912, %v1046_v43  ;;  %vm877_vm15 = vcmp.eq.s32.totalorder %v872_v44, 2  ;;  %vm873_vm4 = vcmp.lt.s32.totalorder %v872_v44, 2  ;;  %vm874_vm14 = vcmp.eq.s32.totalorder %v872_v44, 0  ;;  %v1293_v44 = vld [vmem:[#allocation9 + $0x30] sm:$0xff] }
 0x1dc   :  { %v961_v39 = vor.u32 4788187, %v960_v63  ;;  %v964_v59 = vcvt.s32.f32 %v957_v33  ;;  %v975_v29 = vadd.s32 3, %v971_v55  ;;  %vm988_vm2 = vcmp.lt.s32.totalorder %v15280_v4, 0  ;;  %v1289_v33 = vld [vmem:[#allocation9 + $0x10] sm:$0xff]  ;;  %v1292_v63 = vld [vmem:[#allocation9 + $0x28] sm:$0xff] }
 0x1dd   :  { %v11787_v19 = vshrl.u32 %v1047_v37, 30  ;;  %vm11804_vm11 = vcmp.le.f32.partialorder %v986_v22, 0.7853982  ;;  %v10118_v10 = vpack.c.bf16 %v1290_v6, %v1288_v56  ;;  %v1291_v37 = vld [vmem:[#allocation9 + $0x20] sm:$0xff]  ;;  %v1301_v55 = vld [vmem:[#allocation9 + $0x70] sm:$0xff] }
 0x1de   :  { %v962_v18 = vand.u32 2147483647, %v961_v39  ;;  %v976_v57 = vand.u32 3, %v975_v29  ;;  %v1294_v39 = vld [vmem:[#allocation9 + $0x38] sm:$0xff]  ;;  %v1317_v56 = vld [vmem:[#allocation9 + $0xf0] sm:$0xff] }
 0x1df   :  { %v1049_v27 = vshll.u32 %v11787_v19, 30  ;;  %v1072_v9 = vsub.s32 4, %v11787_v19  ;;  %10119 = vmatprep.subr.bf16.mxu1 %v10118_v10  ;;  %v10677_v10 = vmov 0.0  }
 0x1e0   :  { %v10362_v61 = vpop.eup %10361  ;;  %v965_v50 = vmul.f32 %v964_v59, %v962_v18  ;;  %vm981_vm5 = vcmp.eq.s32.totalorder %v976_v57, 2  ;;  %vm978_vm7 = vcmp.eq.s32.totalorder %v976_v57, 0  ;;  %vm977_vm8 = vcmp.lt.s32.totalorder %v976_v57, 2  ;;  %v1303_v57 = vld [vmem:[#allocation9 + $0x80] sm:$0xff]  ;;  %1395 = vmatprep.mubr.f32.mxu1 %v10677_v10 }
 0x1e1   :  { %v10364_v30 = vpop.eup %10363  ;;  %v878_v47 = vxor.u32 2147483648, %v10362_v61  ;;  %v1050_v5 = vsub.s32 %v1046_v43, %v1049_v27  ;;  %v10120_v43 = vpack.c.bf16 %v1289_v33, %v1287_v24  ;;  %v10122_v18 = vpack.c.bf16 %v1294_v39, %v1292_v63  ;;  %v1561_v39 = vld [vmem:[#allocation12 + $0x28] sm:$0xff] }
 0x1e2   :  { %v875_v35 = vxor.u32 2147483648, %v10364_v30  ;;  %v966_v60 = vxor.u32 2147483648, %v965_v50  ;;  %v10124_v59 = vpack.c.bf16 %v1293_v44, %v1291_v37  ;;  %v1559_v37 = vld [vmem:[#allocation12 + $0x18] sm:$0xff] }
 0x1e3   :  { %v879_v34 = vsel %vm877_vm15, %v878_v47, %v10364_v30  ;;  %v1052_v40 = vsub.s32 0, %v1050_v5  ;;  %10121 = vmatpush1.bf16.msra.mxu1 %v10120_v43  ;;  %vm1078_vm15 = vweird.f32 %v15280_v4  ;;  %v1557_v43 = vld [vmem:[#allocation12 + $0x8] sm:$0xff] }
 0x1e4   :  { %v876_v58 = vsel %vm874_vm14, %v10362_v61, %v875_v35  ;;  %v967_v45 = vsel %vm884_vm13, %v966_v60, %v965_v50  ;;  %10123 = vmatprep.subr.bf16.mxu1 %v10122_v18  ;;  %v10150_v44 = vpack.c.bf16 %v1561_v39, %v1557_v43  ;;  %v1563_v18 = vld [vmem:[#allocation12 + $0x38] sm:$0xff]  ;;  %v1597_v39 = vld [vmem:[#allocation12 + $0x148] sm:$0xff] }
 0x1e5   :  { %v880_v25 = vsel %vm873_vm4, %v876_v58, %v879_v34  ;;  %v970_v36 = vsel %vm883_vm10, %v15269_v12, %v967_v45  ;;  %v8210_v8 = vmin.u32 %v1052_v40, %v1050_v5  ;;  %v1073_v12 = vsel %vm988_vm2, %v1072_v9, %v11787_v19  ;;  %v1296_v34 = vld [vmem:[#allocation9 + $0x48] sm:$0xff]  ;;  %v1298_v58 = vld [vmem:[#allocation9 + $0x58] sm:$0xff]  ;;  %v1297_v40 = vld [vmem:[#allocation9 + $0x50] sm:$0xff] }
 0x1e6   :  { %v881_v49 = vsel %vm870_vm6, nan, %v880_v25  ;;  %10365 = vcosq.f32 %v970_v36  ;;  %v1075_v22 = vsel %vm11804_vm11, 0, %v1073_v12  ;;  %v10126_v45 = vpack.c.bf16 %v1298_v58, %v1296_v34  ;;  %v1300_v25 = vld [vmem:[#allocation9 + $0x68] sm:$0xff]  ;;  %v1313_v9 = vld [vmem:[#allocation9 + $0xd0] sm:$0xff]  ;;  %10151 = vmatprep.subr.bf16.mxu0 %v10150_v44  ;;  %v1567_v34 = vld [vmem:[#allocation12 + $0x58] sm:$0xff] }
 0x1e7   :  { %9321 = vmatmul.mubr.msk.f32.gmra.mrb[4].mxu0 %vm1101_vm9, %v881_v49  ;;  %10367 = vsinq.f32 %v970_v36  ;;  %v1054_v16 = vclz %v8210_v8  ;;  %v1079_v19 = vadd.s32 3, %v1075_v22  ;;  %10125 = vmatpush1.bf16.msra.mxu1 %v10124_v59  ;;  %v10128_v36 = vpack.c.bf16 %v1297_v40, %v1295_v2  ;;  %v1302_v49 = vld [vmem:[#allocation9 + $0x78] sm:$0xff]  ;;  %v1299_v8 = vld [vmem:[#allocation9 + $0x60] sm:$0xff] }
 0x1e8   :  { %10127 = vmatprep.subr.bf16.mxu1 %v10126_v45  ;;  %v10132_v29 = vpack.c.bf16 %v1301_v55, %v1299_v8  ;;  %v1556_v59 = vld [vmem:[#allocation12] sm:$0xff]  ;;  %v1571_v58 = vld [vmem:[#allocation12 + $0x78] sm:$0xff]  ;;  %v1570_v55 = vld [vmem:[#allocation12 + $0x70] sm:$0xff]  ;;  %vm2143_vm10 = vcmask 64512  }
 0x1e9   :  { %v8211_v53 = vadd.s32 4294967294, %v1054_v16  ;;  %v1080_v61 = vand.u32 3, %v1079_v19  ;;  %v10130_v16 = vpack.c.bf16 %v1302_v49, %v1300_v25  ;;  %v1560_v19 = vld [vmem:[#allocation12 + $0x20] sm:$0xff]  ;;  %v10218_v40 = vpack.c.bf16 %v1571_v58, %v1567_v34  ;;  %v1566_v49 = vld [vmem:[#allocation12 + $0x50] sm:$0xff]  ;;  %v1609_v34 = vld [vmem:[#allocation12 + $0x1a8] sm:$0xff] }
 0x1ea   :  { %v1564_v25 = vld [vmem:[#allocation12 + $0x40] sm:$0xff] }
 0x1eb   :  { %vm8212_vm3 = vcmp.lt.s32.totalorder %v8211_v53, 0  ;;  %vm1085_vm12 = vcmp.eq.s32.totalorder %v1080_v61, 2  ;;  %vm1082_vm0 = vcmp.eq.s32.totalorder %v1080_v61, 0  ;;  %vm1081_vm13 = vcmp.lt.s32.totalorder %v1080_v61, 2  ;;  %10129 = vmatpush1.bf16.msra.mxu1 %v10128_v36  ;;  %v1568_v36 = vld [vmem:[#allocation12 + $0x60] sm:$0xff] }
 0x1ec   :  { %v1057_v51 = vsel %vm8212_vm3, 0, %v8211_v53  ;;  %10131 = vmatprep.subr.bf16.mxu1 %v10130_v16  ;;  %v1306_v53 = vld [vmem:[#allocation9 + $0x98] sm:$0xff]  ;;  %v10156_v8 = vpack.c.bf16 %v1568_v36, %v1564_v25  ;;  %v1573_v16 = vld [vmem:[#allocation12 + $0x88] sm:$0xff] }
 0x1ed   :  { %v1058_v21 = vsub.s32 32, %v1057_v51  ;;  %v1062_v54 = vsub.s32 4294967266, %v1057_v51  ;;  %v1059_v15 = vshll.u32 %v1050_v5, %v1057_v51  ;;  %v1607_v25 = vld [vmem:[#allocation12 + $0x198] sm:$0xff] }
 0x1ee   :  { %v1611_v36 = vld [vmem:[#allocation12 + $0x1b8] sm:$0xff] }
 0x1ef   :  { %v1060_v38 = vshrl.u32 %v1042_v52, %v1058_v21  ;;  %v1063_v31 = vadd.s32 127, %v1062_v54  ;;  %10133 = vmatpush1.bf16.msra.mxu1 %v10132_v29  ;;  %v1305_v21 = vld [vmem:[#allocation9 + $0x90] sm:$0xff]  ;;  %v1308_v54 = vld [vmem:[#allocation9 + $0xa8] sm:$0xff] }
 0x1f0   :  { %v10366_v13 = vpop.eup %10365  ;;  %v1577_v29 = vld [vmem:[#allocation12 + $0xa8] sm:$0xff] }
 0x1f1   :  { %v10368_v32 = vpop.eup %10367  ;;  %v982_v41 = vxor.u32 2147483648, %v10366_v13  ;;  %v1061_v42 = vor.u32 %v1060_v38, %v1059_v15  ;;  %v1064_v23 = vshll.u32 %v1063_v31, 23  ;;  %v1310_v15 = vld [vmem:[#allocation9 + $0xb8] sm:$0xff]  ;;  %v1307_v38 = vld [vmem:[#allocation9 + $0xa0] sm:$0xff]  ;;  %v1309_v31 = vld [vmem:[#allocation9 + $0xb0] sm:$0xff] }
 0x1f2   :  { %v979_v48 = vxor.u32 2147483648, %v10368_v32 }
 0x1f3   :  { %v983_v14 = vsel %vm981_vm5, %v982_v41, %v10368_v32  ;;  %v1065_v62 = vor.u32 4788187, %v1064_v23  ;;  %v1068_v17 = vcvt.s32.f32 %v1061_v42  ;;  %v10138_v32 = vpack.c.bf16 %v1310_v15, %v1308_v54  ;;  %v1576_v15 = vld [vmem:[#allocation12 + $0xa0] sm:$0xff] }
 0x1f4   :  { %v980_v1 = vsel %vm978_vm7, %v10366_v13, %v979_v48  ;;  %v10136_v13 = vpack.c.bf16 %v1305_v21, %v1303_v57  ;;  %v10140_v41 = vpack.c.bf16 %v1309_v31, %v1307_v38  ;;  %v11816_v48 = vld [vmem:[#allocation7] ss:$0 sm:$0xff]  ;;  %v1572_v21 = vld [vmem:[#allocation12 + $0x80] sm:$0xff]  ;;  %v1574_v38 = vld [vmem:[#allocation12 + $0x90] sm:$0xff]  ;;  %vm7656_vm7 = vcmask 523264  }
 0x1f5   :  { %v984_v0 = vsel %vm977_vm8, %v980_v1, %v983_v14  ;;  %v1066_v26 = vand.u32 2147483647, %v1065_v62  ;;  %v1579_v57 = vld [vmem:[#allocation12 + $0xb8] sm:$0xff]  ;;  %v1578_v31 = vld [vmem:[#allocation12 + $0xb0] sm:$0xff] }
 0x1f6   :  { %v985_v20 = vsel %vm974_vm1, nan, %v984_v0 }
 0x1f7   :  { %9323 = vmatprep.mubr.msk.f32.mxu0 %vm1101_vm9, %v985_v20  ;;  %v1069_v28 = vmul.f32 %v1068_v17, %v1066_v26  ;;  %v1312_v20 = vld [vmem:[#allocation9 + $0xc8] sm:$0xff]  ;;  %v1314_v26 = vld [vmem:[#allocation9 + $0xd8] sm:$0xff] }
 0x1f8   :  { %v10142_v17 = vpack.c.bf16 %v1314_v26, %v1312_v20  ;;  %v1584_v20 = vld [vmem:[#allocation12 + $0xe0] sm:$0xff]  ;;  %v1589_v26 = vld [vmem:[#allocation12 + $0x108] sm:$0xff] }
 0x1f9   :  { %v1070_v52 = vxor.u32 2147483648, %v1069_v28 }
 0x1fb   :  { %v1071_v7 = vsel %vm988_vm2, %v1070_v52, %v1069_v28  ;;  %v1311_v28 = vld [vmem:[#allocation9 + $0xc0] sm:$0xff] }
 0x1fc   :  { %v1074_v3 = vsel %vm11804_vm11, %v15280_v4, %v1071_v7  ;;  %v1304_v4 = vld [vmem:[#allocation9 + $0x88] sm:$0xff]  ;;  %v10144_v52 = vpack.c.bf16 %v1313_v9, %v1311_v28  ;;  %v1318_v7 = vld [vmem:[#allocation9 + $0xf8] sm:$0xff] }
 0x1fd   :  { %10369 = vcosq.f32 %v1074_v3  ;;  %v10134_v51 = vpack.c.bf16 %v1306_v53, %v1304_v4  ;;  %v10146_v12 = vpack.c.bf16 %v1318_v7, %v1316_v11  ;;  %v10220_v4 = vpack.c.bf16 %v1570_v55, %v1566_v49  ;;  %v1582_v28 = vld [vmem:[#allocation12 + $0xd0] sm:$0xff]  ;;  %v1608_v55 = vld [vmem:[#allocation12 + $0x1a0] sm:$0xff] }
 0x1fe   :  { %10371 = vsinq.f32 %v1074_v3  ;;  %v1315_v3 = vld [vmem:[#allocation9 + $0xe0] sm:$0xff]  ;;  %v10158_v53 = vpack.c.bf16 %v1577_v29, %v1573_v16  ;;  %v1586_v9 = vld [vmem:[#allocation12 + $0xf0] sm:$0xff]  ;;  %v1613_v29 = vld [vmem:[#allocation12 + $0x1c8] sm:$0xff] }
 0x1ff   :  { %10135 = vmatprep.subr.bf16.mxu1 %v10134_v51  ;;  %v10148_v6 = vpack.c.bf16 %v1317_v56, %v1315_v3  ;;  %v1575_v51 = vld [vmem:[#allocation12 + $0x98] sm:$0xff]  ;;  %v10228_v43 = vpack.c.bf16 %v1586_v9, %v1582_v28 }
 0x200   :  { %10137 = vmatpush1.bf16.msra.mxu1 %v10136_v13  ;;  %v10222_v13 = vpack.c.bf16 %v1579_v57, %v1575_v51  ;;  %v1595_v3 = vld [vmem:[#allocation12 + $0x138] sm:$0xff]  ;;  %v1606_v51 = vld [vmem:[#allocation12 + $0x190] sm:$0xff] }
 0x201   :  { %10139 = vmatprep.subr.bf16.mxu1 %v10138_v32  ;;  %v10160_v32 = vpack.c.bf16 %v1576_v15, %v1572_v21  ;;  %v1610_v57 = vld [vmem:[#allocation12 + $0x1b0] sm:$0xff] }
 0x204   :  { %10141 = vmatpush1.bf16.msra.mxu1 %v10140_v41  ;;  %v1581_v41 = vld [vmem:[#allocation12 + $0xc8] sm:$0xff] }
 0x205   :  { %10143 = vmatprep.subr.bf16.mxu1 %v10142_v17 }
 0x207   :  { %v10370_v50 = vpop.eup %10369 }
 0x208   :  { %v10372_v46 = vpop.eup %10371  ;;  %v1086_v27 = vxor.u32 2147483648, %v10370_v50  ;;  %10145 = vmatpush1.bf16.msra.mxu1 %v10144_v52  ;;  %v1593_v52 = vld [vmem:[#allocation12 + $0x128] sm:$0xff] }
 0x209   :  { %v1083_v30 = vxor.u32 2147483648, %v10372_v46  ;;  %10147 = vmatprep.subr.bf16.mxu1 %v10146_v12  ;;  %v1591_v12 = vld [vmem:[#allocation12 + $0x118] sm:$0xff] }
 0x20a   :  { %v1087_v47 = vsel %vm1085_vm12, %v1086_v27, %v10372_v46  ;;  %v10152_v46 = vpack.c.bf16 %v1560_v19, %v1556_v59  ;;  %v1558_v27 = vld [vmem:[#allocation12 + $0x10] sm:$0xff] }
 0x20b   :  { %v1084_v35 = vsel %vm1082_vm0, %v10370_v50, %v1083_v30  ;;  %v10214_v50 = vpack.c.bf16 %v1563_v18, %v1559_v37  ;;  %v1562_v30 = vld [vmem:[#allocation12 + $0x30] sm:$0xff]  ;;  %v1601_v37 = vld [vmem:[#allocation12 + $0x168] sm:$0xff]  ;;  %v10230_v18 = vpack.c.bf16 %v1595_v3, %v1591_v12 }
 0x20c   :  { %v1088_v60 = vsel %vm1081_vm13, %v1084_v35, %v1087_v47  ;;  %10149 = vmatpush1.bf16.msra.mxu1 %v10148_v6  ;;  %v1565_v47 = vld [vmem:[#allocation12 + $0x48] sm:$0xff]  ;;  %10153 = vmatpush1.bf16.msra.mxu0 %v10152_v46  ;;  %v1590_v59 = vld [vmem:[#allocation12 + $0x110] sm:$0xff]  ;;  %v1599_v46 = vld [vmem:[#allocation12 + $0x158] sm:$0xff] }
 0x20d   :  { %v1089_v5 = vsel %vm1078_vm15, nan, %v1088_v60  ;;  %v10216_v60 = vpack.c.bf16 %v1562_v30, %v1558_v27  ;;  %10215 = vmatprep.subr.bf16.mxu1 %v10214_v50  ;;  %v1594_v19 = vld [vmem:[#allocation12 + $0x130] sm:$0xff]  ;;  %v1603_v27 = vld [vmem:[#allocation12 + $0x178] sm:$0xff]  ;;  %v10170_v30 = vpack.c.bf16 %v1601_v37, %v1597_v39 }
 0x20e   :  { %9324 = vmatmul.mubr.msk.f32.gmra.mrb[6].mxu0 %vm1101_vm9, %v1089_v5  ;;  %v1569_v5 = vld [vmem:[#allocation12 + $0x68] sm:$0xff]  ;;  %v10234_v58 = vpack.c.bf16 %v1603_v27, %v1599_v46 }
 0x20f   :  { %v10154_v2 = vpack.c.bf16 %v1569_v5, %v1565_v47  ;;  %v1596_v47 = vld [vmem:[#allocation12 + $0x140] sm:$0xff]  ;;  %v1605_v5 = vld [vmem:[#allocation12 + $0x188] sm:$0xff] }
 0x210   :  { %v10174_v49 = vpack.c.bf16 %v1609_v34, %v1605_v5  ;;  %v1625_v5 = vld [vmem:[#allocation12 + $0x228] sm:$0xff]  ;;  %v1623_v34 = vld [vmem:[#allocation12 + $0x218] sm:$0xff] }
 0x211   :  { %10155 = vmatprep.subr.bf16.mxu0 %v10154_v2  ;;  %v1602_v2 = vld [vmem:[#allocation12 + $0x170] sm:$0xff] }
 0x212   :  { %10157 = vmatpush1.bf16.msra.mxu0 %v10156_v8  ;;  %v1604_v8 = vld [vmem:[#allocation12 + $0x180] sm:$0xff] }
 0x213   :  { %10159 = vmatprep.subr.bf16.mxu0 %v10158_v53  ;;  %v10238_v53 = vpack.c.bf16 %v1611_v36, %v1607_v25  ;;  %v10176_v21 = vpack.c.bf16 %v1608_v55, %v1604_v8  ;;  %v1629_v8 = vld [vmem:[#allocation12 + $0x248] sm:$0xff] }
 0x216   :  { %10161 = vmatpush1.bf16.msra.mxu0 %v10160_v32  ;;  %v10240_v32 = vpack.c.bf16 %v1610_v57, %v1606_v51 }
 0x269   :  { %v9316_v42 = vpop.f32.mrb[0].mxu0 }
 0x26a   :  { %v11819_v23 = vadd.f32 %v9316_v42, %v11816_v48  ;;  %v1192_v14 = vpop.f32.mrb[1].mxu0  ;;  %v1585_v42 = vld [vmem:[#allocation12 + $0xe8] sm:$0xff] }
 0x26b   :  { %v1193_v1 = vadd.f32 %v11816_v48, %v1192_v14  ;;  %v1583_v14 = vld [vmem:[#allocation12 + $0xd8] sm:$0xff] }
 0x26c   :  { %v8223_v62 = vmul.f32 -1.442695, %v11819_v23 }
 0x26d   :  { %v8222_v0 = vmul.f32 -1.442695, %v1193_v1 }
 0x26e   :  { %10373 = vpow2.f32 %v8223_v62  ;;  %v1587_v62 = vld [vmem:[#allocation12 + $0xf8] sm:$0xff] }
 0x26f   :  { %10375 = vpow2.f32 %v8222_v0  ;;  %v1580_v0 = vld [vmem:[#allocation12 + $0xc0] sm:$0xff]  ;;  %v10226_v17 = vpack.c.bf16 %v1587_v62, %v1583_v14  ;;  %v1614_v14 = vld [vmem:[#allocation12 + $0x1d0] sm:$0xff] }
 0x270   :  { %v10164_v7 = vpack.c.bf16 %v1584_v20, %v1580_v0 }
 0x278   :  { %v10374_v24 = vpop.eup %10373 }
 0x279   :  { %v10376_v33 = vpop.eup %10375  ;;  %v1256_v63 = vadd.f32 1.0, %v10374_v24  ;;  %v10166_v24 = vpack.c.bf16 %v1593_v52, %v1589_v26 }
 0x27a   :  { %v1255_v22 = vadd.f32 1.0, %v10376_v33  ;;  %v1588_v33 = vld [vmem:[#allocation12 + $0x100] sm:$0xff] }
 0x27c   :  { %10377 = vrcp.f32 %v1255_v22 }
 0x27d   :  { %10379 = vrcp.f32 %v1256_v63  ;;  %v1592_v63 = vld [vmem:[#allocation12 + $0x120] sm:$0xff] }
 0x27e   :  { %v10168_v50 = vpack.c.bf16 %v1592_v63, %v1588_v33 }
 0x286   :  { %v10378_v61 = vpop.eup %10377 }
 0x287   :  { %v1279_v35 = vmul.f32 %v10378_v61, %v1193_v1  ;;  %v10380_v45 = vpop.eup %10379  ;;  %v10162_v1 = vpack.c.bf16 %v1585_v42, %v1581_v41 }
 0x288   :  { %v1280_v54 = vmul.f32 %v10380_v45, %v11819_v23  ;;  %v10224_v23 = vpack.c.bf16 %v1578_v31, %v1574_v38  ;;  %v1598_v45 = vld [vmem:[#allocation12 + $0x150] sm:$0xff]  ;;  %v1612_v38 = vld [vmem:[#allocation12 + $0x1c0] sm:$0xff] }
 0x289   :  { %1396 = vmatmul.mubr.f32.vlgmr.msra.gmra.mrb[0].mxu1 %v1279_v35  ;;  %10163 = vmatprep.subr.bf16.mxu0 %v10162_v1  ;;  %v1600_v35 = vld [vmem:[#allocation12 + $0x160] sm:$0xff]  ;;  %v10236_v16 = vpack.c.bf16 %v1602_v2, %v1598_v45  ;;  %v1618_v1 = vld [vmem:[#allocation12 + $0x1f0] sm:$0xff]  ;;  %v1627_v45 = vld [vmem:[#allocation12 + $0x238] sm:$0xff] }
 0x28a   :  { %1401 = vmatprep.mubr.f32.mxu1 %v10677_v10  ;;  %10217 = vmatpush1.bf16.msra.mxu1 %v10216_v60  ;;  %v10232_v60 = vpack.c.bf16 %v1594_v19, %v1590_v59  ;;  %v1616_v31 = vld [vmem:[#allocation12 + $0x1e0] sm:$0xff]  ;;  %v10244_v26 = vpack.c.bf16 %v1618_v1, %v1614_v14  ;;  %v10246_v25 = vpack.c.bf16 %v1627_v45, %v1623_v34  ;;  %v1637_v14 = vld [vmem:[#allocation12 + $0x288] sm:$0xff]  ;;  %v1663_v34 = vld [vmem:[#allocation12 + $0x358] sm:$0xff] }
 0x28b   :  { %10219 = vmatprep.subr.bf16.mxu1 %v10218_v40  ;;  %10165 = vmatpush1.bf16.msra.mxu0 %v10164_v7  ;;  %v10172_v40 = vpack.c.bf16 %v1600_v35, %v1596_v47  ;;  %v10180_v0 = vpack.c.bf16 %v1616_v31, %v1612_v38  ;;  %v1620_v2 = vld [vmem:[#allocation12 + $0x200] sm:$0xff]  ;;  %v1634_v31 = vld [vmem:[#allocation12 + $0x270] sm:$0xff]  ;;  %v1641_v1 = vld [vmem:[#allocation12 + $0x2a8] sm:$0xff] }
 0x28c   :  { %10167 = vmatprep.subr.bf16.mxu0 %v10166_v24  ;;  %v1667_v45 = vld [vmem:[#allocation12 + $0x378] sm:$0xff] }
 0x28d   :  { %1402 = vmatmul.mubr.f32.gmra.mrb[2].mxu1 %v1280_v54  ;;  %v1615_v54 = vld [vmem:[#allocation12 + $0x1d8] sm:$0xff] }
 0x28e   :  { %1407 = vmatprep.mubr.f32.mxu1 %v10677_v10  ;;  %10221 = vmatpush1.bf16.msra.mxu1 %v10220_v4  ;;  %v1617_v4 = vld [vmem:[#allocation12 + $0x1e8] sm:$0xff] }
 0x28f   :  { %10223 = vmatprep.subr.bf16.mxu1 %v10222_v13  ;;  %10169 = vmatpush1.bf16.msra.mxu0 %v10168_v50  ;;  %v1619_v13 = vld [vmem:[#allocation12 + $0x1f8] sm:$0xff]  ;;  %v10178_v15 = vpack.c.bf16 %v1617_v4, %v1613_v29 }
 0x290   :  { %10171 = vmatprep.subr.bf16.mxu0 %v10170_v30  ;;  %v10242_v42 = vpack.c.bf16 %v1619_v13, %v1615_v54  ;;  %v1631_v29 = vld [vmem:[#allocation12 + $0x258] sm:$0xff]  ;;  %v1632_v54 = vld [vmem:[#allocation12 + $0x260] sm:$0xff]  ;;  %v1630_v13 = vld [vmem:[#allocation12 + $0x250] sm:$0xff] }
 0x291   :  { %v1635_v4 = vld [vmem:[#allocation12 + $0x278] sm:$0xff] }
 0x292   :  { %v9319_v11 = vpop.f32.mrb[2].mxu0  ;;  %10225 = vmatpush1.bf16.msra.mxu1 %v10224_v23  ;;  %v10250_v57 = vpack.c.bf16 %v1635_v4, %v1631_v29  ;;  %v1319_v4 = vld [vmem:[#allocation10] sm:$0x3] }
 0x293   :  { %v11828_v56 = vadd.f32 %v9319_v11, %v11816_v48  ;;  %v1202_v6 = vpop.f32.mrb[3].mxu0  ;;  %10227 = vmatprep.subr.bf16.mxu1 %v10226_v17  ;;  %10173 = vmatpush1.bf16.msra.mxu0 %v10172_v40  ;;  %v1624_v40 = vld [vmem:[#allocation12 + $0x220] sm:$0xff] }
 0x294   :  { %v11831_v22 = vadd.f32 %v11816_v48, %v1202_v6  ;;  %10175 = vmatprep.subr.bf16.mxu0 %v10174_v49  ;;  %v10184_v36 = vpack.c.bf16 %v1624_v40, %v1620_v2  ;;  %v1626_v49 = vld [vmem:[#allocation12 + $0x230] sm:$0xff]  ;;  %v1660_v2 = vld [vmem:[#allocation12 + $0x340] sm:$0xff] }
 0x295   :  { %v8225_v44 = vmul.f32 -1.442695, %v11828_v56  ;;  %v1664_v40 = vld [vmem:[#allocation12 + $0x360] sm:$0xff] }
 0x296   :  { %v8224_v61 = vmul.f32 -1.442695, %v11831_v22  ;;  %10229 = vmatpush1.bf16.msra.mxu1 %v10228_v43 }
 0x297   :  { %10381 = vpow2.f32 %v8225_v44  ;;  %10231 = vmatprep.subr.bf16.mxu1 %v10230_v18  ;;  %10177 = vmatpush1.bf16.msra.mxu0 %v10176_v21  ;;  %v1628_v21 = vld [vmem:[#allocation12 + $0x240] sm:$0xff] }
 0x298   :  { %10383 = vpow2.f32 %v8224_v61  ;;  %10179 = vmatprep.subr.bf16.mxu0 %v10178_v15  ;;  %v10188_v38 = vpack.c.bf16 %v1632_v54, %v1628_v21 }
 0x29a   :  { %10233 = vmatpush1.bf16.msra.mxu1 %v10232_v60  ;;  %v1621_v60 = vld [vmem:[#allocation12 + $0x208] sm:$0xff] }
 0x29b   :  { %10235 = vmatprep.subr.bf16.mxu1 %v10234_v58  ;;  %10181 = vmatpush1.bf16.msra.mxu0 %v10180_v0  ;;  %v10182_v58 = vpack.c.bf16 %v1625_v5, %v1621_v60  ;;  %v10190_v0 = vpack.c.bf16 %v1641_v1, %v1637_v14  ;;  %v1661_v60 = vld [vmem:[#allocation12 + $0x348] sm:$0xff] }
 0x29c   :  { %v1665_v5 = vld [vmem:[#allocation12 + $0x368] sm:$0xff] }
 0x29d   :  { %10183 = vmatprep.subr.bf16.mxu0 %v10182_v58  ;;  %v10202_v58 = vpack.c.bf16 %v1665_v5, %v1661_v60  ;;  %v1669_v14 = vld [vmem:[#allocation12 + $0x388] sm:$0xff]  ;;  %v1932_v60 = vld [vmem:[#allocation2] sm:$0xff] }
 0x29e   :  { %10237 = vmatpush1.bf16.msra.mxu1 %v10236_v16  ;;  %v1633_v16 = vld [vmem:[#allocation12 + $0x268] sm:$0xff] }
 0x29f   :  { %10239 = vmatprep.subr.bf16.mxu1 %v10238_v53  ;;  %10185 = vmatpush1.bf16.msra.mxu0 %v10184_v36  ;;  %v10186_v51 = vpack.c.bf16 %v1633_v16, %v1629_v8  ;;  %v10204_v36 = vpack.c.bf16 %v1664_v40, %v1660_v2  ;;  %v1673_v1 = vld [vmem:[#allocation12 + $0x3a8] sm:$0xff] }
 0x2a1   :  { %v10382_v41 = vpop.eup %10381  ;;  %10187 = vmatprep.subr.bf16.mxu0 %v10186_v51 }
 0x2a2   :  { %v10384_v62 = vpop.eup %10383  ;;  %v1258_v20 = vadd.f32 1.0, %v10382_v41  ;;  %10241 = vmatpush1.bf16.msra.mxu1 %v10240_v32  ;;  %v10252_v41 = vpack.c.bf16 %v1634_v31, %v1630_v13 }
 0x2a3   :  { %v1257_v23 = vadd.f32 1.0, %v10384_v62  ;;  %10243 = vmatprep.subr.bf16.mxu1 %v10242_v42  ;;  %10189 = vmatpush1.bf16.msra.mxu0 %v10188_v38  ;;  %v1639_v62 = vld [vmem:[#allocation12 + $0x298] sm:$0xff] }
 0x2a4   :  { %10191 = vmatprep.subr.bf16.mxu0 %v10190_v0 }
 0x2a5   :  { %10385 = vrcp.f32 %v1257_v23  ;;  %v1636_v23 = vld [vmem:[#allocation12 + $0x280] sm:$0xff] }
 0x2a6   :  { %10387 = vrcp.f32 %v1258_v20  ;;  %10245 = vmatpush1.bf16.msra.mxu1 %v10244_v26  ;;  %v1643_v20 = vld [vmem:[#allocation12 + $0x2b8] sm:$0xff]  ;;  %v1640_v26 = vld [vmem:[#allocation12 + $0x2a0] sm:$0xff] }
 0x2a7   :  { %10247 = vmatprep.subr.bf16.mxu1 %v10246_v25  ;;  %v10266_v25 = vpack.c.bf16 %v1667_v45, %v1663_v34 }
 0x2af   :  { %v10386_v17 = vpop.eup %10385 }
 0x2b0   :  { %v1281_v28 = vmul.f32 %v10386_v17, %v11831_v22  ;;  %v10388_v9 = vpop.eup %10387  ;;  %v10254_v17 = vpack.c.bf16 %v1643_v20, %v1639_v62  ;;  %v1671_v62 = vld [vmem:[#allocation12 + $0x398] sm:$0xff]  ;;  %v10206_v20 = vpack.c.bf16 %v1673_v1, %v1669_v14 }
 0x2b1   :  { %v1282_v52 = vmul.f32 %v10388_v9, %v11828_v56  ;;  %v1638_v9 = vld [vmem:[#allocation12 + $0x290] sm:$0xff] }
 0x2b2   :  { %1408 = vmatmul.mubr.f32.gmra.mrb[4].mxu1 %v1281_v28  ;;  %v10192_v28 = vpack.c.bf16 %v1640_v26, %v1636_v23  ;;  %v1675_v23 = vld [vmem:[#allocation12 + $0x3b8] sm:$0xff]  ;;  %v1668_v26 = vld [vmem:[#allocation12 + $0x380] sm:$0xff] }
 0x2b3   :  { %1413 = vmatprep.mubr.f32.mxu1 %v10677_v10 }
 0x2b4   :  { %10193 = vmatpush1.bf16.msra.mxu0 %v10192_v28 }
 0x2b6   :  { %1414 = vmatmul.mubr.f32.gmra.mrb[6].mxu1 %v1282_v52  ;;  %v1642_v52 = vld [vmem:[#allocation12 + $0x2b0] sm:$0xff] }
 0x2b7   :  { %1419 = vmatprep.mubr.f32.mxu1 %v10677_v10 }
 0x2ba   :  { %v9322_v11 = vpop.f32.mrb[4].mxu0 }
 0x2bb   :  { %v1218_v7 = vadd.f32 %v9322_v11, %v11816_v48  ;;  %v1212_v12 = vpop.f32.mrb[5].mxu0  ;;  %v10256_v11 = vpack.c.bf16 %v1642_v52, %v1638_v9  ;;  %v10270_v9 = vpack.c.bf16 %v1675_v23, %v1671_v62 }
 0x2bc   :  { %v1213_v3 = vadd.f32 %v11816_v48, %v1212_v12  ;;  %v1647_v12 = vld [vmem:[#allocation12 + $0x2d8] sm:$0xff] }
 0x2bd   :  { %v8227_v6 = vmul.f32 -1.442695, %v1218_v7 }
 0x2be   :  { %v8226_v24 = vmul.f32 -1.442695, %v1213_v3 }
 0x2bf   :  { %10389 = vpow2.f32 %v8227_v6  ;;  %v1651_v6 = vld [vmem:[#allocation12 + $0x2f8] sm:$0xff] }
 0x2c0   :  { %10391 = vpow2.f32 %v8226_v24  ;;  %v1644_v24 = vld [vmem:[#allocation12 + $0x2c0] sm:$0xff] }
 0x2c9   :  { %v10390_v33 = vpop.eup %10389 }
 0x2ca   :  { %v10392_v63 = vpop.eup %10391  ;;  %v1260_v22 = vadd.f32 1.0, %v10390_v33  ;;  %v1648_v33 = vld [vmem:[#allocation12 + $0x2e0] sm:$0xff] }
 0x2cb   :  { %v1259_v43 = vadd.f32 1.0, %v10392_v63  ;;  %v10258_v63 = vpack.c.bf16 %v1651_v6, %v1647_v12  ;;  %v1681_v6 = vld [vmem:[#allocation12 + $0x3e8] sm:$0xff] }
 0x2cd   :  { %10393 = vrcp.f32 %v1259_v43  ;;  %v1646_v43 = vld [vmem:[#allocation12 + $0x2d0] sm:$0xff] }
 0x2ce   :  { %10395 = vrcp.f32 %v1260_v22  ;;  %v10196_v22 = vpack.c.bf16 %v1648_v33, %v1644_v24  ;;  %v1679_v24 = vld [vmem:[#allocation12 + $0x3d8] sm:$0xff] }
 0x2d7   :  { %v10394_v56 = vpop.eup %10393 }
 0x2d8   :  { %v1283_v39 = vmul.f32 %v10394_v56, %v1213_v3  ;;  %v10396_v37 = vpop.eup %10395  ;;  %v1650_v56 = vld [vmem:[#allocation12 + $0x2f0] sm:$0xff] }
 0x2d9   :  { %v1284_v44 = vmul.f32 %v10396_v37, %v1218_v7  ;;  %v1649_v7 = vld [vmem:[#allocation12 + $0x2e8] sm:$0xff] }
 0x2da   :  { %1420 = vmatmul.mubr.f32.gmra.mrb[8].mxu1 %v1283_v39  ;;  %v10260_v39 = vpack.c.bf16 %v1650_v56, %v1646_v43  ;;  %v1653_v37 = vld [vmem:[#allocation12 + $0x308] sm:$0xff]  ;;  %v1680_v43 = vld [vmem:[#allocation12 + $0x3e0] sm:$0xff] }
 0x2db   :  { %1425 = vmatprep.mubr.f32.mxu1 %v10677_v10 }
 0x2de   :  { %1426 = vmatmul.mubr.f32.gmra.mrb[10].mxu1 %v1284_v44  ;;  %v1657_v44 = vld [vmem:[#allocation12 + $0x328] sm:$0xff] }
 0x2df   :  { %1431 = vmatprep.mubr.f32.mxu1 %v10677_v10 }
 0x2e1   :  { %v9325_v18 = vpop.f32.mrb[6].mxu0 }
 0x2e2   :  { %v1228_v59 = vadd.f32 %v9325_v18, %v11816_v48  ;;  %v1222_v19 = vpop.f32.mrb[7].mxu0  ;;  %v1655_v18 = vld [vmem:[#allocation12 + $0x318] sm:$0xff] }
 0x2e3   :  { %v1223_v61 = vadd.f32 %v11816_v48, %v1222_v19  ;;  %v1622_v48 = vld [vmem:[#allocation12 + $0x210] sm:$0xff]  ;;  %v1659_v19 = vld [vmem:[#allocation12 + $0x338] sm:$0xff] }
 0x2e4   :  { %v8229_v50 = vmul.f32 -1.442695, %v1228_v59  ;;  %v10248_v55 = vpack.c.bf16 %v1626_v49, %v1622_v48  ;;  %v1662_v48 = vld [vmem:[#allocation12 + $0x350] sm:$0xff] }
 0x2e5   :  { %v8228_v46 = vmul.f32 -1.442695, %v1223_v61  ;;  %v1666_v49 = vld [vmem:[#allocation12 + $0x370] sm:$0xff] }
 0x2e6   :  { %10397 = vpow2.f32 %v8229_v50  ;;  %10249 = vmatpush1.bf16.msra.mxu1 %v10248_v55  ;;  %v1656_v50 = vld [vmem:[#allocation12 + $0x320] sm:$0xff]  ;;  %v10268_v8 = vpack.c.bf16 %v1666_v49, %v1662_v48  ;;  %v1321_v55 = vlaneseq }
 0x2e7   :  { %10399 = vpow2.f32 %v8228_v46  ;;  %10251 = vmatprep.subr.bf16.mxu1 %v10250_v57  ;;  %v10262_v46 = vpack.c.bf16 %v1659_v19, %v1655_v18 }
 0x2e8   :  { %v11847_v16 = vshrl.u32 %v1321_v55, 7 }
 0x2ea   :  { %10253 = vmatpush1.bf16.msra.mxu1 %v10252_v41  ;;  %v11850_v29 = vsub.s32 0, %v11847_v16  ;;  %v1696_v5 = vsub.s32 2, %v11847_v16  ;;  %v1965_v2 = vsub.s32 4, %v11847_v16  ;;  %v1700_v48 = vsub.s32 3, %v11847_v16 }
 0x2eb   :  { %10255 = vmatprep.subr.bf16.mxu1 %v10254_v17  ;;  %v1672_v17 = vld [vmem:[#allocation12 + $0x3a0] sm:$0xff] }
 0x2ec   :  { %v11856_v51 = vrot.slane %v1319_v4, %v11850_v29  ;;  %v10208_v52 = vpack.c.bf16 %v1672_v17, %v1668_v26 }
 0x2ee   :  { %10257 = vmatpush1.bf16.msra.mxu1 %v10256_v11  ;;  %v1670_v11 = vld [vmem:[#allocation12 + $0x390] sm:$0xff] }
 0x2ef   :  { %10259 = vmatprep.subr.bf16.mxu1 %v10258_v63  ;;  %v1683_v63 = vld [vmem:[#allocation12 + $0x3f8] sm:$0xff] }
 0x2f0   :  { %v10398_v27 = vpop.eup %10397  ;;  %v10274_v56 = vpack.c.bf16 %v1683_v63, %v1679_v24 }
 0x2f1   :  { %v10400_v30 = vpop.eup %10399  ;;  %v1262_v47 = vadd.f32 1.0, %v10398_v27 }
 0x2f2   :  { %v1261_v35 = vadd.f32 1.0, %v10400_v30  ;;  %10261 = vmatpush1.bf16.msra.mxu1 %v10260_v39  ;;  %v1654_v30 = vld [vmem:[#allocation12 + $0x310] sm:$0xff] }
 0x2f3   :  { %10263 = vmatprep.subr.bf16.mxu1 %v10262_v46 }
 0x2f4   :  { %10401 = vrcp.f32 %v1261_v35 }
 0x2f5   :  { %10403 = vrcp.f32 %v1262_v47  ;;  %v1658_v47 = vld [vmem:[#allocation12 + $0x330] sm:$0xff] }
 0x2f6   :  { %v10264_v35 = vpack.c.bf16 %v1658_v47, %v1654_v30 }
 0x2f8   :  { %10265 = vmatpush1.bf16.msra.mxu1 %v10264_v35 }
 0x2f9   :  { %10267 = vmatprep.subr.bf16.mxu1 %v10266_v25  ;;  %v1952_v25 = vrot.slane %v1932_v60, %v1696_v5 }
 0x2fc   :  { %10269 = vmatpush1.bf16.msra.mxu1 %v10268_v8 }
 0x2fd   :  { %10271 = vmatprep.subr.bf16.mxu1 %v10270_v9 }
 0x2fe   :  { %v10402_v53 = vpop.eup %10401 }
 0x2ff   :  { %v1285_v15 = vmul.f32 %v10402_v53, %v1223_v61  ;;  %v10404_v32 = vpop.eup %10403  ;;  %v1652_v61 = vld [vmem:[#allocation12 + $0x300] sm:$0xff]  ;;  %v11853_v53 = vsub.s32 1, %v11847_v16 }
 0x300   :  { %v1286_v42 = vmul.f32 %v10404_v32, %v1228_v59  ;;  %v10198_v59 = vpack.c.bf16 %v1657_v44, %v1653_v37  ;;  %v10200_v27 = vpack.c.bf16 %v1656_v50, %v1652_v61  ;;  %v1678_v37 = vld [vmem:[#allocation12 + $0x3d0] sm:$0xff] }
 0x301   :  { %1432 = vmatmul.mubr.f32.gmra.mrb[12].mxu1 %v1285_v15  ;;  %v11859_v57 = vrot.slane %v1319_v4, %v11853_v53  ;;  %v1682_v44 = vld [vmem:[#allocation12 + $0x3f0] sm:$0xff] }
 0x302   :  { %1437 = vmatprep.mubr.f32.mxu1 %v10677_v10  ;;  %v1645_v10 = vld [vmem:[#allocation12 + $0x2c8] sm:$0xff]  ;;  %v10276_v18 = vpack.c.bf16 %v1682_v44, %v1678_v37 }
 0x303   :  { %v10194_v3 = vpack.c.bf16 %v1649_v7, %v1645_v10  ;;  %v1674_v10 = vld [vmem:[#allocation12 + $0x3b0] sm:$0xff] }
 0x304   :  { %v10272_v12 = vpack.c.bf16 %v1674_v10, %v1670_v11 }
 0x305   :  { %1438 = vmatmul.mubr.f32.gmra.mrb[14].mxu1 %v1286_v42  ;;  %10195 = vmatprep.subr.bf16.mxu0 %v10194_v3  ;;  %v1677_v3 = vld [vmem:[#allocation12 + $0x3c8] sm:$0xff] }
 0x306   :  { %10197 = vmatpush1.bf16.msra.mxu0 %v10196_v22  ;;  %10273 = vmatpush1.bf16.msra.mxu1 %v10272_v12  ;;  %v10210_v33 = vpack.c.bf16 %v1681_v6, %v1677_v3  ;;  %v1676_v22 = vld [vmem:[#allocation12 + $0x3c0] sm:$0xff] }
 0x307   :  { %10199 = vmatprep.subr.bf16.mxu0 %v10198_v59  ;;  %v10212_v39 = vpack.c.bf16 %v1680_v43, %v1676_v22  ;;  %10275 = vmatprep.subr.bf16.mxu1 %v10274_v56 }
 0x30a   :  { %10201 = vmatpush1.bf16.msra.mxu0 %v10200_v27  ;;  %10277 = vmatpush1.bf16.msra.mxu1 %v10276_v18 }
 0x30b   :  { %10203 = vmatprep.subr.bf16.mxu0 %v10202_v58  ;;  %v1938_v58 = vrot.slane %v1932_v60, %v11850_v29 }
 0x30d   :  { %1940 = vbcast.lane.b32.xlu1 %v1938_v58, 256 }
 0x30e   :  { %10205 = vmatpush1.bf16.msra.mxu0 %v10204_v36  ;;  %v1945_v36 = vrot.slane %v1932_v60, %v11853_v53 }
 0x30f   :  { %10207 = vmatprep.subr.bf16.mxu0 %v10206_v20 }
 0x310   :  { %1947 = vbcast.lane.b32.xlu0 %v1945_v36, 256 }
 0x311   :  { %1954 = vbcast.lane.b32.xlu1 %v1952_v25, 256 }
 0x312   :  { %10209 = vmatpush1.bf16.msra.mxu0 %v10208_v52 }
 0x313   :  { %10211 = vmatprep.subr.bf16.mxu0 %v10210_v33 }
 0x316   :  { %10213 = vmatpush1.bf16.msra.mxu0 %v10212_v39 }
 0x35c   :  { %v1397_v21 = vpop.f32.mrb[0].mxu1 }
 0x35d   :  { %v11862_v54 = vadd.f32 %v1397_v21, %v11856_v51  ;;  %v1399_v13 = vpop.f32.mrb[1].mxu1  ;;  %v1959_v21 = vrot.slane %v1932_v60, %v1700_v48 }
 0x35e   :  { %v1400_v15 = vadd.f32 %v1399_v13, %v11859_v57 }
 0x35f   :  { %v8230_v38 = vmul.f32 -1.442695, %v11862_v54  ;;  %1961 = vbcast.lane.b32.xlu0 %v1959_v21, 256 }
 0x360   :  { %v8231_v31 = vmul.f32 -1.442695, %v1400_v15  ;;  %v1403_v32 = vpop.f32.mrb[2].mxu1 }
 0x361   :  { %10405 = vpow2.f32 %v8230_v38  ;;  %v11867_v41 = vadd.f32 %v1403_v32, %v11856_v51  ;;  %v1405_v42 = vpop.f32.mrb[3].mxu1  ;;  %v1979_v38 = vsub.s32 6, %v11847_v16  ;;  %v1986_v32 = vsub.s32 7, %v11847_v16 }
 0x362   :  { %10407 = vpow2.f32 %v8231_v31  ;;  %v11870_v0 = vadd.f32 %v1405_v42, %v11859_v57 }
 0x363   :  { %v8232_v28 = vmul.f32 -1.442695, %v11867_v41  ;;  %v1980_v14 = vrot.slane %v1932_v60, %v1979_v38  ;;  %v1987_v20 = vrot.slane %v1932_v60, %v1986_v32 }
 0x364   :  { %v8233_v7 = vmul.f32 -1.442695, %v11870_v0 }
 0x365   :  { %10409 = vpow2.f32 %v8232_v28 }
 0x366   :  { %10411 = vpow2.f32 %v8233_v7 }
 0x36b   :  { %v10406_v59 = vpop.eup %10405 }
 0x36c   :  { %v10408_v19 = vpop.eup %10407  ;;  %v1492_v61 = vadd.f32 1.0, %v10406_v59 }
 0x36d   :  { %v1493_v50 = vadd.f32 1.0, %v10408_v19 }
 0x36e   :  { %10413 = vrcp.f32 %v1492_v61 }
 0x36f   :  { %v10410_v46 = vpop.eup %10409  ;;  %10415 = vrcp.f32 %v1493_v50 }
 0x370   :  { %v10412_v27 = vpop.eup %10411  ;;  %v1494_v30 = vadd.f32 1.0, %v10410_v46 }
 0x371   :  { %v1495_v47 = vadd.f32 1.0, %v10412_v27 }
 0x372   :  { %10417 = vrcp.f32 %v1494_v30 }
 0x373   :  { %10419 = vrcp.f32 %v1495_v47 }
 0x378   :  { %v10414_v35 = vpop.eup %10413 }
 0x379   :  { %v10416_v34 = vpop.eup %10415  ;;  %v1540_v40 = vmul.f32 %v10414_v35, %v11862_v54  ;;  %v1972_v54 = vsub.s32 5, %v11847_v16 }
 0x37a   :  { %v1541_v45 = vmul.f32 %v10416_v34, %v1400_v15  ;;  %v1966_v15 = vrot.slane %v1932_v60, %v1965_v2 }
 0x37b   :  { %v1973_v31 = vrot.slane %v1932_v60, %v1972_v54 }
 0x37c   :  { %v10418_v49 = vpop.eup %10417  ;;  %1770 = vmatprep.mubr.f32.mxu0 %v1541_v45  ;;  %1883 = vmatprep.mubr.f32.mxu1 %v1541_v45 }
 0x37d   :  { %v10420_v8 = vpop.eup %10419  ;;  %1771 = vmatmul.mubr.f32.vlgmr.msra.gmra.mrb[8].mxu0 %v1540_v40  ;;  %1884 = vmatmul.mubr.f32.vlgmr.msra.gmra.mrb[16].mxu1 %v1540_v40  ;;  %v1542_v13 = vmul.f32 %v10418_v49, %v11867_v41 }
 0x37e   :  { %v1543_v4 = vmul.f32 %v10420_v8, %v11870_v0  ;;  %1968 = vbcast.lane.b32.xlu1 %v1966_v15, 256  ;;  %1975 = vbcast.lane.b32.xlu0 %v1973_v31, 256 }
 0x380   :  { %1776 = vmatprep.mubr.f32.mxu0 %v1543_v4  ;;  %1889 = vmatprep.mubr.f32.mxu1 %v1543_v4 }
 0x381   :  { %1777 = vmatmul.mubr.f32.gmra.mrb[10].mxu0 %v1542_v13  ;;  %1890 = vmatmul.mubr.f32.gmra.mrb[18].mxu1 %v1542_v13 }
 0x382   :  { %1982 = vbcast.lane.b32.xlu1 %v1980_v14, 256  ;;  %1989 = vbcast.lane.b32.xlu0 %v1987_v20, 256 }
 0x385   :  { %v1409_v42 = vpop.f32.mrb[4].mxu1 }
 0x386   :  { %v1410_v1 = vadd.f32 %v1409_v42, %v11856_v51  ;;  %v1411_v62 = vpop.f32.mrb[5].mxu1 }
 0x387   :  { %v1412_v41 = vadd.f32 %v1411_v62, %v11859_v57 }
 0x388   :  { %v8234_v0 = vmul.f32 -1.442695, %v1410_v1 }
 0x389   :  { %v8235_v23 = vmul.f32 -1.442695, %v1412_v41  ;;  %v1415_v26 = vpop.f32.mrb[6].mxu1 }
 0x38a   :  { %10421 = vpow2.f32 %v8234_v0  ;;  %v1416_v17 = vadd.f32 %v1415_v26, %v11856_v51  ;;  %v1417_v28 = vpop.f32.mrb[7].mxu1 }
 0x38b   :  { %10423 = vpow2.f32 %v8235_v23  ;;  %v1418_v9 = vadd.f32 %v1417_v28, %v11859_v57 }
 0x38c   :  { %v8236_v52 = vmul.f32 -1.442695, %v1416_v17 }
 0x38d   :  { %v8237_v11 = vmul.f32 -1.442695, %v1418_v9 }
 0x38e   :  { %10425 = vpow2.f32 %v8236_v52 }
 0x38f   :  { %10427 = vpow2.f32 %v8237_v11 }
 0x394   :  { %v10422_v10 = vpop.eup %10421 }
 0x395   :  { %v10424_v7 = vpop.eup %10423  ;;  %v1496_v12 = vadd.f32 1.0, %v10422_v10 }
 0x396   :  { %v1497_v3 = vadd.f32 1.0, %v10424_v7 }
 0x397   :  { %10429 = vrcp.f32 %v1496_v12 }
 0x398   :  { %v10426_v6 = vpop.eup %10425  ;;  %10431 = vrcp.f32 %v1497_v3 }
 0x399   :  { %v10428_v24 = vpop.eup %10427  ;;  %v1498_v33 = vadd.f32 1.0, %v10426_v6 }
 0x39a   :  { %v1499_v63 = vadd.f32 1.0, %v10428_v24 }
 0x39b   :  { %10433 = vrcp.f32 %v1498_v33 }
 0x39c   :  { %10435 = vrcp.f32 %v1499_v63 }
 0x3a1   :  { %v10430_v22 = vpop.eup %10429 }
 0x3a2   :  { %v10432_v43 = vpop.eup %10431  ;;  %v1544_v39 = vmul.f32 %v10430_v22, %v1410_v1 }
 0x3a3   :  { %v1545_v56 = vmul.f32 %v10432_v43, %v1412_v41 }
 0x3a5   :  { %v10434_v37 = vpop.eup %10433  ;;  %1782 = vmatprep.mubr.f32.mxu0 %v1545_v56  ;;  %1895 = vmatprep.mubr.f32.mxu1 %v1545_v56 }
 0x3a6   :  { %v10436_v44 = vpop.eup %10435  ;;  %1783 = vmatmul.mubr.f32.gmra.mrb[12].mxu0 %v1544_v39  ;;  %1896 = vmatmul.mubr.f32.gmra.mrb[20].mxu1 %v1544_v39  ;;  %v1546_v59 = vmul.f32 %v10434_v37, %v1416_v17 }
 0x3a7   :  { %v1547_v18 = vmul.f32 %v10436_v44, %v1418_v9 }
 0x3a9   :  { %1788 = vmatprep.mubr.f32.mxu0 %v1547_v18  ;;  %1901 = vmatprep.mubr.f32.mxu1 %v1547_v18  ;;  %v1684_v18 = vld [vmem:[#allocation13] sm:$0xf] }
 0x3aa   :  { %1789 = vmatmul.mubr.f32.gmra.mrb[14].mxu0 %v1546_v59  ;;  %1902 = vmatmul.mubr.f32.gmra.mrb[22].mxu1 %v1546_v59  ;;  %v11902_v59 = vrot.slane %v1684_v18, %v11850_v29 }
 0x3ad   :  { %v1421_v19 = vpop.f32.mrb[8].mxu1 }
 0x3ae   :  { %v1422_v61 = vadd.f32 %v1421_v19, %v11856_v51  ;;  %v1423_v50 = vpop.f32.mrb[9].mxu1  ;;  %v11906_v19 = vrot.slane %v1684_v18, %v1696_v5 }
 0x3af   :  { %v1424_v46 = vadd.f32 %v1423_v50, %v11859_v57  ;;  %v1941_v50 = vpop.permute.xlu1 %1940 }
 0x3b0   :  { %v8238_v27 = vmul.f32 -1.442695, %v1422_v61 }
 0x3b1   :  { %v8239_v30 = vmul.f32 -1.442695, %v1424_v46  ;;  %v1427_v47 = vpop.f32.mrb[10].mxu1 }
 0x3b2   :  { %10437 = vpow2.f32 %v8238_v27  ;;  %v1428_v35 = vadd.f32 %v1427_v47, %v11856_v51  ;;  %v1429_v60 = vpop.f32.mrb[11].mxu1  ;;  %v15233_v47 = vmov 1.0  }
 0x3b3   :  { %10439 = vpow2.f32 %v8239_v30  ;;  %v1430_v34 = vadd.f32 %v1429_v60, %v11859_v57 }
 0x3b4   :  { %v8240_v58 = vmul.f32 -1.442695, %v1428_v35 }
 0x3b5   :  { %v8241_v45 = vmul.f32 -1.442695, %v1430_v34 }
 0x3b6   :  { %10441 = vpow2.f32 %v8240_v58 }
 0x3b7   :  { %10443 = vpow2.f32 %v8241_v45 }
 0x3bc   :  { %v10438_v2 = vpop.eup %10437 }
 0x3bd   :  { %v10440_v40 = vpop.eup %10439  ;;  %v1500_v25 = vadd.f32 1.0, %v10438_v2 }
 0x3be   :  { %v1501_v36 = vadd.f32 1.0, %v10440_v40 }
 0x3bf   :  { %10445 = vrcp.f32 %v1500_v25 }
 0x3c0   :  { %v10442_v49 = vpop.eup %10441  ;;  %10447 = vrcp.f32 %v1501_v36 }
 0x3c1   :  { %v10444_v8 = vpop.eup %10443  ;;  %v1502_v4 = vadd.f32 1.0, %v10442_v49 }
 0x3c2   :  { %v1503_v21 = vadd.f32 1.0, %v10444_v8 }
 0x3c3   :  { %10449 = vrcp.f32 %v1502_v4 }
 0x3c4   :  { %10451 = vrcp.f32 %v1503_v21 }
 0x3c9   :  { %v10446_v54 = vpop.eup %10445 }
 0x3ca   :  { %v10448_v13 = vpop.eup %10447  ;;  %v1548_v38 = vmul.f32 %v10446_v54, %v1422_v61  ;;  %v11909_v61 = vand.u32 127, %v1321_v55 }
 0x3cb   :  { %v1549_v15 = vmul.f32 %v10448_v13, %v1424_v46  ;;  %v11911_v46 = vpop.permute.xlu0 %1947  ;;  %v11961_v13 = vrot.slane %v1684_v18, %v11853_v53 }
 0x3cc   :  { %vm1991_vm9 = vcmp.eq.s32.totalorder %v11909_v61, %v1941_v50  ;;  %vm1992_vm4 = vcmp.eq.s32.totalorder %v11909_v61, %v11911_v46 }
 0x3cd   :  { %v10450_v31 = vpop.eup %10449  ;;  %1794 = vmatprep.mubr.f32.mxu0 %v1549_v15  ;;  %1907 = vmatprep.mubr.f32.mxu1 %v1549_v15  ;;  %v11965_v15 = vrot.slane %v1684_v18, %v1700_v48 }
 0x3ce   :  { %v10452_v32 = vpop.eup %10451  ;;  %1795 = vmatmul.mubr.f32.gmra.mrb[16].mxu0 %v1548_v38  ;;  %1908 = vmatmul.mubr.f32.gmra.mrb[24].mxu1 %v1548_v38  ;;  %v1550_v14 = vmul.f32 %v10450_v31, %v1428_v35 }
 0x3cf   :  { %v1551_v42 = vmul.f32 %v10452_v32, %v1430_v34  ;;  %9326 = vmatprep.subr.msk.mxu0 %vm1991_vm9, %v15233_v47  ;;  %10278 = vmatprep.subr.msk.mxu1 %vm1992_vm4, %v15233_v47 }
 0x3d0   :  { %9327 = vmatpush3.msk.msra.mxu0 %vm1991_vm9, %v15233_v47  ;;  %10279 = vmatpush3.msk.msra.mxu1 %vm1992_vm4, %v15233_v47 }
 0x3d1   :  { %1800 = vmatprep.mubr.f32.mxu0 %v1551_v42  ;;  %1913 = vmatprep.mubr.f32.mxu1 %v1551_v42  ;;  %v11932_v60 = vpop.permute.xlu0 %1961 }
 0x3d2   :  { %1801 = vmatmul.mubr.f32.gmra.mrb[18].mxu0 %v1550_v14  ;;  %1914 = vmatmul.mubr.f32.gmra.mrb[26].mxu1 %v1550_v14  ;;  %vm1994_vm14 = vcmp.eq.s32.totalorder %v11909_v61, %v11932_v60 }
 0x3d3   :  { %9424 = vmatprep.subr.msk.mxu0 %vm1992_vm4, %v15233_v47  ;;  %9620 = vmatprep.subr.msk.mxu1 %vm1994_vm14, %v15233_v47 }
 0x3d4   :  { %v1433_v1 = vpop.f32.mrb[12].mxu1 }
 0x3d5   :  { %v1434_v62 = vadd.f32 %v1433_v1, %v11856_v51  ;;  %v1435_v41 = vpop.f32.mrb[13].mxu1 }
 0x3d6   :  { %v1436_v0 = vadd.f32 %v1435_v41, %v11859_v57  ;;  %v11985_v41 = vpop.permute.xlu1 %1954 }
 0x3d7   :  { %v8242_v20 = vmul.f32 -1.442695, %v1434_v62  ;;  %vm1993_vm6 = vcmp.eq.s32.totalorder %v11909_v61, %v11985_v41 }
 0x3d8   :  { %v8243_v23 = vmul.f32 -1.442695, %v1436_v0  ;;  %v1439_v26 = vpop.f32.mrb[14].mxu1 }
 0x3d9   :  { %10453 = vpow2.f32 %v8242_v20  ;;  %v1440_v17 = vadd.f32 %v1439_v26, %v11856_v51  ;;  %v1441_v28 = vpop.f32.mrb[15].mxu1 }
 0x3da   :  { %10455 = vpow2.f32 %v8243_v23  ;;  %v1442_v9 = vadd.f32 %v1441_v28, %v11859_v57 }
 0x3db   :  { %v8244_v52 = vmul.f32 -1.442695, %v1440_v17 }
 0x3dc   :  { %v8245_v11 = vmul.f32 -1.442695, %v1442_v9 }
 0x3dd   :  { %10457 = vpow2.f32 %v8244_v52 }
 0x3de   :  { %10459 = vpow2.f32 %v8245_v11 }
 0x3e3   :  { %v10454_v10 = vpop.eup %10453 }
 0x3e4   :  { %v10456_v7 = vpop.eup %10455  ;;  %v1504_v12 = vadd.f32 1.0, %v10454_v10 }
 0x3e5   :  { %v1505_v3 = vadd.f32 1.0, %v10456_v7 }
 0x3e6   :  { %10461 = vrcp.f32 %v1504_v12 }
 0x3e7   :  { %v10458_v6 = vpop.eup %10457  ;;  %10463 = vrcp.f32 %v1505_v3 }
 0x3e8   :  { %v10460_v24 = vpop.eup %10459  ;;  %v1506_v33 = vadd.f32 1.0, %v10458_v6 }
 0x3e9   :  { %v1507_v63 = vadd.f32 1.0, %v10460_v24 }
 0x3ea   :  { %10465 = vrcp.f32 %v1506_v33 }
 0x3eb   :  { %10467 = vrcp.f32 %v1507_v63 }
 0x3f0   :  { %v10462_v51 = vpop.eup %10461  ;;  %v11997_v28 = vpop.permute.xlu0 %1975 }
 0x3f1   :  { %v10464_v22 = vpop.eup %10463  ;;  %v1552_v57 = vmul.f32 %v10462_v51, %v1434_v62  ;;  %vm1996_vm3 = vcmp.eq.s32.totalorder %v11909_v61, %v11997_v28 }
 0x3f2   :  { %v1553_v43 = vmul.f32 %v10464_v22, %v1436_v0 }
 0x3f4   :  { %v10466_v56 = vpop.eup %10465  ;;  %1806 = vmatprep.mubr.f32.mxu0 %v1553_v43  ;;  %1919 = vmatprep.mubr.f32.mxu1 %v1553_v43  ;;  %v12011_v6 = vpop.permute.xlu0 %1989 }
 0x3f5   :  { %v10468_v39 = vpop.eup %10467  ;;  %1807 = vmatmul.mubr.f32.gmra.mrb[20].mxu0 %v1552_v57  ;;  %1920 = vmatmul.mubr.f32.gmra.mrb[28].mxu1 %v1552_v57  ;;  %v1554_v44 = vmul.f32 %v10466_v56, %v1440_v17  ;;  %v11995_v17 = vpop.permute.xlu1 %1968  ;;  %vm1998_vm1 = vcmp.eq.s32.totalorder %v11909_v61, %v12011_v6 }
 0x3f6   :  { %v1555_v37 = vmul.f32 %v10468_v39, %v1442_v9  ;;  %vm1995_vm5 = vcmp.eq.s32.totalorder %v11909_v61, %v11995_v17 }
 0x3f8   :  { %1812 = vmatprep.mubr.f32.mxu0 %v1555_v37  ;;  %1925 = vmatprep.mubr.f32.mxu1 %v1555_v37 }
 0x3f9   :  { %1813 = vmatmul.mubr.f32.gmra.mrb[22].mxu0 %v1554_v44  ;;  %1926 = vmatmul.mubr.f32.gmra.mrb[30].mxu1 %v1554_v44  ;;  %v12009_v3 = vpop.permute.xlu1 %1982 }
 0x3fa   :  { %vm1997_vm8 = vcmp.eq.s32.totalorder %v11909_v61, %v12009_v3 }
 0x450   :  { %v1772_v27 = vpop.f32.mrb[8].mxu0  ;;  %v1885_v30 = vpop.f32.mrb[16].mxu1 }
 0x451   :  { %v1773_v55 = vadd.f32 %v1772_v27, %v11902_v59  ;;  %v1886_v29 = vadd.f32 %v1885_v30, %v11906_v19  ;;  %v1774_v5 = vpop.f32.mrb[9].mxu0  ;;  %v1887_v35 = vpop.f32.mrb[17].mxu1 }
 0x452   :  { %v1775_v38 = vadd.f32 %v1774_v5, %v11961_v13  ;;  %v1888_v31 = vadd.f32 %v1887_v35, %v11965_v15 }
 0x453   :  { %2015 = vxpose.xlu1.b32.start.end [1/1] (short) %v1773_v55, 128  ;;  %2079 = vxpose.xlu0.b32.start.end [1/1] (short) %v1886_v29, 128 }
 0x454   :  { %v1778_v34 = vpop.f32.mrb[10].mxu0  ;;  %v11936_v58 = vpop.f32.mrb[18].mxu1 }
 0x455   :  { %v1780_v45 = vpop.f32.mrb[11].mxu0  ;;  %v11942_v2 = vpop.f32.mrb[19].mxu1  ;;  %v1779_v9 = vadd.f32 %v1778_v34, %v11902_v59 }
 0x456   :  { %v1781_v52 = vadd.f32 %v1780_v45, %v11961_v13 }
 0x479   :  { %v11944_v40 = vpop.f32.mrb[12].mxu0  ;;  %v11946_v25 = vpop.f32.mrb[20].mxu1 }
 0x47a   :  { %v11948_v36 = vpop.f32.mrb[13].mxu0  ;;  %v11950_v49 = vpop.f32.mrb[21].mxu1 }
 0x47d   :  { %v11952_v8 = vpop.f32.mrb[14].mxu0  ;;  %v11954_v4 = vpop.f32.mrb[22].mxu1 }
 0x47e   :  { %v11956_v21 = vpop.f32.mrb[15].mxu0  ;;  %v11958_v54 = vpop.f32.mrb[23].mxu1 }
 0x490   :  { %2111 = vxpose.xlu1.b32.start.end [1/1] (short) %v1888_v31, 128  ;;  %2047 = vxpose.xlu0.b32.start.end [1/1] (short) %v1775_v38, 128 }
 0x4a1   :  { %v11969_v32 = vpop.f32.mrb[16].mxu0  ;;  %v11971_v42 = vpop.f32.mrb[24].mxu1 }
 0x4a2   :  { %v11973_v14 = vpop.f32.mrb[17].mxu0  ;;  %v11975_v1 = vpop.f32.mrb[25].mxu1 }
 0x4a5   :  { %v11977_v53 = vpop.f32.mrb[18].mxu0  ;;  %v11979_v62 = vpop.f32.mrb[26].mxu1 }
 0x4a6   :  { %v11981_v16 = vpop.f32.mrb[19].mxu0  ;;  %v11983_v48 = vpop.f32.mrb[27].mxu1 }
 0x4c8   :  { %v11987_v0 = vpop.f32.mrb[20].mxu0  ;;  %v11989_v20 = vpop.f32.mrb[28].mxu1 }
 0x4c9   :  { %15285 = vst [vmem:[#allocation30_spill] sm:$0xff] %v11987_v0  ;;  %15286 = vst [vmem:[#allocation29_spill] sm:$0xff] %v11989_v20  ;;  %v11991_v23 = vpop.f32.mrb[21].mxu0  ;;  %v11993_v26 = vpop.f32.mrb[29].mxu1 }
 0x4ca   :  { %15287 = vst [vmem:[#allocation24_spill] sm:$0xff] %v11991_v23  ;;  %15288 = vst [vmem:[#allocation20_spill] sm:$0xff] %v11993_v26 }
 0x4cc   :  { %v12001_v11 = vpop.f32.mrb[22].mxu0  ;;  %v12003_v10 = vpop.f32.mrb[30].mxu1 }
 0x4cd   :  { %15289 = vst [vmem:[#allocation25_spill] sm:$0xff] %v12001_v11  ;;  %15290 = vst [vmem:[#allocation23_spill] sm:$0xff] %v12003_v10  ;;  %v12005_v7 = vpop.f32.mrb[23].mxu0  ;;  %v12007_v12 = vpop.f32.mrb[31].mxu1  ;;  %2753 = vxpose.xlu1.b32.start.end [1/1] (short) %v1781_v52, 128  ;;  %2721 = vxpose.xlu0.b32.start.end [1/1] (short) %v1779_v9, 128 }
 0x4ce   :  { %15291 = vst [vmem:[#allocation22_spill] sm:$0xff] %v12005_v7  ;;  %15292 = vst [vmem:[#allocation26_spill] sm:$0xff] %v12007_v12 }
 0x4d3   :  { %v2031_v24 = vpop.trf.xlu1  ;;  %v12013_v33 = vpop.trf.xlu0 }
 0x4d4   :  { %9328 = vmatprep.mubr.msk.f32.mxu0 %vm2143_vm10, %v2031_v24 }
 0x4d7   :  { %v2032_v63 = vpop.trf.xlu1  ;;  %v12016_v51 = vpop.trf.xlu0 }
 0x4d8   :  { %9329 = vmatmul.mubr.msk.f32.vlgmr.msra.gmra.mrb[24].mxu0 %vm2143_vm10, %v2032_v63 }
 0x4d9   :  { %9425 = vmatpush3.msk.msra.mxu0 %vm1992_vm4, %v15233_v47 }
 0x4da   :  { %9522 = vmatprep.subr.msk.mxu0 %vm1993_vm6, %v15233_v47 }
 0x4db   :  { %v2033_v22 = vpop.trf.xlu1  ;;  %v12029_v43 = vpop.trf.xlu0 }
 0x4dc   :  { %9331 = vmatprep.mubr.msk.f32.mxu0 %vm2143_vm10, %v2033_v22  ;;  %v1892_v22 = vadd.f32 %v11936_v58, %v11906_v19 }
 0x4df   :  { %v2034_v57 = vpop.trf.xlu1  ;;  %v12032_v56 = vpop.trf.xlu0 }
 0x4e0   :  { %9332 = vmatmul.mubr.msk.f32.gmra.mrb[26].mxu0 %vm2143_vm10, %v2034_v57  ;;  %v1894_v57 = vadd.f32 %v11942_v2, %v11965_v15 }
 0x4e3   :  { %v2035_v39 = vpop.trf.xlu1  ;;  %v12035_v37 = vpop.trf.xlu0 }
 0x4e4   :  { %9334 = vmatprep.mubr.msk.f32.mxu0 %vm2143_vm10, %v2035_v39 }
 0x4e7   :  { %v2036_v44 = vpop.trf.xlu1  ;;  %v12038_v18 = vpop.trf.xlu0 }
 0x4e8   :  { %9335 = vmatmul.mubr.msk.f32.gmra.mrb[28].mxu0 %vm2143_vm10, %v2036_v44 }
 0x4eb   :  { %v2037_v50 = vpop.trf.xlu1  ;;  %v12041_v46 = vpop.trf.xlu0 }
 0x4ec   :  { %9337 = vmatprep.mubr.msk.f32.mxu0 %vm2143_vm10, %v2037_v50 }
 0x4ef   :  { %v2038_v27 = vpop.trf.xlu1  ;;  %v12044_v30 = vpop.trf.xlu0 }
 0x4f0   :  { %9338 = vmatmul.mubr.msk.f32.gmra.mrb[30].mxu0 %vm2143_vm10, %v2038_v27 }
 0x4f3   :  { %v2039_v55 = vpop.trf.xlu1  ;;  %v12047_v29 = vpop.trf.xlu0 }
 0x4f4   :  { %9340 = vmatprep.mubr.msk.f32.mxu0 %vm2143_vm10, %v2039_v55 }
 0x4f7   :  { %v2040_v5 = vpop.trf.xlu1  ;;  %v12050_v35 = vpop.trf.xlu0 }
 0x4f8   :  { %9341 = vmatmul.mubr.msk.f32.gmra.mrb[32].mxu0 %vm2143_vm10, %v2040_v5 }
 0x4fb   :  { %v2041_v34 = vpop.trf.xlu1  ;;  %v12053_v45 = vpop.trf.xlu0 }
 0x4fc   :  { %9343 = vmatprep.mubr.msk.f32.mxu0 %vm2143_vm10, %v2041_v34 }
 0x4ff   :  { %v2042_v38 = vpop.trf.xlu1  ;;  %v12056_v31 = vpop.trf.xlu0 }
 0x500   :  { %9344 = vmatmul.mubr.msk.f32.gmra.mrb[34].mxu0 %vm2143_vm10, %v2042_v38 }
 0x503   :  { %v2043_v9 = vpop.trf.xlu1  ;;  %v12059_v52 = vpop.trf.xlu0 }
 0x504   :  { %9346 = vmatprep.mubr.msk.f32.mxu0 %vm2143_vm10, %v2043_v9 }
 0x507   :  { %v2044_v24 = vpop.trf.xlu1  ;;  %v12062_v63 = vpop.trf.xlu0 }
 0x508   :  { %9347 = vmatmul.mubr.msk.f32.gmra.mrb[36].mxu0 %vm2143_vm10, %v2044_v24 }
 0x50b   :  { %v2045_v39 = vpop.trf.xlu1  ;;  %2817 = vxpose.xlu1.b32.start.end [1/1] (short) %v1894_v57, 128  ;;  %v12069_v44 = vpop.trf.xlu0  ;;  %2785 = vxpose.xlu0.b32.start.end [1/1] (short) %v1892_v22, 128 }
 0x50c   :  { %9349 = vmatprep.mubr.msk.f32.mxu0 %vm2143_vm10, %v2045_v39 }
 0x50f   :  { %v2046_v50 = vpop.trf.xlu1  ;;  %v12072_v27 = vpop.trf.xlu0 }
 0x510   :  { %9350 = vmatmul.mubr.msk.f32.gmra.mrb[38].mxu0 %vm2143_vm10, %v2046_v50 }
 0x513   :  { %v12075_v55 = vpop.trf.xlu1  ;;  %v2063_v5 = vpop.trf.xlu0 }
 0x514   :  { %9352 = vmatprep.mubr.msk.f32.mxu0 %vm2143_vm10, %v2063_v5 }
 0x517   :  { %v12078_v58 = vpop.trf.xlu1  ;;  %v2064_v2 = vpop.trf.xlu0 }
 0x518   :  { %9353 = vmatmul.mubr.msk.f32.gmra.mrb[40].mxu0 %vm2143_vm10, %v2064_v2 }
 0x51b   :  { %v12081_v34 = vpop.trf.xlu1  ;;  %v2065_v38 = vpop.trf.xlu0 }
 0x51c   :  { %9355 = vmatprep.mubr.msk.f32.mxu0 %vm2143_vm10, %v2065_v38 }
 0x51f   :  { %v12084_v9 = vpop.trf.xlu1  ;;  %v2066_v24 = vpop.trf.xlu0 }
 0x520   :  { %9356 = vmatmul.mubr.msk.f32.gmra.mrb[42].mxu0 %vm2143_vm10, %v2066_v24 }
 0x523   :  { %v12087_v22 = vpop.trf.xlu1  ;;  %v2067_v57 = vpop.trf.xlu0 }
 0x524   :  { %9358 = vmatprep.mubr.msk.f32.mxu0 %vm2143_vm10, %v2067_v57 }
 0x527   :  { %v12090_v39 = vpop.trf.xlu1  ;;  %v2068_v50 = vpop.trf.xlu0 }
 0x528   :  { %9359 = vmatmul.mubr.msk.f32.gmra.mrb[44].mxu0 %vm2143_vm10, %v2068_v50 }
 0x52b   :  { %v12093_v5 = vpop.trf.xlu1  ;;  %v2069_v2 = vpop.trf.xlu0 }
 0x52c   :  { %9361 = vmatprep.mubr.msk.f32.mxu0 %vm2143_vm10, %v2069_v2 }
 0x52f   :  { %v12096_v38 = vpop.trf.xlu1  ;;  %v2070_v47 = vpop.trf.xlu0 }
 0x530   :  { %9362 = vmatmul.mubr.msk.f32.gmra.mrb[46].mxu0 %vm2143_vm10, %v2070_v47 }
 0x533   :  { %v12099_v24 = vpop.trf.xlu1  ;;  %v2071_v26 = vpop.trf.xlu0 }
 0x534   :  { %9364 = vmatprep.mubr.msk.f32.mxu0 %vm2143_vm10, %v2071_v26 }
 0x537   :  { %v12102_v57 = vpop.trf.xlu1  ;;  %v2072_v12 = vpop.trf.xlu0 }
 0x538   :  { %9365 = vmatmul.mubr.msk.f32.gmra.mrb[48].mxu0 %vm2143_vm10, %v2072_v12  ;;  %v1785_v12 = vadd.f32 %v11944_v40, %v11902_v59 }
 0x53b   :  { %v12105_v50 = vpop.trf.xlu1  ;;  %v2073_v20 = vpop.trf.xlu0 }
 0x53c   :  { %9367 = vmatprep.mubr.msk.f32.mxu0 %vm2143_vm10, %v2073_v20  ;;  %v1787_v20 = vadd.f32 %v11948_v36, %v11961_v13 }
 0x53f   :  { %v12108_v2 = vpop.trf.xlu1  ;;  %v2074_v10 = vpop.trf.xlu0 }
 0x540   :  { %9368 = vmatmul.mubr.msk.f32.gmra.mrb[50].mxu0 %vm2143_vm10, %v2074_v10 }
 0x543   :  { %v12111_v47 = vpop.trf.xlu1  ;;  %v2075_v23 = vpop.trf.xlu0 }
 0x544   :  { %9370 = vmatprep.mubr.msk.f32.mxu0 %vm2143_vm10, %v2075_v23 }
 0x547   :  { %v12114_v26 = vpop.trf.xlu1  ;;  %v2076_v7 = vpop.trf.xlu0 }
 0x548   :  { %9371 = vmatmul.mubr.msk.f32.gmra.mrb[52].mxu0 %vm2143_vm10, %v2076_v7 }
 0x54b   :  { %v12121_v0 = vpop.trf.xlu1  ;;  %3458 = vxpose.xlu1.b32.start.end [1/1] (short) %v1787_v20, 128  ;;  %v2077_v10 = vpop.trf.xlu0  ;;  %3426 = vxpose.xlu0.b32.start.end [1/1] (short) %v1785_v12, 128 }
 0x54c   :  { %9373 = vmatprep.mubr.msk.f32.mxu0 %vm2143_vm10, %v2077_v10 }
 0x54f   :  { %v12124_v11 = vpop.trf.xlu1  ;;  %v2078_v23 = vpop.trf.xlu0 }
 0x550   :  { %9374 = vmatmul.mubr.msk.f32.gmra.mrb[54].mxu0 %vm2143_vm10, %v2078_v23 }
 0x551   :  { %9376 = vmatprep.mubr.msk.f32.mxu0 %vm2143_vm10, %v12013_v33 }
 0x553   :  { %v12129_v7 = vpop.trf.xlu1  ;;  %v12131_v40 = vpop.trf.xlu0 }
 0x554   :  { %9377 = vmatmul.mubr.msk.f32.gmra.mrb[56].mxu0 %vm2143_vm10, %v12016_v51 }
 0x555   :  { %9379 = vmatprep.mubr.msk.f32.mxu0 %vm2143_vm10, %v12029_v43 }
 0x557   :  { %v12137_v36 = vpop.trf.xlu1  ;;  %v12139_v12 = vpop.trf.xlu0 }
 0x558   :  { %9380 = vmatmul.mubr.msk.f32.gmra.mrb[58].mxu0 %vm2143_vm10, %v12032_v56 }
 0x559   :  { %9382 = vmatprep.mubr.msk.f32.mxu0 %vm2143_vm10, %v12035_v37 }
 0x55b   :  { %v12145_v33 = vpop.trf.xlu1  ;;  %v12147_v20 = vpop.trf.xlu0 }
 0x55c   :  { %9383 = vmatmul.mubr.msk.f32.gmra.mrb[60].mxu0 %vm2143_vm10, %v12038_v18 }
 0x55d   :  { %9385 = vmatprep.mubr.msk.f32.mxu0 %vm2143_vm10, %v12041_v46 }
 0x55f   :  { %v12153_v51 = vpop.trf.xlu1  ;;  %v12155_v43 = vpop.trf.xlu0 }
 0x560   :  { %9386 = vmatmul.mubr.msk.f32.gmra.mrb[62].mxu0 %vm2143_vm10, %v12044_v30 }
 0x561   :  { %9388 = vmatprep.mubr.msk.f32.mxu0 %vm2143_vm10, %v12047_v29 }
 0x563   :  { %v12161_v56 = vpop.trf.xlu1  ;;  %v12163_v37 = vpop.trf.xlu0 }
 0x564   :  { %9389 = vmatmul.mubr.msk.f32.gmra.mrb[64].mxu0 %vm2143_vm10, %v12050_v35 }
 0x565   :  { %9391 = vmatprep.mubr.msk.f32.mxu0 %vm2143_vm10, %v12053_v45 }
 0x567   :  { %v12169_v18 = vpop.trf.xlu1  ;;  %v12171_v46 = vpop.trf.xlu0 }
 0x568   :  { %9392 = vmatmul.mubr.msk.f32.gmra.mrb[66].mxu0 %vm2143_vm10, %v12056_v31  ;;  %v15293_v31 = vmov 1.0  }
 0x569   :  { %9394 = vmatprep.mubr.msk.f32.mxu0 %vm2143_vm10, %v12059_v52 }
 0x56b   :  { %v12177_v30 = vpop.trf.xlu1  ;;  %v2743_v29 = vpop.trf.xlu0 }
 0x56c   :  { %9395 = vmatmul.mubr.msk.f32.gmra.mrb[68].mxu0 %vm2143_vm10, %v12062_v63  ;;  %9435 = vmatprep.mubr.msk.f32.mxu1 %vm2143_vm10, %v2743_v29 }
 0x56d   :  { %9397 = vmatprep.mubr.msk.f32.mxu0 %vm2143_vm10, %v12069_v44 }
 0x56f   :  { %v12184_v35 = vpop.trf.xlu1  ;;  %v2744_v45 = vpop.trf.xlu0 }
 0x570   :  { %9398 = vmatmul.mubr.msk.f32.gmra.mrb[70].mxu0 %vm2143_vm10, %v12072_v27  ;;  %9436 = vmatmul.mubr.msk.f32.vlgmr.msra.gmra.mrb[32].mxu1 %vm2143_vm10, %v2744_v45 }
 0x571   :  { %9621 = vmatpush3.msk.msra.mxu1 %vm1994_vm14, %v15293_v31  ;;  %9400 = vmatprep.mubr.msk.f32.mxu0 %vm2143_vm10, %v12075_v55 }
 0x572   :  { %9816 = vmatprep.subr.msk.mxu1 %vm1996_vm3, %v15293_v31 }
 0x573   :  { %v12201_v52 = vpop.trf.xlu1  ;;  %v2745_v63 = vpop.trf.xlu0 }
 0x574   :  { %9401 = vmatmul.mubr.msk.f32.gmra.mrb[72].mxu0 %vm2143_vm10, %v12078_v58  ;;  %9438 = vmatprep.mubr.msk.f32.mxu1 %vm2143_vm10, %v2745_v63 }
 0x575   :  { %9403 = vmatprep.mubr.msk.f32.mxu0 %vm2143_vm10, %v12081_v34 }
 0x577   :  { %v12208_v60 = vpop.trf.xlu1  ;;  %v2746_v44 = vpop.trf.xlu0 }
 0x578   :  { %9404 = vmatmul.mubr.msk.f32.gmra.mrb[74].mxu0 %vm2143_vm10, %v12084_v9  ;;  %9439 = vmatmul.mubr.msk.f32.gmra.mrb[34].mxu1 %vm2143_vm10, %v2746_v44 }
 0x579   :  { %9406 = vmatprep.mubr.msk.f32.mxu0 %vm2143_vm10, %v12087_v22 }
 0x57b   :  { %v2779_v27 = vpop.trf.xlu1  ;;  %v2747_v55 = vpop.trf.xlu0 }
 0x57c   :  { %9407 = vmatmul.mubr.msk.f32.gmra.mrb[76].mxu0 %vm2143_vm10, %v12090_v39  ;;  %9441 = vmatprep.mubr.msk.f32.mxu1 %vm2143_vm10, %v2747_v55 }
 0x57d   :  { %9409 = vmatprep.mubr.msk.f32.mxu0 %vm2143_vm10, %v12093_v5 }
 0x57f   :  { %v2780_v58 = vpop.trf.xlu1  ;;  %v2748_v34 = vpop.trf.xlu0 }
 0x580   :  { %9410 = vmatmul.mubr.msk.f32.gmra.mrb[78].mxu0 %vm2143_vm10, %v12096_v38  ;;  %9442 = vmatmul.mubr.msk.f32.gmra.mrb[36].mxu1 %vm2143_vm10, %v2748_v34  ;;  %v1898_v38 = vadd.f32 %v11946_v25, %v11906_v19 }
 0x581   :  { %9412 = vmatprep.mubr.msk.f32.mxu0 %vm2143_vm10, %v12099_v24  ;;  %v1900_v24 = vadd.f32 %v11950_v49, %v11965_v15 }
 0x583   :  { %v2781_v9 = vpop.trf.xlu1  ;;  %v2749_v22 = vpop.trf.xlu0 }
 0x584   :  { %9413 = vmatmul.mubr.msk.f32.gmra.mrb[80].mxu0 %vm2143_vm10, %v12102_v57  ;;  %9444 = vmatprep.mubr.msk.f32.mxu1 %vm2143_vm10, %v2749_v22 }
 0x585   :  { %9415 = vmatprep.mubr.msk.f32.mxu0 %vm2143_vm10, %v12105_v50 }
 0x587   :  { %v2782_v39 = vpop.trf.xlu1  ;;  %v2750_v5 = vpop.trf.xlu0 }
 0x588   :  { %9416 = vmatmul.mubr.msk.f32.gmra.mrb[82].mxu0 %vm2143_vm10, %v12108_v2  ;;  %9445 = vmatmul.mubr.msk.f32.gmra.mrb[38].mxu1 %vm2143_vm10, %v2750_v5 }
 0x589   :  { %9418 = vmatprep.mubr.msk.f32.mxu0 %vm2143_vm10, %v12111_v47 }
 0x58b   :  { %v2783_v57 = vpop.trf.xlu1  ;;  %3522 = vxpose.xlu1.b32.start.end [1/1] (short) %v1900_v24, 128  ;;  %v2751_v10 = vpop.trf.xlu0  ;;  %3490 = vxpose.xlu0.b32.start.end [1/1] (short) %v1898_v38, 128  ;;  %v1793_v38 = vadd.f32 %v11956_v21, %v11961_v13  ;;  %v1791_v24 = vadd.f32 %v11952_v8, %v11902_v59 }
 0x58c   :  { %9419 = vmatmul.mubr.msk.f32.gmra.mrb[84].mxu0 %vm2143_vm10, %v12114_v26  ;;  %9447 = vmatprep.mubr.msk.f32.mxu1 %vm2143_vm10, %v2751_v10 }
 0x58d   :  { %9421 = vmatprep.mubr.msk.f32.mxu0 %vm2143_vm10, %v12121_v0 }
 0x58f   :  { %v2784_v50 = vpop.trf.xlu1  ;;  %v2752_v25 = vpop.trf.xlu0 }
 0x590   :  { %9422 = vmatmul.mubr.msk.f32.gmra.mrb[86].mxu0 %vm2143_vm10, %v12124_v11  ;;  %9448 = vmatmul.mubr.msk.f32.gmra.mrb[40].mxu1 %vm2143_vm10, %v2752_v25 }
 0x591   :  { %9426 = vmatprep.mubr.msk.f32.mxu0 %vm2143_vm10, %v12131_v40  ;;  %9450 = vmatprep.mubr.msk.f32.mxu1 %vm2143_vm10, %v12129_v7 }
 0x593   :  { %v12251_v49 = vpop.trf.xlu1  ;;  %v2801_v2 = vpop.trf.xlu0 }
 0x594   :  { %9427 = vmatmul.mubr.msk.f32.vlgmr.msra.gmra.mrb[88].mxu0 %vm2143_vm10, %v12139_v12  ;;  %9451 = vmatmul.mubr.msk.f32.gmra.mrb[42].mxu1 %vm2143_vm10, %v12137_v36 }
 0x595   :  { %9523 = vmatpush3.msk.msra.mxu0 %vm1993_vm6, %v15293_v31  ;;  %9429 = vmatprep.mubr.msk.f32.mxu0 %vm2143_vm10, %v12147_v20 }
 0x596   :  { %9453 = vmatprep.mubr.msk.f32.mxu1 %vm2143_vm10, %v12145_v33  ;;  %9718 = vmatprep.subr.msk.mxu0 %vm1995_vm5, %v15293_v31 }
 0x597   :  { %v12271_v0 = vpop.trf.xlu1  ;;  %v2802_v11 = vpop.trf.xlu0 }
 0x598   :  { %9430 = vmatmul.mubr.msk.f32.gmra.mrb[90].mxu0 %vm2143_vm10, %v12155_v43  ;;  %9454 = vmatmul.mubr.msk.f32.gmra.mrb[44].mxu1 %vm2143_vm10, %v12153_v51 }
 0x599   :  { %9432 = vmatprep.mubr.msk.f32.mxu0 %vm2143_vm10, %v12163_v37  ;;  %9456 = vmatprep.mubr.msk.f32.mxu1 %vm2143_vm10, %v12161_v56 }
 0x59b   :  { %v12281_v41 = vpop.trf.xlu1  ;;  %v2803_v47 = vpop.trf.xlu0 }
 0x59c   :  { %9433 = vmatmul.mubr.msk.f32.gmra.mrb[92].mxu0 %vm2143_vm10, %v12171_v46  ;;  %9457 = vmatmul.mubr.msk.f32.gmra.mrb[46].mxu1 %vm2143_vm10, %v12169_v18 }
 0x59d   :  { %9459 = vmatprep.mubr.msk.f32.mxu1 %vm2143_vm10, %v12177_v30 }
 0x59f   :  { %v12289_v26 = vpop.trf.xlu1  ;;  %v2804_v23 = vpop.trf.xlu0 }
 0x5a0   :  { %9460 = vmatmul.mubr.msk.f32.gmra.mrb[48].mxu1 %vm2143_vm10, %v12184_v35 }
 0x5a1   :  { %9462 = vmatprep.mubr.msk.f32.mxu1 %vm2143_vm10, %v12201_v52 }
 0x5a3   :  { %v12295_v7 = vpop.trf.xlu1  ;;  %v2805_v40 = vpop.trf.xlu0 }
 0x5a4   :  { %9463 = vmatmul.mubr.msk.f32.gmra.mrb[50].mxu1 %vm2143_vm10, %v12208_v60 }
 0x5a5   :  { %9465 = vmatprep.mubr.msk.f32.mxu1 %vm2143_vm10, %v2779_v27 }
 0x5a7   :  { %v12300_v36 = vpop.trf.xlu1  ;;  %v2806_v12 = vpop.trf.xlu0 }
 0x5a8   :  { %9466 = vmatmul.mubr.msk.f32.gmra.mrb[52].mxu1 %vm2143_vm10, %v2780_v58 }
 0x5a9   :  { %9468 = vmatprep.mubr.msk.f32.mxu1 %vm2143_vm10, %v2781_v9 }
 0x5ab   :  { %v12304_v33 = vpop.trf.xlu1  ;;  %v9330_v20 = vpop.f32.mrb[24].mxu0 }
 0x5ac   :  { %7658 = vst.msk [vmem:[%s15205_s9 + $0x8] sm:$0xff] %vm7656_vm7, %v9330_v20  ;;  %v2807_v51 = vpop.trf.xlu0  ;;  %v2402_v43 = vpop.f32.mrb[25].mxu0  ;;  %9469 = vmatmul.mubr.msk.f32.gmra.mrb[54].mxu1 %vm2143_vm10, %v2782_v39 }
 0x5ad   :  { %7657 = vst.msk [vmem:[%s15205_s9] sm:$0xff] %vm7656_vm7, %v2402_v43  ;;  %9471 = vmatprep.mubr.msk.f32.mxu1 %vm2143_vm10, %v2783_v57 }
 0x5af   :  { %v12316_v56 = vpop.trf.xlu1 }
 0x5b0   :  { %v2808_v37 = vpop.trf.xlu0  ;;  %9472 = vmatmul.mubr.msk.f32.gmra.mrb[56].mxu1 %vm2143_vm10, %v2784_v50 }
 0x5b1   :  { %9474 = vmatprep.mubr.msk.f32.mxu1 %vm2143_vm10, %v2801_v2 }
 0x5b3   :  { %v12320_v18 = vpop.trf.xlu1  ;;  %v9333_v46 = vpop.f32.mrb[26].mxu0 }
 0x5b4   :  { %7660 = vst.msk [vmem:[%s15205_s9 + $0x18] sm:$0xff] %vm7656_vm7, %v9333_v46  ;;  %v2809_v30 = vpop.trf.xlu0  ;;  %v2412_v29 = vpop.f32.mrb[27].mxu0  ;;  %9475 = vmatmul.mubr.msk.f32.gmra.mrb[58].mxu1 %vm2143_vm10, %v2802_v11 }
 0x5b5   :  { %7659 = vst.msk [vmem:[%s15205_s9 + $0x10] sm:$0xff] %vm7656_vm7, %v2412_v29  ;;  %9477 = vmatprep.mubr.msk.f32.mxu1 %vm2143_vm10, %v2803_v47 }
 0x5b7   :  { %v12332_v35 = vpop.trf.xlu1 }
 0x5b8   :  { %v2810_v45 = vpop.trf.xlu0  ;;  %9478 = vmatmul.mubr.msk.f32.gmra.mrb[60].mxu1 %vm2143_vm10, %v2804_v23 }
 0x5b9   :  { %9480 = vmatprep.mubr.msk.f32.mxu1 %vm2143_vm10, %v2805_v40 }
 0x5bb   :  { %v12336_v52 = vpop.trf.xlu1  ;;  %v9336_v63 = vpop.f32.mrb[28].mxu0 }
 0x5bc   :  { %7662 = vst.msk [vmem:[%s15205_s9 + $0x28] sm:$0xff] %vm7656_vm7, %v9336_v63  ;;  %v2811_v60 = vpop.trf.xlu0  ;;  %v2422_v44 = vpop.f32.mrb[29].mxu0  ;;  %9481 = vmatmul.mubr.msk.f32.gmra.mrb[62].mxu1 %vm2143_vm10, %v2806_v12 }
 0x5bd   :  { %7661 = vst.msk [vmem:[%s15205_s9 + $0x20] sm:$0xff] %vm7656_vm7, %v2422_v44  ;;  %9483 = vmatprep.mubr.msk.f32.mxu1 %vm2143_vm10, %v2807_v51 }
 0x5bf   :  { %v12348_v27 = vpop.trf.xlu1 }
 0x5c0   :  { %v2812_v55 = vpop.trf.xlu0  ;;  %9484 = vmatmul.mubr.msk.f32.gmra.mrb[64].mxu1 %vm2143_vm10, %v2808_v37 }
 0x5c1   :  { %9486 = vmatprep.mubr.msk.f32.mxu1 %vm2143_vm10, %v2809_v30 }
 0x5c3   :  { %v12352_v58 = vpop.trf.xlu1  ;;  %v9339_v34 = vpop.f32.mrb[30].mxu0 }
 0x5c4   :  { %7664 = vst.msk [vmem:[%s15205_s9 + $0x38] sm:$0xff] %vm7656_vm7, %v9339_v34  ;;  %v2813_v9 = vpop.trf.xlu0  ;;  %v2432_v22 = vpop.f32.mrb[31].mxu0  ;;  %9487 = vmatmul.mubr.msk.f32.gmra.mrb[66].mxu1 %vm2143_vm10, %v2810_v45 }
 0x5c5   :  { %7663 = vst.msk [vmem:[%s15205_s9 + $0x30] sm:$0xff] %vm7656_vm7, %v2432_v22  ;;  %9489 = vmatprep.mubr.msk.f32.mxu1 %vm2143_vm10, %v2811_v60 }
 0x5c7   :  { %v12364_v39 = vpop.trf.xlu1 }
 0x5c8   :  { %v2814_v5 = vpop.trf.xlu0  ;;  %9490 = vmatmul.mubr.msk.f32.gmra.mrb[68].mxu1 %vm2143_vm10, %v2812_v55 }
 0x5c9   :  { %9492 = vmatprep.mubr.msk.f32.mxu1 %vm2143_vm10, %v2813_v9 }
 0x5cb   :  { %v12372_v57 = vpop.trf.xlu1  ;;  %4163 = vxpose.xlu1.b32.start.end [1/1] (short) %v1793_v38, 128  ;;  %v9342_v10 = vpop.f32.mrb[32].mxu0 }
 0x5cc   :  { %7666 = vst.msk [vmem:[%s15205_s9 + $0x48] sm:$0xff] %vm7656_vm7, %v9342_v10  ;;  %v2815_v50 = vpop.trf.xlu0  ;;  %4131 = vxpose.xlu0.b32.start.end [1/1] (short) %v1791_v24, 128  ;;  %v2442_v25 = vpop.f32.mrb[33].mxu0  ;;  %9493 = vmatmul.mubr.msk.f32.gmra.mrb[70].mxu1 %vm2143_vm10, %v2814_v5 }
 0x5cd   :  { %7665 = vst.msk [vmem:[%s15205_s9 + $0x40] sm:$0xff] %vm7656_vm7, %v2442_v25  ;;  %9495 = vmatprep.mubr.msk.f32.mxu1 %vm2143_vm10, %v2815_v50  ;;  %v1906_v25 = vadd.f32 %v11958_v54, %v11965_v15 }
 0x5cf   :  { %v2848_v8 = vpop.trf.xlu1 }
 0x5d0   :  { %v2816_v21 = vpop.trf.xlu0 }
 0x5d1   :  { %9496 = vmatmul.mubr.msk.f32.gmra.mrb[72].mxu1 %vm2143_vm10, %v2816_v21 }
 0x5d2   :  { %9498 = vmatprep.mubr.msk.f32.mxu1 %vm2143_vm10, %v12251_v49 }
 0x5d3   :  { %v12387_v2 = vpop.trf.xlu1  ;;  %v9345_v11 = vpop.f32.mrb[34].mxu0 }
 0x5d4   :  { %7668 = vst.msk [vmem:[%s15205_s9 + $0x58] sm:$0xff] %vm7656_vm7, %v9345_v11  ;;  %v3442_v47 = vpop.trf.xlu0  ;;  %v2452_v23 = vpop.f32.mrb[35].mxu0 }
 0x5d5   :  { %7667 = vst.msk [vmem:[%s15205_s9 + $0x50] sm:$0xff] %vm7656_vm7, %v2452_v23  ;;  %9499 = vmatmul.mubr.msk.f32.gmra.mrb[74].mxu1 %vm2143_vm10, %v12271_v0  ;;  %9524 = vmatprep.mubr.msk.f32.mxu0 %vm2143_vm10, %v3442_v47 }
 0x5d6   :  { %9501 = vmatprep.mubr.msk.f32.mxu1 %vm2143_vm10, %v12281_v41 }
 0x5d7   :  { %v12402_v49 = vpop.trf.xlu1 }
 0x5d8   :  { %v3443_v40 = vpop.trf.xlu0 }
 0x5d9   :  { %9502 = vmatmul.mubr.msk.f32.gmra.mrb[76].mxu1 %vm2143_vm10, %v12289_v26  ;;  %9525 = vmatmul.mubr.msk.f32.vlgmr.msra.gmra.mrb[94].mxu0 %vm2143_vm10, %v3443_v40 }
 0x5da   :  { %9719 = vmatpush3.msk.msra.mxu0 %vm1995_vm5, %v15293_v31  ;;  %9504 = vmatprep.mubr.msk.f32.mxu1 %vm2143_vm10, %v12295_v7 }
 0x5db   :  { %9914 = vmatprep.subr.msk.mxu0 %vm1997_vm8, %v15293_v31  ;;  %v12419_v0 = vpop.trf.xlu1  ;;  %v9348_v41 = vpop.f32.mrb[36].mxu0 }
 0x5dc   :  { %7670 = vst.msk [vmem:[%s15205_s9 + $0x68] sm:$0xff] %vm7656_vm7, %v9348_v41  ;;  %v3444_v26 = vpop.trf.xlu0  ;;  %v2462_v12 = vpop.f32.mrb[37].mxu0 }
 0x5dd   :  { %7669 = vst.msk [vmem:[%s15205_s9 + $0x60] sm:$0xff] %vm7656_vm7, %v2462_v12  ;;  %9505 = vmatmul.mubr.msk.f32.gmra.mrb[78].mxu1 %vm2143_vm10, %v12300_v36  ;;  %9527 = vmatprep.mubr.msk.f32.mxu0 %vm2143_vm10, %v3444_v26 }
 0x5de   :  { %9507 = vmatprep.mubr.msk.f32.mxu1 %vm2143_vm10, %v12304_v33 }
 0x5df   :  { %v12434_v17 = vpop.trf.xlu1 }
 0x5e0   :  { %v3445_v7 = vpop.trf.xlu0 }
 0x5e1   :  { %9508 = vmatmul.mubr.msk.f32.gmra.mrb[80].mxu1 %vm2143_vm10, %v12316_v56  ;;  %9528 = vmatmul.mubr.msk.f32.gmra.mrb[96].mxu0 %vm2143_vm10, %v3445_v7 }
 0x5e2   :  { %9510 = vmatprep.mubr.msk.f32.mxu1 %vm2143_vm10, %v12320_v18 }
 0x5e3   :  { %v12441_v20 = vpop.trf.xlu1  ;;  %v9351_v51 = vpop.f32.mrb[38].mxu0 }
 0x5e4   :  { %7672 = vst.msk [vmem:[%s15205_s9 + $0x78] sm:$0xff] %vm7656_vm7, %v9351_v51  ;;  %v3446_v36 = vpop.trf.xlu0  ;;  %v2472_v33 = vpop.f32.mrb[39].mxu0 }
 0x5e5   :  { %7671 = vst.msk [vmem:[%s15205_s9 + $0x70] sm:$0xff] %vm7656_vm7, %v2472_v33  ;;  %9511 = vmatmul.mubr.msk.f32.gmra.mrb[82].mxu1 %vm2143_vm10, %v12332_v35  ;;  %9530 = vmatprep.mubr.msk.f32.mxu0 %vm2143_vm10, %v3446_v36 }
 0x5e6   :  { %9513 = vmatprep.mubr.msk.f32.mxu1 %vm2143_vm10, %v12336_v52 }
 0x5e7   :  { %v12456_v43 = vpop.trf.xlu1 }
 0x5e8   :  { %v3447_v56 = vpop.trf.xlu0 }
 0x5e9   :  { %9514 = vmatmul.mubr.msk.f32.gmra.mrb[84].mxu1 %vm2143_vm10, %v12348_v27  ;;  %9531 = vmatmul.mubr.msk.f32.gmra.mrb[98].mxu0 %vm2143_vm10, %v3447_v56 }
 0x5ea   :  { %9516 = vmatprep.mubr.msk.f32.mxu1 %vm2143_vm10, %v12352_v58 }
 0x5eb   :  { %v12463_v37 = vpop.trf.xlu1  ;;  %v9354_v18 = vpop.f32.mrb[40].mxu0 }
 0x5ec   :  { %7674 = vst.msk [vmem:[%s15205_s9 + $0x88] sm:$0xff] %vm7656_vm7, %v9354_v18  ;;  %v3448_v46 = vpop.trf.xlu0  ;;  %v2482_v30 = vpop.f32.mrb[41].mxu0 }
 0x5ed   :  { %7673 = vst.msk [vmem:[%s15205_s9 + $0x80] sm:$0xff] %vm7656_vm7, %v2482_v30  ;;  %9517 = vmatmul.mubr.msk.f32.gmra.mrb[86].mxu1 %vm2143_vm10, %v12364_v39  ;;  %9533 = vmatprep.mubr.msk.f32.mxu0 %vm2143_vm10, %v3448_v46 }
 0x5ee   :  { %9519 = vmatprep.mubr.msk.f32.mxu1 %vm2143_vm10, %v12372_v57 }
 0x5ef   :  { %v12478_v29 = vpop.trf.xlu1 }
 0x5f0   :  { %v3449_v35 = vpop.trf.xlu0 }
 0x5f1   :  { %9520 = vmatmul.mubr.msk.f32.gmra.mrb[88].mxu1 %vm2143_vm10, %v2848_v8  ;;  %9534 = vmatmul.mubr.msk.f32.gmra.mrb[100].mxu0 %vm2143_vm10, %v3449_v35  ;;  %v1904_v8 = vadd.f32 %v11954_v4, %v11906_v19 }
 0x5f3   :  { %v12482_v45 = vpop.trf.xlu1  ;;  %v9357_v52 = vpop.f32.mrb[42].mxu0 }
 0x5f4   :  { %7676 = vst.msk [vmem:[%s15205_s9 + $0x98] sm:$0xff] %vm7656_vm7, %v9357_v52  ;;  %v3450_v63 = vpop.trf.xlu0  ;;  %v2492_v60 = vpop.f32.mrb[43].mxu0 }
 0x5f5   :  { %7675 = vst.msk [vmem:[%s15205_s9 + $0x90] sm:$0xff] %vm7656_vm7, %v2492_v60  ;;  %9536 = vmatprep.mubr.msk.f32.mxu0 %vm2143_vm10, %v3450_v63 }
 0x5f7   :  { %v12493_v44 = vpop.trf.xlu1 }
 0x5f8   :  { %v3451_v27 = vpop.trf.xlu0 }
 0x5f9   :  { %9537 = vmatmul.mubr.msk.f32.gmra.mrb[102].mxu0 %vm2143_vm10, %v3451_v27 }
 0x5fb   :  { %v12496_v55 = vpop.trf.xlu1  ;;  %v9360_v58 = vpop.f32.mrb[44].mxu0 }
 0x5fc   :  { %7678 = vst.msk [vmem:[%s15205_s9 + $0xa8] sm:$0xff] %vm7656_vm7, %v9360_v58  ;;  %v3452_v34 = vpop.trf.xlu0  ;;  %v2502_v9 = vpop.f32.mrb[45].mxu0 }
 0x5fd   :  { %7677 = vst.msk [vmem:[%s15205_s9 + $0xa0] sm:$0xff] %vm7656_vm7, %v2502_v9  ;;  %9539 = vmatprep.mubr.msk.f32.mxu0 %vm2143_vm10, %v3452_v34 }
 0x5ff   :  { %v12507_v22 = vpop.trf.xlu1 }
 0x600   :  { %v3453_v39 = vpop.trf.xlu0 }
 0x601   :  { %9540 = vmatmul.mubr.msk.f32.gmra.mrb[104].mxu0 %vm2143_vm10, %v3453_v39 }
 0x603   :  { %v12510_v5 = vpop.trf.xlu1  ;;  %v9363_v38 = vpop.f32.mrb[46].mxu0 }
 0x604   :  { %7680 = vst.msk [vmem:[%s15205_s9 + $0xb8] sm:$0xff] %vm7656_vm7, %v9363_v38  ;;  %v3454_v24 = vpop.trf.xlu0  ;;  %v2512_v57 = vpop.f32.mrb[47].mxu0 }
 0x605   :  { %7679 = vst.msk [vmem:[%s15205_s9 + $0xb0] sm:$0xff] %vm7656_vm7, %v2512_v57  ;;  %9542 = vmatprep.mubr.msk.f32.mxu0 %vm2143_vm10, %v3454_v24 }
 0x607   :  { %v12521_v10 = vpop.trf.xlu1 }
 0x608   :  { %v3455_v50 = vpop.trf.xlu0 }
 0x609   :  { %9543 = vmatmul.mubr.msk.f32.gmra.mrb[106].mxu0 %vm2143_vm10, %v3455_v50 }
 0x60b   :  { %v3488_v21 = vpop.trf.xlu1  ;;  %4227 = vxpose.xlu1.b32.start.end [1/1] (short) %v1906_v25, 128  ;;  %v9366_v11 = vpop.f32.mrb[48].mxu0 }
 0x60c   :  { %7682 = vst.msk [vmem:[%s15205_s9 + $0xc8] sm:$0xff] %vm7656_vm7, %v9366_v11  ;;  %v3456_v47 = vpop.trf.xlu0  ;;  %4195 = vxpose.xlu0.b32.start.end [1/1] (short) %v1904_v8, 128  ;;  %v2522_v23 = vpop.f32.mrb[49].mxu0 }
 0x60d   :  { %7681 = vst.msk [vmem:[%s15205_s9 + $0xc0] sm:$0xff] %vm7656_vm7, %v2522_v23  ;;  %9545 = vmatprep.mubr.msk.f32.mxu0 %vm2143_vm10, %v3456_v47 }
 0x60f   :  { %v3489_v54 = vpop.trf.xlu1 }
 0x610   :  { %v3457_v4 = vpop.trf.xlu0 }
 0x611   :  { %9546 = vmatmul.mubr.msk.f32.gmra.mrb[108].mxu0 %vm2143_vm10, %v3457_v4 }
 0x612   :  { %9548 = vmatprep.mubr.msk.f32.mxu0 %vm2143_vm10, %v12387_v2 }
 0x613   :  { %v12540_v40 = vpop.trf.xlu1  ;;  %v9369_v41 = vpop.f32.mrb[50].mxu0 }
 0x614   :  { %7684 = vst.msk [vmem:[%s15205_s9 + $0xd8] sm:$0xff] %vm7656_vm7, %v9369_v41  ;;  %v3506_v26 = vpop.trf.xlu0  ;;  %v2532_v12 = vpop.f32.mrb[51].mxu0 }
 0x615   :  { %7683 = vst.msk [vmem:[%s15205_s9 + $0xd0] sm:$0xff] %vm7656_vm7, %v2532_v12  ;;  %9549 = vmatmul.mubr.msk.f32.gmra.mrb[110].mxu0 %vm2143_vm10, %v12402_v49 }
 0x616   :  { %9551 = vmatprep.mubr.msk.f32.mxu0 %vm2143_vm10, %v12419_v0 }
 0x617   :  { %v12554_v2 = vpop.trf.xlu1 }
 0x618   :  { %v3507_v7 = vpop.trf.xlu0 }
 0x619   :  { %9552 = vmatmul.mubr.msk.f32.gmra.mrb[112].mxu0 %vm2143_vm10, %v12434_v17 }
 0x61a   :  { %9554 = vmatprep.mubr.msk.f32.mxu0 %vm2143_vm10, %v12441_v20 }
 0x61b   :  { %v12560_v51 = vpop.trf.xlu1  ;;  %v9372_v36 = vpop.f32.mrb[52].mxu0 }
 0x61c   :  { %7686 = vst.msk [vmem:[%s15205_s9 + $0xe8] sm:$0xff] %vm7656_vm7, %v9372_v36  ;;  %v3508_v49 = vpop.trf.xlu0  ;;  %v2542_v33 = vpop.f32.mrb[53].mxu0 }
 0x61d   :  { %7685 = vst.msk [vmem:[%s15205_s9 + $0xe0] sm:$0xff] %vm7656_vm7, %v2542_v33  ;;  %9555 = vmatmul.mubr.msk.f32.gmra.mrb[114].mxu0 %vm2143_vm10, %v12456_v43 }
 0x61e   :  { %9557 = vmatprep.mubr.msk.f32.mxu0 %vm2143_vm10, %v12463_v37 }
 0x61f   :  { %v12574_v0 = vpop.trf.xlu1 }
 0x620   :  { %v3509_v17 = vpop.trf.xlu0 }
 0x621   :  { %9558 = vmatmul.mubr.msk.f32.gmra.mrb[116].mxu0 %vm2143_vm10, %v12478_v29 }
 0x622   :  { %9560 = vmatprep.mubr.msk.f32.mxu0 %vm2143_vm10, %v12482_v45 }
 0x623   :  { %v12580_v20 = vpop.trf.xlu1  ;;  %v9375_v56 = vpop.f32.mrb[54].mxu0 }
 0x624   :  { %7688 = vst.msk [vmem:[%s15205_s9 + $0xf8] sm:$0xff] %vm7656_vm7, %v9375_v56  ;;  %v3510_v43 = vpop.trf.xlu0  ;;  %v2552_v18 = vpop.f32.mrb[55].mxu0  ;;  %v1797_v56 = vadd.f32 %v11969_v32, %v11902_v59 }
 0x625   :  { %7687 = vst.msk [vmem:[%s15205_s9 + $0xf0] sm:$0xff] %vm7656_vm7, %v2552_v18  ;;  %9561 = vmatmul.mubr.msk.f32.gmra.mrb[118].mxu0 %vm2143_vm10, %v12493_v44 }
 0x626   :  { %9563 = vmatprep.mubr.msk.f32.mxu0 %vm2143_vm10, %v12496_v55 }
 0x627   :  { %v12594_v37 = vpop.trf.xlu1  ;;  %v9378_v46 = vpop.f32.mrb[56].mxu0 }
 0x628   :  { %7690 = vst.msk [vmem:[%s15205_s9 + $0x108] sm:$0xff] %vm7656_vm7, %v9378_v46  ;;  %v3511_v30 = vpop.trf.xlu0  ;;  %v2562_v29 = vpop.f32.mrb[57].mxu0 }
 0x629   :  { %7689 = vst.msk [vmem:[%s15205_s9 + $0x100] sm:$0xff] %vm7656_vm7, %v2562_v29  ;;  %9564 = vmatmul.mubr.msk.f32.gmra.mrb[120].mxu0 %vm2143_vm10, %v12507_v22 }
 0x62a   :  { %9566 = vmatprep.mubr.msk.f32.mxu0 %vm2143_vm10, %v12510_v5 }
 0x62b   :  { %v12608_v35 = vpop.trf.xlu1  ;;  %v9381_v45 = vpop.f32.mrb[58].mxu0 }
 0x62c   :  { %7692 = vst.msk [vmem:[%s15205_s9 + $0x118] sm:$0xff] %vm7656_vm7, %v9381_v45  ;;  %v3512_v52 = vpop.trf.xlu0  ;;  %v2572_v63 = vpop.f32.mrb[59].mxu0 }
 0x62d   :  { %7691 = vst.msk [vmem:[%s15205_s9 + $0x110] sm:$0xff] %vm7656_vm7, %v2572_v63  ;;  %9567 = vmatmul.mubr.msk.f32.gmra.mrb[122].mxu0 %vm2143_vm10, %v12521_v10 }
 0x62e   :  { %9569 = vmatprep.mubr.msk.f32.mxu0 %vm2143_vm10, %v3488_v21 }
 0x62f   :  { %v12621_v60 = vpop.trf.xlu1  ;;  %v9384_v44 = vpop.f32.mrb[60].mxu0 }
 0x630   :  { %7694 = vst.msk [vmem:[%s15205_s9 + $0x128] sm:$0xff] %vm7656_vm7, %v9384_v44  ;;  %v3513_v27 = vpop.trf.xlu0  ;;  %v2582_v55 = vpop.f32.mrb[61].mxu0 }
 0x631   :  { %7693 = vst.msk [vmem:[%s15205_s9 + $0x120] sm:$0xff] %vm7656_vm7, %v2582_v55  ;;  %9570 = vmatmul.mubr.msk.f32.gmra.mrb[124].mxu0 %vm2143_vm10, %v3489_v54 }
 0x632   :  { %9572 = vmatprep.mubr.msk.f32.mxu0 %vm2143_vm10, %v3506_v26 }
 0x633   :  { %v12633_v58 = vpop.trf.xlu1  ;;  %v9387_v34 = vpop.f32.mrb[62].mxu0 }
 0x634   :  { %7696 = vst.msk [vmem:[%s15205_s9 + $0x138] sm:$0xff] %vm7656_vm7, %v9387_v34  ;;  %v3514_v9 = vpop.trf.xlu0  ;;  %v2592_v22 = vpop.f32.mrb[63].mxu0 }
 0x635   :  { %7695 = vst.msk [vmem:[%s15205_s9 + $0x130] sm:$0xff] %vm7656_vm7, %v2592_v22  ;;  %9573 = vmatmul.mubr.msk.f32.gmra.mrb[126].mxu0 %vm2143_vm10, %v3507_v7 }
 0x636   :  { %9575 = vmatprep.mubr.msk.f32.mxu0 %vm2143_vm10, %v3508_v49 }
 0x637   :  { %v12645_v39 = vpop.trf.xlu1  ;;  %v9390_v5 = vpop.f32.mrb[64].mxu0 }
 0x638   :  { %7698 = vst.msk [vmem:[%s15205_s9 + $0x148] sm:$0xff] %vm7656_vm7, %v9390_v5  ;;  %v3515_v38 = vpop.trf.xlu0  ;;  %v2602_v24 = vpop.f32.mrb[65].mxu0 }
 0x639   :  { %7697 = vst.msk [vmem:[%s15205_s9 + $0x140] sm:$0xff] %vm7656_vm7, %v2602_v24  ;;  %9576 = vmatmul.mubr.msk.f32.gmra.mrb[128].mxu0 %vm2143_vm10, %v3509_v17  ;;  %v1803_v17 = vadd.f32 %v11977_v53, %v11902_v59 }
 0x63a   :  { %9578 = vmatprep.mubr.msk.f32.mxu0 %vm2143_vm10, %v3510_v43 }
 0x63b   :  { %v12657_v57 = vpop.trf.xlu1  ;;  %v9393_v10 = vpop.f32.mrb[66].mxu0 }
 0x63c   :  { %7700 = vst.msk [vmem:[%s15205_s9 + $0x158] sm:$0xff] %vm7656_vm7, %v9393_v10  ;;  %v3516_v50 = vpop.trf.xlu0  ;;  %v2612_v25 = vpop.f32.mrb[67].mxu0 }
 0x63d   :  { %7699 = vst.msk [vmem:[%s15205_s9 + $0x150] sm:$0xff] %vm7656_vm7, %v2612_v25  ;;  %9579 = vmatmul.mubr.msk.f32.gmra.mrb[130].mxu0 %vm2143_vm10, %v3511_v30 }
 0x63e   :  { %9581 = vmatprep.mubr.msk.f32.mxu0 %vm2143_vm10, %v3512_v52 }
 0x63f   :  { %v12669_v8 = vpop.trf.xlu1  ;;  %v9396_v21 = vpop.f32.mrb[68].mxu0 }
 0x640   :  { %7702 = vst.msk [vmem:[%s15205_s9 + $0x168] sm:$0xff] %vm7656_vm7, %v9396_v21  ;;  %v3517_v11 = vpop.trf.xlu0  ;;  %v2622_v47 = vpop.f32.mrb[69].mxu0 }
 0x641   :  { %7701 = vst.msk [vmem:[%s15205_s9 + $0x160] sm:$0xff] %vm7656_vm7, %v2622_v47  ;;  %9582 = vmatmul.mubr.msk.f32.gmra.mrb[132].mxu0 %vm2143_vm10, %v3513_v27 }
 0x642   :  { %9584 = vmatprep.mubr.msk.f32.mxu0 %vm2143_vm10, %v3514_v9 }
 0x643   :  { %v12681_v23 = vpop.trf.xlu1  ;;  %v9399_v54 = vpop.f32.mrb[70].mxu0 }
 0x644   :  { %7704 = vst.msk [vmem:[%s15205_s9 + $0x178] sm:$0xff] %vm7656_vm7, %v9399_v54  ;;  %v9437_v4 = vpop.f32.mrb[32].mxu1  ;;  %v3518_v41 = vpop.trf.xlu0 }
 0x645   :  { %7728 = vst.msk [vmem:[%s15205_s9 + $0x238] sm:$0xff] %vm7656_vm7, %v9437_v4  ;;  %v2632_v26 = vpop.f32.mrb[71].mxu0  ;;  %v3137_v12 = vpop.f32.mrb[33].mxu1  ;;  %9585 = vmatmul.mubr.msk.f32.gmra.mrb[134].mxu0 %vm2143_vm10, %v3515_v38 }
 0x646   :  { %7703 = vst.msk [vmem:[%s15205_s9 + $0x170] sm:$0xff] %vm7656_vm7, %v2632_v26  ;;  %7727 = vst.msk [vmem:[%s15205_s9 + $0x230] sm:$0xff] %vm7656_vm7, %v3137_v12  ;;  %9587 = vmatprep.mubr.msk.f32.mxu0 %vm2143_vm10, %v3516_v50 }
 0x647   :  { %v12701_v7 = vpop.trf.xlu1  ;;  %v9402_v36 = vpop.f32.mrb[72].mxu0 }
 0x648   :  { %7706 = vst.msk [vmem:[%s15205_s9 + $0x188] sm:$0xff] %vm7656_vm7, %v9402_v36  ;;  %v3519_v49 = vpop.trf.xlu0  ;;  %v2642_v33 = vpop.f32.mrb[73].mxu0 }
 0x649   :  { %7705 = vst.msk [vmem:[%s15205_s9 + $0x180] sm:$0xff] %vm7656_vm7, %v2642_v33  ;;  %9588 = vmatmul.mubr.msk.f32.gmra.mrb[136].mxu0 %vm2143_vm10, %v3517_v11 }
 0x64a   :  { %9590 = vmatprep.mubr.msk.f32.mxu0 %vm2143_vm10, %v3518_v41 }
 0x64b   :  { %v12717_v43 = vpop.trf.xlu1  ;;  %5541 = vxpose.xlu1.b32.start.end [1/1] (short) %v1803_v17, 128  ;;  %v9405_v18 = vpop.f32.mrb[74].mxu0 }
 0x64c   :  { %7708 = vst.msk [vmem:[%s15205_s9 + $0x198] sm:$0xff] %vm7656_vm7, %v9405_v18  ;;  %v9440_v53 = vpop.f32.mrb[34].mxu1  ;;  %v3520_v46 = vpop.trf.xlu0  ;;  %4836 = vxpose.xlu0.b32.start.end [1/1] (short) %v1797_v56, 128 }
 0x64d   :  { %7730 = vst.msk [vmem:[%s15205_s9 + $0x248] sm:$0xff] %vm7656_vm7, %v9440_v53  ;;  %v2652_v32 = vpop.f32.mrb[75].mxu0  ;;  %v3147_v30 = vpop.f32.mrb[35].mxu1  ;;  %9591 = vmatmul.mubr.msk.f32.gmra.mrb[138].mxu0 %vm2143_vm10, %v3519_v49 }
 0x64e   :  { %7707 = vst.msk [vmem:[%s15205_s9 + $0x190] sm:$0xff] %vm7656_vm7, %v2652_v32  ;;  %7729 = vst.msk [vmem:[%s15205_s9 + $0x240] sm:$0xff] %vm7656_vm7, %v3147_v30  ;;  %9593 = vmatprep.mubr.msk.f32.mxu0 %vm2143_vm10, %v3520_v46 }
 0x64f   :  { %v12737_v29 = vpop.trf.xlu1  ;;  %v9408_v45 = vpop.f32.mrb[76].mxu0 }
 0x650   :  { %7710 = vst.msk [vmem:[%s15205_s9 + $0x1a8] sm:$0xff] %vm7656_vm7, %v9408_v45  ;;  %v3521_v52 = vpop.trf.xlu0  ;;  %v2662_v63 = vpop.f32.mrb[77].mxu0 }
 0x651   :  { %7709 = vst.msk [vmem:[%s15205_s9 + $0x1a0] sm:$0xff] %vm7656_vm7, %v2662_v63  ;;  %9594 = vmatmul.mubr.msk.f32.gmra.mrb[140].mxu0 %vm2143_vm10, %v3521_v52 }
 0x652   :  { %9596 = vmatprep.mubr.msk.f32.mxu0 %vm2143_vm10, %v12540_v40 }
 0x653   :  { %v12750_v44 = vpop.trf.xlu1  ;;  %v9411_v27 = vpop.f32.mrb[78].mxu0 }
 0x654   :  { %7712 = vst.msk [vmem:[%s15205_s9 + $0x1b8] sm:$0xff] %vm7656_vm7, %v9411_v27  ;;  %v9443_v55 = vpop.f32.mrb[36].mxu1  ;;  %v4147_v34 = vpop.trf.xlu0 }
 0x655   :  { %7732 = vst.msk [vmem:[%s15205_s9 + $0x258] sm:$0xff] %vm7656_vm7, %v9443_v55  ;;  %v2672_v9 = vpop.f32.mrb[79].mxu0  ;;  %v3157_v22 = vpop.f32.mrb[37].mxu1  ;;  %9597 = vmatmul.mubr.msk.f32.gmra.mrb[142].mxu0 %vm2143_vm10, %v12554_v2  ;;  %9622 = vmatprep.mubr.msk.f32.mxu1 %vm2143_vm10, %v4147_v34 }
 0x656   :  { %7711 = vst.msk [vmem:[%s15205_s9 + $0x1b0] sm:$0xff] %vm7656_vm7, %v2672_v9  ;;  %7731 = vst.msk [vmem:[%s15205_s9 + $0x250] sm:$0xff] %vm7656_vm7, %v3157_v22  ;;  %9599 = vmatprep.mubr.msk.f32.mxu0 %vm2143_vm10, %v12560_v51 }
 0x657   :  { %v12773_v40 = vpop.trf.xlu1  ;;  %v9414_v5 = vpop.f32.mrb[80].mxu0 }
 0x658   :  { %7714 = vst.msk [vmem:[%s15205_s9 + $0x1c8] sm:$0xff] %vm7656_vm7, %v9414_v5  ;;  %v4148_v2 = vpop.trf.xlu0  ;;  %v2682_v38 = vpop.f32.mrb[81].mxu0 }
 0x659   :  { %7713 = vst.msk [vmem:[%s15205_s9 + $0x1c0] sm:$0xff] %vm7656_vm7, %v2682_v38  ;;  %9600 = vmatmul.mubr.msk.f32.gmra.mrb[144].mxu0 %vm2143_vm10, %v12574_v0  ;;  %9623 = vmatmul.mubr.msk.f32.vlgmr.msra.gmra.mrb[90].mxu1 %vm2143_vm10, %v4148_v2 }
 0x65a   :  { %9817 = vmatpush3.msk.msra.mxu1 %vm1996_vm3, %v15293_v31  ;;  %9602 = vmatprep.mubr.msk.f32.mxu0 %vm2143_vm10, %v12580_v20 }
 0x65b   :  { %10012 = vmatprep.subr.msk.mxu1 %vm1998_vm1, %v15293_v31  ;;  %v12798_v51 = vpop.trf.xlu1  ;;  %v9417_v0 = vpop.f32.mrb[82].mxu0 }
 0x65c   :  { %7716 = vst.msk [vmem:[%s15205_s9 + $0x1d8] sm:$0xff] %vm7656_vm7, %v9417_v0  ;;  %v9446_v24 = vpop.f32.mrb[38].mxu1  ;;  %v4149_v10 = vpop.trf.xlu0 }
 0x65d   :  { %7734 = vst.msk [vmem:[%s15205_s9 + $0x268] sm:$0xff] %vm7656_vm7, %v9446_v24  ;;  %v2692_v28 = vpop.f32.mrb[83].mxu0  ;;  %v3167_v20 = vpop.f32.mrb[39].mxu1  ;;  %9603 = vmatmul.mubr.msk.f32.gmra.mrb[146].mxu0 %vm2143_vm10, %v12594_v37  ;;  %9625 = vmatprep.mubr.msk.f32.mxu1 %vm2143_vm10, %v4149_v10 }
 0x65e   :  { %7715 = vst.msk [vmem:[%s15205_s9 + $0x1d0] sm:$0xff] %vm7656_vm7, %v2692_v28  ;;  %7733 = vst.msk [vmem:[%s15205_s9 + $0x260] sm:$0xff] %vm7656_vm7, %v3167_v20  ;;  %9605 = vmatprep.mubr.msk.f32.mxu0 %vm2143_vm10, %v12608_v35 }
 0x65f   :  { %v12821_v50 = vpop.trf.xlu1  ;;  %v9420_v25 = vpop.f32.mrb[84].mxu0 }
 0x660   :  { %7718 = vst.msk [vmem:[%s15205_s9 + $0x1e8] sm:$0xff] %vm7656_vm7, %v9420_v25  ;;  %v4150_v37 = vpop.trf.xlu0  ;;  %v2702_v21 = vpop.f32.mrb[85].mxu0 }
 0x661   :  { %7717 = vst.msk [vmem:[%s15205_s9 + $0x1e0] sm:$0xff] %vm7656_vm7, %v2702_v21  ;;  %9606 = vmatmul.mubr.msk.f32.gmra.mrb[148].mxu0 %vm2143_vm10, %v12621_v60  ;;  %9626 = vmatmul.mubr.msk.f32.gmra.mrb[92].mxu1 %vm2143_vm10, %v4150_v37 }
 0x662   :  { %9608 = vmatprep.mubr.msk.f32.mxu0 %vm2143_vm10, %v12633_v58 }
 0x663   :  { %v12836_v35 = vpop.trf.xlu1  ;;  %v9423_v11 = vpop.f32.mrb[86].mxu0 }
 0x664   :  { %7720 = vst.msk [vmem:[%s15205_s9 + $0x1f8] sm:$0xff] %vm7656_vm7, %v9423_v11  ;;  %v9449_v47 = vpop.f32.mrb[40].mxu1  ;;  %v4151_v54 = vpop.trf.xlu0 }
 0x665   :  { %7736 = vst.msk [vmem:[%s15205_s9 + $0x278] sm:$0xff] %vm7656_vm7, %v9449_v47  ;;  %v2712_v60 = vpop.f32.mrb[87].mxu0  ;;  %v3177_v4 = vpop.f32.mrb[41].mxu1  ;;  %9609 = vmatmul.mubr.msk.f32.gmra.mrb[150].mxu0 %vm2143_vm10, %v12645_v39  ;;  %9628 = vmatprep.mubr.msk.f32.mxu1 %vm2143_vm10, %v4151_v54  ;;  %v1916_v54 = vadd.f32 %v11979_v62, %v11906_v19 }
 0x666   :  { %7719 = vst.msk [vmem:[%s15205_s9 + $0x1f0] sm:$0xff] %vm7656_vm7, %v2712_v60  ;;  %7735 = vst.msk [vmem:[%s15205_s9 + $0x270] sm:$0xff] %vm7656_vm7, %v3177_v4  ;;  %9611 = vmatprep.mubr.msk.f32.mxu0 %vm2143_vm10, %v12657_v57  ;;  %v1910_v60 = vadd.f32 %v11971_v42, %v11906_v19 }
 0x667   :  { %v12859_v58 = vpop.trf.xlu1  ;;  %v9428_v41 = vpop.f32.mrb[88].mxu0 }
 0x668   :  { %7722 = vst.msk [vmem:[%s15205_s9 + $0x208] sm:$0xff] %vm7656_vm7, %v9428_v41  ;;  %v9452_v39 = vpop.f32.mrb[42].mxu1  ;;  %v4152_v26 = vpop.trf.xlu0 }
 0x669   :  { %7738 = vst.msk [vmem:[%s15205_s9 + $0x288] sm:$0xff] %vm7656_vm7, %v9452_v39  ;;  %v3107_v12 = vpop.f32.mrb[89].mxu0  ;;  %v3187_v36 = vpop.f32.mrb[43].mxu1  ;;  %9612 = vmatmul.mubr.msk.f32.gmra.mrb[152].mxu0 %vm2143_vm10, %v12669_v8  ;;  %9629 = vmatmul.mubr.msk.f32.gmra.mrb[94].mxu1 %vm2143_vm10, %v4152_v26 }
 0x66a   :  { %7721 = vst.msk [vmem:[%s15205_s9 + $0x200] sm:$0xff] %vm7656_vm7, %v3107_v12  ;;  %7737 = vst.msk [vmem:[%s15205_s9 + $0x280] sm:$0xff] %vm7656_vm7, %v3187_v36  ;;  %9614 = vmatprep.mubr.msk.f32.mxu0 %vm2143_vm10, %v12681_v23 }
 0x66b   :  { %v12882_v57 = vpop.trf.xlu1  ;;  %v9431_v49 = vpop.f32.mrb[90].mxu0 }
 0x66c   :  { %7724 = vst.msk [vmem:[%s15205_s9 + $0x218] sm:$0xff] %vm7656_vm7, %v9431_v49  ;;  %v9455_v8 = vpop.f32.mrb[44].mxu1  ;;  %v4153_v33 = vpop.trf.xlu0 }
 0x66d   :  { %7740 = vst.msk [vmem:[%s15205_s9 + $0x298] sm:$0xff] %vm7656_vm7, %v9455_v8  ;;  %v3117_v17 = vpop.f32.mrb[91].mxu0  ;;  %v3197_v56 = vpop.f32.mrb[45].mxu1  ;;  %9615 = vmatmul.mubr.msk.f32.gmra.mrb[154].mxu0 %vm2143_vm10, %v12701_v7  ;;  %9631 = vmatprep.mubr.msk.f32.mxu1 %vm2143_vm10, %v4153_v33 }
 0x66e   :  { %7723 = vst.msk [vmem:[%s15205_s9 + $0x210] sm:$0xff] %vm7656_vm7, %v3117_v17  ;;  %7739 = vst.msk [vmem:[%s15205_s9 + $0x290] sm:$0xff] %vm7656_vm7, %v3197_v56  ;;  %9617 = vmatprep.mubr.msk.f32.mxu0 %vm2143_vm10, %v12717_v43 }
 0x66f   :  { %v12905_v23 = vpop.trf.xlu1  ;;  %v9434_v18 = vpop.f32.mrb[92].mxu0 }
 0x670   :  { %7726 = vst.msk [vmem:[%s15205_s9 + $0x228] sm:$0xff] %vm7656_vm7, %v9434_v18  ;;  %v9458_v7 = vpop.f32.mrb[46].mxu1  ;;  %v4154_v53 = vpop.trf.xlu0 }
 0x671   :  { %7742 = vst.msk [vmem:[%s15205_s9 + $0x2a8] sm:$0xff] %vm7656_vm7, %v9458_v7  ;;  %v3127_v46 = vpop.f32.mrb[93].mxu0  ;;  %v3207_v32 = vpop.f32.mrb[47].mxu1  ;;  %9618 = vmatmul.mubr.msk.f32.gmra.mrb[156].mxu0 %vm2143_vm10, %v12737_v29  ;;  %9632 = vmatmul.mubr.msk.f32.gmra.mrb[96].mxu1 %vm2143_vm10, %v4154_v53 }
 0x672   :  { %7725 = vst.msk [vmem:[%s15205_s9 + $0x220] sm:$0xff] %vm7656_vm7, %v3127_v46  ;;  %7741 = vst.msk [vmem:[%s15205_s9 + $0x2a0] sm:$0xff] %vm7656_vm7, %v3207_v32 }
 0x673   :  { %v12926_v43 = vpop.trf.xlu1  ;;  %v9461_v30 = vpop.f32.mrb[48].mxu1 }
 0x674   :  { %7744 = vst.msk [vmem:[%s15205_s9 + $0x2b8] sm:$0xff] %vm7656_vm7, %v9461_v30  ;;  %v4155_v29 = vpop.trf.xlu0  ;;  %v3217_v45 = vpop.f32.mrb[49].mxu1 }
 0x675   :  { %7743 = vst.msk [vmem:[%s15205_s9 + $0x2b0] sm:$0xff] %vm7656_vm7, %v3217_v45  ;;  %9634 = vmatprep.mubr.msk.f32.mxu1 %vm2143_vm10, %v4155_v29 }
 0x677   :  { %v12937_v52 = vpop.trf.xlu1  ;;  %v9464_v63 = vpop.f32.mrb[50].mxu1 }
 0x678   :  { %7746 = vst.msk [vmem:[%s15205_s9 + $0x2c8] sm:$0xff] %vm7656_vm7, %v9464_v63  ;;  %v4156_v27 = vpop.trf.xlu0  ;;  %v3227_v55 = vpop.f32.mrb[51].mxu1 }
 0x679   :  { %7745 = vst.msk [vmem:[%s15205_s9 + $0x2c0] sm:$0xff] %vm7656_vm7, %v3227_v55  ;;  %9635 = vmatmul.mubr.msk.f32.gmra.mrb[98].mxu1 %vm2143_vm10, %v4156_v27 }
 0x67b   :  { %v12948_v34 = vpop.trf.xlu1  ;;  %v9467_v9 = vpop.f32.mrb[52].mxu1 }
 0x67c   :  { %7748 = vst.msk [vmem:[%s15205_s9 + $0x2d8] sm:$0xff] %vm7656_vm7, %v9467_v9  ;;  %v4157_v22 = vpop.trf.xlu0  ;;  %v3237_v5 = vpop.f32.mrb[53].mxu1 }
 0x67d   :  { %7747 = vst.msk [vmem:[%s15205_s9 + $0x2d0] sm:$0xff] %vm7656_vm7, %v3237_v5  ;;  %9637 = vmatprep.mubr.msk.f32.mxu1 %vm2143_vm10, %v4157_v22 }
 0x67f   :  { %v12959_v2 = vpop.trf.xlu1  ;;  %v9470_v38 = vpop.f32.mrb[54].mxu1 }
 0x680   :  { %7750 = vst.msk [vmem:[%s15205_s9 + $0x2e8] sm:$0xff] %vm7656_vm7, %v9470_v38  ;;  %v4158_v0 = vpop.trf.xlu0  ;;  %v3247_v24 = vpop.f32.mrb[55].mxu1 }
 0x681   :  { %7749 = vst.msk [vmem:[%s15205_s9 + $0x2e0] sm:$0xff] %vm7656_vm7, %v3247_v24  ;;  %9638 = vmatmul.mubr.msk.f32.gmra.mrb[100].mxu1 %vm2143_vm10, %v4158_v0 }
 0x683   :  { %v12970_v10 = vpop.trf.xlu1  ;;  %v9473_v28 = vpop.f32.mrb[56].mxu1 }
 0x684   :  { %7752 = vst.msk [vmem:[%s15205_s9 + $0x2f8] sm:$0xff] %vm7656_vm7, %v9473_v28  ;;  %v4159_v20 = vpop.trf.xlu0  ;;  %v3257_v25 = vpop.f32.mrb[57].mxu1 }
 0x685   :  { %7751 = vst.msk [vmem:[%s15205_s9 + $0x2f0] sm:$0xff] %vm7656_vm7, %v3257_v25  ;;  %9640 = vmatprep.mubr.msk.f32.mxu1 %vm2143_vm10, %v4159_v20 }
 0x687   :  { %v12981_v37 = vpop.trf.xlu1  ;;  %v9476_v21 = vpop.f32.mrb[58].mxu1 }
 0x688   :  { %7754 = vst.msk [vmem:[%s15205_s9 + $0x308] sm:$0xff] %vm7656_vm7, %v9476_v21  ;;  %v4160_v11 = vpop.trf.xlu0  ;;  %v3267_v47 = vpop.f32.mrb[59].mxu1 }
 0x689   :  { %7753 = vst.msk [vmem:[%s15205_s9 + $0x300] sm:$0xff] %vm7656_vm7, %v3267_v47  ;;  %9641 = vmatmul.mubr.msk.f32.gmra.mrb[102].mxu1 %vm2143_vm10, %v4160_v11 }
 0x68b   :  { %v12996_v4 = vpop.trf.xlu1  ;;  %5605 = vxpose.xlu1.b32.start.end [1/1] (short) %v1916_v54, 128  ;;  %v9479_v41 = vpop.f32.mrb[60].mxu1 }
 0x68c   :  { %7756 = vst.msk [vmem:[%s15205_s9 + $0x318] sm:$0xff] %vm7656_vm7, %v9479_v41  ;;  %v4161_v62 = vpop.trf.xlu0  ;;  %4900 = vxpose.xlu0.b32.start.end [1/1] (short) %v1910_v60, 128  ;;  %v3277_v39 = vpop.f32.mrb[61].mxu1 }
 0x68d   :  { %7755 = vst.msk [vmem:[%s15205_s9 + $0x310] sm:$0xff] %vm7656_vm7, %v3277_v39  ;;  %9643 = vmatprep.mubr.msk.f32.mxu1 %vm2143_vm10, %v4161_v62 }
 0x68f   :  { %v13007_v42 = vpop.trf.xlu1  ;;  %v9482_v26 = vpop.f32.mrb[62].mxu1 }
 0x690   :  { %7758 = vst.msk [vmem:[%s15205_s9 + $0x328] sm:$0xff] %vm7656_vm7, %v9482_v26  ;;  %v4162_v12 = vpop.trf.xlu0  ;;  %v3287_v36 = vpop.f32.mrb[63].mxu1 }
 0x691   :  { %7757 = vst.msk [vmem:[%s15205_s9 + $0x320] sm:$0xff] %vm7656_vm7, %v3287_v36  ;;  %9644 = vmatmul.mubr.msk.f32.gmra.mrb[104].mxu1 %vm2143_vm10, %v4162_v12 }
 0x692   :  { %9646 = vmatprep.mubr.msk.f32.mxu1 %vm2143_vm10, %v12750_v44 }
 0x693   :  { %v13020_v49 = vpop.trf.xlu1  ;;  %v9485_v8 = vpop.f32.mrb[64].mxu1 }
 0x694   :  { %7760 = vst.msk [vmem:[%s15205_s9 + $0x338] sm:$0xff] %vm7656_vm7, %v9485_v8  ;;  %v13026_v33 = vpop.trf.xlu0  ;;  %v3297_v17 = vpop.f32.mrb[65].mxu1 }
 0x695   :  { %7759 = vst.msk [vmem:[%s15205_s9 + $0x330] sm:$0xff] %vm7656_vm7, %v3297_v17  ;;  %9647 = vmatmul.mubr.msk.f32.gmra.mrb[106].mxu1 %vm2143_vm10, %v12773_v40 }
 0x696   :  { %9649 = vmatprep.mubr.msk.f32.mxu1 %vm2143_vm10, %v12798_v51 }
 0x697   :  { %v13036_v44 = vpop.trf.xlu1  ;;  %v9488_v56 = vpop.f32.mrb[66].mxu1 }
 0x698   :  { %7762 = vst.msk [vmem:[%s15205_s9 + $0x348] sm:$0xff] %vm7656_vm7, %v9488_v56  ;;  %v13042_v18 = vpop.trf.xlu0  ;;  %v3307_v7 = vpop.f32.mrb[67].mxu1 }
 0x699   :  { %7761 = vst.msk [vmem:[%s15205_s9 + $0x340] sm:$0xff] %vm7656_vm7, %v3307_v7  ;;  %9650 = vmatmul.mubr.msk.f32.gmra.mrb[108].mxu1 %vm2143_vm10, %v12821_v50 }
 0x69a   :  { %9652 = vmatprep.mubr.msk.f32.mxu1 %vm2143_vm10, %v12836_v35 }
 0x69b   :  { %v13052_v40 = vpop.trf.xlu1  ;;  %v9491_v51 = vpop.f32.mrb[68].mxu1 }
 0x69c   :  { %7764 = vst.msk [vmem:[%s15205_s9 + $0x358] sm:$0xff] %vm7656_vm7, %v9491_v51  ;;  %v4213_v53 = vpop.trf.xlu0  ;;  %v3317_v46 = vpop.f32.mrb[69].mxu1 }
 0x69d   :  { %7763 = vst.msk [vmem:[%s15205_s9 + $0x350] sm:$0xff] %vm7656_vm7, %v3317_v46  ;;  %9653 = vmatmul.mubr.msk.f32.gmra.mrb[110].mxu1 %vm2143_vm10, %v12859_v58 }
 0x69e   :  { %9655 = vmatprep.mubr.msk.f32.mxu1 %vm2143_vm10, %v12882_v57 }
 0x69f   :  { %v13066_v50 = vpop.trf.xlu1  ;;  %v9494_v35 = vpop.f32.mrb[70].mxu1 }
 0x6a0   :  { %7766 = vst.msk [vmem:[%s15205_s9 + $0x368] sm:$0xff] %vm7656_vm7, %v9494_v35  ;;  %v4214_v32 = vpop.trf.xlu0  ;;  %v3327_v30 = vpop.f32.mrb[71].mxu1  ;;  %v1805_v35 = vadd.f32 %v11981_v16, %v11961_v13 }
 0x6a1   :  { %7765 = vst.msk [vmem:[%s15205_s9 + $0x360] sm:$0xff] %vm7656_vm7, %v3327_v30  ;;  %9656 = vmatmul.mubr.msk.f32.gmra.mrb[112].mxu1 %vm2143_vm10, %v12905_v23  ;;  %v1799_v30 = vadd.f32 %v11973_v14, %v11961_v13 }
 0x6a2   :  { %9658 = vmatprep.mubr.msk.f32.mxu1 %vm2143_vm10, %v12926_v43 }
 0x6a3   :  { %v13080_v58 = vpop.trf.xlu1 }
 0x6a4   :  { %v9497_v57 = vpop.f32.mrb[72].mxu1  ;;  %v4215_v29 = vpop.trf.xlu0 }
 0x6a5   :  { %7768 = vst.msk [vmem:[%s15205_s9 + $0x378] sm:$0xff] %vm7656_vm7, %v9497_v57  ;;  %v3337_v45 = vpop.f32.mrb[73].mxu1  ;;  %9659 = vmatmul.mubr.msk.f32.gmra.mrb[114].mxu1 %vm2143_vm10, %v12937_v52 }
 0x6a6   :  { %7767 = vst.msk [vmem:[%s15205_s9 + $0x370] sm:$0xff] %vm7656_vm7, %v3337_v45  ;;  %9661 = vmatprep.mubr.msk.f32.mxu1 %vm2143_vm10, %v12948_v34 }
 0x6a7   :  { %v13094_v23 = vpop.trf.xlu1 }
 0x6a8   :  { %v9500_v43 = vpop.f32.mrb[74].mxu1  ;;  %v4216_v63 = vpop.trf.xlu0 }
 0x6a9   :  { %7770 = vst.msk [vmem:[%s15205_s9 + $0x388] sm:$0xff] %vm7656_vm7, %v9500_v43  ;;  %v3347_v27 = vpop.f32.mrb[75].mxu1  ;;  %9662 = vmatmul.mubr.msk.f32.gmra.mrb[116].mxu1 %vm2143_vm10, %v12959_v2 }
 0x6aa   :  { %7769 = vst.msk [vmem:[%s15205_s9 + $0x380] sm:$0xff] %vm7656_vm7, %v3347_v27  ;;  %9664 = vmatprep.mubr.msk.f32.mxu1 %vm2143_vm10, %v12970_v10 }
 0x6ab   :  { %v13108_v52 = vpop.trf.xlu1 }
 0x6ac   :  { %v9503_v55 = vpop.f32.mrb[76].mxu1  ;;  %v9526_v34 = vpop.f32.mrb[94].mxu0 }
 0x6ad   :  { %7772 = vst.msk [vmem:[%s15205_s9 + $0x398] sm:$0xff] %vm7656_vm7, %v9503_v55  ;;  %7786 = vst.msk [vmem:[%s15205_s9 + $0x408] sm:$0xff] %vm7656_vm7, %v9526_v34  ;;  %v4217_v9 = vpop.trf.xlu0  ;;  %v3357_v22 = vpop.f32.mrb[77].mxu1  ;;  %9665 = vmatmul.mubr.msk.f32.gmra.mrb[118].mxu1 %vm2143_vm10, %v12981_v37 }
 0x6ae   :  { %7771 = vst.msk [vmem:[%s15205_s9 + $0x390] sm:$0xff] %vm7656_vm7, %v3357_v22  ;;  %v3812_v5 = vpop.f32.mrb[95].mxu0  ;;  %9667 = vmatprep.mubr.msk.f32.mxu1 %vm2143_vm10, %v12996_v4 }
 0x6af   :  { %7785 = vst.msk [vmem:[%s15205_s9 + $0x400] sm:$0xff] %vm7656_vm7, %v3812_v5  ;;  %v13130_v2 = vpop.trf.xlu1 }
 0x6b0   :  { %v9506_v38 = vpop.f32.mrb[78].mxu1 }
 0x6b1   :  { %7774 = vst.msk [vmem:[%s15205_s9 + $0x3a8] sm:$0xff] %vm7656_vm7, %v9506_v38  ;;  %v4218_v0 = vpop.trf.xlu0  ;;  %v3367_v24 = vpop.f32.mrb[79].mxu1  ;;  %9668 = vmatmul.mubr.msk.f32.gmra.mrb[120].mxu1 %vm2143_vm10, %v13007_v42 }
 0x6b2   :  { %7773 = vst.msk [vmem:[%s15205_s9 + $0x3a0] sm:$0xff] %vm7656_vm7, %v3367_v24  ;;  %9670 = vmatprep.mubr.msk.f32.mxu1 %vm2143_vm10, %v13026_v33 }
 0x6b3   :  { %v13144_v10 = vpop.trf.xlu1 }
 0x6b4   :  { %v9509_v28 = vpop.f32.mrb[80].mxu1  ;;  %v9529_v20 = vpop.f32.mrb[96].mxu0 }
 0x6b5   :  { %7776 = vst.msk [vmem:[%s15205_s9 + $0x3b8] sm:$0xff] %vm7656_vm7, %v9509_v28  ;;  %7788 = vst.msk [vmem:[%s15205_s9 + $0x418] sm:$0xff] %vm7656_vm7, %v9529_v20  ;;  %v4219_v25 = vpop.trf.xlu0  ;;  %v3377_v37 = vpop.f32.mrb[81].mxu1  ;;  %9671 = vmatmul.mubr.msk.f32.gmra.mrb[122].mxu1 %vm2143_vm10, %v13042_v18 }
 0x6b6   :  { %7775 = vst.msk [vmem:[%s15205_s9 + $0x3b0] sm:$0xff] %vm7656_vm7, %v3377_v37  ;;  %v3822_v21 = vpop.f32.mrb[97].mxu0  ;;  %9673 = vmatprep.mubr.msk.f32.mxu1 %vm2143_vm10, %v4213_v53 }
 0x6b7   :  { %7787 = vst.msk [vmem:[%s15205_s9 + $0x410] sm:$0xff] %vm7656_vm7, %v3822_v21  ;;  %v13165_v11 = vpop.trf.xlu1 }
 0x6b8   :  { %v9512_v47 = vpop.f32.mrb[82].mxu1 }
 0x6b9   :  { %7778 = vst.msk [vmem:[%s15205_s9 + $0x3c8] sm:$0xff] %vm7656_vm7, %v9512_v47  ;;  %v4220_v54 = vpop.trf.xlu0  ;;  %v3387_v60 = vpop.f32.mrb[83].mxu1  ;;  %9674 = vmatmul.mubr.msk.f32.gmra.mrb[124].mxu1 %vm2143_vm10, %v4214_v32 }
 0x6ba   :  { %7777 = vst.msk [vmem:[%s15205_s9 + $0x3c0] sm:$0xff] %vm7656_vm7, %v3387_v60  ;;  %9676 = vmatprep.mubr.msk.f32.mxu1 %vm2143_vm10, %v4215_v29 }
 0x6bb   :  { %v13177_v4 = vpop.trf.xlu1 }
 0x6bc   :  { %v9515_v41 = vpop.f32.mrb[84].mxu1  ;;  %v9532_v62 = vpop.f32.mrb[98].mxu0 }
 0x6bd   :  { %7780 = vst.msk [vmem:[%s15205_s9 + $0x3d8] sm:$0xff] %vm7656_vm7, %v9515_v41  ;;  %7790 = vst.msk [vmem:[%s15205_s9 + $0x428] sm:$0xff] %vm7656_vm7, %v9532_v62  ;;  %v4221_v39 = vpop.trf.xlu0  ;;  %v3397_v42 = vpop.f32.mrb[85].mxu1  ;;  %9677 = vmatmul.mubr.msk.f32.gmra.mrb[126].mxu1 %vm2143_vm10, %v4216_v63 }
 0x6be   :  { %7779 = vst.msk [vmem:[%s15205_s9 + $0x3d0] sm:$0xff] %vm7656_vm7, %v3397_v42  ;;  %v3832_v26 = vpop.f32.mrb[99].mxu0  ;;  %9679 = vmatprep.mubr.msk.f32.mxu1 %vm2143_vm10, %v4217_v9 }
 0x6bf   :  { %7789 = vst.msk [vmem:[%s15205_s9 + $0x420] sm:$0xff] %vm7656_vm7, %v3832_v26  ;;  %v13197_v12 = vpop.trf.xlu1 }
 0x6c0   :  { %v9518_v36 = vpop.f32.mrb[86].mxu1 }
 0x6c1   :  { %7782 = vst.msk [vmem:[%s15205_s9 + $0x3e8] sm:$0xff] %vm7656_vm7, %v9518_v36  ;;  %v4222_v8 = vpop.trf.xlu0  ;;  %v3407_v33 = vpop.f32.mrb[87].mxu1  ;;  %9680 = vmatmul.mubr.msk.f32.gmra.mrb[128].mxu1 %vm2143_vm10, %v4218_v0 }
 0x6c2   :  { %7781 = vst.msk [vmem:[%s15205_s9 + $0x3e0] sm:$0xff] %vm7656_vm7, %v3407_v33  ;;  %9682 = vmatprep.mubr.msk.f32.mxu1 %vm2143_vm10, %v4219_v25 }
 0x6c3   :  { %v13209_v17 = vpop.trf.xlu1 }
 0x6c4   :  { %v9521_v56 = vpop.f32.mrb[88].mxu1  ;;  %v9535_v18 = vpop.f32.mrb[100].mxu0 }
 0x6c5   :  { %7784 = vst.msk [vmem:[%s15205_s9 + $0x3f8] sm:$0xff] %vm7656_vm7, %v9521_v56  ;;  %7792 = vst.msk [vmem:[%s15205_s9 + $0x438] sm:$0xff] %vm7656_vm7, %v9535_v18  ;;  %v4223_v7 = vpop.trf.xlu0  ;;  %v3417_v51 = vpop.f32.mrb[89].mxu1  ;;  %9683 = vmatmul.mubr.msk.f32.gmra.mrb[130].mxu1 %vm2143_vm10, %v4220_v54 }
 0x6c6   :  { %7783 = vst.msk [vmem:[%s15205_s9 + $0x3f0] sm:$0xff] %vm7656_vm7, %v3417_v51  ;;  %v3842_v53 = vpop.f32.mrb[101].mxu0  ;;  %9685 = vmatprep.mubr.msk.f32.mxu1 %vm2143_vm10, %v4221_v39 }
 0x6c7   :  { %7791 = vst.msk [vmem:[%s15205_s9 + $0x430] sm:$0xff] %vm7656_vm7, %v3842_v53  ;;  %v13229_v46 = vpop.trf.xlu1 }
 0x6c9   :  { %v4224_v32 = vpop.trf.xlu0  ;;  %9686 = vmatmul.mubr.msk.f32.gmra.mrb[132].mxu1 %vm2143_vm10, %v4222_v8 }
 0x6ca   :  { %9688 = vmatprep.mubr.msk.f32.mxu1 %vm2143_vm10, %v4223_v7 }
 0x6cb   :  { %v13237_v57 = vpop.trf.xlu1  ;;  %5573 = vxpose.xlu1.b32.start.end [1/1] (short) %v1805_v35, 128 }
 0x6cc   :  { %v9538_v29 = vpop.f32.mrb[102].mxu0 }
 0x6cd   :  { %7794 = vst.msk [vmem:[%s15205_s9 + $0x448] sm:$0xff] %vm7656_vm7, %v9538_v29  ;;  %v4225_v45 = vpop.trf.xlu0  ;;  %4868 = vxpose.xlu0.b32.start.end [1/1] (short) %v1799_v30, 128  ;;  %v3852_v16 = vpop.f32.mrb[103].mxu0  ;;  %9689 = vmatmul.mubr.msk.f32.gmra.mrb[134].mxu1 %vm2143_vm10, %v4224_v32  ;;  %v1918_v32 = vadd.f32 %v11983_v48, %v11965_v15  ;;  %v1912_v29 = vadd.f32 %v11975_v1, %v11965_v15 }
 0x6ce   :  { %7793 = vst.msk [vmem:[%s15205_s9 + $0x440] sm:$0xff] %vm7656_vm7, %v3852_v16  ;;  %9691 = vmatprep.mubr.msk.f32.mxu1 %vm2143_vm10, %v4225_v45 }
 0x6cf   :  { %v13249_v14 = vpop.trf.xlu1 }
 0x6d1   :  { %v4226_v43 = vpop.trf.xlu0 }
 0x6d2   :  { %9692 = vmatmul.mubr.msk.f32.gmra.mrb[136].mxu1 %vm2143_vm10, %v4226_v43 }
 0x6d3   :  { %9694 = vmatprep.mubr.msk.f32.mxu1 %vm2143_vm10, %v13020_v49  ;;  %v13254_v63 = vpop.trf.xlu1 }
 0x6d4   :  { %v9541_v27 = vpop.f32.mrb[104].mxu0 }
 0x6d5   :  { %7796 = vst.msk [vmem:[%s15205_s9 + $0x458] sm:$0xff] %vm7656_vm7, %v9541_v27  ;;  %v4852_v55 = vpop.trf.xlu0  ;;  %v3862_v34 = vpop.f32.mrb[105].mxu0 }
 0x6d6   :  { %7795 = vst.msk [vmem:[%s15205_s9 + $0x450] sm:$0xff] %vm7656_vm7, %v3862_v34  ;;  %9695 = vmatmul.mubr.msk.f32.gmra.mrb[138].mxu1 %vm2143_vm10, %v13036_v44  ;;  %9720 = vmatprep.mubr.msk.f32.mxu0 %vm2143_vm10, %v4852_v55 }
 0x6d7   :  { %9697 = vmatprep.mubr.msk.f32.mxu1 %vm2143_vm10, %v13052_v40  ;;  %v13269_v49 = vpop.trf.xlu1 }
 0x6d9   :  { %v4853_v9 = vpop.trf.xlu0 }
 0x6da   :  { %9698 = vmatmul.mubr.msk.f32.gmra.mrb[140].mxu1 %vm2143_vm10, %v13066_v50  ;;  %9721 = vmatmul.mubr.msk.f32.vlgmr.msra.gmra.mrb[158].mxu0 %vm2143_vm10, %v4853_v9 }
 0x6db   :  { %9915 = vmatpush3.msk.msra.mxu0 %vm1997_vm8, %v15293_v31  ;;  %9700 = vmatprep.mubr.msk.f32.mxu1 %vm2143_vm10, %v13080_v58  ;;  %v5559_v44 = vpop.trf.xlu1 }
 0x6dc   :  { %v9544_v22 = vpop.f32.mrb[106].mxu0 }
 0x6dd   :  { %7798 = vst.msk [vmem:[%s15205_s9 + $0x468] sm:$0xff] %vm7656_vm7, %v9544_v22  ;;  %v4854_v40 = vpop.trf.xlu0  ;;  %v3872_v5 = vpop.f32.mrb[107].mxu0 }
 0x6de   :  { %7797 = vst.msk [vmem:[%s15205_s9 + $0x460] sm:$0xff] %vm7656_vm7, %v3872_v5  ;;  %9701 = vmatmul.mubr.msk.f32.gmra.mrb[142].mxu1 %vm2143_vm10, %v13094_v23  ;;  %9723 = vmatprep.mubr.msk.f32.mxu0 %vm2143_vm10, %v4854_v40 }
 0x6df   :  { %9703 = vmatprep.mubr.msk.f32.mxu1 %vm2143_vm10, %v13108_v52  ;;  %v5560_v3 = vpop.trf.xlu1 }
 0x6e1   :  { %v4855_v50 = vpop.trf.xlu0 }
 0x6e2   :  { %9704 = vmatmul.mubr.msk.f32.gmra.mrb[144].mxu1 %vm2143_vm10, %v13130_v2  ;;  %9724 = vmatmul.mubr.msk.f32.gmra.mrb[160].mxu0 %vm2143_vm10, %v4855_v50 }
 0x6e3   :  { %9706 = vmatprep.mubr.msk.f32.mxu1 %vm2143_vm10, %v13144_v10  ;;  %v5561_v58 = vpop.trf.xlu1 }
 0x6e4   :  { %v9547_v38 = vpop.f32.mrb[108].mxu0 }
 0x6e5   :  { %7800 = vst.msk [vmem:[%s15205_s9 + $0x478] sm:$0xff] %vm7656_vm7, %v9547_v38  ;;  %v4856_v23 = vpop.trf.xlu0  ;;  %v3882_v0 = vpop.f32.mrb[109].mxu0 }
 0x6e6   :  { %7799 = vst.msk [vmem:[%s15205_s9 + $0x470] sm:$0xff] %vm7656_vm7, %v3882_v0  ;;  %9707 = vmatmul.mubr.msk.f32.gmra.mrb[146].mxu1 %vm2143_vm10, %v13165_v11  ;;  %9726 = vmatprep.mubr.msk.f32.mxu0 %vm2143_vm10, %v4856_v23 }
 0x6e7   :  { %9709 = vmatprep.mubr.msk.f32.mxu1 %vm2143_vm10, %v13177_v4  ;;  %v5562_v52 = vpop.trf.xlu1 }
 0x6e8   :  { %v9550_v2 = vpop.f32.mrb[110].mxu0 }
 0x6e9   :  { %7802 = vst.msk [vmem:[%s15205_s9 + $0x488] sm:$0xff] %vm7656_vm7, %v9550_v2  ;;  %v4857_v24 = vpop.trf.xlu0  ;;  %v3892_v10 = vpop.f32.mrb[111].mxu0 }
 0x6ea   :  { %7801 = vst.msk [vmem:[%s15205_s9 + $0x480] sm:$0xff] %vm7656_vm7, %v3892_v10  ;;  %9710 = vmatmul.mubr.msk.f32.gmra.mrb[148].mxu1 %vm2143_vm10, %v13197_v12  ;;  %9727 = vmatmul.mubr.msk.f32.gmra.mrb[162].mxu0 %vm2143_vm10, %v4857_v24 }
 0x6eb   :  { %9712 = vmatprep.mubr.msk.f32.mxu1 %vm2143_vm10, %v13209_v17  ;;  %v5563_v28 = vpop.trf.xlu1 }
 0x6ec   :  { %v9553_v20 = vpop.f32.mrb[112].mxu0 }
 0x6ed   :  { %7804 = vst.msk [vmem:[%s15205_s9 + $0x498] sm:$0xff] %vm7656_vm7, %v9553_v20  ;;  %v4858_v25 = vpop.trf.xlu0  ;;  %v3902_v37 = vpop.f32.mrb[113].mxu0 }
 0x6ee   :  { %7803 = vst.msk [vmem:[%s15205_s9 + $0x490] sm:$0xff] %vm7656_vm7, %v3902_v37  ;;  %9713 = vmatmul.mubr.msk.f32.gmra.mrb[150].mxu1 %vm2143_vm10, %v13229_v46  ;;  %9729 = vmatprep.mubr.msk.f32.mxu0 %vm2143_vm10, %v4858_v25 }
 0x6ef   :  { %9715 = vmatprep.mubr.msk.f32.mxu1 %vm2143_vm10, %v13237_v57  ;;  %v5564_v21 = vpop.trf.xlu1 }
 0x6f0   :  { %v9556_v11 = vpop.f32.mrb[114].mxu0 }
 0x6f1   :  { %7806 = vst.msk [vmem:[%s15205_s9 + $0x4a8] sm:$0xff] %vm7656_vm7, %v9556_v11  ;;  %v4859_v47 = vpop.trf.xlu0  ;;  %v3912_v54 = vpop.f32.mrb[115].mxu0 }
 0x6f2   :  { %7805 = vst.msk [vmem:[%s15205_s9 + $0x4a0] sm:$0xff] %vm7656_vm7, %v3912_v54  ;;  %9716 = vmatmul.mubr.msk.f32.gmra.mrb[152].mxu1 %vm2143_vm10, %v13249_v14  ;;  %9730 = vmatmul.mubr.msk.f32.gmra.mrb[164].mxu0 %vm2143_vm10, %v4859_v47 }
 0x6f3   :  { %9818 = vmatprep.mubr.msk.f32.mxu1 %vm2143_vm10, %v13254_v63  ;;  %v5565_v60 = vpop.trf.xlu1 }
 0x6f4   :  { %v9559_v4 = vpop.f32.mrb[116].mxu0 }
 0x6f5   :  { %7808 = vst.msk [vmem:[%s15205_s9 + $0x4b8] sm:$0xff] %vm7656_vm7, %v9559_v4  ;;  %v4860_v41 = vpop.trf.xlu0  ;;  %v3922_v62 = vpop.f32.mrb[117].mxu0 }
 0x6f6   :  { %7807 = vst.msk [vmem:[%s15205_s9 + $0x4b0] sm:$0xff] %vm7656_vm7, %v3922_v62  ;;  %9732 = vmatprep.mubr.msk.f32.mxu0 %vm2143_vm10, %v4860_v41  ;;  %9819 = vmatmul.mubr.msk.f32.vlgmr.msra.gmra.mrb[154].mxu1 %vm2143_vm10, %v13269_v49 }
 0x6f7   :  { %10013 = vmatpush3.msk.msra.mxu1 %vm1998_vm1, %v15293_v31  ;;  %9821 = vmatprep.mubr.msk.f32.mxu1 %vm2143_vm10, %v5559_v44  ;;  %v5566_v39 = vpop.trf.xlu1 }
 0x6f8   :  { %v9562_v42 = vpop.f32.mrb[118].mxu0 }
 0x6f9   :  { %7810 = vst.msk [vmem:[%s15205_s9 + $0x4c8] sm:$0xff] %vm7656_vm7, %v9562_v42  ;;  %v4861_v26 = vpop.trf.xlu0  ;;  %v3932_v12 = vpop.f32.mrb[119].mxu0 }
 0x6fa   :  { %7809 = vst.msk [vmem:[%s15205_s9 + $0x4c0] sm:$0xff] %vm7656_vm7, %v3932_v12  ;;  %9733 = vmatmul.mubr.msk.f32.gmra.mrb[166].mxu0 %vm2143_vm10, %v4861_v26  ;;  %9822 = vmatmul.mubr.msk.f32.gmra.mrb[156].mxu1 %vm2143_vm10, %v5560_v3 }
 0x6fb   :  { %9824 = vmatprep.mubr.msk.f32.mxu1 %vm2143_vm10, %v5561_v58  ;;  %v5567_v61 = vpop.trf.xlu1 }
 0x6fc   :  { %v9565_v6 = vpop.f32.mrb[120].mxu0 }
 0x6fd   :  { %7812 = vst.msk [vmem:[%s15205_s9 + $0x4d8] sm:$0xff] %vm7656_vm7, %v9565_v6  ;;  %v4862_v31 = vpop.trf.xlu0  ;;  %v3942_v36 = vpop.f32.mrb[121].mxu0 }
 0x6fe   :  { %7811 = vst.msk [vmem:[%s15205_s9 + $0x4d0] sm:$0xff] %vm7656_vm7, %v3942_v36  ;;  %9735 = vmatprep.mubr.msk.f32.mxu0 %vm2143_vm10, %v4862_v31  ;;  %9825 = vmatmul.mubr.msk.f32.gmra.mrb[158].mxu1 %vm2143_vm10, %v5562_v52 }
 0x6ff   :  { %9827 = vmatprep.mubr.msk.f32.mxu1 %vm2143_vm10, %v5563_v28  ;;  %v5568_v8 = vpop.trf.xlu1 }
 0x700   :  { %v9568_v33 = vpop.f32.mrb[122].mxu0 }
 0x701   :  { %7814 = vst.msk [vmem:[%s15205_s9 + $0x4e8] sm:$0xff] %vm7656_vm7, %v9568_v33  ;;  %v4863_v17 = vpop.trf.xlu0  ;;  %v3952_v56 = vpop.f32.mrb[123].mxu0 }
 0x702   :  { %7813 = vst.msk [vmem:[%s15205_s9 + $0x4e0] sm:$0xff] %vm7656_vm7, %v3952_v56  ;;  %9736 = vmatmul.mubr.msk.f32.gmra.mrb[168].mxu0 %vm2143_vm10, %v4863_v17  ;;  %9828 = vmatmul.mubr.msk.f32.gmra.mrb[160].mxu1 %vm2143_vm10, %v5564_v21 }
 0x703   :  { %9830 = vmatprep.mubr.msk.f32.mxu1 %vm2143_vm10, %v5565_v60  ;;  %v5569_v18 = vpop.trf.xlu1 }
 0x704   :  { %v9571_v7 = vpop.f32.mrb[124].mxu0 }
 0x705   :  { %7816 = vst.msk [vmem:[%s15205_s9 + $0x4f8] sm:$0xff] %vm7656_vm7, %v9571_v7  ;;  %v4864_v51 = vpop.trf.xlu0  ;;  %v3962_v53 = vpop.f32.mrb[125].mxu0 }
 0x706   :  { %7815 = vst.msk [vmem:[%s15205_s9 + $0x4f0] sm:$0xff] %vm7656_vm7, %v3962_v53  ;;  %9738 = vmatprep.mubr.msk.f32.mxu0 %vm2143_vm10, %v4864_v51  ;;  %9831 = vmatmul.mubr.msk.f32.gmra.mrb[162].mxu1 %vm2143_vm10, %v5566_v39 }
 0x707   :  { %9833 = vmatprep.mubr.msk.f32.mxu1 %vm2143_vm10, %v5567_v61  ;;  %v5570_v46 = vpop.trf.xlu1 }
 0x708   :  { %v9574_v35 = vpop.f32.mrb[126].mxu0 }
 0x709   :  { %7818 = vst.msk [vmem:[%s15205_s9 + $0x508] sm:$0xff] %vm7656_vm7, %v9574_v35  ;;  %v4865_v30 = vpop.trf.xlu0  ;;  %v3972_v57 = vpop.f32.mrb[127].mxu0 }
 0x70a   :  { %7817 = vst.msk [vmem:[%s15205_s9 + $0x500] sm:$0xff] %vm7656_vm7, %v3972_v57  ;;  %9739 = vmatmul.mubr.msk.f32.gmra.mrb[170].mxu0 %vm2143_vm10, %v4865_v30  ;;  %9834 = vmatmul.mubr.msk.f32.gmra.mrb[164].mxu1 %vm2143_vm10, %v5568_v8 }
 0x70b   :  { %9836 = vmatprep.mubr.msk.f32.mxu1 %vm2143_vm10, %v5569_v18  ;;  %v5571_v48 = vpop.trf.xlu1  ;;  %5637 = vxpose.xlu1.b32.start.end [1/1] (short) %v1918_v32, 128 }
 0x70c   :  { %v9577_v45 = vpop.f32.mrb[128].mxu0 }
 0x70d   :  { %7820 = vst.msk [vmem:[%s15205_s9 + $0x518] sm:$0xff] %vm7656_vm7, %v9577_v45  ;;  %v4866_v16 = vpop.trf.xlu0  ;;  %4932 = vxpose.xlu0.b32.start.end [1/1] (short) %v1912_v29, 128  ;;  %v3982_v14 = vpop.f32.mrb[129].mxu0 }
 0x70e   :  { %7819 = vst.msk [vmem:[%s15205_s9 + $0x510] sm:$0xff] %vm7656_vm7, %v3982_v14  ;;  %9741 = vmatprep.mubr.msk.f32.mxu0 %vm2143_vm10, %v4866_v16  ;;  %9837 = vmatmul.mubr.msk.f32.gmra.mrb[166].mxu1 %vm2143_vm10, %v5570_v46 }
 0x70f   :  { %9839 = vmatprep.mubr.msk.f32.mxu1 %vm2143_vm10, %v5571_v48  ;;  %v5572_v1 = vpop.trf.xlu1 }
 0x710   :  { %v9580_v43 = vpop.f32.mrb[130].mxu0 }
 0x711   :  { %7822 = vst.msk [vmem:[%s15205_s9 + $0x528] sm:$0xff] %vm7656_vm7, %v9580_v43  ;;  %v4867_v63 = vpop.trf.xlu0  ;;  %v3992_v27 = vpop.f32.mrb[131].mxu0 }
 0x712   :  { %7821 = vst.msk [vmem:[%s15205_s9 + $0x520] sm:$0xff] %vm7656_vm7, %v3992_v27  ;;  %9742 = vmatmul.mubr.msk.f32.gmra.mrb[172].mxu0 %vm2143_vm10, %v4867_v63  ;;  %9840 = vmatmul.mubr.msk.f32.gmra.mrb[168].mxu1 %vm2143_vm10, %v5572_v1 }
 0x713   :  { %v13446_v55 = vpop.trf.xlu1 }
 0x714   :  { %v9583_v34 = vpop.f32.mrb[132].mxu0 }
 0x715   :  { %7824 = vst.msk [vmem:[%s15205_s9 + $0x538] sm:$0xff] %vm7656_vm7, %v9583_v34  ;;  %v13452_v49 = vpop.trf.xlu0  ;;  %v4002_v9 = vpop.f32.mrb[133].mxu0 }
 0x716   :  { %7823 = vst.msk [vmem:[%s15205_s9 + $0x530] sm:$0xff] %vm7656_vm7, %v4002_v9  ;;  %v15294_v9 = vld [vmem:[#allocation25_spill] sm:$0xff] }
 0x717   :  { %v13458_v44 = vpop.trf.xlu1 }
 0x718   :  { %v9586_v22 = vpop.f32.mrb[134].mxu0 }
 0x719   :  { %7826 = vst.msk [vmem:[%s15205_s9 + $0x548] sm:$0xff] %vm7656_vm7, %v9586_v22  ;;  %v13464_v40 = vpop.trf.xlu0  ;;  %v4012_v5 = vpop.f32.mrb[135].mxu0  ;;  %v1815_v22 = vadd.f32 %v15294_v9, %v11902_v59 }
 0x71a   :  { %7825 = vst.msk [vmem:[%s15205_s9 + $0x540] sm:$0xff] %vm7656_vm7, %v4012_v5 }
 0x71b   :  { %v13470_v3 = vpop.trf.xlu1 }
 0x71c   :  { %v9589_v50 = vpop.f32.mrb[136].mxu0 }
 0x71d   :  { %7828 = vst.msk [vmem:[%s15205_s9 + $0x558] sm:$0xff] %vm7656_vm7, %v9589_v50  ;;  %v13476_v58 = vpop.trf.xlu0  ;;  %v4022_v38 = vpop.f32.mrb[137].mxu0  ;;  %v15295_v50 = vld [vmem:[#allocation30_spill] sm:$0xff] }
 0x71e   :  { %7827 = vst.msk [vmem:[%s15205_s9 + $0x550] sm:$0xff] %vm7656_vm7, %v4022_v38  ;;  %v1809_v38 = vadd.f32 %v15295_v50, %v11902_v59 }
 0x71f   :  { %v13482_v23 = vpop.trf.xlu1 }
 0x720   :  { %v9592_v0 = vpop.f32.mrb[138].mxu0 }
 0x721   :  { %7830 = vst.msk [vmem:[%s15205_s9 + $0x568] sm:$0xff] %vm7656_vm7, %v9592_v0  ;;  %v13488_v52 = vpop.trf.xlu0  ;;  %v4032_v2 = vpop.f32.mrb[139].mxu0 }
 0x722   :  { %7829 = vst.msk [vmem:[%s15205_s9 + $0x560] sm:$0xff] %vm7656_vm7, %v4032_v2 }
 0x723   :  { %v13494_v24 = vpop.trf.xlu1 }
 0x724   :  { %v9595_v10 = vpop.f32.mrb[140].mxu0 }
 0x725   :  { %7832 = vst.msk [vmem:[%s15205_s9 + $0x578] sm:$0xff] %vm7656_vm7, %v9595_v10  ;;  %v13500_v28 = vpop.trf.xlu0  ;;  %v4042_v20 = vpop.f32.mrb[141].mxu0 }
 0x726   :  { %7831 = vst.msk [vmem:[%s15205_s9 + $0x570] sm:$0xff] %vm7656_vm7, %v4042_v20 }
 0x727   :  { %v13506_v25 = vpop.trf.xlu1 }
 0x728   :  { %v9598_v37 = vpop.f32.mrb[142].mxu0 }
 0x729   :  { %7834 = vst.msk [vmem:[%s15205_s9 + $0x588] sm:$0xff] %vm7656_vm7, %v9598_v37  ;;  %v13512_v21 = vpop.trf.xlu0  ;;  %v4052_v11 = vpop.f32.mrb[143].mxu0 }
 0x72a   :  { %7833 = vst.msk [vmem:[%s15205_s9 + $0x580] sm:$0xff] %vm7656_vm7, %v4052_v11 }
 0x72b   :  { %v13518_v47 = vpop.trf.xlu1 }
 0x72c   :  { %v9601_v54 = vpop.f32.mrb[144].mxu0  ;;  %v9624_v60 = vpop.f32.mrb[90].mxu1 }
 0x72d   :  { %7836 = vst.msk [vmem:[%s15205_s9 + $0x598] sm:$0xff] %vm7656_vm7, %v9601_v54  ;;  %7850 = vst.msk [vmem:[%s15205_s9 + $0x608] sm:$0xff] %vm7656_vm7, %v9624_v60  ;;  %v13528_v4 = vpop.trf.xlu0  ;;  %v4062_v41 = vpop.f32.mrb[145].mxu0 }
 0x72e   :  { %7835 = vst.msk [vmem:[%s15205_s9 + $0x590] sm:$0xff] %vm7656_vm7, %v4062_v41  ;;  %v4517_v62 = vpop.f32.mrb[91].mxu1 }
 0x72f   :  { %7849 = vst.msk [vmem:[%s15205_s9 + $0x600] sm:$0xff] %vm7656_vm7, %v4517_v62  ;;  %v13538_v39 = vpop.trf.xlu1 }
 0x730   :  { %v9604_v42 = vpop.f32.mrb[146].mxu0 }
 0x731   :  { %7838 = vst.msk [vmem:[%s15205_s9 + $0x5a8] sm:$0xff] %vm7656_vm7, %v9604_v42  ;;  %v13544_v26 = vpop.trf.xlu0  ;;  %v4072_v12 = vpop.f32.mrb[147].mxu0 }
 0x732   :  { %7837 = vst.msk [vmem:[%s15205_s9 + $0x5a0] sm:$0xff] %vm7656_vm7, %v4072_v12 }
 0x733   :  { %v13550_v61 = vpop.trf.xlu1 }
 0x734   :  { %v9607_v6 = vpop.f32.mrb[148].mxu0  ;;  %v9627_v31 = vpop.f32.mrb[92].mxu1 }
 0x735   :  { %7840 = vst.msk [vmem:[%s15205_s9 + $0x5b8] sm:$0xff] %vm7656_vm7, %v9607_v6  ;;  %7852 = vst.msk [vmem:[%s15205_s9 + $0x618] sm:$0xff] %vm7656_vm7, %v9627_v31  ;;  %v13560_v36 = vpop.trf.xlu0  ;;  %v4082_v8 = vpop.f32.mrb[149].mxu0 }
 0x736   :  { %7839 = vst.msk [vmem:[%s15205_s9 + $0x5b0] sm:$0xff] %vm7656_vm7, %v4082_v8  ;;  %v4527_v33 = vpop.f32.mrb[93].mxu1 }
 0x737   :  { %7851 = vst.msk [vmem:[%s15205_s9 + $0x610] sm:$0xff] %vm7656_vm7, %v4527_v33  ;;  %v13570_v17 = vpop.trf.xlu1 }
 0x738   :  { %v9610_v56 = vpop.f32.mrb[150].mxu0 }
 0x739   :  { %7842 = vst.msk [vmem:[%s15205_s9 + $0x5c8] sm:$0xff] %vm7656_vm7, %v9610_v56  ;;  %v13576_v18 = vpop.trf.xlu0  ;;  %v4092_v7 = vpop.f32.mrb[151].mxu0 }
 0x73a   :  { %7841 = vst.msk [vmem:[%s15205_s9 + $0x5c0] sm:$0xff] %vm7656_vm7, %v4092_v7 }
 0x73b   :  { %v13582_v51 = vpop.trf.xlu1 }
 0x73c   :  { %v9613_v53 = vpop.f32.mrb[152].mxu0  ;;  %v9630_v46 = vpop.f32.mrb[94].mxu1 }
 0x73d   :  { %7844 = vst.msk [vmem:[%s15205_s9 + $0x5d8] sm:$0xff] %vm7656_vm7, %v9613_v53  ;;  %7854 = vst.msk [vmem:[%s15205_s9 + $0x628] sm:$0xff] %vm7656_vm7, %v9630_v46  ;;  %v13592_v35 = vpop.trf.xlu0  ;;  %v4102_v32 = vpop.f32.mrb[153].mxu0 }
 0x73e   :  { %7843 = vst.msk [vmem:[%s15205_s9 + $0x5d0] sm:$0xff] %vm7656_vm7, %v4102_v32  ;;  %v4537_v30 = vpop.f32.mrb[95].mxu1 }
 0x73f   :  { %7853 = vst.msk [vmem:[%s15205_s9 + $0x620] sm:$0xff] %vm7656_vm7, %v4537_v30  ;;  %v13602_v57 = vpop.trf.xlu1 }
 0x740   :  { %v9616_v29 = vpop.f32.mrb[154].mxu0 }
 0x741   :  { %7846 = vst.msk [vmem:[%s15205_s9 + $0x5e8] sm:$0xff] %vm7656_vm7, %v9616_v29  ;;  %v13608_v48 = vpop.trf.xlu0  ;;  %v4112_v45 = vpop.f32.mrb[155].mxu0 }
 0x742   :  { %7845 = vst.msk [vmem:[%s15205_s9 + $0x5e0] sm:$0xff] %vm7656_vm7, %v4112_v45 }
 0x743   :  { %v13614_v16 = vpop.trf.xlu1 }
 0x744   :  { %v9619_v14 = vpop.f32.mrb[156].mxu0  ;;  %v9633_v1 = vpop.f32.mrb[96].mxu1 }
 0x745   :  { %7848 = vst.msk [vmem:[%s15205_s9 + $0x5f8] sm:$0xff] %vm7656_vm7, %v9619_v14  ;;  %7856 = vst.msk [vmem:[%s15205_s9 + $0x638] sm:$0xff] %vm7656_vm7, %v9633_v1  ;;  %v13624_v43 = vpop.trf.xlu0  ;;  %v4122_v63 = vpop.f32.mrb[157].mxu0 }
 0x746   :  { %7847 = vst.msk [vmem:[%s15205_s9 + $0x5f0] sm:$0xff] %vm7656_vm7, %v4122_v63  ;;  %v4547_v27 = vpop.f32.mrb[97].mxu1 }
 0x747   :  { %7855 = vst.msk [vmem:[%s15205_s9 + $0x630] sm:$0xff] %vm7656_vm7, %v4547_v27  ;;  %v13634_v34 = vpop.trf.xlu1 }
 0x749   :  { %v13638_v5 = vpop.trf.xlu0 }
 0x74b   :  { %v13642_v0 = vpop.trf.xlu1  ;;  %6951 = vxpose.xlu1.b32.start.end [1/1] (short) %v1815_v22, 128 }
 0x74c   :  { %v9636_v2 = vpop.f32.mrb[98].mxu1 }
 0x74d   :  { %7858 = vst.msk [vmem:[%s15205_s9 + $0x648] sm:$0xff] %vm7656_vm7, %v9636_v2  ;;  %v13648_v10 = vpop.trf.xlu0  ;;  %6246 = vxpose.xlu0.b32.start.end [1/1] (short) %v1809_v38, 128  ;;  %v4557_v20 = vpop.f32.mrb[99].mxu1 }
 0x74e   :  { %7857 = vst.msk [vmem:[%s15205_s9 + $0x640] sm:$0xff] %vm7656_vm7, %v4557_v20 }
 0x74f   :  { %v13654_v37 = vpop.trf.xlu1 }
 0x751   :  { %v13656_v59 = vpop.trf.xlu0 }
 0x753   :  { %v5589_v11 = vpop.trf.xlu1 }
 0x754   :  { %v9639_v54 = vpop.f32.mrb[100].mxu1  ;;  %9842 = vmatprep.mubr.msk.f32.mxu1 %vm2143_vm10, %v5589_v11 }
 0x755   :  { %7860 = vst.msk [vmem:[%s15205_s9 + $0x658] sm:$0xff] %vm7656_vm7, %v9639_v54  ;;  %v4884_v60 = vpop.trf.xlu0  ;;  %v4567_v41 = vpop.f32.mrb[101].mxu1 }
 0x756   :  { %7859 = vst.msk [vmem:[%s15205_s9 + $0x650] sm:$0xff] %vm7656_vm7, %v4567_v41  ;;  %9744 = vmatprep.mubr.msk.f32.mxu0 %vm2143_vm10, %v4884_v60 }
 0x757   :  { %v5590_v62 = vpop.trf.xlu1 }
 0x758   :  { %9843 = vmatmul.mubr.msk.f32.gmra.mrb[170].mxu1 %vm2143_vm10, %v5590_v62 }
 0x759   :  { %v4885_v42 = vpop.trf.xlu0 }
 0x75a   :  { %9745 = vmatmul.mubr.msk.f32.gmra.mrb[174].mxu0 %vm2143_vm10, %v4885_v42 }
 0x75b   :  { %v5591_v12 = vpop.trf.xlu1 }
 0x75c   :  { %v9642_v6 = vpop.f32.mrb[102].mxu1  ;;  %9845 = vmatprep.mubr.msk.f32.mxu1 %vm2143_vm10, %v5591_v12 }
 0x75d   :  { %7862 = vst.msk [vmem:[%s15205_s9 + $0x668] sm:$0xff] %vm7656_vm7, %v9642_v6  ;;  %v4886_v31 = vpop.trf.xlu0  ;;  %v4577_v8 = vpop.f32.mrb[103].mxu1 }
 0x75e   :  { %7861 = vst.msk [vmem:[%s15205_s9 + $0x660] sm:$0xff] %vm7656_vm7, %v4577_v8  ;;  %9747 = vmatprep.mubr.msk.f32.mxu0 %vm2143_vm10, %v4886_v31 }
 0x75f   :  { %v5592_v33 = vpop.trf.xlu1 }
 0x760   :  { %9846 = vmatmul.mubr.msk.f32.gmra.mrb[172].mxu1 %vm2143_vm10, %v5592_v33 }
 0x761   :  { %v4887_v56 = vpop.trf.xlu0 }
 0x762   :  { %9748 = vmatmul.mubr.msk.f32.gmra.mrb[176].mxu0 %vm2143_vm10, %v4887_v56 }
 0x763   :  { %v5593_v7 = vpop.trf.xlu1 }
 0x764   :  { %v9645_v53 = vpop.f32.mrb[104].mxu1  ;;  %9848 = vmatprep.mubr.msk.f32.mxu1 %vm2143_vm10, %v5593_v7 }
 0x765   :  { %7864 = vst.msk [vmem:[%s15205_s9 + $0x678] sm:$0xff] %vm7656_vm7, %v9645_v53  ;;  %v4888_v46 = vpop.trf.xlu0  ;;  %v4587_v32 = vpop.f32.mrb[105].mxu1 }
 0x766   :  { %7863 = vst.msk [vmem:[%s15205_s9 + $0x670] sm:$0xff] %vm7656_vm7, %v4587_v32  ;;  %9750 = vmatprep.mubr.msk.f32.mxu0 %vm2143_vm10, %v4888_v46 }
 0x767   :  { %v5594_v30 = vpop.trf.xlu1 }
 0x768   :  { %v9648_v29 = vpop.f32.mrb[106].mxu1  ;;  %9849 = vmatmul.mubr.msk.f32.gmra.mrb[174].mxu1 %vm2143_vm10, %v5594_v30 }
 0x769   :  { %7866 = vst.msk [vmem:[%s15205_s9 + $0x688] sm:$0xff] %vm7656_vm7, %v9648_v29  ;;  %v4889_v45 = vpop.trf.xlu0  ;;  %v4597_v14 = vpop.f32.mrb[107].mxu1 }
 0x76a   :  { %7865 = vst.msk [vmem:[%s15205_s9 + $0x680] sm:$0xff] %vm7656_vm7, %v4597_v14  ;;  %9751 = vmatmul.mubr.msk.f32.gmra.mrb[178].mxu0 %vm2143_vm10, %v4889_v45 }
 0x76b   :  { %v5595_v1 = vpop.trf.xlu1 }
 0x76c   :  { %v9651_v63 = vpop.f32.mrb[108].mxu1  ;;  %9851 = vmatprep.mubr.msk.f32.mxu1 %vm2143_vm10, %v5595_v1 }
 0x76d   :  { %7868 = vst.msk [vmem:[%s15205_s9 + $0x698] sm:$0xff] %vm7656_vm7, %v9651_v63  ;;  %v4890_v27 = vpop.trf.xlu0  ;;  %v4607_v9 = vpop.f32.mrb[109].mxu1  ;;  %v15296_v63 = vld [vmem:[#allocation22_spill] sm:$0xff] }
 0x76e   :  { %7867 = vst.msk [vmem:[%s15205_s9 + $0x690] sm:$0xff] %vm7656_vm7, %v4607_v9  ;;  %9753 = vmatprep.mubr.msk.f32.mxu0 %vm2143_vm10, %v4890_v27  ;;  %v1817_v27 = vadd.f32 %v15296_v63, %v11961_v13 }
 0x76f   :  { %v5596_v22 = vpop.trf.xlu1 }
 0x770   :  { %v9654_v50 = vpop.f32.mrb[110].mxu1  ;;  %9852 = vmatmul.mubr.msk.f32.gmra.mrb[176].mxu1 %vm2143_vm10, %v5596_v22 }
 0x771   :  { %7870 = vst.msk [vmem:[%s15205_s9 + $0x6a8] sm:$0xff] %vm7656_vm7, %v9654_v50  ;;  %v4891_v38 = vpop.trf.xlu0  ;;  %v4617_v2 = vpop.f32.mrb[111].mxu1  ;;  %v15297_v50 = vld [vmem:[#allocation24_spill] sm:$0xff] }
 0x772   :  { %7869 = vst.msk [vmem:[%s15205_s9 + $0x6a0] sm:$0xff] %vm7656_vm7, %v4617_v2  ;;  %9754 = vmatmul.mubr.msk.f32.gmra.mrb[180].mxu0 %vm2143_vm10, %v4891_v38  ;;  %v1811_v38 = vadd.f32 %v15297_v50, %v11961_v13 }
 0x773   :  { %v5597_v20 = vpop.trf.xlu1 }
 0x774   :  { %v9657_v11 = vpop.f32.mrb[112].mxu1  ;;  %9854 = vmatprep.mubr.msk.f32.mxu1 %vm2143_vm10, %v5597_v20 }
 0x775   :  { %7872 = vst.msk [vmem:[%s15205_s9 + $0x6b8] sm:$0xff] %vm7656_vm7, %v9657_v11  ;;  %v4892_v54 = vpop.trf.xlu0  ;;  %v4627_v60 = vpop.f32.mrb[113].mxu1 }
 0x776   :  { %7871 = vst.msk [vmem:[%s15205_s9 + $0x6b0] sm:$0xff] %vm7656_vm7, %v4627_v60  ;;  %9756 = vmatprep.mubr.msk.f32.mxu0 %vm2143_vm10, %v4892_v54 }
 0x777   :  { %v5598_v41 = vpop.trf.xlu1 }
 0x778   :  { %v9660_v62 = vpop.f32.mrb[114].mxu1  ;;  %9855 = vmatmul.mubr.msk.f32.gmra.mrb[178].mxu1 %vm2143_vm10, %v5598_v41 }
 0x779   :  { %7874 = vst.msk [vmem:[%s15205_s9 + $0x6c8] sm:$0xff] %vm7656_vm7, %v9660_v62  ;;  %v4893_v42 = vpop.trf.xlu0  ;;  %v4637_v12 = vpop.f32.mrb[115].mxu1 }
 0x77a   :  { %7873 = vst.msk [vmem:[%s15205_s9 + $0x6c0] sm:$0xff] %vm7656_vm7, %v4637_v12  ;;  %9757 = vmatmul.mubr.msk.f32.gmra.mrb[182].mxu0 %vm2143_vm10, %v4893_v42 }
 0x77b   :  { %v5599_v6 = vpop.trf.xlu1 }
 0x77c   :  { %v9663_v31 = vpop.f32.mrb[116].mxu1  ;;  %9857 = vmatprep.mubr.msk.f32.mxu1 %vm2143_vm10, %v5599_v6 }
 0x77d   :  { %7876 = vst.msk [vmem:[%s15205_s9 + $0x6d8] sm:$0xff] %vm7656_vm7, %v9663_v31  ;;  %v4894_v8 = vpop.trf.xlu0  ;;  %v4647_v33 = vpop.f32.mrb[117].mxu1 }
 0x77e   :  { %7875 = vst.msk [vmem:[%s15205_s9 + $0x6d0] sm:$0xff] %vm7656_vm7, %v4647_v33  ;;  %9759 = vmatprep.mubr.msk.f32.mxu0 %vm2143_vm10, %v4894_v8 }
 0x77f   :  { %v5600_v56 = vpop.trf.xlu1 }
 0x780   :  { %v9666_v7 = vpop.f32.mrb[118].mxu1  ;;  %9858 = vmatmul.mubr.msk.f32.gmra.mrb[180].mxu1 %vm2143_vm10, %v5600_v56 }
 0x781   :  { %7878 = vst.msk [vmem:[%s15205_s9 + $0x6e8] sm:$0xff] %vm7656_vm7, %v9666_v7  ;;  %v4895_v53 = vpop.trf.xlu0  ;;  %v4657_v46 = vpop.f32.mrb[119].mxu1 }
 0x782   :  { %7877 = vst.msk [vmem:[%s15205_s9 + $0x6e0] sm:$0xff] %vm7656_vm7, %v4657_v46  ;;  %9760 = vmatmul.mubr.msk.f32.gmra.mrb[184].mxu0 %vm2143_vm10, %v4895_v53 }
 0x783   :  { %v5601_v32 = vpop.trf.xlu1 }
 0x784   :  { %v9669_v30 = vpop.f32.mrb[120].mxu1  ;;  %9860 = vmatprep.mubr.msk.f32.mxu1 %vm2143_vm10, %v5601_v32 }
 0x785   :  { %7880 = vst.msk [vmem:[%s15205_s9 + $0x6f8] sm:$0xff] %vm7656_vm7, %v9669_v30  ;;  %v4896_v29 = vpop.trf.xlu0  ;;  %v4667_v45 = vpop.f32.mrb[121].mxu1 }
 0x786   :  { %7879 = vst.msk [vmem:[%s15205_s9 + $0x6f0] sm:$0xff] %vm7656_vm7, %v4667_v45  ;;  %9762 = vmatprep.mubr.msk.f32.mxu0 %vm2143_vm10, %v4896_v29 }
 0x787   :  { %v5602_v14 = vpop.trf.xlu1 }
 0x788   :  { %v9672_v1 = vpop.f32.mrb[122].mxu1  ;;  %9861 = vmatmul.mubr.msk.f32.gmra.mrb[182].mxu1 %vm2143_vm10, %v5602_v14 }
 0x789   :  { %7882 = vst.msk [vmem:[%s15205_s9 + $0x708] sm:$0xff] %vm7656_vm7, %v9672_v1  ;;  %v4897_v9 = vpop.trf.xlu0  ;;  %v4677_v22 = vpop.f32.mrb[123].mxu1 }
 0x78a   :  { %7881 = vst.msk [vmem:[%s15205_s9 + $0x700] sm:$0xff] %vm7656_vm7, %v4677_v22  ;;  %9763 = vmatmul.mubr.msk.f32.gmra.mrb[186].mxu0 %vm2143_vm10, %v4897_v9 }
 0x78b   :  { %v5603_v2 = vpop.trf.xlu1  ;;  %6983 = vxpose.xlu1.b32.start.end [1/1] (short) %v1817_v27, 128 }
 0x78c   :  { %v9675_v20 = vpop.f32.mrb[124].mxu1  ;;  %9863 = vmatprep.mubr.msk.f32.mxu1 %vm2143_vm10, %v5603_v2 }
 0x78d   :  { %7884 = vst.msk [vmem:[%s15205_s9 + $0x718] sm:$0xff] %vm7656_vm7, %v9675_v20  ;;  %v4898_v11 = vpop.trf.xlu0  ;;  %6278 = vxpose.xlu0.b32.start.end [1/1] (short) %v1811_v38, 128  ;;  %v4687_v54 = vpop.f32.mrb[125].mxu1 }
 0x78e   :  { %7883 = vst.msk [vmem:[%s15205_s9 + $0x710] sm:$0xff] %vm7656_vm7, %v4687_v54  ;;  %9765 = vmatprep.mubr.msk.f32.mxu0 %vm2143_vm10, %v4898_v11 }
 0x78f   :  { %v5604_v13 = vpop.trf.xlu1 }
 0x790   :  { %v9678_v60 = vpop.f32.mrb[126].mxu1  ;;  %9864 = vmatmul.mubr.msk.f32.gmra.mrb[184].mxu1 %vm2143_vm10, %v5604_v13 }
 0x791   :  { %7886 = vst.msk [vmem:[%s15205_s9 + $0x728] sm:$0xff] %vm7656_vm7, %v9678_v60  ;;  %v4899_v41 = vpop.trf.xlu0  ;;  %v4697_v62 = vpop.f32.mrb[127].mxu1  ;;  %9866 = vmatprep.mubr.msk.f32.mxu1 %vm2143_vm10, %v13446_v55 }
 0x792   :  { %7885 = vst.msk [vmem:[%s15205_s9 + $0x720] sm:$0xff] %vm7656_vm7, %v4697_v62  ;;  %9766 = vmatmul.mubr.msk.f32.gmra.mrb[188].mxu0 %vm2143_vm10, %v4899_v41  ;;  %v15298_v62 = vld [vmem:[#allocation23_spill] sm:$0xff] }
 0x793   :  { %9768 = vmatprep.mubr.msk.f32.mxu0 %vm2143_vm10, %v13452_v49  ;;  %v13810_v42 = vpop.trf.xlu1 }
 0x794   :  { %v9681_v12 = vpop.f32.mrb[128].mxu1  ;;  %9867 = vmatmul.mubr.msk.f32.gmra.mrb[186].mxu1 %vm2143_vm10, %v13458_v44 }
 0x795   :  { %7888 = vst.msk [vmem:[%s15205_s9 + $0x738] sm:$0xff] %vm7656_vm7, %v9681_v12  ;;  %v13818_v55 = vpop.trf.xlu0  ;;  %v4707_v6 = vpop.f32.mrb[129].mxu1  ;;  %9869 = vmatprep.mubr.msk.f32.mxu1 %vm2143_vm10, %v13470_v3 }
 0x796   :  { %7887 = vst.msk [vmem:[%s15205_s9 + $0x730] sm:$0xff] %vm7656_vm7, %v4707_v6  ;;  %9769 = vmatmul.mubr.msk.f32.gmra.mrb[190].mxu0 %vm2143_vm10, %v13464_v40 }
 0x797   :  { %9771 = vmatprep.mubr.msk.f32.mxu0 %vm2143_vm10, %v13476_v58  ;;  %v13830_v49 = vpop.trf.xlu1 }
 0x798   :  { %v9684_v44 = vpop.f32.mrb[130].mxu1  ;;  %9870 = vmatmul.mubr.msk.f32.gmra.mrb[188].mxu1 %vm2143_vm10, %v13482_v23 }
 0x799   :  { %7890 = vst.msk [vmem:[%s15205_s9 + $0x748] sm:$0xff] %vm7656_vm7, %v9684_v44  ;;  %v13838_v3 = vpop.trf.xlu0  ;;  %v4717_v31 = vpop.f32.mrb[131].mxu1  ;;  %9872 = vmatprep.mubr.msk.f32.mxu1 %vm2143_vm10, %v13494_v24  ;;  %v15299_v44 = vld [vmem:[#allocation29_spill] sm:$0xff] }
 0x79a   :  { %7889 = vst.msk [vmem:[%s15205_s9 + $0x740] sm:$0xff] %vm7656_vm7, %v4717_v31  ;;  %9772 = vmatmul.mubr.msk.f32.gmra.mrb[192].mxu0 %vm2143_vm10, %v13488_v52 }
 0x79b   :  { %9774 = vmatprep.mubr.msk.f32.mxu0 %vm2143_vm10, %v13500_v28  ;;  %v13850_v40 = vpop.trf.xlu1 }
 0x79c   :  { %v9687_v58 = vpop.f32.mrb[132].mxu1  ;;  %9873 = vmatmul.mubr.msk.f32.gmra.mrb[190].mxu1 %vm2143_vm10, %v13506_v25 }
 0x79d   :  { %7892 = vst.msk [vmem:[%s15205_s9 + $0x758] sm:$0xff] %vm7656_vm7, %v9687_v58  ;;  %v13858_v23 = vpop.trf.xlu0  ;;  %v4727_v24 = vpop.f32.mrb[133].mxu1  ;;  %9875 = vmatprep.mubr.msk.f32.mxu1 %vm2143_vm10, %v13518_v47 }
 0x79e   :  { %7891 = vst.msk [vmem:[%s15205_s9 + $0x750] sm:$0xff] %vm7656_vm7, %v4727_v24  ;;  %9775 = vmatmul.mubr.msk.f32.gmra.mrb[194].mxu0 %vm2143_vm10, %v13512_v21 }
 0x79f   :  { %9777 = vmatprep.mubr.msk.f32.mxu0 %vm2143_vm10, %v13528_v4  ;;  %v13870_v52 = vpop.trf.xlu1 }
 0x7a0   :  { %v9690_v28 = vpop.f32.mrb[134].mxu1  ;;  %9876 = vmatmul.mubr.msk.f32.gmra.mrb[192].mxu1 %vm2143_vm10, %v13538_v39 }
 0x7a1   :  { %7894 = vst.msk [vmem:[%s15205_s9 + $0x768] sm:$0xff] %vm7656_vm7, %v9690_v28  ;;  %v13878_v25 = vpop.trf.xlu0  ;;  %v4737_v47 = vpop.f32.mrb[135].mxu1  ;;  %9878 = vmatprep.mubr.msk.f32.mxu1 %vm2143_vm10, %v13550_v61 }
 0x7a2   :  { %7893 = vst.msk [vmem:[%s15205_s9 + $0x760] sm:$0xff] %vm7656_vm7, %v4737_v47  ;;  %9778 = vmatmul.mubr.msk.f32.gmra.mrb[196].mxu0 %vm2143_vm10, %v13544_v26 }
 0x7a3   :  { %9780 = vmatprep.mubr.msk.f32.mxu0 %vm2143_vm10, %v13560_v36  ;;  %v5657_v21 = vpop.trf.xlu1 }
 0x7a4   :  { %9879 = vmatmul.mubr.msk.f32.gmra.mrb[194].mxu1 %vm2143_vm10, %v13570_v17 }
 0x7a5   :  { %v9693_v4 = vpop.f32.mrb[136].mxu1  ;;  %v13892_v39 = vpop.trf.xlu0  ;;  %9881 = vmatprep.mubr.msk.f32.mxu1 %vm2143_vm10, %v13582_v51 }
 0x7a6   :  { %7896 = vst.msk [vmem:[%s15205_s9 + $0x778] sm:$0xff] %vm7656_vm7, %v9693_v4  ;;  %v4747_v61 = vpop.f32.mrb[137].mxu1  ;;  %9781 = vmatmul.mubr.msk.f32.gmra.mrb[198].mxu0 %vm2143_vm10, %v13576_v18 }
 0x7a7   :  { %7895 = vst.msk [vmem:[%s15205_s9 + $0x770] sm:$0xff] %vm7656_vm7, %v4747_v61  ;;  %9783 = vmatprep.mubr.msk.f32.mxu0 %vm2143_vm10, %v13592_v35  ;;  %v5658_v26 = vpop.trf.xlu1 }
 0x7a8   :  { %9882 = vmatmul.mubr.msk.f32.gmra.mrb[196].mxu1 %vm2143_vm10, %v13602_v57 }
 0x7a9   :  { %v9696_v36 = vpop.f32.mrb[138].mxu1  ;;  %v13910_v17 = vpop.trf.xlu0  ;;  %9884 = vmatprep.mubr.msk.f32.mxu1 %vm2143_vm10, %v13614_v16 }
 0x7aa   :  { %7898 = vst.msk [vmem:[%s15205_s9 + $0x788] sm:$0xff] %vm7656_vm7, %v9696_v36  ;;  %v4757_v18 = vpop.f32.mrb[139].mxu1  ;;  %9784 = vmatmul.mubr.msk.f32.gmra.mrb[200].mxu0 %vm2143_vm10, %v13608_v48 }
 0x7ab   :  { %7897 = vst.msk [vmem:[%s15205_s9 + $0x780] sm:$0xff] %vm7656_vm7, %v4757_v18  ;;  %9786 = vmatprep.mubr.msk.f32.mxu0 %vm2143_vm10, %v13624_v43  ;;  %v5659_v51 = vpop.trf.xlu1 }
 0x7ac   :  { %9885 = vmatmul.mubr.msk.f32.gmra.mrb[198].mxu1 %vm2143_vm10, %v13634_v34 }
 0x7ad   :  { %v9699_v35 = vpop.f32.mrb[140].mxu1  ;;  %v9722_v57 = vpop.f32.mrb[158].mxu0  ;;  %9887 = vmatprep.mubr.msk.f32.mxu1 %vm2143_vm10, %v13642_v0 }
 0x7ae   :  { %7900 = vst.msk [vmem:[%s15205_s9 + $0x798] sm:$0xff] %vm7656_vm7, %v9699_v35  ;;  %7914 = vst.msk [vmem:[%s15205_s9 + $0x808] sm:$0xff] %vm7656_vm7, %v9722_v57  ;;  %v4954_v48 = vpop.trf.xlu0  ;;  %v4767_v16 = vpop.f32.mrb[141].mxu1  ;;  %9787 = vmatmul.mubr.msk.f32.gmra.mrb[202].mxu0 %vm2143_vm10, %v13638_v5 }
 0x7af   :  { %7899 = vst.msk [vmem:[%s15205_s9 + $0x790] sm:$0xff] %vm7656_vm7, %v4767_v16  ;;  %v5222_v43 = vpop.f32.mrb[159].mxu0  ;;  %9789 = vmatprep.mubr.msk.f32.mxu0 %vm2143_vm10, %v13648_v10  ;;  %v5660_v34 = vpop.trf.xlu1 }
 0x7b0   :  { %7913 = vst.msk [vmem:[%s15205_s9 + $0x800] sm:$0xff] %vm7656_vm7, %v5222_v43  ;;  %9888 = vmatmul.mubr.msk.f32.gmra.mrb[200].mxu1 %vm2143_vm10, %v13654_v37 }
 0x7b1   :  { %v9702_v0 = vpop.f32.mrb[142].mxu1  ;;  %9890 = vmatprep.mubr.msk.f32.mxu1 %vm2143_vm10, %v13810_v42  ;;  %v1928_v42 = vadd.f32 %v15298_v62, %v11906_v19 }
 0x7b2   :  { %7902 = vst.msk [vmem:[%s15205_s9 + $0x7a8] sm:$0xff] %vm7656_vm7, %v9702_v0  ;;  %v4955_v5 = vpop.trf.xlu0  ;;  %v4777_v10 = vpop.f32.mrb[143].mxu1  ;;  %9790 = vmatmul.mubr.msk.f32.gmra.mrb[204].mxu0 %vm2143_vm10, %v13656_v59 }
 0x7b3   :  { %7901 = vst.msk [vmem:[%s15205_s9 + $0x7a0] sm:$0xff] %vm7656_vm7, %v4777_v10  ;;  %9792 = vmatprep.mubr.msk.f32.mxu0 %vm2143_vm10, %v13818_v55  ;;  %v5661_v37 = vpop.trf.xlu1 }
 0x7b4   :  { %9891 = vmatmul.mubr.msk.f32.gmra.mrb[202].mxu1 %vm2143_vm10, %v13830_v49 }
 0x7b5   :  { %v9705_v8 = vpop.f32.mrb[144].mxu1  ;;  %v9725_v33 = vpop.f32.mrb[160].mxu0  ;;  %9893 = vmatprep.mubr.msk.f32.mxu1 %vm2143_vm10, %v13850_v40 }
 0x7b6   :  { %7904 = vst.msk [vmem:[%s15205_s9 + $0x7b8] sm:$0xff] %vm7656_vm7, %v9705_v8  ;;  %7916 = vst.msk [vmem:[%s15205_s9 + $0x818] sm:$0xff] %vm7656_vm7, %v9725_v33  ;;  %v4956_v59 = vpop.trf.xlu0  ;;  %v4787_v56 = vpop.f32.mrb[145].mxu1  ;;  %9793 = vmatmul.mubr.msk.f32.gmra.mrb[206].mxu0 %vm2143_vm10, %v13838_v3  ;;  %v1922_v3 = vadd.f32 %v15299_v44, %v11906_v19 }
 0x7b7   :  { %7903 = vst.msk [vmem:[%s15205_s9 + $0x7b0] sm:$0xff] %vm7656_vm7, %v4787_v56  ;;  %v5232_v7 = vpop.f32.mrb[161].mxu0  ;;  %9795 = vmatprep.mubr.msk.f32.mxu0 %vm2143_vm10, %v13858_v23  ;;  %v5662_v53 = vpop.trf.xlu1 }
 0x7b8   :  { %7915 = vst.msk [vmem:[%s15205_s9 + $0x810] sm:$0xff] %vm7656_vm7, %v5232_v7  ;;  %9894 = vmatmul.mubr.msk.f32.gmra.mrb[204].mxu1 %vm2143_vm10, %v13870_v52 }
 0x7b9   :  { %v9708_v46 = vpop.f32.mrb[146].mxu1  ;;  %9896 = vmatprep.mubr.msk.f32.mxu1 %vm2143_vm10, %v5657_v21 }
 0x7ba   :  { %7906 = vst.msk [vmem:[%s15205_s9 + $0x7c8] sm:$0xff] %vm7656_vm7, %v9708_v46  ;;  %v4957_v32 = vpop.trf.xlu0  ;;  %v4797_v30 = vpop.f32.mrb[147].mxu1  ;;  %9796 = vmatmul.mubr.msk.f32.gmra.mrb[208].mxu0 %vm2143_vm10, %v13878_v25 }
 0x7bb   :  { %7905 = vst.msk [vmem:[%s15205_s9 + $0x7c0] sm:$0xff] %vm7656_vm7, %v4797_v30  ;;  %9798 = vmatprep.mubr.msk.f32.mxu0 %vm2143_vm10, %v13892_v39  ;;  %v5663_v29 = vpop.trf.xlu1 }
 0x7bc   :  { %9897 = vmatmul.mubr.msk.f32.gmra.mrb[206].mxu1 %vm2143_vm10, %v5658_v26 }
 0x7bd   :  { %v9711_v45 = vpop.f32.mrb[148].mxu1  ;;  %v9728_v14 = vpop.f32.mrb[162].mxu0  ;;  %9899 = vmatprep.mubr.msk.f32.mxu1 %vm2143_vm10, %v5659_v51 }
 0x7be   :  { %7908 = vst.msk [vmem:[%s15205_s9 + $0x7d8] sm:$0xff] %vm7656_vm7, %v9711_v45  ;;  %7918 = vst.msk [vmem:[%s15205_s9 + $0x828] sm:$0xff] %vm7656_vm7, %v9728_v14  ;;  %v4958_v1 = vpop.trf.xlu0  ;;  %v4807_v63 = vpop.f32.mrb[149].mxu1  ;;  %9799 = vmatmul.mubr.msk.f32.gmra.mrb[210].mxu0 %vm2143_vm10, %v13910_v17 }
 0x7bf   :  { %7907 = vst.msk [vmem:[%s15205_s9 + $0x7d0] sm:$0xff] %vm7656_vm7, %v4807_v63  ;;  %v5242_v27 = vpop.f32.mrb[163].mxu0  ;;  %9801 = vmatprep.mubr.msk.f32.mxu0 %vm2143_vm10, %v4954_v48  ;;  %v5664_v9 = vpop.trf.xlu1 }
 0x7c0   :  { %7917 = vst.msk [vmem:[%s15205_s9 + $0x820] sm:$0xff] %vm7656_vm7, %v5242_v27  ;;  %9900 = vmatmul.mubr.msk.f32.gmra.mrb[208].mxu1 %vm2143_vm10, %v5660_v34 }
 0x7c1   :  { %v9714_v22 = vpop.f32.mrb[150].mxu1  ;;  %9902 = vmatprep.mubr.msk.f32.mxu1 %vm2143_vm10, %v5661_v37 }
 0x7c2   :  { %7910 = vst.msk [vmem:[%s15205_s9 + $0x7e8] sm:$0xff] %vm7656_vm7, %v9714_v22  ;;  %v4959_v50 = vpop.trf.xlu0  ;;  %v4817_v38 = vpop.f32.mrb[151].mxu1  ;;  %9802 = vmatmul.mubr.msk.f32.gmra.mrb[212].mxu0 %vm2143_vm10, %v4955_v5 }
 0x7c3   :  { %7909 = vst.msk [vmem:[%s15205_s9 + $0x7e0] sm:$0xff] %vm7656_vm7, %v4817_v38  ;;  %9804 = vmatprep.mubr.msk.f32.mxu0 %vm2143_vm10, %v4956_v59  ;;  %v5665_v2 = vpop.trf.xlu1 }
 0x7c4   :  { %9903 = vmatmul.mubr.msk.f32.gmra.mrb[210].mxu1 %vm2143_vm10, %v5662_v53 }
 0x7c5   :  { %v9717_v20 = vpop.f32.mrb[152].mxu1  ;;  %v9731_v11 = vpop.f32.mrb[164].mxu0  ;;  %9905 = vmatprep.mubr.msk.f32.mxu1 %vm2143_vm10, %v5663_v29 }
 0x7c6   :  { %7912 = vst.msk [vmem:[%s15205_s9 + $0x7f8] sm:$0xff] %vm7656_vm7, %v9717_v20  ;;  %7920 = vst.msk [vmem:[%s15205_s9 + $0x838] sm:$0xff] %vm7656_vm7, %v9731_v11  ;;  %v4960_v54 = vpop.trf.xlu0  ;;  %v4827_v13 = vpop.f32.mrb[153].mxu1  ;;  %9805 = vmatmul.mubr.msk.f32.gmra.mrb[214].mxu0 %vm2143_vm10, %v4957_v32 }
 0x7c7   :  { %7911 = vst.msk [vmem:[%s15205_s9 + $0x7f0] sm:$0xff] %vm7656_vm7, %v4827_v13  ;;  %v5252_v60 = vpop.f32.mrb[165].mxu0  ;;  %9807 = vmatprep.mubr.msk.f32.mxu0 %vm2143_vm10, %v4958_v1  ;;  %v5666_v41 = vpop.trf.xlu1  ;;  %v15300_v13 = vld [vmem:[#allocation26_spill] sm:$0xff] }
 0x7c8   :  { %7919 = vst.msk [vmem:[%s15205_s9 + $0x830] sm:$0xff] %vm7656_vm7, %v5252_v60  ;;  %9906 = vmatmul.mubr.msk.f32.gmra.mrb[212].mxu1 %vm2143_vm10, %v5664_v9  ;;  %v1930_v60 = vadd.f32 %v15300_v13, %v11965_v15 }
 0x7c9   :  { %v9820_v12 = vpop.f32.mrb[154].mxu1  ;;  %9908 = vmatprep.mubr.msk.f32.mxu1 %vm2143_vm10, %v5665_v2 }
 0x7ca   :  { %7978 = vst.msk [vmem:[%s15205_s9 + $0xa08] sm:$0xff] %vm7656_vm7, %v9820_v12  ;;  %v4961_v55 = vpop.trf.xlu0  ;;  %9808 = vmatmul.mubr.msk.f32.gmra.mrb[216].mxu0 %vm2143_vm10, %v4959_v50  ;;  %v5927_v6 = vpop.f32.mrb[155].mxu1 }
 0x7cb   :  { %7977 = vst.msk [vmem:[%s15205_s9 + $0xa00] sm:$0xff] %vm7656_vm7, %v5927_v6  ;;  %9810 = vmatprep.mubr.msk.f32.mxu0 %vm2143_vm10, %v4960_v54  ;;  %v5667_v49 = vpop.trf.xlu1  ;;  %7015 = vxpose.xlu1.b32.start.end [1/1] (short) %v1928_v42, 128  ;;  %v15301_v42 = vld [vmem:[#allocation20_spill] sm:$0xff] }
 0x7cc   :  { %9909 = vmatmul.mubr.msk.f32.gmra.mrb[214].mxu1 %vm2143_vm10, %v5666_v41  ;;  %v1924_v12 = vadd.f32 %v15301_v42, %v11965_v15 }
 0x7cd   :  { %v9734_v31 = vpop.f32.mrb[166].mxu0  ;;  %v9823_v40 = vpop.f32.mrb[156].mxu1  ;;  %9911 = vmatprep.mubr.msk.f32.mxu1 %vm2143_vm10, %v5667_v49 }
 0x7ce   :  { %7922 = vst.msk [vmem:[%s15205_s9 + $0x848] sm:$0xff] %vm7656_vm7, %v9734_v31  ;;  %7980 = vst.msk [vmem:[%s15205_s9 + $0xa18] sm:$0xff] %vm7656_vm7, %v9823_v40  ;;  %v4962_v58 = vpop.trf.xlu0  ;;  %6310 = vxpose.xlu0.b32.start.end [1/1] (short) %v1922_v3, 128  ;;  %v5262_v23 = vpop.f32.mrb[167].mxu0  ;;  %9811 = vmatmul.mubr.msk.f32.gmra.mrb[218].mxu0 %vm2143_vm10, %v4961_v55 }
 0x7cf   :  { %7921 = vst.msk [vmem:[%s15205_s9 + $0x840] sm:$0xff] %vm7656_vm7, %v5262_v23  ;;  %v5937_v19 = vpop.f32.mrb[157].mxu1  ;;  %9813 = vmatprep.mubr.msk.f32.mxu0 %vm2143_vm10, %v4962_v58  ;;  %v5668_v24 = vpop.trf.xlu1 }
 0x7d0   :  { %7979 = vst.msk [vmem:[%s15205_s9 + $0xa10] sm:$0xff] %vm7656_vm7, %v5937_v19  ;;  %9912 = vmatmul.mubr.msk.f32.gmra.mrb[216].mxu1 %vm2143_vm10, %v5668_v24 }
 0x7d1   :  { %v9826_v52 = vpop.f32.mrb[158].mxu1 }
 0x7d2   :  { %7982 = vst.msk [vmem:[%s15205_s9 + $0xa28] sm:$0xff] %vm7656_vm7, %v9826_v52  ;;  %v4963_v28 = vpop.trf.xlu0  ;;  %v5947_v25 = vpop.f32.mrb[159].mxu1 }
 0x7d3   :  { %9814 = vmatmul.mubr.msk.f32.gmra.mrb[220].mxu0 %vm2143_vm10, %v4963_v28  ;;  %7981 = vst.msk [vmem:[%s15205_s9 + $0xa20] sm:$0xff] %vm7656_vm7, %v5947_v25  ;;  %v6967_v47 = vpop.trf.xlu1 }
 0x7d4   :  { %10014 = vmatprep.mubr.msk.f32.mxu1 %vm2143_vm10, %v6967_v47 }
 0x7d5   :  { %v9737_v21 = vpop.f32.mrb[168].mxu0  ;;  %v9829_v4 = vpop.f32.mrb[160].mxu1 }
 0x7d6   :  { %7924 = vst.msk [vmem:[%s15205_s9 + $0x858] sm:$0xff] %vm7656_vm7, %v9737_v21  ;;  %7984 = vst.msk [vmem:[%s15205_s9 + $0xa38] sm:$0xff] %vm7656_vm7, %v9829_v4  ;;  %v6262_v39 = vpop.trf.xlu0  ;;  %v5272_v61 = vpop.f32.mrb[169].mxu0 }
 0x7d7   :  { %7923 = vst.msk [vmem:[%s15205_s9 + $0x850] sm:$0xff] %vm7656_vm7, %v5272_v61  ;;  %v5957_v26 = vpop.f32.mrb[161].mxu1  ;;  %9916 = vmatprep.mubr.msk.f32.mxu0 %vm2143_vm10, %v6262_v39  ;;  %v6968_v36 = vpop.trf.xlu1 }
 0x7d8   :  { %7983 = vst.msk [vmem:[%s15205_s9 + $0xa30] sm:$0xff] %vm7656_vm7, %v5957_v26  ;;  %10015 = vmatmul.mubr.msk.f32.vlgmr.msra.gmra.mrb[218].mxu1 %vm2143_vm10, %v6968_v36 }
 0x7d9   :  { %v9832_v17 = vpop.f32.mrb[162].mxu1 }
 0x7da   :  { %7986 = vst.msk [vmem:[%s15205_s9 + $0xa48] sm:$0xff] %vm7656_vm7, %v9832_v17  ;;  %v6263_v18 = vpop.trf.xlu0  ;;  %v5967_v51 = vpop.f32.mrb[163].mxu1 }
 0x7db   :  { %7985 = vst.msk [vmem:[%s15205_s9 + $0xa40] sm:$0xff] %vm7656_vm7, %v5967_v51  ;;  %9917 = vmatmul.mubr.msk.f32.vlgmr.msra.gmra.mrb[222].mxu0 %vm2143_vm10, %v6263_v18  ;;  %v6969_v35 = vpop.trf.xlu1 }
 0x7dc   :  { %10017 = vmatprep.mubr.msk.f32.mxu1 %vm2143_vm10, %v6969_v35 }
 0x7dd   :  { %v9740_v57 = vpop.f32.mrb[170].mxu0  ;;  %v9835_v48 = vpop.f32.mrb[164].mxu1 }
 0x7de   :  { %7926 = vst.msk [vmem:[%s15205_s9 + $0x868] sm:$0xff] %vm7656_vm7, %v9740_v57  ;;  %7988 = vst.msk [vmem:[%s15205_s9 + $0xa58] sm:$0xff] %vm7656_vm7, %v9835_v48  ;;  %v6264_v16 = vpop.trf.xlu0  ;;  %v5282_v43 = vpop.f32.mrb[171].mxu0 }
 0x7df   :  { %7925 = vst.msk [vmem:[%s15205_s9 + $0x860] sm:$0xff] %vm7656_vm7, %v5282_v43  ;;  %v5977_v34 = vpop.f32.mrb[165].mxu1  ;;  %9919 = vmatprep.mubr.msk.f32.mxu0 %vm2143_vm10, %v6264_v16  ;;  %v6970_v0 = vpop.trf.xlu1 }
 0x7e0   :  { %7987 = vst.msk [vmem:[%s15205_s9 + $0xa50] sm:$0xff] %vm7656_vm7, %v5977_v34  ;;  %10018 = vmatmul.mubr.msk.f32.gmra.mrb[220].mxu1 %vm2143_vm10, %v6970_v0 }
 0x7e1   :  { %v9838_v5 = vpop.f32.mrb[166].mxu1 }
 0x7e2   :  { %7990 = vst.msk [vmem:[%s15205_s9 + $0xa68] sm:$0xff] %vm7656_vm7, %v9838_v5  ;;  %v6265_v10 = vpop.trf.xlu0  ;;  %v5987_v37 = vpop.f32.mrb[167].mxu1 }
 0x7e3   :  { %7989 = vst.msk [vmem:[%s15205_s9 + $0xa60] sm:$0xff] %vm7656_vm7, %v5987_v37  ;;  %9920 = vmatmul.mubr.msk.f32.gmra.mrb[224].mxu0 %vm2143_vm10, %v6265_v10  ;;  %v6971_v8 = vpop.trf.xlu1 }
 0x7e4   :  { %10020 = vmatprep.mubr.msk.f32.mxu1 %vm2143_vm10, %v6971_v8 }
 0x7e5   :  { %v9743_v33 = vpop.f32.mrb[172].mxu0  ;;  %v9841_v59 = vpop.f32.mrb[168].mxu1 }
 0x7e6   :  { %7928 = vst.msk [vmem:[%s15205_s9 + $0x878] sm:$0xff] %vm7656_vm7, %v9743_v33  ;;  %7992 = vst.msk [vmem:[%s15205_s9 + $0xa78] sm:$0xff] %vm7656_vm7, %v9841_v59  ;;  %v6266_v56 = vpop.trf.xlu0  ;;  %v5292_v7 = vpop.f32.mrb[173].mxu0 }
 0x7e7   :  { %7927 = vst.msk [vmem:[%s15205_s9 + $0x870] sm:$0xff] %vm7656_vm7, %v5292_v7  ;;  %v5997_v53 = vpop.f32.mrb[169].mxu1  ;;  %9922 = vmatprep.mubr.msk.f32.mxu0 %vm2143_vm10, %v6266_v56  ;;  %v6972_v46 = vpop.trf.xlu1 }
 0x7e8   :  { %7991 = vst.msk [vmem:[%s15205_s9 + $0xa70] sm:$0xff] %vm7656_vm7, %v5997_v53  ;;  %10021 = vmatmul.mubr.msk.f32.gmra.mrb[222].mxu1 %vm2143_vm10, %v6972_v46 }
 0x7ea   :  { %v6267_v32 = vpop.trf.xlu0 }
 0x7eb   :  { %9923 = vmatmul.mubr.msk.f32.gmra.mrb[226].mxu0 %vm2143_vm10, %v6267_v32  ;;  %v6973_v30 = vpop.trf.xlu1 }
 0x7ec   :  { %10023 = vmatprep.mubr.msk.f32.mxu1 %vm2143_vm10, %v6973_v30 }
 0x7ee   :  { %v6268_v29 = vpop.trf.xlu0 }
 0x7ef   :  { %9925 = vmatprep.mubr.msk.f32.mxu0 %vm2143_vm10, %v6268_v29  ;;  %v6974_v45 = vpop.trf.xlu1 }
 0x7f0   :  { %10024 = vmatmul.mubr.msk.f32.gmra.mrb[224].mxu1 %vm2143_vm10, %v6974_v45 }
 0x7f2   :  { %v6269_v14 = vpop.trf.xlu0 }
 0x7f3   :  { %9926 = vmatmul.mubr.msk.f32.gmra.mrb[228].mxu0 %vm2143_vm10, %v6269_v14  ;;  %v6975_v1 = vpop.trf.xlu1 }
 0x7f4   :  { %10026 = vmatprep.mubr.msk.f32.mxu1 %vm2143_vm10, %v6975_v1 }
 0x7f6   :  { %v6270_v63 = vpop.trf.xlu0 }
 0x7f7   :  { %9928 = vmatprep.mubr.msk.f32.mxu0 %vm2143_vm10, %v6270_v63  ;;  %v6976_v27 = vpop.trf.xlu1 }
 0x7f8   :  { %10027 = vmatmul.mubr.msk.f32.gmra.mrb[226].mxu1 %vm2143_vm10, %v6976_v27 }
 0x7fa   :  { %v6271_v9 = vpop.trf.xlu0 }
 0x7fb   :  { %9929 = vmatmul.mubr.msk.f32.gmra.mrb[230].mxu0 %vm2143_vm10, %v6271_v9  ;;  %v6977_v22 = vpop.trf.xlu1 }
 0x7fc   :  { %10029 = vmatprep.mubr.msk.f32.mxu1 %vm2143_vm10, %v6977_v22 }
 0x7fe   :  { %v6272_v50 = vpop.trf.xlu0 }
 0x7ff   :  { %9931 = vmatprep.mubr.msk.f32.mxu0 %vm2143_vm10, %v6272_v50  ;;  %v6978_v38 = vpop.trf.xlu1 }
 0x800   :  { %10030 = vmatmul.mubr.msk.f32.gmra.mrb[228].mxu1 %vm2143_vm10, %v6978_v38 }
 0x802   :  { %v6273_v2 = vpop.trf.xlu0 }
 0x803   :  { %9932 = vmatmul.mubr.msk.f32.gmra.mrb[232].mxu0 %vm2143_vm10, %v6273_v2  ;;  %v6979_v20 = vpop.trf.xlu1 }
 0x804   :  { %10032 = vmatprep.mubr.msk.f32.mxu1 %vm2143_vm10, %v6979_v20 }
 0x806   :  { %v6274_v11 = vpop.trf.xlu0 }
 0x807   :  { %9934 = vmatprep.mubr.msk.f32.mxu0 %vm2143_vm10, %v6274_v11  ;;  %v6980_v54 = vpop.trf.xlu1 }
 0x808   :  { %10033 = vmatmul.mubr.msk.f32.gmra.mrb[230].mxu1 %vm2143_vm10, %v6980_v54 }
 0x80a   :  { %v6275_v41 = vpop.trf.xlu0 }
 0x80b   :  { %9935 = vmatmul.mubr.msk.f32.gmra.mrb[234].mxu0 %vm2143_vm10, %v6275_v41  ;;  %v6981_v62 = vpop.trf.xlu1  ;;  %7047 = vxpose.xlu1.b32.start.end [1/1] (short) %v1930_v60, 128 }
 0x80c   :  { %10035 = vmatprep.mubr.msk.f32.mxu1 %vm2143_vm10, %v6981_v62 }
 0x80e   :  { %v6276_v55 = vpop.trf.xlu0  ;;  %6342 = vxpose.xlu0.b32.start.end [1/1] (short) %v1924_v12, 128 }
 0x80f   :  { %9937 = vmatprep.mubr.msk.f32.mxu0 %vm2143_vm10, %v6276_v55  ;;  %v6982_v6 = vpop.trf.xlu1 }
 0x810   :  { %10036 = vmatmul.mubr.msk.f32.gmra.mrb[232].mxu1 %vm2143_vm10, %v6982_v6 }
 0x812   :  { %v6277_v49 = vpop.trf.xlu0 }
 0x813   :  { %9938 = vmatmul.mubr.msk.f32.gmra.mrb[236].mxu0 %vm2143_vm10, %v6277_v49  ;;  %v6999_v44 = vpop.trf.xlu1 }
 0x814   :  { %10038 = vmatprep.mubr.msk.f32.mxu1 %vm2143_vm10, %v6999_v44 }
 0x816   :  { %v6294_v3 = vpop.trf.xlu0 }
 0x817   :  { %9940 = vmatprep.mubr.msk.f32.mxu0 %vm2143_vm10, %v6294_v3  ;;  %v7000_v31 = vpop.trf.xlu1 }
 0x818   :  { %10039 = vmatmul.mubr.msk.f32.gmra.mrb[234].mxu1 %vm2143_vm10, %v7000_v31 }
 0x81a   :  { %v6295_v15 = vpop.trf.xlu0 }
 0x81b   :  { %9941 = vmatmul.mubr.msk.f32.gmra.mrb[238].mxu0 %vm2143_vm10, %v6295_v15  ;;  %v7001_v40 = vpop.trf.xlu1 }
 0x81c   :  { %10041 = vmatprep.mubr.msk.f32.mxu1 %vm2143_vm10, %v7001_v40 }
 0x81e   :  { %v6296_v58 = vpop.trf.xlu0 }
 0x81f   :  { %9943 = vmatprep.mubr.msk.f32.mxu0 %vm2143_vm10, %v6296_v58  ;;  %v7002_v23 = vpop.trf.xlu1 }
 0x820   :  { %10042 = vmatmul.mubr.msk.f32.gmra.mrb[236].mxu1 %vm2143_vm10, %v7002_v23 }
 0x822   :  { %v6297_v19 = vpop.trf.xlu0 }
 0x823   :  { %9944 = vmatmul.mubr.msk.f32.gmra.mrb[240].mxu0 %vm2143_vm10, %v6297_v19  ;;  %v7003_v24 = vpop.trf.xlu1 }
 0x824   :  { %10044 = vmatprep.mubr.msk.f32.mxu1 %vm2143_vm10, %v7003_v24 }
 0x826   :  { %v6298_v52 = vpop.trf.xlu0 }
 0x827   :  { %9946 = vmatprep.mubr.msk.f32.mxu0 %vm2143_vm10, %v6298_v52  ;;  %v7004_v28 = vpop.trf.xlu1 }
 0x828   :  { %10045 = vmatmul.mubr.msk.f32.gmra.mrb[238].mxu1 %vm2143_vm10, %v7004_v28 }
 0x82a   :  { %v6299_v25 = vpop.trf.xlu0 }
 0x82b   :  { %9947 = vmatmul.mubr.msk.f32.gmra.mrb[242].mxu0 %vm2143_vm10, %v6299_v25  ;;  %v7005_v47 = vpop.trf.xlu1  ;;  %v9844_v21 = vpop.f32.mrb[170].mxu1 }
 0x82c   :  { %7994 = vst.msk [vmem:[%s15205_s9 + $0xa88] sm:$0xff] %vm7656_vm7, %v9844_v21  ;;  %v6007_v4 = vpop.f32.mrb[171].mxu1  ;;  %10047 = vmatprep.mubr.msk.f32.mxu1 %vm2143_vm10, %v7005_v47 }
 0x82d   :  { %v9746_v39 = vpop.f32.mrb[174].mxu0  ;;  %7993 = vst.msk [vmem:[%s15205_s9 + $0xa80] sm:$0xff] %vm7656_vm7, %v6007_v4 }
 0x82e   :  { %7930 = vst.msk [vmem:[%s15205_s9 + $0x888] sm:$0xff] %vm7656_vm7, %v9746_v39  ;;  %v6300_v61 = vpop.trf.xlu0  ;;  %v5302_v26 = vpop.f32.mrb[175].mxu0 }
 0x82f   :  { %7929 = vst.msk [vmem:[%s15205_s9 + $0x880] sm:$0xff] %vm7656_vm7, %v5302_v26  ;;  %9949 = vmatprep.mubr.msk.f32.mxu0 %vm2143_vm10, %v6300_v61  ;;  %v7006_v36 = vpop.trf.xlu1 }
 0x830   :  { %10048 = vmatmul.mubr.msk.f32.gmra.mrb[240].mxu1 %vm2143_vm10, %v7006_v36 }
 0x832   :  { %v6301_v17 = vpop.trf.xlu0 }
 0x833   :  { %9950 = vmatmul.mubr.msk.f32.gmra.mrb[244].mxu0 %vm2143_vm10, %v6301_v17  ;;  %v7007_v18 = vpop.trf.xlu1  ;;  %v9847_v51 = vpop.f32.mrb[172].mxu1 }
 0x834   :  { %7996 = vst.msk [vmem:[%s15205_s9 + $0xa98] sm:$0xff] %vm7656_vm7, %v9847_v51  ;;  %v6017_v35 = vpop.f32.mrb[173].mxu1  ;;  %10050 = vmatprep.mubr.msk.f32.mxu1 %vm2143_vm10, %v7007_v18 }
 0x835   :  { %v9749_v57 = vpop.f32.mrb[176].mxu0  ;;  %7995 = vst.msk [vmem:[%s15205_s9 + $0xa90] sm:$0xff] %vm7656_vm7, %v6017_v35 }
 0x836   :  { %7932 = vst.msk [vmem:[%s15205_s9 + $0x898] sm:$0xff] %vm7656_vm7, %v9749_v57  ;;  %v6302_v48 = vpop.trf.xlu0  ;;  %v5312_v16 = vpop.f32.mrb[177].mxu0 }
 0x837   :  { %7931 = vst.msk [vmem:[%s15205_s9 + $0x890] sm:$0xff] %vm7656_vm7, %v5312_v16  ;;  %9952 = vmatprep.mubr.msk.f32.mxu0 %vm2143_vm10, %v6302_v48  ;;  %v7008_v43 = vpop.trf.xlu1 }
 0x838   :  { %10051 = vmatmul.mubr.msk.f32.gmra.mrb[242].mxu1 %vm2143_vm10, %v7008_v43 }
 0x83a   :  { %v6303_v34 = vpop.trf.xlu0 }
 0x83b   :  { %9953 = vmatmul.mubr.msk.f32.gmra.mrb[246].mxu0 %vm2143_vm10, %v6303_v34  ;;  %v7009_v0 = vpop.trf.xlu1  ;;  %v9850_v5 = vpop.f32.mrb[174].mxu1 }
 0x83c   :  { %7998 = vst.msk [vmem:[%s15205_s9 + $0xaa8] sm:$0xff] %vm7656_vm7, %v9850_v5  ;;  %v6027_v10 = vpop.f32.mrb[175].mxu1  ;;  %10053 = vmatprep.mubr.msk.f32.mxu1 %vm2143_vm10, %v7009_v0 }
 0x83d   :  { %v9752_v37 = vpop.f32.mrb[178].mxu0  ;;  %7997 = vst.msk [vmem:[%s15205_s9 + $0xaa0] sm:$0xff] %vm7656_vm7, %v6027_v10 }
 0x83e   :  { %7934 = vst.msk [vmem:[%s15205_s9 + $0x8a8] sm:$0xff] %vm7656_vm7, %v9752_v37  ;;  %v6304_v8 = vpop.trf.xlu0  ;;  %v5322_v33 = vpop.f32.mrb[179].mxu0 }
 0x83f   :  { %7933 = vst.msk [vmem:[%s15205_s9 + $0x8a0] sm:$0xff] %vm7656_vm7, %v5322_v33  ;;  %9955 = vmatprep.mubr.msk.f32.mxu0 %vm2143_vm10, %v6304_v8  ;;  %v7010_v59 = vpop.trf.xlu1 }
 0x840   :  { %10054 = vmatmul.mubr.msk.f32.gmra.mrb[244].mxu1 %vm2143_vm10, %v7010_v59 }
 0x842   :  { %v6305_v56 = vpop.trf.xlu0 }
 0x843   :  { %9956 = vmatmul.mubr.msk.f32.gmra.mrb[248].mxu0 %vm2143_vm10, %v6305_v56  ;;  %v7011_v7 = vpop.trf.xlu1  ;;  %v9853_v53 = vpop.f32.mrb[176].mxu1 }
 0x844   :  { %8000 = vst.msk [vmem:[%s15205_s9 + $0xab8] sm:$0xff] %vm7656_vm7, %v9853_v53  ;;  %v6037_v46 = vpop.f32.mrb[177].mxu1  ;;  %10056 = vmatprep.mubr.msk.f32.mxu1 %vm2143_vm10, %v7011_v7 }
 0x845   :  { %v9755_v32 = vpop.f32.mrb[180].mxu0  ;;  %7999 = vst.msk [vmem:[%s15205_s9 + $0xab0] sm:$0xff] %vm7656_vm7, %v6037_v46 }
 0x846   :  { %7936 = vst.msk [vmem:[%s15205_s9 + $0x8b8] sm:$0xff] %vm7656_vm7, %v9755_v32  ;;  %v6306_v30 = vpop.trf.xlu0  ;;  %v5332_v29 = vpop.f32.mrb[181].mxu0 }
 0x847   :  { %7935 = vst.msk [vmem:[%s15205_s9 + $0x8b0] sm:$0xff] %vm7656_vm7, %v5332_v29  ;;  %9958 = vmatprep.mubr.msk.f32.mxu0 %vm2143_vm10, %v6306_v30  ;;  %v7012_v45 = vpop.trf.xlu1 }
 0x848   :  { %10057 = vmatmul.mubr.msk.f32.gmra.mrb[246].mxu1 %vm2143_vm10, %v7012_v45 }
 0x84a   :  { %v6307_v14 = vpop.trf.xlu0 }
 0x84b   :  { %9959 = vmatmul.mubr.msk.f32.gmra.mrb[250].mxu0 %vm2143_vm10, %v6307_v14  ;;  %v7013_v1 = vpop.trf.xlu1  ;;  %v9856_v63 = vpop.f32.mrb[178].mxu1 }
 0x84c   :  { %8002 = vst.msk [vmem:[%s15205_s9 + $0xac8] sm:$0xff] %vm7656_vm7, %v9856_v63  ;;  %v6047_v27 = vpop.f32.mrb[179].mxu1  ;;  %10059 = vmatprep.mubr.msk.f32.mxu1 %vm2143_vm10, %v7013_v1 }
 0x84d   :  { %v9758_v9 = vpop.f32.mrb[182].mxu0  ;;  %8001 = vst.msk [vmem:[%s15205_s9 + $0xac0] sm:$0xff] %vm7656_vm7, %v6047_v27 }
 0x84e   :  { %7938 = vst.msk [vmem:[%s15205_s9 + $0x8c8] sm:$0xff] %vm7656_vm7, %v9758_v9  ;;  %v6308_v22 = vpop.trf.xlu0  ;;  %v5342_v50 = vpop.f32.mrb[183].mxu0 }
 0x84f   :  { %7937 = vst.msk [vmem:[%s15205_s9 + $0x8c0] sm:$0xff] %vm7656_vm7, %v5342_v50  ;;  %9961 = vmatprep.mubr.msk.f32.mxu0 %vm2143_vm10, %v6308_v22  ;;  %v7014_v38 = vpop.trf.xlu1 }
 0x850   :  { %10060 = vmatmul.mubr.msk.f32.gmra.mrb[248].mxu1 %vm2143_vm10, %v7014_v38 }
 0x852   :  { %v6309_v2 = vpop.trf.xlu0 }
 0x853   :  { %9962 = vmatmul.mubr.msk.f32.gmra.mrb[252].mxu0 %vm2143_vm10, %v6309_v2  ;;  %v7031_v20 = vpop.trf.xlu1  ;;  %v9859_v11 = vpop.f32.mrb[180].mxu1 }
 0x854   :  { %8004 = vst.msk [vmem:[%s15205_s9 + $0xad8] sm:$0xff] %vm7656_vm7, %v9859_v11  ;;  %v6057_v54 = vpop.f32.mrb[181].mxu1  ;;  %10062 = vmatprep.mubr.msk.f32.mxu1 %vm2143_vm10, %v7031_v20 }
 0x855   :  { %v9761_v13 = vpop.f32.mrb[184].mxu0  ;;  %8003 = vst.msk [vmem:[%s15205_s9 + $0xad0] sm:$0xff] %vm7656_vm7, %v6057_v54 }
 0x856   :  { %7940 = vst.msk [vmem:[%s15205_s9 + $0x8d8] sm:$0xff] %vm7656_vm7, %v9761_v13  ;;  %v6326_v60 = vpop.trf.xlu0  ;;  %v5352_v41 = vpop.f32.mrb[185].mxu0 }
 0x857   :  { %7939 = vst.msk [vmem:[%s15205_s9 + $0x8d0] sm:$0xff] %vm7656_vm7, %v5352_v41  ;;  %9964 = vmatprep.mubr.msk.f32.mxu0 %vm2143_vm10, %v6326_v60  ;;  %v7032_v62 = vpop.trf.xlu1 }
 0x858   :  { %10063 = vmatmul.mubr.msk.f32.gmra.mrb[250].mxu1 %vm2143_vm10, %v7032_v62 }
 0x85a   :  { %v6327_v42 = vpop.trf.xlu0 }
 0x85b   :  { %9965 = vmatmul.mubr.msk.f32.gmra.mrb[254].mxu0 %vm2143_vm10, %v6327_v42  ;;  %v7033_v12 = vpop.trf.xlu1  ;;  %v9862_v55 = vpop.f32.mrb[182].mxu1 }
 0x85c   :  { %8006 = vst.msk [vmem:[%s15205_s9 + $0xae8] sm:$0xff] %vm7656_vm7, %v9862_v55  ;;  %v6067_v6 = vpop.f32.mrb[183].mxu1  ;;  %10065 = vmatprep.mubr.msk.f32.mxu1 %vm2143_vm10, %v7033_v12 }
 0x85d   :  { %v9764_v49 = vpop.f32.mrb[186].mxu0  ;;  %8005 = vst.msk [vmem:[%s15205_s9 + $0xae0] sm:$0xff] %vm7656_vm7, %v6067_v6 }
 0x85e   :  { %7942 = vst.msk [vmem:[%s15205_s9 + $0x8e8] sm:$0xff] %vm7656_vm7, %v9764_v49  ;;  %v6328_v44 = vpop.trf.xlu0  ;;  %v5362_v3 = vpop.f32.mrb[187].mxu0 }
 0x85f   :  { %7941 = vst.msk [vmem:[%s15205_s9 + $0x8e0] sm:$0xff] %vm7656_vm7, %v5362_v3  ;;  %9967 = vmatprep.mubr.msk.f32.mxu0 %vm2143_vm10, %v6328_v44  ;;  %v7034_v31 = vpop.trf.xlu1 }
 0x860   :  { %10066 = vmatmul.mubr.msk.f32.gmra.mrb[252].mxu1 %vm2143_vm10, %v7034_v31 }
 0x862   :  { %v6329_v15 = vpop.trf.xlu0 }
 0x863   :  { %9968 = vmatmul.mubr.msk.f32.gmra.mrb[0].mxu0 %vm2143_vm10, %v6329_v15  ;;  %v7035_v40 = vpop.trf.xlu1  ;;  %v9865_v58 = vpop.f32.mrb[184].mxu1 }
 0x864   :  { %8008 = vst.msk [vmem:[%s15205_s9 + $0xaf8] sm:$0xff] %vm7656_vm7, %v9865_v58  ;;  %v6077_v23 = vpop.f32.mrb[185].mxu1  ;;  %10068 = vmatprep.mubr.msk.f32.mxu1 %vm2143_vm10, %v7035_v40 }
 0x865   :  { %v9767_v19 = vpop.f32.mrb[188].mxu0  ;;  %8007 = vst.msk [vmem:[%s15205_s9 + $0xaf0] sm:$0xff] %vm7656_vm7, %v6077_v23 }
 0x866   :  { %7944 = vst.msk [vmem:[%s15205_s9 + $0x8f8] sm:$0xff] %vm7656_vm7, %v9767_v19  ;;  %v6330_v24 = vpop.trf.xlu0  ;;  %v5372_v52 = vpop.f32.mrb[189].mxu0 }
 0x867   :  { %7943 = vst.msk [vmem:[%s15205_s9 + $0x8f0] sm:$0xff] %vm7656_vm7, %v5372_v52  ;;  %9970 = vmatprep.mubr.msk.f32.mxu0 %vm2143_vm10, %v6330_v24  ;;  %v7036_v28 = vpop.trf.xlu1  ;;  %v9868_v25 = vpop.f32.mrb[186].mxu1 }
 0x868   :  { %8010 = vst.msk [vmem:[%s15205_s9 + $0xb08] sm:$0xff] %vm7656_vm7, %v9868_v25  ;;  %v6087_v47 = vpop.f32.mrb[187].mxu1  ;;  %10069 = vmatmul.mubr.msk.f32.gmra.mrb[254].mxu1 %vm2143_vm10, %v7036_v28 }
 0x869   :  { %v9770_v21 = vpop.f32.mrb[190].mxu0  ;;  %8009 = vst.msk [vmem:[%s15205_s9 + $0xb00] sm:$0xff] %vm7656_vm7, %v6087_v47 }
 0x86a   :  { %7946 = vst.msk [vmem:[%s15205_s9 + $0x908] sm:$0xff] %vm7656_vm7, %v9770_v21  ;;  %v6331_v4 = vpop.trf.xlu0  ;;  %v5382_v39 = vpop.f32.mrb[191].mxu0 }
 0x86b   :  { %7945 = vst.msk [vmem:[%s15205_s9 + $0x900] sm:$0xff] %vm7656_vm7, %v5382_v39  ;;  %9971 = vmatmul.mubr.msk.f32.gmra.mrb[2].mxu0 %vm2143_vm10, %v6331_v4  ;;  %v7037_v61 = vpop.trf.xlu1  ;;  %v9871_v26 = vpop.f32.mrb[188].mxu1 }
 0x86c   :  { %8012 = vst.msk [vmem:[%s15205_s9 + $0xb18] sm:$0xff] %vm7656_vm7, %v9871_v26  ;;  %v6097_v36 = vpop.f32.mrb[189].mxu1  ;;  %10071 = vmatprep.mubr.msk.f32.mxu1 %vm2143_vm10, %v7037_v61 }
 0x86d   :  { %v9773_v17 = vpop.f32.mrb[192].mxu0  ;;  %8011 = vst.msk [vmem:[%s15205_s9 + $0xb10] sm:$0xff] %vm7656_vm7, %v6097_v36 }
 0x86e   :  { %7948 = vst.msk [vmem:[%s15205_s9 + $0x918] sm:$0xff] %vm7656_vm7, %v9773_v17  ;;  %v6332_v18 = vpop.trf.xlu0  ;;  %v5392_v51 = vpop.f32.mrb[193].mxu0 }
 0x86f   :  { %7947 = vst.msk [vmem:[%s15205_s9 + $0x910] sm:$0xff] %vm7656_vm7, %v5392_v51  ;;  %9973 = vmatprep.mubr.msk.f32.mxu0 %vm2143_vm10, %v6332_v18  ;;  %v7038_v35 = vpop.trf.xlu1  ;;  %v9874_v57 = vpop.f32.mrb[190].mxu1 }
 0x870   :  { %8014 = vst.msk [vmem:[%s15205_s9 + $0xb28] sm:$0xff] %vm7656_vm7, %v9874_v57  ;;  %v6107_v48 = vpop.f32.mrb[191].mxu1  ;;  %10072 = vmatmul.mubr.msk.f32.gmra.mrb[0].mxu1 %vm2143_vm10, %v7038_v35 }
 0x871   :  { %v9776_v16 = vpop.f32.mrb[194].mxu0  ;;  %8013 = vst.msk [vmem:[%s15205_s9 + $0xb20] sm:$0xff] %vm7656_vm7, %v6107_v48 }
 0x872   :  { %7950 = vst.msk [vmem:[%s15205_s9 + $0x928] sm:$0xff] %vm7656_vm7, %v9776_v16  ;;  %v6333_v43 = vpop.trf.xlu0  ;;  %v5402_v34 = vpop.f32.mrb[195].mxu0 }
 0x873   :  { %7949 = vst.msk [vmem:[%s15205_s9 + $0x920] sm:$0xff] %vm7656_vm7, %v5402_v34  ;;  %9974 = vmatmul.mubr.msk.f32.gmra.mrb[4].mxu0 %vm2143_vm10, %v6333_v43  ;;  %v7039_v0 = vpop.trf.xlu1  ;;  %v9877_v5 = vpop.f32.mrb[192].mxu1 }
 0x874   :  { %8016 = vst.msk [vmem:[%s15205_s9 + $0xb38] sm:$0xff] %vm7656_vm7, %v9877_v5  ;;  %v6117_v10 = vpop.f32.mrb[193].mxu1  ;;  %10074 = vmatprep.mubr.msk.f32.mxu1 %vm2143_vm10, %v7039_v0 }
 0x875   :  { %v9779_v37 = vpop.f32.mrb[196].mxu0  ;;  %8015 = vst.msk [vmem:[%s15205_s9 + $0xb30] sm:$0xff] %vm7656_vm7, %v6117_v10 }
 0x876   :  { %7952 = vst.msk [vmem:[%s15205_s9 + $0x938] sm:$0xff] %vm7656_vm7, %v9779_v37  ;;  %v6334_v8 = vpop.trf.xlu0  ;;  %v5412_v33 = vpop.f32.mrb[197].mxu0 }
 0x877   :  { %7951 = vst.msk [vmem:[%s15205_s9 + $0x930] sm:$0xff] %vm7656_vm7, %v5412_v33  ;;  %9976 = vmatprep.mubr.msk.f32.mxu0 %vm2143_vm10, %v6334_v8  ;;  %v7040_v59 = vpop.trf.xlu1  ;;  %v9880_v56 = vpop.f32.mrb[194].mxu1 }
 0x878   :  { %8018 = vst.msk [vmem:[%s15205_s9 + $0xb48] sm:$0xff] %vm7656_vm7, %v9880_v56  ;;  %v6127_v7 = vpop.f32.mrb[195].mxu1  ;;  %10075 = vmatmul.mubr.msk.f32.gmra.mrb[2].mxu1 %vm2143_vm10, %v7040_v59 }
 0x879   :  { %v9782_v53 = vpop.f32.mrb[198].mxu0  ;;  %8017 = vst.msk [vmem:[%s15205_s9 + $0xb40] sm:$0xff] %vm7656_vm7, %v6127_v7 }
 0x87a   :  { %7954 = vst.msk [vmem:[%s15205_s9 + $0x948] sm:$0xff] %vm7656_vm7, %v9782_v53  ;;  %v6335_v46 = vpop.trf.xlu0  ;;  %v5422_v32 = vpop.f32.mrb[199].mxu0 }
 0x87b   :  { %7953 = vst.msk [vmem:[%s15205_s9 + $0x940] sm:$0xff] %vm7656_vm7, %v5422_v32  ;;  %9977 = vmatmul.mubr.msk.f32.gmra.mrb[6].mxu0 %vm2143_vm10, %v6335_v46  ;;  %v7041_v30 = vpop.trf.xlu1  ;;  %v9883_v29 = vpop.f32.mrb[196].mxu1 }
 0x87c   :  { %8020 = vst.msk [vmem:[%s15205_s9 + $0xb58] sm:$0xff] %vm7656_vm7, %v9883_v29  ;;  %v6137_v45 = vpop.f32.mrb[197].mxu1  ;;  %10077 = vmatprep.mubr.msk.f32.mxu1 %vm2143_vm10, %v7041_v30 }
 0x87d   :  { %v9785_v14 = vpop.f32.mrb[200].mxu0  ;;  %8019 = vst.msk [vmem:[%s15205_s9 + $0xb50] sm:$0xff] %vm7656_vm7, %v6137_v45 }
 0x87e   :  { %7956 = vst.msk [vmem:[%s15205_s9 + $0x958] sm:$0xff] %vm7656_vm7, %v9785_v14  ;;  %v6336_v1 = vpop.trf.xlu0  ;;  %v5432_v63 = vpop.f32.mrb[201].mxu0 }
 0x87f   :  { %7955 = vst.msk [vmem:[%s15205_s9 + $0x950] sm:$0xff] %vm7656_vm7, %v5432_v63  ;;  %9979 = vmatprep.mubr.msk.f32.mxu0 %vm2143_vm10, %v6336_v1  ;;  %v7042_v27 = vpop.trf.xlu1  ;;  %v9886_v9 = vpop.f32.mrb[198].mxu1 }
 0x880   :  { %8022 = vst.msk [vmem:[%s15205_s9 + $0xb68] sm:$0xff] %vm7656_vm7, %v9886_v9  ;;  %v6147_v22 = vpop.f32.mrb[199].mxu1  ;;  %10078 = vmatmul.mubr.msk.f32.gmra.mrb[4].mxu1 %vm2143_vm10, %v7042_v27 }
 0x881   :  { %v9788_v50 = vpop.f32.mrb[202].mxu0  ;;  %8021 = vst.msk [vmem:[%s15205_s9 + $0xb60] sm:$0xff] %vm7656_vm7, %v6147_v22 }
 0x882   :  { %7958 = vst.msk [vmem:[%s15205_s9 + $0x968] sm:$0xff] %vm7656_vm7, %v9788_v50  ;;  %v6337_v38 = vpop.trf.xlu0  ;;  %v5442_v2 = vpop.f32.mrb[203].mxu0 }
 0x883   :  { %7957 = vst.msk [vmem:[%s15205_s9 + $0x960] sm:$0xff] %vm7656_vm7, %v5442_v2  ;;  %9980 = vmatmul.mubr.msk.f32.gmra.mrb[8].mxu0 %vm2143_vm10, %v6337_v38  ;;  %v7043_v20 = vpop.trf.xlu1  ;;  %v9889_v11 = vpop.f32.mrb[200].mxu1 }
 0x884   :  { %8024 = vst.msk [vmem:[%s15205_s9 + $0xb78] sm:$0xff] %vm7656_vm7, %v9889_v11  ;;  %v6157_v54 = vpop.f32.mrb[201].mxu1  ;;  %10080 = vmatprep.mubr.msk.f32.mxu1 %vm2143_vm10, %v7043_v20 }
 0x885   :  { %v9791_v13 = vpop.f32.mrb[204].mxu0  ;;  %8023 = vst.msk [vmem:[%s15205_s9 + $0xb70] sm:$0xff] %vm7656_vm7, %v6157_v54 }
 0x886   :  { %7960 = vst.msk [vmem:[%s15205_s9 + $0x978] sm:$0xff] %vm7656_vm7, %v9791_v13  ;;  %v6338_v60 = vpop.trf.xlu0  ;;  %v5452_v41 = vpop.f32.mrb[205].mxu0 }
 0x887   :  { %7959 = vst.msk [vmem:[%s15205_s9 + $0x970] sm:$0xff] %vm7656_vm7, %v5452_v41  ;;  %9982 = vmatprep.mubr.msk.f32.mxu0 %vm2143_vm10, %v6338_v60  ;;  %v7044_v62 = vpop.trf.xlu1  ;;  %v9892_v42 = vpop.f32.mrb[202].mxu1 }
 0x888   :  { %8026 = vst.msk [vmem:[%s15205_s9 + $0xb88] sm:$0xff] %vm7656_vm7, %v9892_v42  ;;  %v6167_v12 = vpop.f32.mrb[203].mxu1  ;;  %10081 = vmatmul.mubr.msk.f32.gmra.mrb[6].mxu1 %vm2143_vm10, %v7044_v62 }
 0x889   :  { %v9794_v55 = vpop.f32.mrb[206].mxu0  ;;  %8025 = vst.msk [vmem:[%s15205_s9 + $0xb80] sm:$0xff] %vm7656_vm7, %v6167_v12 }
 0x88a   :  { %7962 = vst.msk [vmem:[%s15205_s9 + $0x988] sm:$0xff] %vm7656_vm7, %v9794_v55  ;;  %v6339_v6 = vpop.trf.xlu0  ;;  %v5462_v49 = vpop.f32.mrb[207].mxu0 }
 0x88b   :  { %7961 = vst.msk [vmem:[%s15205_s9 + $0x980] sm:$0xff] %vm7656_vm7, %v5462_v49  ;;  %9983 = vmatmul.mubr.msk.f32.gmra.mrb[10].mxu0 %vm2143_vm10, %v6339_v6  ;;  %v7045_v44 = vpop.trf.xlu1  ;;  %v9895_v3 = vpop.f32.mrb[204].mxu1 }
 0x88c   :  { %8028 = vst.msk [vmem:[%s15205_s9 + $0xb98] sm:$0xff] %vm7656_vm7, %v9895_v3  ;;  %v6177_v31 = vpop.f32.mrb[205].mxu1  ;;  %10083 = vmatprep.mubr.msk.f32.mxu1 %vm2143_vm10, %v7045_v44 }
 0x88d   :  { %v9797_v15 = vpop.f32.mrb[208].mxu0  ;;  %8027 = vst.msk [vmem:[%s15205_s9 + $0xb90] sm:$0xff] %vm7656_vm7, %v6177_v31 }
 0x88e   :  { %7964 = vst.msk [vmem:[%s15205_s9 + $0x998] sm:$0xff] %vm7656_vm7, %v9797_v15  ;;  %v6340_v40 = vpop.trf.xlu0  ;;  %v5472_v58 = vpop.f32.mrb[209].mxu0 }
 0x88f   :  { %7963 = vst.msk [vmem:[%s15205_s9 + $0x990] sm:$0xff] %vm7656_vm7, %v5472_v58  ;;  %9985 = vmatprep.mubr.msk.f32.mxu0 %vm2143_vm10, %v6340_v40  ;;  %v7046_v23 = vpop.trf.xlu1  ;;  %v9898_v19 = vpop.f32.mrb[206].mxu1 }
 0x890   :  { %8030 = vst.msk [vmem:[%s15205_s9 + $0xba8] sm:$0xff] %vm7656_vm7, %v9898_v19  ;;  %v6187_v24 = vpop.f32.mrb[207].mxu1  ;;  %10084 = vmatmul.mubr.msk.f32.gmra.mrb[8].mxu1 %vm2143_vm10, %v7046_v23 }
 0x891   :  { %v9800_v52 = vpop.f32.mrb[210].mxu0  ;;  %8029 = vst.msk [vmem:[%s15205_s9 + $0xba0] sm:$0xff] %vm7656_vm7, %v6187_v24 }
 0x892   :  { %7966 = vst.msk [vmem:[%s15205_s9 + $0x9a8] sm:$0xff] %vm7656_vm7, %v9800_v52  ;;  %v6341_v28 = vpop.trf.xlu0  ;;  %v5482_v25 = vpop.f32.mrb[211].mxu0 }
 0x893   :  { %7965 = vst.msk [vmem:[%s15205_s9 + $0x9a0] sm:$0xff] %vm7656_vm7, %v5482_v25  ;;  %9986 = vmatmul.mubr.msk.f32.gmra.mrb[12].mxu0 %vm2143_vm10, %v6341_v28  ;;  %v7063_v47 = vpop.trf.xlu1  ;;  %v9901_v21 = vpop.f32.mrb[208].mxu1 }
 0x894   :  { %8032 = vst.msk [vmem:[%s15205_s9 + $0xbb8] sm:$0xff] %vm7656_vm7, %v9901_v21  ;;  %v6197_v4 = vpop.f32.mrb[209].mxu1  ;;  %10086 = vmatprep.mubr.msk.f32.mxu1 %vm2143_vm10, %v7063_v47 }
 0x895   :  { %v9803_v39 = vpop.f32.mrb[212].mxu0  ;;  %8031 = vst.msk [vmem:[%s15205_s9 + $0xbb0] sm:$0xff] %vm7656_vm7, %v6197_v4 }
 0x896   :  { %7968 = vst.msk [vmem:[%s15205_s9 + $0x9b8] sm:$0xff] %vm7656_vm7, %v9803_v39  ;;  %v6358_v61 = vpop.trf.xlu0  ;;  %v5492_v26 = vpop.f32.mrb[213].mxu0 }
 0x897   :  { %7967 = vst.msk [vmem:[%s15205_s9 + $0x9b0] sm:$0xff] %vm7656_vm7, %v5492_v26  ;;  %9988 = vmatprep.mubr.msk.f32.mxu0 %vm2143_vm10, %v6358_v61  ;;  %v7064_v36 = vpop.trf.xlu1  ;;  %v9904_v17 = vpop.f32.mrb[210].mxu1 }
 0x898   :  { %8034 = vst.msk [vmem:[%s15205_s9 + $0xbc8] sm:$0xff] %vm7656_vm7, %v9904_v17  ;;  %v6207_v18 = vpop.f32.mrb[211].mxu1  ;;  %10087 = vmatmul.mubr.msk.f32.gmra.mrb[10].mxu1 %vm2143_vm10, %v7064_v36 }
 0x899   :  { %v9806_v51 = vpop.f32.mrb[214].mxu0  ;;  %8033 = vst.msk [vmem:[%s15205_s9 + $0xbc0] sm:$0xff] %vm7656_vm7, %v6207_v18 }
 0x89a   :  { %7970 = vst.msk [vmem:[%s15205_s9 + $0x9c8] sm:$0xff] %vm7656_vm7, %v9806_v51  ;;  %v6359_v35 = vpop.trf.xlu0  ;;  %v5502_v57 = vpop.f32.mrb[215].mxu0 }
 0x89b   :  { %7969 = vst.msk [vmem:[%s15205_s9 + $0x9c0] sm:$0xff] %vm7656_vm7, %v5502_v57  ;;  %9989 = vmatmul.mubr.msk.f32.gmra.mrb[14].mxu0 %vm2143_vm10, %v6359_v35  ;;  %v7065_v48 = vpop.trf.xlu1  ;;  %v9907_v16 = vpop.f32.mrb[212].mxu1 }
 0x89c   :  { %8036 = vst.msk [vmem:[%s15205_s9 + $0xbd8] sm:$0xff] %vm7656_vm7, %v9907_v16  ;;  %v6217_v43 = vpop.f32.mrb[213].mxu1  ;;  %10089 = vmatprep.mubr.msk.f32.mxu1 %vm2143_vm10, %v7065_v48 }
 0x89d   :  { %v9809_v34 = vpop.f32.mrb[216].mxu0  ;;  %8035 = vst.msk [vmem:[%s15205_s9 + $0xbd0] sm:$0xff] %vm7656_vm7, %v6217_v43 }
 0x89e   :  { %7972 = vst.msk [vmem:[%s15205_s9 + $0x9d8] sm:$0xff] %vm7656_vm7, %v9809_v34  ;;  %v6360_v0 = vpop.trf.xlu0  ;;  %v5512_v5 = vpop.f32.mrb[217].mxu0 }
 0x89f   :  { %7971 = vst.msk [vmem:[%s15205_s9 + $0x9d0] sm:$0xff] %vm7656_vm7, %v5512_v5  ;;  %9991 = vmatprep.mubr.msk.f32.mxu0 %vm2143_vm10, %v6360_v0  ;;  %v7066_v10 = vpop.trf.xlu1  ;;  %v9910_v37 = vpop.f32.mrb[214].mxu1 }
 0x8a0   :  { %8038 = vst.msk [vmem:[%s15205_s9 + $0xbe8] sm:$0xff] %vm7656_vm7, %v9910_v37  ;;  %v6227_v8 = vpop.f32.mrb[215].mxu1  ;;  %10090 = vmatmul.mubr.msk.f32.gmra.mrb[12].mxu1 %vm2143_vm10, %v7066_v10 }
 0x8a1   :  { %v9812_v33 = vpop.f32.mrb[218].mxu0  ;;  %8037 = vst.msk [vmem:[%s15205_s9 + $0xbe0] sm:$0xff] %vm7656_vm7, %v6227_v8 }
 0x8a2   :  { %7974 = vst.msk [vmem:[%s15205_s9 + $0x9e8] sm:$0xff] %vm7656_vm7, %v9812_v33  ;;  %v6361_v59 = vpop.trf.xlu0  ;;  %v5522_v56 = vpop.f32.mrb[219].mxu0 }
 0x8a3   :  { %7973 = vst.msk [vmem:[%s15205_s9 + $0x9e0] sm:$0xff] %vm7656_vm7, %v5522_v56  ;;  %9992 = vmatmul.mubr.msk.f32.gmra.mrb[16].mxu0 %vm2143_vm10, %v6361_v59  ;;  %v7067_v7 = vpop.trf.xlu1  ;;  %v9913_v53 = vpop.f32.mrb[216].mxu1 }
 0x8a4   :  { %8040 = vst.msk [vmem:[%s15205_s9 + $0xbf8] sm:$0xff] %vm7656_vm7, %v9913_v53  ;;  %v6237_v46 = vpop.f32.mrb[217].mxu1  ;;  %10092 = vmatprep.mubr.msk.f32.mxu1 %vm2143_vm10, %v7067_v7 }
 0x8a5   :  { %8039 = vst.msk [vmem:[%s15205_s9 + $0xbf0] sm:$0xff] %vm7656_vm7, %v6237_v46 }
 0x8a6   :  { %v9815_v32 = vpop.f32.mrb[220].mxu0  ;;  %v6362_v30 = vpop.trf.xlu0 }
 0x8a7   :  { %7976 = vst.msk [vmem:[%s15205_s9 + $0x9f8] sm:$0xff] %vm7656_vm7, %v9815_v32  ;;  %v5532_v29 = vpop.f32.mrb[221].mxu0  ;;  %9994 = vmatprep.mubr.msk.f32.mxu0 %vm2143_vm10, %v6362_v30  ;;  %v7068_v45 = vpop.trf.xlu1 }
 0x8a8   :  { %7975 = vst.msk [vmem:[%s15205_s9 + $0x9f0] sm:$0xff] %vm7656_vm7, %v5532_v29  ;;  %10093 = vmatmul.mubr.msk.f32.gmra.mrb[14].mxu1 %vm2143_vm10, %v7068_v45 }
 0x8aa   :  { %v6363_v14 = vpop.trf.xlu0 }
 0x8ab   :  { %9995 = vmatmul.mubr.msk.f32.gmra.mrb[18].mxu0 %vm2143_vm10, %v6363_v14  ;;  %v7069_v1 = vpop.trf.xlu1  ;;  %v10016_v63 = vpop.f32.mrb[218].mxu1 }
 0x8ac   :  { %8106 = vst.msk [vmem:[%s15205_s9 + $0xe08] sm:$0xff] %vm7656_vm7, %v10016_v63  ;;  %v7337_v27 = vpop.f32.mrb[219].mxu1  ;;  %10095 = vmatprep.mubr.msk.f32.mxu1 %vm2143_vm10, %v7069_v1 }
 0x8ad   :  { %8105 = vst.msk [vmem:[%s15205_s9 + $0xe00] sm:$0xff] %vm7656_vm7, %v7337_v27 }
 0x8ae   :  { %v9918_v9 = vpop.f32.mrb[222].mxu0  ;;  %v6364_v22 = vpop.trf.xlu0 }
 0x8af   :  { %8042 = vst.msk [vmem:[%s15205_s9 + $0xc08] sm:$0xff] %vm7656_vm7, %v9918_v9  ;;  %v6632_v50 = vpop.f32.mrb[223].mxu0  ;;  %9997 = vmatprep.mubr.msk.f32.mxu0 %vm2143_vm10, %v6364_v22  ;;  %v7070_v38 = vpop.trf.xlu1 }
 0x8b0   :  { %8041 = vst.msk [vmem:[%s15205_s9 + $0xc00] sm:$0xff] %vm7656_vm7, %v6632_v50  ;;  %10096 = vmatmul.mubr.msk.f32.gmra.mrb[16].mxu1 %vm2143_vm10, %v7070_v38 }
 0x8b2   :  { %v6365_v2 = vpop.trf.xlu0 }
 0x8b3   :  { %9998 = vmatmul.mubr.msk.f32.gmra.mrb[20].mxu0 %vm2143_vm10, %v6365_v2  ;;  %v7071_v20 = vpop.trf.xlu1  ;;  %v10019_v11 = vpop.f32.mrb[220].mxu1 }
 0x8b4   :  { %8108 = vst.msk [vmem:[%s15205_s9 + $0xe18] sm:$0xff] %vm7656_vm7, %v10019_v11  ;;  %v7347_v54 = vpop.f32.mrb[221].mxu1  ;;  %10098 = vmatprep.mubr.msk.f32.mxu1 %vm2143_vm10, %v7071_v20 }
 0x8b5   :  { %8107 = vst.msk [vmem:[%s15205_s9 + $0xe10] sm:$0xff] %vm7656_vm7, %v7347_v54 }
 0x8b6   :  { %v9921_v13 = vpop.f32.mrb[224].mxu0  ;;  %v6366_v60 = vpop.trf.xlu0 }
 0x8b7   :  { %8044 = vst.msk [vmem:[%s15205_s9 + $0xc18] sm:$0xff] %vm7656_vm7, %v9921_v13  ;;  %v6642_v41 = vpop.f32.mrb[225].mxu0  ;;  %10000 = vmatprep.mubr.msk.f32.mxu0 %vm2143_vm10, %v6366_v60  ;;  %v7072_v62 = vpop.trf.xlu1 }
 0x8b8   :  { %8043 = vst.msk [vmem:[%s15205_s9 + $0xc10] sm:$0xff] %vm7656_vm7, %v6642_v41  ;;  %10099 = vmatmul.mubr.msk.f32.gmra.mrb[18].mxu1 %vm2143_vm10, %v7072_v62 }
 0x8ba   :  { %v6367_v42 = vpop.trf.xlu0 }
 0x8bb   :  { %10001 = vmatmul.mubr.msk.f32.gmra.mrb[22].mxu0 %vm2143_vm10, %v6367_v42  ;;  %v7073_v12 = vpop.trf.xlu1  ;;  %v10022_v55 = vpop.f32.mrb[222].mxu1 }
 0x8bc   :  { %8110 = vst.msk [vmem:[%s15205_s9 + $0xe28] sm:$0xff] %vm7656_vm7, %v10022_v55  ;;  %v7357_v6 = vpop.f32.mrb[223].mxu1  ;;  %10101 = vmatprep.mubr.msk.f32.mxu1 %vm2143_vm10, %v7073_v12 }
 0x8bd   :  { %8109 = vst.msk [vmem:[%s15205_s9 + $0xe20] sm:$0xff] %vm7656_vm7, %v7357_v6 }
 0x8be   :  { %v9924_v49 = vpop.f32.mrb[226].mxu0  ;;  %v6368_v44 = vpop.trf.xlu0 }
 0x8bf   :  { %8046 = vst.msk [vmem:[%s15205_s9 + $0xc28] sm:$0xff] %vm7656_vm7, %v9924_v49  ;;  %v6652_v3 = vpop.f32.mrb[227].mxu0  ;;  %10003 = vmatprep.mubr.msk.f32.mxu0 %vm2143_vm10, %v6368_v44  ;;  %v7074_v31 = vpop.trf.xlu1 }
 0x8c0   :  { %8045 = vst.msk [vmem:[%s15205_s9 + $0xc20] sm:$0xff] %vm7656_vm7, %v6652_v3  ;;  %10102 = vmatmul.mubr.msk.f32.gmra.mrb[20].mxu1 %vm2143_vm10, %v7074_v31 }
 0x8c2   :  { %v6369_v15 = vpop.trf.xlu0 }
 0x8c3   :  { %10004 = vmatmul.mubr.msk.f32.gmra.mrb[24].mxu0 %vm2143_vm10, %v6369_v15  ;;  %v7075_v40 = vpop.trf.xlu1  ;;  %v10025_v58 = vpop.f32.mrb[224].mxu1 }
 0x8c4   :  { %8112 = vst.msk [vmem:[%s15205_s9 + $0xe38] sm:$0xff] %vm7656_vm7, %v10025_v58  ;;  %v7367_v23 = vpop.f32.mrb[225].mxu1  ;;  %10104 = vmatprep.mubr.msk.f32.mxu1 %vm2143_vm10, %v7075_v40 }
 0x8c5   :  { %8111 = vst.msk [vmem:[%s15205_s9 + $0xe30] sm:$0xff] %vm7656_vm7, %v7367_v23 }
 0x8c6   :  { %v9927_v19 = vpop.f32.mrb[228].mxu0  ;;  %v6370_v24 = vpop.trf.xlu0 }
 0x8c7   :  { %8048 = vst.msk [vmem:[%s15205_s9 + $0xc38] sm:$0xff] %vm7656_vm7, %v9927_v19  ;;  %v6662_v52 = vpop.f32.mrb[229].mxu0  ;;  %10006 = vmatprep.mubr.msk.f32.mxu0 %vm2143_vm10, %v6370_v24  ;;  %v7076_v28 = vpop.trf.xlu1 }
 0x8c8   :  { %8047 = vst.msk [vmem:[%s15205_s9 + $0xc30] sm:$0xff] %vm7656_vm7, %v6662_v52  ;;  %10105 = vmatmul.mubr.msk.f32.gmra.mrb[22].mxu1 %vm2143_vm10, %v7076_v28 }
 0x8ca   :  { %v6371_v25 = vpop.trf.xlu0 }
 0x8cb   :  { %10007 = vmatmul.mubr.msk.f32.gmra.mrb[26].mxu0 %vm2143_vm10, %v6371_v25  ;;  %v7077_v47 = vpop.trf.xlu1  ;;  %v10028_v21 = vpop.f32.mrb[226].mxu1 }
 0x8cc   :  { %8114 = vst.msk [vmem:[%s15205_s9 + $0xe48] sm:$0xff] %vm7656_vm7, %v10028_v21  ;;  %v7377_v4 = vpop.f32.mrb[227].mxu1  ;;  %10107 = vmatprep.mubr.msk.f32.mxu1 %vm2143_vm10, %v7077_v47 }
 0x8cd   :  { %8113 = vst.msk [vmem:[%s15205_s9 + $0xe40] sm:$0xff] %vm7656_vm7, %v7377_v4 }
 0x8ce   :  { %v9930_v39 = vpop.f32.mrb[230].mxu0  ;;  %v6372_v61 = vpop.trf.xlu0 }
 0x8cf   :  { %8050 = vst.msk [vmem:[%s15205_s9 + $0xc48] sm:$0xff] %vm7656_vm7, %v9930_v39  ;;  %v6672_v26 = vpop.f32.mrb[231].mxu0  ;;  %10009 = vmatprep.mubr.msk.f32.mxu0 %vm2143_vm10, %v6372_v61  ;;  %v7078_v36 = vpop.trf.xlu1 }
 0x8d0   :  { %8049 = vst.msk [vmem:[%s15205_s9 + $0xc40] sm:$0xff] %vm7656_vm7, %v6672_v26  ;;  %10108 = vmatmul.mubr.msk.f32.gmra.mrb[24].mxu1 %vm2143_vm10, %v7078_v36 }
 0x8d2   :  { %v6373_v17 = vpop.trf.xlu0 }
 0x8d3   :  { %10010 = vmatmul.mubr.msk.f32.gmra.mrb[28].mxu0 %vm2143_vm10, %v6373_v17  ;;  %v10031_v18 = vpop.f32.mrb[228].mxu1 }
 0x8d4   :  { %8116 = vst.msk [vmem:[%s15205_s9 + $0xe58] sm:$0xff] %vm7656_vm7, %v10031_v18  ;;  %v7387_v51 = vpop.f32.mrb[229].mxu1 }
 0x8d5   :  { %8115 = vst.msk [vmem:[%s15205_s9 + $0xe50] sm:$0xff] %vm7656_vm7, %v7387_v51 }
 0x8d6   :  { %v9933_v35 = vpop.f32.mrb[232].mxu0 }
 0x8d7   :  { %8052 = vst.msk [vmem:[%s15205_s9 + $0xc58] sm:$0xff] %vm7656_vm7, %v9933_v35  ;;  %v6682_v57 = vpop.f32.mrb[233].mxu0 }
 0x8d8   :  { %8051 = vst.msk [vmem:[%s15205_s9 + $0xc50] sm:$0xff] %vm7656_vm7, %v6682_v57 }
 0x8db   :  { %v10034_v48 = vpop.f32.mrb[230].mxu1 }
 0x8dc   :  { %8118 = vst.msk [vmem:[%s15205_s9 + $0xe68] sm:$0xff] %vm7656_vm7, %v10034_v48  ;;  %v7397_v16 = vpop.f32.mrb[231].mxu1 }
 0x8dd   :  { %8117 = vst.msk [vmem:[%s15205_s9 + $0xe60] sm:$0xff] %vm7656_vm7, %v7397_v16 }
 0x8de   :  { %v9936_v43 = vpop.f32.mrb[234].mxu0 }
 0x8df   :  { %8054 = vst.msk [vmem:[%s15205_s9 + $0xc68] sm:$0xff] %vm7656_vm7, %v9936_v43  ;;  %v6692_v34 = vpop.f32.mrb[235].mxu0 }
 0x8e0   :  { %8053 = vst.msk [vmem:[%s15205_s9 + $0xc60] sm:$0xff] %vm7656_vm7, %v6692_v34 }
 0x8e3   :  { %v10037_v0 = vpop.f32.mrb[232].mxu1 }
 0x8e4   :  { %8120 = vst.msk [vmem:[%s15205_s9 + $0xe78] sm:$0xff] %vm7656_vm7, %v10037_v0  ;;  %v7407_v5 = vpop.f32.mrb[233].mxu1 }
 0x8e5   :  { %8119 = vst.msk [vmem:[%s15205_s9 + $0xe70] sm:$0xff] %vm7656_vm7, %v7407_v5 }
 0x8e6   :  { %v9939_v10 = vpop.f32.mrb[236].mxu0 }
 0x8e7   :  { %8056 = vst.msk [vmem:[%s15205_s9 + $0xc78] sm:$0xff] %vm7656_vm7, %v9939_v10  ;;  %v6702_v37 = vpop.f32.mrb[237].mxu0 }
 0x8e8   :  { %8055 = vst.msk [vmem:[%s15205_s9 + $0xc70] sm:$0xff] %vm7656_vm7, %v6702_v37 }
 0x8eb   :  { %v10040_v8 = vpop.f32.mrb[234].mxu1 }
 0x8ec   :  { %8122 = vst.msk [vmem:[%s15205_s9 + $0xe88] sm:$0xff] %vm7656_vm7, %v10040_v8  ;;  %v7417_v33 = vpop.f32.mrb[235].mxu1 }
 0x8ed   :  { %8121 = vst.msk [vmem:[%s15205_s9 + $0xe80] sm:$0xff] %vm7656_vm7, %v7417_v33 }
 0x8ee   :  { %v9942_v59 = vpop.f32.mrb[238].mxu0 }
 0x8ef   :  { %8058 = vst.msk [vmem:[%s15205_s9 + $0xc88] sm:$0xff] %vm7656_vm7, %v9942_v59  ;;  %v6712_v56 = vpop.f32.mrb[239].mxu0 }
 0x8f0   :  { %8057 = vst.msk [vmem:[%s15205_s9 + $0xc80] sm:$0xff] %vm7656_vm7, %v6712_v56 }
 0x8f3   :  { %v10043_v7 = vpop.f32.mrb[236].mxu1 }
 0x8f4   :  { %8124 = vst.msk [vmem:[%s15205_s9 + $0xe98] sm:$0xff] %vm7656_vm7, %v10043_v7  ;;  %v7427_v53 = vpop.f32.mrb[237].mxu1 }
 0x8f5   :  { %8123 = vst.msk [vmem:[%s15205_s9 + $0xe90] sm:$0xff] %vm7656_vm7, %v7427_v53 }
 0x8f6   :  { %v9945_v46 = vpop.f32.mrb[240].mxu0 }
 0x8f7   :  { %8060 = vst.msk [vmem:[%s15205_s9 + $0xc98] sm:$0xff] %vm7656_vm7, %v9945_v46  ;;  %v6722_v32 = vpop.f32.mrb[241].mxu0 }
 0x8f8   :  { %8059 = vst.msk [vmem:[%s15205_s9 + $0xc90] sm:$0xff] %vm7656_vm7, %v6722_v32 }
 0x8fb   :  { %v10046_v30 = vpop.f32.mrb[238].mxu1 }
 0x8fc   :  { %8126 = vst.msk [vmem:[%s15205_s9 + $0xea8] sm:$0xff] %vm7656_vm7, %v10046_v30  ;;  %v7437_v29 = vpop.f32.mrb[239].mxu1 }
 0x8fd   :  { %8125 = vst.msk [vmem:[%s15205_s9 + $0xea0] sm:$0xff] %vm7656_vm7, %v7437_v29 }
 0x8fe   :  { %v9948_v45 = vpop.f32.mrb[242].mxu0 }
 0x8ff   :  { %8062 = vst.msk [vmem:[%s15205_s9 + $0xca8] sm:$0xff] %vm7656_vm7, %v9948_v45  ;;  %v6732_v14 = vpop.f32.mrb[243].mxu0 }
 0x900   :  { %8061 = vst.msk [vmem:[%s15205_s9 + $0xca0] sm:$0xff] %vm7656_vm7, %v6732_v14 }
 0x903   :  { %v10049_v1 = vpop.f32.mrb[240].mxu1 }
 0x904   :  { %8128 = vst.msk [vmem:[%s15205_s9 + $0xeb8] sm:$0xff] %vm7656_vm7, %v10049_v1  ;;  %v7447_v63 = vpop.f32.mrb[241].mxu1 }
 0x905   :  { %8127 = vst.msk [vmem:[%s15205_s9 + $0xeb0] sm:$0xff] %vm7656_vm7, %v7447_v63 }
 0x906   :  { %v9951_v27 = vpop.f32.mrb[244].mxu0 }
 0x907   :  { %8064 = vst.msk [vmem:[%s15205_s9 + $0xcb8] sm:$0xff] %vm7656_vm7, %v9951_v27  ;;  %v6742_v9 = vpop.f32.mrb[245].mxu0 }
 0x908   :  { %8063 = vst.msk [vmem:[%s15205_s9 + $0xcb0] sm:$0xff] %vm7656_vm7, %v6742_v9 }
 0x90b   :  { %v10052_v22 = vpop.f32.mrb[242].mxu1 }
 0x90c   :  { %8130 = vst.msk [vmem:[%s15205_s9 + $0xec8] sm:$0xff] %vm7656_vm7, %v10052_v22  ;;  %v7457_v50 = vpop.f32.mrb[243].mxu1 }
 0x90d   :  { %8129 = vst.msk [vmem:[%s15205_s9 + $0xec0] sm:$0xff] %vm7656_vm7, %v7457_v50 }
 0x90e   :  { %v9954_v38 = vpop.f32.mrb[246].mxu0 }
 0x90f   :  { %8066 = vst.msk [vmem:[%s15205_s9 + $0xcc8] sm:$0xff] %vm7656_vm7, %v9954_v38  ;;  %v6752_v2 = vpop.f32.mrb[247].mxu0 }
 0x910   :  { %8065 = vst.msk [vmem:[%s15205_s9 + $0xcc0] sm:$0xff] %vm7656_vm7, %v6752_v2 }
 0x913   :  { %v10055_v20 = vpop.f32.mrb[244].mxu1 }
 0x914   :  { %8132 = vst.msk [vmem:[%s15205_s9 + $0xed8] sm:$0xff] %vm7656_vm7, %v10055_v20  ;;  %v7467_v11 = vpop.f32.mrb[245].mxu1 }
 0x915   :  { %8131 = vst.msk [vmem:[%s15205_s9 + $0xed0] sm:$0xff] %vm7656_vm7, %v7467_v11 }
 0x916   :  { %v9957_v54 = vpop.f32.mrb[248].mxu0 }
 0x917   :  { %8068 = vst.msk [vmem:[%s15205_s9 + $0xcd8] sm:$0xff] %vm7656_vm7, %v9957_v54  ;;  %v6762_v13 = vpop.f32.mrb[249].mxu0 }
 0x918   :  { %8067 = vst.msk [vmem:[%s15205_s9 + $0xcd0] sm:$0xff] %vm7656_vm7, %v6762_v13 }
 0x91b   :  { %v10058_v60 = vpop.f32.mrb[246].mxu1 }
 0x91c   :  { %8134 = vst.msk [vmem:[%s15205_s9 + $0xee8] sm:$0xff] %vm7656_vm7, %v10058_v60  ;;  %v7477_v41 = vpop.f32.mrb[247].mxu1 }
 0x91d   :  { %8133 = vst.msk [vmem:[%s15205_s9 + $0xee0] sm:$0xff] %vm7656_vm7, %v7477_v41 }
 0x91e   :  { %v9960_v62 = vpop.f32.mrb[250].mxu0 }
 0x91f   :  { %8070 = vst.msk [vmem:[%s15205_s9 + $0xce8] sm:$0xff] %vm7656_vm7, %v9960_v62  ;;  %v6772_v42 = vpop.f32.mrb[251].mxu0 }
 0x920   :  { %8069 = vst.msk [vmem:[%s15205_s9 + $0xce0] sm:$0xff] %vm7656_vm7, %v6772_v42 }
 0x923   :  { %v10061_v12 = vpop.f32.mrb[248].mxu1 }
 0x924   :  { %8136 = vst.msk [vmem:[%s15205_s9 + $0xef8] sm:$0xff] %vm7656_vm7, %v10061_v12  ;;  %v7487_v55 = vpop.f32.mrb[249].mxu1 }
 0x925   :  { %8135 = vst.msk [vmem:[%s15205_s9 + $0xef0] sm:$0xff] %vm7656_vm7, %v7487_v55 }
 0x926   :  { %v9963_v6 = vpop.f32.mrb[252].mxu0 }
 0x927   :  { %8072 = vst.msk [vmem:[%s15205_s9 + $0xcf8] sm:$0xff] %vm7656_vm7, %v9963_v6  ;;  %v6782_v49 = vpop.f32.mrb[253].mxu0 }
 0x928   :  { %8071 = vst.msk [vmem:[%s15205_s9 + $0xcf0] sm:$0xff] %vm7656_vm7, %v6782_v49 }
 0x92b   :  { %v10064_v44 = vpop.f32.mrb[250].mxu1 }
 0x92c   :  { %8138 = vst.msk [vmem:[%s15205_s9 + $0xf08] sm:$0xff] %vm7656_vm7, %v10064_v44  ;;  %v7497_v3 = vpop.f32.mrb[251].mxu1 }
 0x92d   :  { %8137 = vst.msk [vmem:[%s15205_s9 + $0xf00] sm:$0xff] %vm7656_vm7, %v7497_v3 }
 0x92e   :  { %v9966_v31 = vpop.f32.mrb[254].mxu0 }
 0x92f   :  { %8074 = vst.msk [vmem:[%s15205_s9 + $0xd08] sm:$0xff] %vm7656_vm7, %v9966_v31  ;;  %v6792_v15 = vpop.f32.mrb[255].mxu0 }
 0x930   :  { %8073 = vst.msk [vmem:[%s15205_s9 + $0xd00] sm:$0xff] %vm7656_vm7, %v6792_v15 }
 0x933   :  { %v10067_v40 = vpop.f32.mrb[252].mxu1 }
 0x934   :  { %8140 = vst.msk [vmem:[%s15205_s9 + $0xf18] sm:$0xff] %vm7656_vm7, %v10067_v40  ;;  %v7507_v58 = vpop.f32.mrb[253].mxu1 }
 0x935   :  { %8139 = vst.msk [vmem:[%s15205_s9 + $0xf10] sm:$0xff] %vm7656_vm7, %v7507_v58 }
 0x936   :  { %v9969_v23 = vpop.f32.mrb[0].mxu0 }
 0x937   :  { %8076 = vst.msk [vmem:[%s15205_s9 + $0xd18] sm:$0xff] %vm7656_vm7, %v9969_v23  ;;  %v6802_v19 = vpop.f32.mrb[1].mxu0 }
 0x938   :  { %8075 = vst.msk [vmem:[%s15205_s9 + $0xd10] sm:$0xff] %vm7656_vm7, %v6802_v19 }
 0x93b   :  { %v10070_v24 = vpop.f32.mrb[254].mxu1 }
 0x93c   :  { %8142 = vst.msk [vmem:[%s15205_s9 + $0xf28] sm:$0xff] %vm7656_vm7, %v10070_v24  ;;  %v7517_v52 = vpop.f32.mrb[255].mxu1 }
 0x93d   :  { %8141 = vst.msk [vmem:[%s15205_s9 + $0xf20] sm:$0xff] %vm7656_vm7, %v7517_v52 }
 0x93e   :  { %v9972_v28 = vpop.f32.mrb[2].mxu0 }
 0x93f   :  { %8078 = vst.msk [vmem:[%s15205_s9 + $0xd28] sm:$0xff] %vm7656_vm7, %v9972_v28  ;;  %v6812_v25 = vpop.f32.mrb[3].mxu0 }
 0x940   :  { %8077 = vst.msk [vmem:[%s15205_s9 + $0xd20] sm:$0xff] %vm7656_vm7, %v6812_v25 }
 0x943   :  { %v10073_v47 = vpop.f32.mrb[0].mxu1 }
 0x944   :  { %8144 = vst.msk [vmem:[%s15205_s9 + $0xf38] sm:$0xff] %vm7656_vm7, %v10073_v47  ;;  %v7527_v21 = vpop.f32.mrb[1].mxu1 }
 0x945   :  { %8143 = vst.msk [vmem:[%s15205_s9 + $0xf30] sm:$0xff] %vm7656_vm7, %v7527_v21 }
 0x946   :  { %v9975_v4 = vpop.f32.mrb[4].mxu0 }
 0x947   :  { %8080 = vst.msk [vmem:[%s15205_s9 + $0xd38] sm:$0xff] %vm7656_vm7, %v9975_v4  ;;  %v6822_v39 = vpop.f32.mrb[5].mxu0 }
 0x948   :  { %8079 = vst.msk [vmem:[%s15205_s9 + $0xd30] sm:$0xff] %vm7656_vm7, %v6822_v39 }
 0x94b   :  { %v10076_v61 = vpop.f32.mrb[2].mxu1 }
 0x94c   :  { %8146 = vst.msk [vmem:[%s15205_s9 + $0xf48] sm:$0xff] %vm7656_vm7, %v10076_v61  ;;  %v7537_v26 = vpop.f32.mrb[3].mxu1 }
 0x94d   :  { %8145 = vst.msk [vmem:[%s15205_s9 + $0xf40] sm:$0xff] %vm7656_vm7, %v7537_v26 }
 0x94e   :  { %v9978_v36 = vpop.f32.mrb[6].mxu0 }
 0x94f   :  { %8082 = vst.msk [vmem:[%s15205_s9 + $0xd48] sm:$0xff] %vm7656_vm7, %v9978_v36  ;;  %v6832_v17 = vpop.f32.mrb[7].mxu0 }
 0x950   :  { %8081 = vst.msk [vmem:[%s15205_s9 + $0xd40] sm:$0xff] %vm7656_vm7, %v6832_v17 }
 0x953   :  { %v10079_v18 = vpop.f32.mrb[4].mxu1 }
 0x954   :  { %8148 = vst.msk [vmem:[%s15205_s9 + $0xf58] sm:$0xff] %vm7656_vm7, %v10079_v18  ;;  %v7547_v51 = vpop.f32.mrb[5].mxu1 }
 0x955   :  { %8147 = vst.msk [vmem:[%s15205_s9 + $0xf50] sm:$0xff] %vm7656_vm7, %v7547_v51 }
 0x956   :  { %v9981_v35 = vpop.f32.mrb[8].mxu0 }
 0x957   :  { %8084 = vst.msk [vmem:[%s15205_s9 + $0xd58] sm:$0xff] %vm7656_vm7, %v9981_v35  ;;  %v6842_v57 = vpop.f32.mrb[9].mxu0 }
 0x958   :  { %8083 = vst.msk [vmem:[%s15205_s9 + $0xd50] sm:$0xff] %vm7656_vm7, %v6842_v57 }
 0x95b   :  { %v10082_v48 = vpop.f32.mrb[6].mxu1 }
 0x95c   :  { %8150 = vst.msk [vmem:[%s15205_s9 + $0xf68] sm:$0xff] %vm7656_vm7, %v10082_v48  ;;  %v7557_v16 = vpop.f32.mrb[7].mxu1 }
 0x95d   :  { %8149 = vst.msk [vmem:[%s15205_s9 + $0xf60] sm:$0xff] %vm7656_vm7, %v7557_v16 }
 0x95e   :  { %v9984_v43 = vpop.f32.mrb[10].mxu0 }
 0x95f   :  { %8086 = vst.msk [vmem:[%s15205_s9 + $0xd68] sm:$0xff] %vm7656_vm7, %v9984_v43  ;;  %v6852_v34 = vpop.f32.mrb[11].mxu0 }
 0x960   :  { %8085 = vst.msk [vmem:[%s15205_s9 + $0xd60] sm:$0xff] %vm7656_vm7, %v6852_v34 }
 0x963   :  { %v10085_v0 = vpop.f32.mrb[8].mxu1 }
 0x964   :  { %8152 = vst.msk [vmem:[%s15205_s9 + $0xf78] sm:$0xff] %vm7656_vm7, %v10085_v0  ;;  %v7567_v5 = vpop.f32.mrb[9].mxu1 }
 0x965   :  { %8151 = vst.msk [vmem:[%s15205_s9 + $0xf70] sm:$0xff] %vm7656_vm7, %v7567_v5 }
 0x966   :  { %v9987_v10 = vpop.f32.mrb[12].mxu0 }
 0x967   :  { %8088 = vst.msk [vmem:[%s15205_s9 + $0xd78] sm:$0xff] %vm7656_vm7, %v9987_v10  ;;  %v6862_v37 = vpop.f32.mrb[13].mxu0 }
 0x968   :  { %8087 = vst.msk [vmem:[%s15205_s9 + $0xd70] sm:$0xff] %vm7656_vm7, %v6862_v37 }
 0x96b   :  { %v10088_v8 = vpop.f32.mrb[10].mxu1 }
 0x96c   :  { %8154 = vst.msk [vmem:[%s15205_s9 + $0xf88] sm:$0xff] %vm7656_vm7, %v10088_v8  ;;  %v7577_v33 = vpop.f32.mrb[11].mxu1 }
 0x96d   :  { %8153 = vst.msk [vmem:[%s15205_s9 + $0xf80] sm:$0xff] %vm7656_vm7, %v7577_v33 }
 0x96e   :  { %v9990_v59 = vpop.f32.mrb[14].mxu0 }
 0x96f   :  { %8090 = vst.msk [vmem:[%s15205_s9 + $0xd88] sm:$0xff] %vm7656_vm7, %v9990_v59  ;;  %v6872_v56 = vpop.f32.mrb[15].mxu0 }
 0x970   :  { %8089 = vst.msk [vmem:[%s15205_s9 + $0xd80] sm:$0xff] %vm7656_vm7, %v6872_v56 }
 0x973   :  { %v10091_v7 = vpop.f32.mrb[12].mxu1 }
 0x974   :  { %8156 = vst.msk [vmem:[%s15205_s9 + $0xf98] sm:$0xff] %vm7656_vm7, %v10091_v7  ;;  %v7587_v53 = vpop.f32.mrb[13].mxu1 }
 0x975   :  { %8155 = vst.msk [vmem:[%s15205_s9 + $0xf90] sm:$0xff] %vm7656_vm7, %v7587_v53 }
 0x976   :  { %v9993_v46 = vpop.f32.mrb[16].mxu0 }
 0x977   :  { %8092 = vst.msk [vmem:[%s15205_s9 + $0xd98] sm:$0xff] %vm7656_vm7, %v9993_v46  ;;  %v6882_v32 = vpop.f32.mrb[17].mxu0 }
 0x978   :  { %8091 = vst.msk [vmem:[%s15205_s9 + $0xd90] sm:$0xff] %vm7656_vm7, %v6882_v32 }
 0x97b   :  { %v10094_v30 = vpop.f32.mrb[14].mxu1 }
 0x97c   :  { %8158 = vst.msk [vmem:[%s15205_s9 + $0xfa8] sm:$0xff] %vm7656_vm7, %v10094_v30  ;;  %v7597_v29 = vpop.f32.mrb[15].mxu1 }
 0x97d   :  { %8157 = vst.msk [vmem:[%s15205_s9 + $0xfa0] sm:$0xff] %vm7656_vm7, %v7597_v29 }
 0x97e   :  { %v9996_v45 = vpop.f32.mrb[18].mxu0 }
 0x97f   :  { %8094 = vst.msk [vmem:[%s15205_s9 + $0xda8] sm:$0xff] %vm7656_vm7, %v9996_v45  ;;  %v6892_v14 = vpop.f32.mrb[19].mxu0 }
 0x980   :  { %8093 = vst.msk [vmem:[%s15205_s9 + $0xda0] sm:$0xff] %vm7656_vm7, %v6892_v14 }
 0x983   :  { %v10097_v1 = vpop.f32.mrb[16].mxu1 }
 0x984   :  { %8160 = vst.msk [vmem:[%s15205_s9 + $0xfb8] sm:$0xff] %vm7656_vm7, %v10097_v1  ;;  %v7607_v63 = vpop.f32.mrb[17].mxu1 }
 0x985   :  { %8159 = vst.msk [vmem:[%s15205_s9 + $0xfb0] sm:$0xff] %vm7656_vm7, %v7607_v63 }
 0x986   :  { %v9999_v27 = vpop.f32.mrb[20].mxu0 }
 0x987   :  { %8096 = vst.msk [vmem:[%s15205_s9 + $0xdb8] sm:$0xff] %vm7656_vm7, %v9999_v27  ;;  %v6902_v9 = vpop.f32.mrb[21].mxu0 }
 0x988   :  { %8095 = vst.msk [vmem:[%s15205_s9 + $0xdb0] sm:$0xff] %vm7656_vm7, %v6902_v9 }
 0x98b   :  { %v10100_v22 = vpop.f32.mrb[18].mxu1 }
 0x98c   :  { %8162 = vst.msk [vmem:[%s15205_s9 + $0xfc8] sm:$0xff] %vm7656_vm7, %v10100_v22  ;;  %v7617_v50 = vpop.f32.mrb[19].mxu1 }
 0x98d   :  { %8161 = vst.msk [vmem:[%s15205_s9 + $0xfc0] sm:$0xff] %vm7656_vm7, %v7617_v50 }
 0x98e   :  { %v10002_v38 = vpop.f32.mrb[22].mxu0 }
 0x98f   :  { %8098 = vst.msk [vmem:[%s15205_s9 + $0xdc8] sm:$0xff] %vm7656_vm7, %v10002_v38  ;;  %v6912_v2 = vpop.f32.mrb[23].mxu0 }
 0x990   :  { %8097 = vst.msk [vmem:[%s15205_s9 + $0xdc0] sm:$0xff] %vm7656_vm7, %v6912_v2 }
 0x993   :  { %v10103_v20 = vpop.f32.mrb[20].mxu1 }
 0x994   :  { %8164 = vst.msk [vmem:[%s15205_s9 + $0xfd8] sm:$0xff] %vm7656_vm7, %v10103_v20  ;;  %v7627_v11 = vpop.f32.mrb[21].mxu1 }
 0x995   :  { %8163 = vst.msk [vmem:[%s15205_s9 + $0xfd0] sm:$0xff] %vm7656_vm7, %v7627_v11 }
 0x996   :  { %v10005_v54 = vpop.f32.mrb[24].mxu0 }
 0x997   :  { %8100 = vst.msk [vmem:[%s15205_s9 + $0xdd8] sm:$0xff] %vm7656_vm7, %v10005_v54  ;;  %v6922_v13 = vpop.f32.mrb[25].mxu0 }
 0x998   :  { %8099 = vst.msk [vmem:[%s15205_s9 + $0xdd0] sm:$0xff] %vm7656_vm7, %v6922_v13 }
 0x99b   :  { %v10106_v60 = vpop.f32.mrb[22].mxu1 }
 0x99c   :  { %8166 = vst.msk [vmem:[%s15205_s9 + $0xfe8] sm:$0xff] %vm7656_vm7, %v10106_v60  ;;  %v7637_v41 = vpop.f32.mrb[23].mxu1 }
 0x99d   :  { %8165 = vst.msk [vmem:[%s15205_s9 + $0xfe0] sm:$0xff] %vm7656_vm7, %v7637_v41 }
 0x99e   :  { %v10008_v62 = vpop.f32.mrb[26].mxu0 }
 0x99f   :  { %8102 = vst.msk [vmem:[%s15205_s9 + $0xde8] sm:$0xff] %vm7656_vm7, %v10008_v62  ;;  %v6932_v42 = vpop.f32.mrb[27].mxu0 }
 0x9a0   :  { %8101 = vst.msk [vmem:[%s15205_s9 + $0xde0] sm:$0xff] %vm7656_vm7, %v6932_v42 }
 0x9a3   :  { %v10109_v12 = vpop.f32.mrb[24].mxu1 }
 0x9a4   :  { %8168 = vst.msk [vmem:[%s15205_s9 + $0xff8] sm:$0xff] %vm7656_vm7, %v10109_v12  ;;  %v7647_v55 = vpop.f32.mrb[25].mxu1 }
 0x9a5   :  { %8167 = vst.msk [vmem:[%s15205_s9 + $0xff0] sm:$0xff] %vm7656_vm7, %v7647_v55 }
 0x9a6   :  { %v10011_v6 = vpop.f32.mrb[28].mxu0 }
 0x9a7   :  { %8104 = vst.msk [vmem:[%s15205_s9 + $0xdf8] sm:$0xff] %vm7656_vm7, %v10011_v6  ;;  %v6942_v49 = vpop.f32.mrb[29].mxu0 }
 0x9a8   :  { %8103 = vst.msk [vmem:[%s15205_s9 + $0xdf0] sm:$0xff] %vm7656_vm7, %v6942_v49 }
 0x9a9   :  { %8173 = vsyncpa [#allocation3], 1 }
 0x9aa   :  { %8174 = vsyncpa [#allocation5], 1 }
 0x9ab   :  { %8175 = vsyncpa [#allocation8], 1 }
 0x9ac   :  { %8176 = vsyncpa [#allocation11], 1 }
 0x9ad   :  { %8177 = vsyncpa [#allocation14], 1 }

</bundles_post_ra>
